<compile_context>
chip_gen: v6e
topology: v6e:2x2x1
jax: 0.10.0
libtpu: 0.0.40
codegen_flags: <defaults>
</compile_context>

<pallas_src>
import jax
import jax.numpy as jnp
from jax.experimental import pallas as pl
from jax.experimental.pallas import tpu as pltpu

# ----- Model dimensions (from the PyTorch module) -----
N_INPUT = 784        # stays un-padded (block last dim == full array dim)
H_ENC = 200          # h1_enc == h2_enc == h1_dec == h2_dec == 200
LATENT = 32

# ----- Lane-padded dims (multiples of 128) for the hidden layers only -----
H_PAD = 256          # 200 -> 2 * 128
HEAD_PAD = 128       # fused [mu | sigma] head (2 * 32) padded to one lane group
LAT_SLAB = 128       # packed latent output slab: [mu | logvar | z | pad]


def _round_up(n, m):
    return ((n + m - 1) // m) * m


def _softplus(t):
    # torch.nn.Softplus(beta=1): log(1 + exp(t)); logaddexp is the numerically stable form.
    return jnp.logaddexp(t, 0.0)


def _dense(h, w_ref, b_ref):
    # Cast the activation operand to the weight dtype (bf16 recommended on every TPU
    # generation: the MXU is bf16-native on v5e/v6e/v7x), accumulate in f32, keep the
    # bias add and all elementwise math in f32.
    return jnp.dot(h.astype(w_ref.dtype), w_ref[...],
                   preferred_element_type=jnp.float32) + b_ref[...]


def vae_kernel(x_ref, eps_ref,
               w1e_ref, b1e_ref, w2e_ref, b2e_ref,
               wz_ref, bz_ref,
               w1d_ref, b1d_ref, w2d_ref, b2d_ref,
               wout_ref, bout_ref,
               recon_ref, lat_ref):
    # Padding invariant: hidden-activation columns [200, 256) carry softplus(0) = ln(2),
    # NOT zero.  Correctness relies on the *next* layer's weight rows [200, 256) being
    # zero-padded so those columns cancel.  Every weight in prepare_params is padded that
    # way; do not change the padding scheme without re-checking this invariant.
    x = x_ref[...]

    # ----- encoder -----
    h = _softplus(_dense(x, w1e_ref, b1e_ref))
    h = _softplus(_dense(h, w2e_ref, b2e_ref))

    # Fused latent heads: one (H_PAD, 128) matmul; mu / sigma sliced in-register.
    head = _softplus(_dense(h, wz_ref, bz_ref))
    mu = head[:, :LATENT]
    sig = head[:, LATENT:2 * LATENT]

    # logvar = log(sig^2) == 2*log(sig); sqrt(exp(logvar)) == sig (valid: sig = softplus > 0).
    logvar = 2.0 * jnp.log(sig)
    z = mu + eps_ref[...] * sig

    # ----- decoder -----
    d = _softplus(_dense(z, w1d_ref, b1d_ref))
    d = _softplus(_dense(d, w2d_ref, b2d_ref))
    logits = _dense(d, wout_ref, bout_ref)
    # sigmoid(t) == 0.5 * (1 + tanh(t/2)): a single EUP op on the 784-wide output instead of
    # exp + divide (matters most on v7x, free filler elsewhere).
    recon_ref[...] = (0.5 * (1.0 + jnp.tanh(0.5 * logits))).astype(recon_ref.dtype)

    # Lane-dense packed latent slab: [mu | logvar | z | pad] -> one 128-wide store.
    pad = jnp.zeros((mu.shape[0], LAT_SLAB - 3 * LATENT), jnp.float32)
    lat_ref[...] = jnp.concatenate([mu, logvar, z, pad], axis=-1)


def _pad2(a, rows, cols, dtype=None):
    a = jnp.pad(a, ((0, rows - a.shape[0]), (0, cols - a.shape[1])))
    return a if dtype is None else a.astype(dtype)


def prepare_params(params, weight_dtype=jnp.bfloat16):
    """One-time weight preprocessing (hoisted out of the per-call forward path): fuse the
    two latent heads, zero-pad hidden dims to lane multiples, cast weights to weight_dtype.
    Biases stay f32 (added to the f32 accumulator)."""
    w_z = jnp.concatenate([params["W_z_mean"], params["W_z_sigma"]], axis=1)   # (200, 64)
    b_z = jnp.concatenate([params["b_z_mean"], params["b_z_sigma"]], axis=0)   # (64,)
    wdt = weight_dtype
    return (
        _pad2(params["W1_enc"], N_INPUT, H_PAD, wdt),          # (784, 256)
        _pad2(params["b1_enc"].reshape(1, -1), 1, H_PAD),
        _pad2(params["W2_enc"], H_PAD, H_PAD, wdt),            # (256, 256)
        _pad2(params["b2_enc"].reshape(1, -1), 1, H_PAD),
        _pad2(w_z, H_PAD, HEAD_PAD, wdt),                      # (256, 128)
        _pad2(b_z.reshape(1, -1), 1, HEAD_PAD),
        _pad2(params["W1_dec"], LATENT, H_PAD, wdt),           # (32, 256)
        _pad2(params["b1_dec"].reshape(1, -1), 1, H_PAD),
        _pad2(params["W2_dec"], H_PAD, H_PAD, wdt),            # (256, 256)
        _pad2(params["b2_dec"].reshape(1, -1), 1, H_PAD),
        _pad2(params["W_out"], H_PAD, N_INPUT, wdt),           # (256, 784)
        _pad2(params["b_out"].reshape(1, -1), 1, N_INPUT),
    )


def vae_forward(x, eps, prepped, *, tile_m=512):
    """x: (B, 784), eps: (B, 32), prepped: output of prepare_params.

    Returns (reconstruction, z, mu, logvar) exactly as VAE.forward does.
    recon has x.dtype (feed bf16 x to halve streamed HBM traffic on v5e/v6e);
    z / mu / logvar are f32.
    """
    B = x.shape[0]
    tm = min(tile_m, _round_up(B, 8))
    # Keep >= 2 grid steps where possible so the "parallel" batch axis gives the v7x
    # megacore (2 TCs/chip) work for both cores; harmless on single-TC v5e/v6e.
    if B > 8:
        tm = min(tm, max(8, _round_up(-(-B // 2), 8)))
    B_pad = _round_up(B, tm)
    grid = (B_pad // tm,)

    eps = eps.astype(jnp.float32)
    if B_pad != B:
        x = jnp.pad(x, ((0, B_pad - B), (0, 0)))
        eps = jnp.pad(eps, ((0, B_pad - B), (0, 0)))

    # TODO(synk): eps could be generated in-kernel (pltpu.prng_seed + pltpu.stateful_normal,
    # seeded per program_id) to drop this input stream; kept explicit here for determinism.
    args = (x, eps) + tuple(prepped)

    def row_spec(ncols):
        return pl.BlockSpec((tm, ncols), lambda i: (i, 0))

    def const_spec(a):
        # Same block index every grid step -> weight/bias stays VMEM-resident (no re-DMA).
        # TODO(synk): pipeline_mode=pl.Buffered(1) would halve the constant-buffer VMEM;
        # not needed at this size (total footprint ~12 MiB at tm=512).
        return pl.BlockSpec(a.shape, lambda i: (0, 0))

    in_specs = [row_spec(N_INPUT), row_spec(LATENT)] + [const_spec(a) for a in args[2:]]
    out_specs = (row_spec(N_INPUT), row_spec(LAT_SLAB))
    out_shape = (jax.ShapeDtypeStruct((B_pad, N_INPUT), x.dtype),
                 jax.ShapeDtypeStruct((B_pad, LAT_SLAB), jnp.float32))

    flops = 2 * B_pad * (N_INPUT * H_PAD + H_PAD * H_PAD + H_PAD * HEAD_PAD
                         + LATENT * H_PAD + H_PAD * H_PAD + H_PAD * N_INPUT)
    # softplus ~= 2 EUP ops/elem (exp + log1p), log ~= 1, tanh ~= 1.
    transcendentals = B_pad * (2 * (4 * H_PAD + HEAD_PAD) + LATENT + N_INPUT)
    bytes_weights = sum(int(a.size) * a.dtype.itemsize for a in args[2:])
    bytes_io = (int(x.size) * x.dtype.itemsize            # x in
                + int(eps.size) * 4                       # eps in
                + B_pad * N_INPUT * x.dtype.itemsize      # recon out
                + B_pad * LAT_SLAB * 4)                   # latent slab out
    cost = pl.CostEstimate(flops=int(flops), transcendentals=int(transcendentals),
                           bytes_accessed=int(bytes_weights + bytes_io))

    recon_p, lat = pl.pallas_call(
        vae_kernel,
        grid=grid,
        out_shape=out_shape,
        in_specs=in_specs,
        out_specs=out_specs,
        compiler_params=pltpu.CompilerParams(
            dimension_semantics=("parallel",),      # shard batch tiles across TCs on v7x
            vmem_limit_bytes=48 * 1024 * 1024,      # headroom under v7x's 64 MiB VMEM
        ),
        cost_estimate=cost,
    )(*args)

    recon = recon_p if B_pad == B else recon_p[:B]
    mu = lat[:B, 0:LATENT]
    logvar = lat[:B, LATENT:2 * LATENT]
    z = lat[:B, 2 * LATENT:3 * LATENT]
    return recon, z, mu, logvar


def xavier_uniform(key, fan_in, fan_out):
    bound = (6.0 / (fan_in + fan_out)) ** 0.5
    return jax.random.uniform(key, (fan_in, fan_out), jnp.float32,
                              minval=-bound, maxval=bound)


def init_params(key):
    ks = jax.random.split(key, 7)
    return {
        "W1_enc": xavier_uniform(ks[0], N_INPUT, H_ENC),
        "b1_enc": jnp.zeros((H_ENC,), jnp.float32),
        "W2_enc": xavier_uniform(ks[1], H_ENC, H_ENC),
        "b2_enc": jnp.zeros((H_ENC,), jnp.float32),
        "W_z_mean": xavier_uniform(ks[2], H_ENC, LATENT),
        "b_z_mean": jnp.zeros((LATENT,), jnp.float32),
        "W_z_sigma": xavier_uniform(ks[3], H_ENC, LATENT),
        "b_z_sigma": jnp.zeros((LATENT,), jnp.float32),
        "W1_dec": xavier_uniform(ks[4], LATENT, H_ENC),
        "b1_dec": jnp.zeros((H_ENC,), jnp.float32),
        "W2_dec": xavier_uniform(ks[5], H_ENC, H_ENC),
        "b2_dec": jnp.zeros((H_ENC,), jnp.float32),
        "W_out": xavier_uniform(ks[6], H_ENC, N_INPUT),
        "b_out": jnp.zeros((N_INPUT,), jnp.float32),
    }


def reference_forward(x, eps, p):
    """Pure-JAX reference mirroring the PyTorch forward exactly (incl. log(sig^2) round-trip)."""
    sp = lambda t: jnp.logaddexp(t, 0.0)
    h = sp(x @ p["W1_enc"] + p["b1_enc"])
    h = sp(h @ p["W2_enc"] + p["b2_enc"])
    mu = sp(h @ p["W_z_mean"] + p["b_z_mean"])
    sig = sp(h @ p["W_z_sigma"] + p["b_z_sigma"])
    logvar = jnp.log(sig ** 2)
    z = mu + eps * jnp.sqrt(jnp.exp(logvar))
    d = sp(z @ p["W1_dec"] + p["b1_dec"])
    d = sp(d @ p["W2_dec"] + p["b2_dec"])
    recon = jax.nn.sigmoid(d @ p["W_out"] + p["b_out"])
    return recon, z, mu, logvar


if __name__ == "__main__":
    key = jax.random.PRNGKey(0)
    k_param, k_x, k_eps = jax.random.split(key, 3)

    B = 256                                   # exercises the batch grid: 2 tiles of 128 rows
    params = init_params(k_param)
    x = jax.random.uniform(k_x, (B, N_INPUT), jnp.float32)     # MNIST-like pixels in [0,1]
    # Reparametrization noise (torch samples Normal(0,1) inside forward; supplied here for
    # determinism against the reference).
    eps = jax.random.normal(k_eps, (B, LATENT), jnp.float32)

    r_ref, z_ref, mu_ref, lv_ref = reference_forward(x, eps, params)
    fwd = jax.jit(vae_forward)

    # ---- f32-weight path: exact forward-pass semantics, strict check ----
    prepped_f32 = prepare_params(params, weight_dtype=jnp.float32)
    recon, z, mu, logvar = fwd(x, eps, prepped_f32)
    jax.block_until_ready((recon, z, mu, logvar))
    assert jnp.allclose(recon, r_ref, atol=1e-5, rtol=1e-5)
    assert jnp.allclose(z, z_ref, atol=1e-5, rtol=1e-5)
    assert jnp.allclose(mu, mu_ref, atol=1e-5, rtol=1e-5)
    assert jnp.allclose(logvar, lv_ref, atol=1e-5, rtol=1e-5)

    # ---- bf16-weight path (MXU fast path on v5e/v6e/v7x), loose sanity check ----
    prepped_bf16 = prepare_params(params, weight_dtype=jnp.bfloat16)
    recon16, z16, mu16, lv16 = fwd(x, eps, prepped_bf16)
    jax.block_until_ready((recon16, z16, mu16, lv16))
    assert jnp.allclose(recon16, r_ref, atol=1e-1, rtol=1e-1)
    assert jnp.allclose(mu16, mu_ref, atol=1e-1, rtol=1e-1)
    assert bool(jnp.all(jnp.isfinite(z16)) and jnp.all(jnp.isfinite(lv16)))

    # ---- fully-bf16 streamed I/O (bf16 x in, bf16 recon out): halves HBM traffic on v5e/v6e ----
    recon_io, z_io, mu_io, lv_io = fwd(x.astype(jnp.bfloat16), eps, prepped_bf16)
    jax.block_until_ready((recon_io, z_io, mu_io, lv_io))
    assert recon_io.dtype == jnp.bfloat16
    assert jnp.allclose(recon_io.astype(jnp.float32), r_ref, atol=1e-1, rtol=1e-1)
    assert bool(jnp.all(jnp.isfinite(recon_io.astype(jnp.float32))))

    print("KERNEL_OK")
</pallas_src>

<mosaic_0001>
module attributes {stable_mosaic.version = 11 : i64} {
  func.func @vae_kernel(%arg0: i32, %arg1: memref<128x784xf32, #tpu.memory_space<vmem>>, %arg2: memref<128x32xf32, #tpu.memory_space<vmem>>, %arg3: memref<784x256xf32, #tpu.memory_space<vmem>>, %arg4: memref<1x256xf32, #tpu.memory_space<vmem>>, %arg5: memref<256x256xf32, #tpu.memory_space<vmem>>, %arg6: memref<1x256xf32, #tpu.memory_space<vmem>>, %arg7: memref<256x128xf32, #tpu.memory_space<vmem>>, %arg8: memref<1x128xf32, #tpu.memory_space<vmem>>, %arg9: memref<32x256xf32, #tpu.memory_space<vmem>>, %arg10: memref<1x256xf32, #tpu.memory_space<vmem>>, %arg11: memref<256x256xf32, #tpu.memory_space<vmem>>, %arg12: memref<1x256xf32, #tpu.memory_space<vmem>>, %arg13: memref<256x784xf32, #tpu.memory_space<vmem>>, %arg14: memref<1x784xf32, #tpu.memory_space<vmem>>, %arg15: memref<128x784xf32, #tpu.memory_space<vmem>>, %arg16: memref<128x128xf32, #tpu.memory_space<vmem>>) attributes {dimension_semantics = [#tpu.dimension_semantics<parallel>], iteration_bounds = array<i64: 2>, scalar_prefetch = 0 : i64, scratch_operands = 0 : i64, tpu.core_type = #tpu.core_type<tc>, window_params = [{transform_indices = @transform_0, window_bounds = array<i64: 128, 784>}, {transform_indices = @transform_1, window_bounds = array<i64: 128, 32>}, {pipeline_mode = #tpu.pipeline_mode<synchronous>, transform_indices = @transform_2, window_bounds = array<i64: 784, 256>}, {pipeline_mode = #tpu.pipeline_mode<synchronous>, transform_indices = @transform_3, window_bounds = array<i64: 1, 256>}, {pipeline_mode = #tpu.pipeline_mode<synchronous>, transform_indices = @transform_4, window_bounds = array<i64: 256, 256>}, {pipeline_mode = #tpu.pipeline_mode<synchronous>, transform_indices = @transform_5, window_bounds = array<i64: 1, 256>}, {pipeline_mode = #tpu.pipeline_mode<synchronous>, transform_indices = @transform_6, window_bounds = array<i64: 256, 128>}, {pipeline_mode = #tpu.pipeline_mode<synchronous>, transform_indices = @transform_7, window_bounds = array<i64: 1, 128>}, {pipeline_mode = #tpu.pipeline_mode<synchronous>, transform_indices = @transform_8, window_bounds = array<i64: 32, 256>}, {pipeline_mode = #tpu.pipeline_mode<synchronous>, transform_indices = @transform_9, window_bounds = array<i64: 1, 256>}, {pipeline_mode = #tpu.pipeline_mode<synchronous>, transform_indices = @transform_10, window_bounds = array<i64: 256, 256>}, {pipeline_mode = #tpu.pipeline_mode<synchronous>, transform_indices = @transform_11, window_bounds = array<i64: 1, 256>}, {pipeline_mode = #tpu.pipeline_mode<synchronous>, transform_indices = @transform_12, window_bounds = array<i64: 256, 784>}, {pipeline_mode = #tpu.pipeline_mode<synchronous>, transform_indices = @transform_13, window_bounds = array<i64: 1, 784>}, {transform_indices = @transform_14, window_bounds = array<i64: 128, 784>}, {transform_indices = @transform_15, window_bounds = array<i64: 128, 128>}]} {
    %c0 = arith.constant 0 : index
    %c0_0 = arith.constant 0 : index
    %0 = vector.load %arg1[%c0, %c0_0] : memref<128x784xf32, #tpu.memory_space<vmem>>, vector<128x784xf32>
    %c0_1 = arith.constant 0 : index
    %c0_2 = arith.constant 0 : index
    %1 = vector.load %arg3[%c0_1, %c0_2] : memref<784x256xf32, #tpu.memory_space<vmem>>, vector<784x256xf32>
    %cst = arith.constant dense<0.000000e+00> : vector<128x256xf32>
    %2 = tpu.matmul %0, %1, %cst {dimension_numbers = #tpu.dot_dimension_numbers<[1], [0], [0], [1], [0, 0, 1, 1], [], []>} : vector<128x784xf32>, vector<784x256xf32>, vector<128x256xf32> -> vector<128x256xf32>
    %c0_3 = arith.constant 0 : index
    %c0_4 = arith.constant 0 : index
    %3 = vector.load %arg4[%c0_3, %c0_4] : memref<1x256xf32, #tpu.memory_space<vmem>>, vector<1x256xf32>
    %4 = vector.broadcast %3 : vector<1x256xf32> to vector<128x256xf32>
    %5 = arith.addf %2, %4 : vector<128x256xf32>
    %cst_5 = arith.constant 0.000000e+00 : f32
    %6 = vector.broadcast %cst_5 : f32 to vector<128x256xf32>
    %7 = arith.maximumf %5, %6 : vector<128x256xf32>
    %8 = vector.broadcast %cst_5 : f32 to vector<128x256xf32>
    %9 = arith.subf %5, %8 : vector<128x256xf32>
    %10 = arith.cmpf one, %9, %9 : vector<128x256xf32>
    %11 = vector.broadcast %cst_5 : f32 to vector<128x256xf32>
    %12 = arith.addf %5, %11 : vector<128x256xf32>
    %13 = math.absf %9 : vector<128x256xf32>
    %cst_6 = arith.constant 0.000000e+00 : f32
    %14 = vector.broadcast %cst_6 : f32 to vector<128x256xf32>
    %15 = arith.subf %14, %13 : vector<128x256xf32>
    %16 = math.exp %15 : vector<128x256xf32>
    %17 = math.log1p %16 : vector<128x256xf32>
    %18 = arith.addf %7, %17 : vector<128x256xf32>
    %19 = arith.select %10, %12, %18 : vector<128x256xi1>, vector<128x256xf32>
    %c0_7 = arith.constant 0 : index
    %c0_8 = arith.constant 0 : index
    %20 = vector.load %arg5[%c0_7, %c0_8] : memref<256x256xf32, #tpu.memory_space<vmem>>, vector<256x256xf32>
    %cst_9 = arith.constant dense<0.000000e+00> : vector<128x256xf32>
    %21 = tpu.matmul %19, %20, %cst_9 {dimension_numbers = #tpu.dot_dimension_numbers<[1], [0], [0], [1], [0, 0, 1, 1], [], []>} : vector<128x256xf32>, vector<256x256xf32>, vector<128x256xf32> -> vector<128x256xf32>
    %c0_10 = arith.constant 0 : index
    %c0_11 = arith.constant 0 : index
    %22 = vector.load %arg6[%c0_10, %c0_11] : memref<1x256xf32, #tpu.memory_space<vmem>>, vector<1x256xf32>
    %23 = vector.broadcast %22 : vector<1x256xf32> to vector<128x256xf32>
    %24 = arith.addf %21, %23 : vector<128x256xf32>
    %cst_12 = arith.constant 0.000000e+00 : f32
    %25 = vector.broadcast %cst_12 : f32 to vector<128x256xf32>
    %26 = arith.maximumf %24, %25 : vector<128x256xf32>
    %27 = vector.broadcast %cst_12 : f32 to vector<128x256xf32>
    %28 = arith.subf %24, %27 : vector<128x256xf32>
    %29 = arith.cmpf one, %28, %28 : vector<128x256xf32>
    %30 = vector.broadcast %cst_12 : f32 to vector<128x256xf32>
    %31 = arith.addf %24, %30 : vector<128x256xf32>
    %32 = math.absf %28 : vector<128x256xf32>
    %cst_13 = arith.constant 0.000000e+00 : f32
    %33 = vector.broadcast %cst_13 : f32 to vector<128x256xf32>
    %34 = arith.subf %33, %32 : vector<128x256xf32>
    %35 = math.exp %34 : vector<128x256xf32>
    %36 = math.log1p %35 : vector<128x256xf32>
    %37 = arith.addf %26, %36 : vector<128x256xf32>
    %38 = arith.select %29, %31, %37 : vector<128x256xi1>, vector<128x256xf32>
    %c0_14 = arith.constant 0 : index
    %c0_15 = arith.constant 0 : index
    %39 = vector.load %arg7[%c0_14, %c0_15] : memref<256x128xf32, #tpu.memory_space<vmem>>, vector<256x128xf32>
    %cst_16 = arith.constant dense<0.000000e+00> : vector<128x128xf32>
    %40 = tpu.matmul %38, %39, %cst_16 {dimension_numbers = #tpu.dot_dimension_numbers<[1], [0], [0], [1], [0, 0, 1, 1], [], []>} : vector<128x256xf32>, vector<256x128xf32>, vector<128x128xf32> -> vector<128x128xf32>
    %c0_17 = arith.constant 0 : index
    %c0_18 = arith.constant 0 : index
    %41 = vector.load %arg8[%c0_17, %c0_18] : memref<1x128xf32, #tpu.memory_space<vmem>>, vector<1x128xf32>
    %42 = vector.broadcast %41 : vector<1x128xf32> to vector<128x128xf32>
    %43 = arith.addf %40, %42 : vector<128x128xf32>
    %cst_19 = arith.constant 0.000000e+00 : f32
    %44 = vector.broadcast %cst_19 : f32 to vector<128x128xf32>
    %45 = arith.maximumf %43, %44 : vector<128x128xf32>
    %46 = vector.broadcast %cst_19 : f32 to vector<128x128xf32>
    %47 = arith.subf %43, %46 : vector<128x128xf32>
    %48 = arith.cmpf one, %47, %47 : vector<128x128xf32>
    %49 = vector.broadcast %cst_19 : f32 to vector<128x128xf32>
    %50 = arith.addf %43, %49 : vector<128x128xf32>
    %51 = math.absf %47 : vector<128x128xf32>
    %cst_20 = arith.constant 0.000000e+00 : f32
    %52 = vector.broadcast %cst_20 : f32 to vector<128x128xf32>
    %53 = arith.subf %52, %51 : vector<128x128xf32>
    %54 = math.exp %53 : vector<128x128xf32>
    %55 = math.log1p %54 : vector<128x128xf32>
    %56 = arith.addf %45, %55 : vector<128x128xf32>
    %57 = arith.select %48, %50, %56 : vector<128x128xi1>, vector<128x128xf32>
    %58 = vector.extract_strided_slice %57 {offsets = [0, 0], sizes = [128, 32], strides = [1, 1]} : vector<128x128xf32> to vector<128x32xf32>
    %59 = vector.extract_strided_slice %57 {offsets = [0, 32], sizes = [128, 32], strides = [1, 1]} : vector<128x128xf32> to vector<128x32xf32>
    %60 = math.log %59 : vector<128x32xf32>
    %cst_21 = arith.constant 2.000000e+00 : f32
    %61 = vector.broadcast %cst_21 : f32 to vector<128x32xf32>
    %62 = arith.mulf %61, %60 : vector<128x32xf32>
    %c0_22 = arith.constant 0 : index
    %c0_23 = arith.constant 0 : index
    %63 = vector.load %arg2[%c0_22, %c0_23] : memref<128x32xf32, #tpu.memory_space<vmem>>, vector<128x32xf32>
    %64 = arith.mulf %63, %59 : vector<128x32xf32>
    %65 = arith.addf %58, %64 : vector<128x32xf32>
    %c0_24 = arith.constant 0 : index
    %c0_25 = arith.constant 0 : index
    %66 = vector.load %arg9[%c0_24, %c0_25] : memref<32x256xf32, #tpu.memory_space<vmem>>, vector<32x256xf32>
    %cst_26 = arith.constant dense<0.000000e+00> : vector<128x256xf32>
    %67 = tpu.matmul %65, %66, %cst_26 {dimension_numbers = #tpu.dot_dimension_numbers<[1], [0], [0], [1], [0, 0, 1, 1], [], []>} : vector<128x32xf32>, vector<32x256xf32>, vector<128x256xf32> -> vector<128x256xf32>
    %c0_27 = arith.constant 0 : index
    %c0_28 = arith.constant 0 : index
    %68 = vector.load %arg10[%c0_27, %c0_28] : memref<1x256xf32, #tpu.memory_space<vmem>>, vector<1x256xf32>
    %69 = vector.broadcast %68 : vector<1x256xf32> to vector<128x256xf32>
    %70 = arith.addf %67, %69 : vector<128x256xf32>
    %cst_29 = arith.constant 0.000000e+00 : f32
    %71 = vector.broadcast %cst_29 : f32 to vector<128x256xf32>
    %72 = arith.maximumf %70, %71 : vector<128x256xf32>
    %73 = vector.broadcast %cst_29 : f32 to vector<128x256xf32>
    %74 = arith.subf %70, %73 : vector<128x256xf32>
    %75 = arith.cmpf one, %74, %74 : vector<128x256xf32>
    %76 = vector.broadcast %cst_29 : f32 to vector<128x256xf32>
    %77 = arith.addf %70, %76 : vector<128x256xf32>
    %78 = math.absf %74 : vector<128x256xf32>
    %cst_30 = arith.constant 0.000000e+00 : f32
    %79 = vector.broadcast %cst_30 : f32 to vector<128x256xf32>
    %80 = arith.subf %79, %78 : vector<128x256xf32>
    %81 = math.exp %80 : vector<128x256xf32>
    %82 = math.log1p %81 : vector<128x256xf32>
    %83 = arith.addf %72, %82 : vector<128x256xf32>
    %84 = arith.select %75, %77, %83 : vector<128x256xi1>, vector<128x256xf32>
    %c0_31 = arith.constant 0 : index
    %c0_32 = arith.constant 0 : index
    %85 = vector.load %arg11[%c0_31, %c0_32] : memref<256x256xf32, #tpu.memory_space<vmem>>, vector<256x256xf32>
    %cst_33 = arith.constant dense<0.000000e+00> : vector<128x256xf32>
    %86 = tpu.matmul %84, %85, %cst_33 {dimension_numbers = #tpu.dot_dimension_numbers<[1], [0], [0], [1], [0, 0, 1, 1], [], []>} : vector<128x256xf32>, vector<256x256xf32>, vector<128x256xf32> -> vector<128x256xf32>
    %c0_34 = arith.constant 0 : index
    %c0_35 = arith.constant 0 : index
    %87 = vector.load %arg12[%c0_34, %c0_35] : memref<1x256xf32, #tpu.memory_space<vmem>>, vector<1x256xf32>
    %88 = vector.broadcast %87 : vector<1x256xf32> to vector<128x256xf32>
    %89 = arith.addf %86, %88 : vector<128x256xf32>
    %cst_36 = arith.constant 0.000000e+00 : f32
    %90 = vector.broadcast %cst_36 : f32 to vector<128x256xf32>
    %91 = arith.maximumf %89, %90 : vector<128x256xf32>
    %92 = vector.broadcast %cst_36 : f32 to vector<128x256xf32>
    %93 = arith.subf %89, %92 : vector<128x256xf32>
    %94 = arith.cmpf one, %93, %93 : vector<128x256xf32>
    %95 = vector.broadcast %cst_36 : f32 to vector<128x256xf32>
    %96 = arith.addf %89, %95 : vector<128x256xf32>
    %97 = math.absf %93 : vector<128x256xf32>
    %cst_37 = arith.constant 0.000000e+00 : f32
    %98 = vector.broadcast %cst_37 : f32 to vector<128x256xf32>
    %99 = arith.subf %98, %97 : vector<128x256xf32>
    %100 = math.exp %99 : vector<128x256xf32>
    %101 = math.log1p %100 : vector<128x256xf32>
    %102 = arith.addf %91, %101 : vector<128x256xf32>
    %103 = arith.select %94, %96, %102 : vector<128x256xi1>, vector<128x256xf32>
    %c0_38 = arith.constant 0 : index
    %c0_39 = arith.constant 0 : index
    %104 = vector.load %arg13[%c0_38, %c0_39] : memref<256x784xf32, #tpu.memory_space<vmem>>, vector<256x784xf32>
    %cst_40 = arith.constant dense<0.000000e+00> : vector<128x784xf32>
    %105 = tpu.matmul %103, %104, %cst_40 {dimension_numbers = #tpu.dot_dimension_numbers<[1], [0], [0], [1], [0, 0, 1, 1], [], []>} : vector<128x256xf32>, vector<256x784xf32>, vector<128x784xf32> -> vector<128x784xf32>
    %c0_41 = arith.constant 0 : index
    %c0_42 = arith.constant 0 : index
    %106 = vector.load %arg14[%c0_41, %c0_42] : memref<1x784xf32, #tpu.memory_space<vmem>>, vector<1x784xf32>
    %107 = vector.broadcast %106 : vector<1x784xf32> to vector<128x784xf32>
    %108 = arith.addf %105, %107 : vector<128x784xf32>
    %cst_43 = arith.constant 5.000000e-01 : f32
    %109 = vector.broadcast %cst_43 : f32 to vector<128x784xf32>
    %110 = arith.mulf %109, %108 : vector<128x784xf32>
    %111 = math.tanh %110 : vector<128x784xf32>
    %cst_44 = arith.constant 1.000000e+00 : f32
    %112 = vector.broadcast %cst_44 : f32 to vector<128x784xf32>
    %113 = arith.addf %112, %111 : vector<128x784xf32>
    %cst_45 = arith.constant 5.000000e-01 : f32
    %114 = vector.broadcast %cst_45 : f32 to vector<128x784xf32>
    %115 = arith.mulf %114, %113 : vector<128x784xf32>
    %c0_46 = arith.constant 0 : index
    %c0_47 = arith.constant 0 : index
    %116 = vector.load %arg15[%c0_46, %c0_47] : memref<128x784xf32, #tpu.memory_space<vmem>>, vector<128x784xf32>
    tpu.vector_store %arg15[%c0_46, %c0_47], %115 {strides = array<i32>} : memref<128x784xf32, #tpu.memory_space<vmem>>, vector<128x784xf32>,
    %cst_48 = arith.constant 0.000000e+00 : f32
    %117 = vector.broadcast %cst_48 : f32 to vector<128x32xf32>
    %118 = tpu.concatenate %58, %62, %65, %117 in 1 : vector<128x32xf32>, vector<128x32xf32>, vector<128x32xf32>, vector<128x32xf32> -> vector<128x128xf32>
    %c0_49 = arith.constant 0 : index
    %c0_50 = arith.constant 0 : index
    %119 = vector.load %arg16[%c0_49, %c0_50] : memref<128x128xf32, #tpu.memory_space<vmem>>, vector<128x128xf32>
    tpu.vector_store %arg16[%c0_49, %c0_50], %118 {strides = array<i32>} : memref<128x128xf32, #tpu.memory_space<vmem>>, vector<128x128xf32>,
    return
  }
  func.func @transform_0(%arg0: i32) -> (i32, i32) {
    %c0_i32 = arith.constant 0 : i32
    %c0_i32_0 = arith.constant 0 : i32
    return %arg0, %c0_i32 : i32, i32
  }
  func.func @transform_1(%arg0: i32) -> (i32, i32) {
    %c0_i32 = arith.constant 0 : i32
    %c0_i32_0 = arith.constant 0 : i32
    return %arg0, %c0_i32 : i32, i32
  }
  func.func @transform_2(%arg0: i32) -> (i32, i32) {
    %c0_i32 = arith.constant 0 : i32
    %c0_i32_0 = arith.constant 0 : i32
    %c0_i32_1 = arith.constant 0 : i32
    return %c0_i32, %c0_i32_0 : i32, i32
  }
  func.func @transform_3(%arg0: i32) -> (i32, i32) {
    %c0_i32 = arith.constant 0 : i32
    %c0_i32_0 = arith.constant 0 : i32
    %c0_i32_1 = arith.constant 0 : i32
    return %c0_i32, %c0_i32_0 : i32, i32
  }
  func.func @transform_4(%arg0: i32) -> (i32, i32) {
    %c0_i32 = arith.constant 0 : i32
    %c0_i32_0 = arith.constant 0 : i32
    %c0_i32_1 = arith.constant 0 : i32
    return %c0_i32, %c0_i32_0 : i32, i32
  }
  func.func @transform_5(%arg0: i32) -> (i32, i32) {
    %c0_i32 = arith.constant 0 : i32
    %c0_i32_0 = arith.constant 0 : i32
    %c0_i32_1 = arith.constant 0 : i32
    return %c0_i32, %c0_i32_0 : i32, i32
  }
  func.func @transform_6(%arg0: i32) -> (i32, i32) {
    %c0_i32 = arith.constant 0 : i32
    %c0_i32_0 = arith.constant 0 : i32
    %c0_i32_1 = arith.constant 0 : i32
    return %c0_i32, %c0_i32_0 : i32, i32
  }
  func.func @transform_7(%arg0: i32) -> (i32, i32) {
    %c0_i32 = arith.constant 0 : i32
    %c0_i32_0 = arith.constant 0 : i32
    %c0_i32_1 = arith.constant 0 : i32
    return %c0_i32, %c0_i32_0 : i32, i32
  }
  func.func @transform_8(%arg0: i32) -> (i32, i32) {
    %c0_i32 = arith.constant 0 : i32
    %c0_i32_0 = arith.constant 0 : i32
    %c0_i32_1 = arith.constant 0 : i32
    return %c0_i32, %c0_i32_0 : i32, i32
  }
  func.func @transform_9(%arg0: i32) -> (i32, i32) {
    %c0_i32 = arith.constant 0 : i32
    %c0_i32_0 = arith.constant 0 : i32
    %c0_i32_1 = arith.constant 0 : i32
    return %c0_i32, %c0_i32_0 : i32, i32
  }
  func.func @transform_10(%arg0: i32) -> (i32, i32) {
    %c0_i32 = arith.constant 0 : i32
    %c0_i32_0 = arith.constant 0 : i32
    %c0_i32_1 = arith.constant 0 : i32
    return %c0_i32, %c0_i32_0 : i32, i32
  }
  func.func @transform_11(%arg0: i32) -> (i32, i32) {
    %c0_i32 = arith.constant 0 : i32
    %c0_i32_0 = arith.constant 0 : i32
    %c0_i32_1 = arith.constant 0 : i32
    return %c0_i32, %c0_i32_0 : i32, i32
  }
  func.func @transform_12(%arg0: i32) -> (i32, i32) {
    %c0_i32 = arith.constant 0 : i32
    %c0_i32_0 = arith.constant 0 : i32
    %c0_i32_1 = arith.constant 0 : i32
    return %c0_i32, %c0_i32_0 : i32, i32
  }
  func.func @transform_13(%arg0: i32) -> (i32, i32) {
    %c0_i32 = arith.constant 0 : i32
    %c0_i32_0 = arith.constant 0 : i32
    %c0_i32_1 = arith.constant 0 : i32
    return %c0_i32, %c0_i32_0 : i32, i32
  }
  func.func @transform_14(%arg0: i32) -> (i32, i32) {
    %c0_i32 = arith.constant 0 : i32
    %c0_i32_0 = arith.constant 0 : i32
    return %arg0, %c0_i32 : i32, i32
  }
  func.func @transform_15(%arg0: i32) -> (i32, i32) {
    %c0_i32 = arith.constant 0 : i32
    %c0_i32_0 = arith.constant 0 : i32
    return %arg0, %c0_i32 : i32, i32
  }
}

</mosaic_0001>

<bundles_post_ra>
// kernel: vae_forward.1
= control target key start
LH: loop header
LB: loop body
LE: loop exit
PB: predicated region body
PF: predicated region fallthrough
CT: control target
= control target key end

     0   :  { %s8002_s18 = smov 0   ;;  %s13267_s0 = inlined_call_operand.vmem [shape: f32[256,784], index: 0, kind: input, shape index: {}]   ;;  %s13268_s1 = inlined_call_operand.vmem [shape: f32[256,32], index: 1, kind: input, shape index: {}]   ;;  %s13269_s2 = inlined_call_operand.vmem [shape: f32[784,256], index: 2, kind: input, shape index: {}]   ;;  %s13270_s3 = inlined_call_operand.vmem [shape: f32[1,256], index: 3, kind: input, shape index: {}]   ;;  %s13271_s4 = inlined_call_operand.vmem [shape: f32[256,256], index: 4, kind: input, shape index: {}]   ;;  %s13272_s5 = inlined_call_operand.vmem [shape: f32[1,256], index: 5, kind: input, shape index: {}]   ;;  %s13273_s6 = inlined_call_operand.vmem [shape: f32[256,128], index: 6, kind: input, shape index: {}]   ;;  %s13274_s7 = inlined_call_operand.vmem [shape: f32[1,128], index: 7, kind: input, shape index: {}]   ;;  %s13275_s8 = inlined_call_operand.vmem [shape: f32[32,256], index: 8, kind: input, shape index: {}]   ;;  %s13276_s9 = inlined_call_operand.vmem [shape: f32[1,256], index: 9, kind: input, shape index: {}]   ;;  %s13277_s10 = inlined_call_operand.vmem [shape: f32[256,256], index: 10, kind: input, shape index: {}]   ;;  %s13278_s11 = inlined_call_operand.vmem [shape: f32[1,256], index: 11, kind: input, shape index: {}]   ;;  %s13279_s12 = inlined_call_operand.vmem [shape: f32[256,784], index: 12, kind: input, shape index: {}]   ;;  %s13280_s13 = inlined_call_operand.vmem [shape: f32[1,784], index: 13, kind: input, shape index: {}]   ;;  %s13281_s14 = inlined_call_operand.vmem [shape: f32[256,784], index: 14, kind: output, shape index: {0}]   ;;  %s13282_s15 = inlined_call_operand.vmem [shape: f32[256,128], index: 15, kind: output, shape index: {1}]  }
   0x1 LB: > { %s6859_s19 = sadd.s32 4294967295, %s7917_s18   ;;  %p6863_p0 = scmp.ge.s32.totalorder %s7917_s18, 1  ;;  %s7917_s18 = sphi %s8002_s18, %s26_s18  }
   0x2   : > { %p453_p1 = scmp.lt.s32.totalorder %s7917_s18, 3 }
   0x4   : > { %p454_p2 = pnand %p6863_p0, %p453_p1 }
   0x6   : > { %457 = sbr.rel (%p454_p2) target bundleno = 1895 (0x767), region = 76 }
   0xb   : > { %v682_v0 = vld [vmem:[%s13269_s2 + $0xf8] sm:$0xff]  ;;  %v681_v1 = vld [vmem:[%s13269_s2 + $0xf0] sm:$0xff]  ;;  %v680_v3 = vld [vmem:[%s13269_s2 + $0xe8] sm:$0xff]  ;;  %s8282_s16 = sshll.u32 %s6859_s19, 4  ;;  %vm859_vm0 = vcmask 130048   ;;  %s7920_s27 = smov 96  }
   0xc   : > { %v746_v2 = vld [vmem:[%s13269_s2 + $0x2f8] sm:$0xff]  ;;  %908 = vmatprep.subr.mxu0 %v682_v0  ;;  %v745_v4 = vld [vmem:[%s13269_s2 + $0x2f0] sm:$0xff]  ;;  %v679_v5 = vld [vmem:[%s13269_s2 + $0xe0] sm:$0xff]  ;;  %p514_p3 = scmp.lt.s32.totalorder %s8282_s16, 31  ;;  %s7921_s22 = smov 64  }
   0xd   : > { %1069 = vmatprep.subr.mxu1 %v746_v2  ;;  %909 = vmatpush1.msra.mxu0 %v681_v1  ;;  %v744_v6 = vld [vmem:[%s13269_s2 + $0x2e8] sm:$0xff]  ;;  %v678_v7 = vld [vmem:[%s13269_s2 + $0xd8] sm:$0xff]  ;;  %v743_v8 = vld [vmem:[%s13269_s2 + $0x2e0] sm:$0xff] }
   0xe   : > { %1070 = vmatpush1.msra.mxu1 %v745_v4  ;;  %910 = vmatprep.subr.mxu0 %v680_v3  ;;  %v677_v9 = vld [vmem:[%s13269_s2 + $0xd0] sm:$0xff]  ;;  %v742_v10 = vld [vmem:[%s13269_s2 + $0x2d8] sm:$0xff]  ;;  %v676_v11 = vld [vmem:[%s13269_s2 + $0xc8] sm:$0xff]  ;;  %s13418_s16 = smov (!%p514_p3, %s8282_s16), 31 }
   0xf   : > { %1071 = vmatprep.subr.mxu1 %v744_v6  ;;  %911 = vmatpush1.msra.mxu0 %v679_v5  ;;  %v741_v12 = vld [vmem:[%s13269_s2 + $0x2d0] sm:$0xff]  ;;  %v740_v13 = vld [vmem:[%s13269_s2 + $0x2c8] sm:$0xff]  ;;  %v675_v14 = vld [vmem:[%s13269_s2 + $0xc0] sm:$0xff]  ;;  %s7067_s24 = smul.u32 56, %s13418_s16  ;;  %s6867_s29 = sshll.u32 %s13418_s16, 3 }
  0x10   : > { %1072 = vmatpush1.msra.mxu1 %v743_v8  ;;  %912 = vmatprep.subr.mxu0 %v678_v7  ;;  %v739_v15 = vld [vmem:[%s13269_s2 + $0x2c0] sm:$0xff]  ;;  %v674_v16 = vld [vmem:[%s13269_s2 + $0xb8] sm:$0xff]  ;;  %v673_v18 = vld [vmem:[%s13269_s2 + $0xb0] sm:$0xff]  ;;  %s10555_s21 = scalar_lea.vmem %s13268_s1, %s6867_s29  ;;  %s10687_s25 = scalar_lea.vmem %s13282_s15, %s6867_s29 }
  0x11   : > { %1073 = vmatprep.subr.mxu1 %v742_v10  ;;  %913 = vmatpush1.msra.mxu0 %v677_v9  ;;  %v738_v17 = vld [vmem:[%s13269_s2 + $0x2b8] sm:$0xff]  ;;  %v737_v19 = vld [vmem:[%s13269_s2 + $0x2b0] sm:$0xff]  ;;  %v672_v20 = vld [vmem:[%s13269_s2 + $0xa8] sm:$0xff]  ;;  %s8386_s30 = scalar_lea.vmem %s13267_s0, %s7067_s24 }
  0x12   : > { %1074 = vmatpush1.msra.mxu1 %v741_v12  ;;  %914 = vmatprep.subr.mxu0 %v676_v11  ;;  %v736_v21 = vld [vmem:[%s13269_s2 + $0x2a8] sm:$0xff]  ;;  %v671_v22 = vld [vmem:[%s13269_s2 + $0xa0] sm:$0xff]  ;;  %v670_v24 = vld [vmem:[%s13269_s2 + $0x98] sm:$0xff] }
  0x13   : > { %1075 = vmatprep.subr.mxu1 %v740_v13  ;;  %915 = vmatpush1.msra.mxu0 %v675_v14  ;;  %v735_v23 = vld [vmem:[%s13269_s2 + $0x2a0] sm:$0xff]  ;;  %v734_v25 = vld [vmem:[%s13269_s2 + $0x298] sm:$0xff]  ;;  %v669_v26 = vld [vmem:[%s13269_s2 + $0x90] sm:$0xff] }
  0x14   : > { %1076 = vmatpush1.msra.mxu1 %v739_v15  ;;  %916 = vmatprep.subr.mxu0 %v674_v16  ;;  %v733_v27 = vld [vmem:[%s13269_s2 + $0x290] sm:$0xff]  ;;  %v668_v28 = vld [vmem:[%s13269_s2 + $0x88] sm:$0xff]  ;;  %v667_v30 = vld [vmem:[%s13269_s2 + $0x80] sm:$0xff] }
  0x15   : > { %1077 = vmatprep.subr.mxu1 %v738_v17  ;;  %917 = vmatpush1.msra.mxu0 %v673_v18  ;;  %v732_v29 = vld [vmem:[%s13269_s2 + $0x288] sm:$0xff]  ;;  %v731_v31 = vld [vmem:[%s13269_s2 + $0x280] sm:$0xff]  ;;  %v666_v32 = vld [vmem:[%s13269_s2 + $0x78] sm:$0xff] }
  0x16   : > { %1078 = vmatpush1.msra.mxu1 %v737_v19  ;;  %918 = vmatprep.subr.mxu0 %v672_v20  ;;  %v730_v33 = vld [vmem:[%s13269_s2 + $0x278] sm:$0xff]  ;;  %v665_v34 = vld [vmem:[%s13269_s2 + $0x70] sm:$0xff]  ;;  %v664_v36 = vld [vmem:[%s13269_s2 + $0x68] sm:$0xff] }
  0x17   : > { %1079 = vmatprep.subr.mxu1 %v736_v21  ;;  %919 = vmatpush1.msra.mxu0 %v671_v22  ;;  %v729_v35 = vld [vmem:[%s13269_s2 + $0x270] sm:$0xff]  ;;  %v728_v37 = vld [vmem:[%s13269_s2 + $0x268] sm:$0xff]  ;;  %v663_v38 = vld [vmem:[%s13269_s2 + $0x60] sm:$0xff] }
  0x18   : > { %1080 = vmatpush1.msra.mxu1 %v735_v23  ;;  %920 = vmatprep.subr.mxu0 %v670_v24  ;;  %v727_v39 = vld [vmem:[%s13269_s2 + $0x260] sm:$0xff]  ;;  %v662_v40 = vld [vmem:[%s13269_s2 + $0x58] sm:$0xff]  ;;  %v661_v42 = vld [vmem:[%s13269_s2 + $0x50] sm:$0xff] }
  0x19   : > { %1081 = vmatprep.subr.mxu1 %v734_v25  ;;  %921 = vmatpush1.msra.mxu0 %v669_v26  ;;  %v726_v41 = vld [vmem:[%s13269_s2 + $0x258] sm:$0xff]  ;;  %v725_v43 = vld [vmem:[%s13269_s2 + $0x250] sm:$0xff]  ;;  %v660_v44 = vld [vmem:[%s13269_s2 + $0x48] sm:$0xff] }
  0x1a   : > { %1082 = vmatpush1.msra.mxu1 %v733_v27  ;;  %922 = vmatprep.subr.mxu0 %v668_v28  ;;  %v724_v45 = vld [vmem:[%s13269_s2 + $0x248] sm:$0xff]  ;;  %v659_v46 = vld [vmem:[%s13269_s2 + $0x40] sm:$0xff]  ;;  %v658_v48 = vld [vmem:[%s13269_s2 + $0x38] sm:$0xff] }
  0x1b   : > { %1083 = vmatprep.subr.mxu1 %v732_v29  ;;  %923 = vmatpush1.msra.mxu0 %v667_v30  ;;  %v723_v47 = vld [vmem:[%s13269_s2 + $0x240] sm:$0xff]  ;;  %v722_v49 = vld [vmem:[%s13269_s2 + $0x238] sm:$0xff]  ;;  %v657_v50 = vld [vmem:[%s13269_s2 + $0x30] sm:$0xff] }
  0x1c   : > { %1084 = vmatpush1.msra.mxu1 %v731_v31  ;;  %924 = vmatprep.subr.mxu0 %v666_v32  ;;  %v721_v51 = vld [vmem:[%s13269_s2 + $0x230] sm:$0xff]  ;;  %v656_v52 = vld [vmem:[%s13269_s2 + $0x28] sm:$0xff]  ;;  %v655_v54 = vld [vmem:[%s13269_s2 + $0x20] sm:$0xff] }
  0x1d   : > { %1085 = vmatprep.subr.mxu1 %v730_v33  ;;  %925 = vmatpush1.msra.mxu0 %v665_v34  ;;  %v720_v53 = vld [vmem:[%s13269_s2 + $0x228] sm:$0xff]  ;;  %v719_v55 = vld [vmem:[%s13269_s2 + $0x220] sm:$0xff]  ;;  %v654_v56 = vld [vmem:[%s13269_s2 + $0x18] sm:$0xff] }
  0x1e   : > { %1086 = vmatpush1.msra.mxu1 %v729_v35  ;;  %926 = vmatprep.subr.mxu0 %v664_v36  ;;  %v718_v57 = vld [vmem:[%s13269_s2 + $0x218] sm:$0xff]  ;;  %v653_v58 = vld [vmem:[%s13269_s2 + $0x10] sm:$0xff]  ;;  %v652_v60 = vld [vmem:[%s13269_s2 + $0x8] sm:$0xff] }
  0x1f   : > { %1087 = vmatprep.subr.mxu1 %v728_v37  ;;  %927 = vmatpush1.msra.mxu0 %v663_v38  ;;  %v717_v59 = vld [vmem:[%s13269_s2 + $0x210] sm:$0xff]  ;;  %v716_v61 = vld [vmem:[%s13269_s2 + $0x208] sm:$0xff]  ;;  %v651_v62 = vld [vmem:[%s13269_s2] sm:$0xff] }
  0x20   : > { %1088 = vmatpush1.msra.mxu1 %v727_v39  ;;  %928 = vmatprep.subr.mxu0 %v662_v40  ;;  %v715_v63 = vld [vmem:[%s13269_s2 + $0x200] sm:$0xff]  ;;  %v714_v0 = vld [vmem:[%s13269_s2 + $0x1f8] sm:$0xff]  ;;  %v713_v2 = vld [vmem:[%s13269_s2 + $0x1f0] sm:$0xff] }
  0x21   : > { %1089 = vmatprep.subr.mxu1 %v726_v41  ;;  %929 = vmatpush1.msra.mxu0 %v661_v42  ;;  %v778_v1 = vld [vmem:[%s13269_s2 + $0x3f8] sm:$0xff]  ;;  %v777_v3 = vld [vmem:[%s13269_s2 + $0x3f0] sm:$0xff]  ;;  %v712_v4 = vld [vmem:[%s13269_s2 + $0x1e8] sm:$0xff] }
  0x22   : > { %1090 = vmatpush1.msra.mxu1 %v725_v43  ;;  %930 = vmatprep.subr.mxu0 %v660_v44  ;;  %v776_v5 = vld [vmem:[%s13269_s2 + $0x3e8] sm:$0xff]  ;;  %v711_v6 = vld [vmem:[%s13269_s2 + $0x1e0] sm:$0xff]  ;;  %v710_v8 = vld [vmem:[%s13269_s2 + $0x1d8] sm:$0xff] }
  0x23   : > { %1091 = vmatprep.subr.mxu1 %v724_v45  ;;  %931 = vmatpush1.msra.mxu0 %v659_v46  ;;  %v775_v7 = vld [vmem:[%s13269_s2 + $0x3e0] sm:$0xff]  ;;  %v774_v9 = vld [vmem:[%s13269_s2 + $0x3d8] sm:$0xff]  ;;  %v709_v10 = vld [vmem:[%s13269_s2 + $0x1d0] sm:$0xff] }
  0x24   : > { %1092 = vmatpush1.msra.mxu1 %v723_v47  ;;  %932 = vmatprep.subr.mxu0 %v658_v48  ;;  %v773_v11 = vld [vmem:[%s13269_s2 + $0x3d0] sm:$0xff]  ;;  %v708_v12 = vld [vmem:[%s13269_s2 + $0x1c8] sm:$0xff]  ;;  %v707_v14 = vld [vmem:[%s13269_s2 + $0x1c0] sm:$0xff] }
  0x25   : > { %1093 = vmatprep.subr.mxu1 %v722_v49  ;;  %933 = vmatpush1.msra.mxu0 %v657_v50  ;;  %v772_v13 = vld [vmem:[%s13269_s2 + $0x3c8] sm:$0xff]  ;;  %v771_v15 = vld [vmem:[%s13269_s2 + $0x3c0] sm:$0xff]  ;;  %v706_v16 = vld [vmem:[%s13269_s2 + $0x1b8] sm:$0xff] }
  0x26   : > { %1094 = vmatpush1.msra.mxu1 %v721_v51  ;;  %934 = vmatprep.subr.mxu0 %v656_v52  ;;  %v770_v17 = vld [vmem:[%s13269_s2 + $0x3b8] sm:$0xff]  ;;  %v705_v18 = vld [vmem:[%s13269_s2 + $0x1b0] sm:$0xff]  ;;  %v704_v20 = vld [vmem:[%s13269_s2 + $0x1a8] sm:$0xff] }
  0x27   : > { %1095 = vmatprep.subr.mxu1 %v720_v53  ;;  %935 = vmatpush1.msra.mxu0 %v655_v54  ;;  %v769_v19 = vld [vmem:[%s13269_s2 + $0x3b0] sm:$0xff]  ;;  %v768_v21 = vld [vmem:[%s13269_s2 + $0x3a8] sm:$0xff]  ;;  %v703_v22 = vld [vmem:[%s13269_s2 + $0x1a0] sm:$0xff] }
  0x28   : > { %1096 = vmatpush1.msra.mxu1 %v719_v55  ;;  %936 = vmatprep.subr.mxu0 %v654_v56  ;;  %v767_v23 = vld [vmem:[%s13269_s2 + $0x3a0] sm:$0xff]  ;;  %v702_v24 = vld [vmem:[%s13269_s2 + $0x198] sm:$0xff]  ;;  %v701_v26 = vld [vmem:[%s13269_s2 + $0x190] sm:$0xff] }
  0x29   : > { %1097 = vmatprep.subr.mxu1 %v718_v57  ;;  %937 = vmatpush1.msra.mxu0 %v653_v58  ;;  %v766_v25 = vld [vmem:[%s13269_s2 + $0x398] sm:$0xff]  ;;  %v765_v27 = vld [vmem:[%s13269_s2 + $0x390] sm:$0xff]  ;;  %v700_v28 = vld [vmem:[%s13269_s2 + $0x188] sm:$0xff] }
  0x2a   : > { %1098 = vmatpush1.msra.mxu1 %v717_v59  ;;  %938 = vmatprep.subr.mxu0 %v652_v60  ;;  %v764_v29 = vld [vmem:[%s13269_s2 + $0x388] sm:$0xff]  ;;  %v699_v30 = vld [vmem:[%s13269_s2 + $0x180] sm:$0xff]  ;;  %v698_v32 = vld [vmem:[%s13269_s2 + $0x178] sm:$0xff] }
  0x2b   : > { %1099 = vmatprep.subr.mxu1 %v716_v61  ;;  %939 = vmatpush1.msra.mxu0 %v651_v62  ;;  %v763_v31 = vld [vmem:[%s13269_s2 + $0x380] sm:$0xff]  ;;  %v762_v33 = vld [vmem:[%s13269_s2 + $0x378] sm:$0xff]  ;;  %v697_v34 = vld [vmem:[%s13269_s2 + $0x170] sm:$0xff] }
  0x2c   : > { %1100 = vmatpush1.msra.mxu1 %v715_v63  ;;  %940 = vmatprep.subr.mxu0 %v714_v0  ;;  %v761_v35 = vld [vmem:[%s13269_s2 + $0x370] sm:$0xff]  ;;  %v696_v36 = vld [vmem:[%s13269_s2 + $0x168] sm:$0xff]  ;;  %v695_v38 = vld [vmem:[%s13269_s2 + $0x160] sm:$0xff] }
  0x2d   : > { %1101 = vmatprep.subr.mxu1 %v778_v1  ;;  %941 = vmatpush2.msra.mxu0 %v713_v2  ;;  %v760_v37 = vld [vmem:[%s13269_s2 + $0x368] sm:$0xff]  ;;  %v759_v39 = vld [vmem:[%s13269_s2 + $0x360] sm:$0xff]  ;;  %v694_v40 = vld [vmem:[%s13269_s2 + $0x158] sm:$0xff] }
  0x2e   : > { %1102 = vmatpush2.msra.mxu1 %v777_v3  ;;  %942 = vmatprep.subr.mxu0 %v712_v4  ;;  %v758_v41 = vld [vmem:[%s13269_s2 + $0x358] sm:$0xff]  ;;  %v693_v42 = vld [vmem:[%s13269_s2 + $0x150] sm:$0xff]  ;;  %v692_v44 = vld [vmem:[%s13269_s2 + $0x148] sm:$0xff] }
  0x2f   : > { %1103 = vmatprep.subr.mxu1 %v776_v5  ;;  %943 = vmatpush2.msra.mxu0 %v711_v6  ;;  %v757_v43 = vld [vmem:[%s13269_s2 + $0x350] sm:$0xff]  ;;  %v756_v45 = vld [vmem:[%s13269_s2 + $0x348] sm:$0xff]  ;;  %v691_v46 = vld [vmem:[%s13269_s2 + $0x140] sm:$0xff] }
  0x30   : > { %1104 = vmatpush2.msra.mxu1 %v775_v7  ;;  %944 = vmatprep.subr.mxu0 %v710_v8  ;;  %v755_v47 = vld [vmem:[%s13269_s2 + $0x340] sm:$0xff]  ;;  %v690_v48 = vld [vmem:[%s13269_s2 + $0x138] sm:$0xff]  ;;  %v689_v50 = vld [vmem:[%s13269_s2 + $0x130] sm:$0xff] }
  0x31   : > { %1105 = vmatprep.subr.mxu1 %v774_v9  ;;  %945 = vmatpush2.msra.mxu0 %v709_v10  ;;  %v754_v49 = vld [vmem:[%s13269_s2 + $0x338] sm:$0xff]  ;;  %v753_v51 = vld [vmem:[%s13269_s2 + $0x330] sm:$0xff]  ;;  %v688_v52 = vld [vmem:[%s13269_s2 + $0x128] sm:$0xff] }
  0x32   : > { %1106 = vmatpush2.msra.mxu1 %v773_v11  ;;  %946 = vmatprep.subr.mxu0 %v708_v12  ;;  %v752_v53 = vld [vmem:[%s13269_s2 + $0x328] sm:$0xff]  ;;  %v687_v54 = vld [vmem:[%s13269_s2 + $0x120] sm:$0xff]  ;;  %v686_v56 = vld [vmem:[%s13269_s2 + $0x118] sm:$0xff] }
  0x33   : > { %1107 = vmatprep.subr.mxu1 %v772_v13  ;;  %947 = vmatpush2.msra.mxu0 %v707_v14  ;;  %v751_v55 = vld [vmem:[%s13269_s2 + $0x320] sm:$0xff]  ;;  %v750_v57 = vld [vmem:[%s13269_s2 + $0x318] sm:$0xff]  ;;  %v685_v58 = vld [vmem:[%s13269_s2 + $0x110] sm:$0xff] }
  0x34   : > { %1108 = vmatpush2.msra.mxu1 %v771_v15  ;;  %948 = vmatprep.subr.mxu0 %v706_v16  ;;  %v749_v59 = vld [vmem:[%s13269_s2 + $0x310] sm:$0xff]  ;;  %v684_v60 = vld [vmem:[%s13269_s2 + $0x108] sm:$0xff]  ;;  %v683_v62 = vld [vmem:[%s13269_s2 + $0x100] sm:$0xff] }
  0x35   : > { %1109 = vmatprep.subr.mxu1 %v770_v17  ;;  %949 = vmatpush2.msra.mxu0 %v705_v18  ;;  %v540_v61 = vld [vmem:[%s8386_s30 + $0x8] sm:$0xff]  ;;  %v539_v0 = vld [vmem:[%s8386_s30] sm:$0xff]  ;;  %v542_v2 = vld [vmem:[%s8386_s30 + $0x18] sm:$0xff] }
  0x36   : > { %1110 = vmatpush2.msra.mxu1 %v769_v19  ;;  %950 = vmatprep.subr.mxu0 %v704_v20  ;;  %v748_v63 = vld [vmem:[%s13269_s2 + $0x308] sm:$0xff]  ;;  %v747_v1 = vld [vmem:[%s13269_s2 + $0x300] sm:$0xff]  ;;  %v810_v3 = vld [vmem:[%s13269_s2 + $0x4f8] sm:$0xff] }
  0x37   : > { %1111 = vmatprep.subr.mxu1 %v768_v21  ;;  %951 = vmatpush2.msra.mxu0 %v703_v22  ;;  %v541_v4 = vld [vmem:[%s8386_s30 + $0x10] sm:$0xff]  ;;  %v808_v6 = vld [vmem:[%s13269_s2 + $0x4e8] sm:$0xff]  ;;  %v846_v7 = vld [vmem:[%s13269_s2 + $0x618] sm:$0xff] }
  0x38   : > { %1112 = vmatpush2.msra.mxu1 %v767_v23  ;;  %952 = vmatprep.subr.mxu0 %v702_v24  ;;  %v809_v5 = vld [vmem:[%s13269_s2 + $0x4f0] sm:$0xff]  ;;  %v547_v8 = vld [vmem:[%s8386_s30 + $0x40] sm:$0xff]  ;;  %v546_v11 = vld [vmem:[%s8386_s30 + $0x38] sm:$0xff] }
  0x39   : > { %1113 = vmatprep.subr.mxu1 %v766_v25  ;;  %953 = vmatpush2.msra.mxu0 %v701_v26  ;;  %v807_v9 = vld [vmem:[%s13269_s2 + $0x4e0] sm:$0xff]  ;;  %v845_v10 = vld [vmem:[%s13269_s2 + $0x610] sm:$0xff]  ;;  %v806_v13 = vld [vmem:[%s13269_s2 + $0x4d8] sm:$0xff] }
  0x3a   : > { %1114 = vmatpush2.msra.mxu1 %v765_v27  ;;  %954 = vmatprep.subr.mxu0 %v700_v28  ;;  %v549_v12 = vld [vmem:[%s8386_s30 + $0x50] sm:$0xff]  ;;  %v548_v14 = vld [vmem:[%s8386_s30 + $0x48] sm:$0xff]  ;;  %v554_v17 = vld [vmem:[%s8386_s30 + $0x78] sm:$0xff] }
  0x3b   : > { %1115 = vmatprep.subr.mxu1 %v764_v29  ;;  %955 = vmatpush2.msra.mxu0 %v699_v30  ;;  %v805_v15 = vld [vmem:[%s13269_s2 + $0x4d0] sm:$0xff]  ;;  %v804_v16 = vld [vmem:[%s13269_s2 + $0x4c8] sm:$0xff]  ;;  %v803_v18 = vld [vmem:[%s13269_s2 + $0x4c0] sm:$0xff] }
  0x3c   : > { %1116 = vmatpush2.msra.mxu1 %v763_v31  ;;  %956 = vmatprep.subr.mxu0 %v698_v32  ;;  %v556_v19 = vld [vmem:[%s8386_s30 + $0x88] sm:$0xff]  ;;  %v553_v20 = vld [vmem:[%s8386_s30 + $0x70] sm:$0xff]  ;;  %v802_v21 = vld [vmem:[%s13269_s2 + $0x4b8] sm:$0xff] }
  0x3d   : > { %1117 = vmatprep.subr.mxu1 %v762_v33  ;;  %957 = vmatpush2.msra.mxu0 %v697_v34  ;;  %v555_v22 = vld [vmem:[%s8386_s30 + $0x80] sm:$0xff]  ;;  %v801_v23 = vld [vmem:[%s13269_s2 + $0x4b0] sm:$0xff]  ;;  %v800_v24 = vld [vmem:[%s13269_s2 + $0x4a8] sm:$0xff] }
  0x3e   : > { %1118 = vmatpush2.msra.mxu1 %v761_v35  ;;  %958 = vmatprep.subr.mxu0 %v696_v36  ;;  %v561_v25 = vld [vmem:[%s8386_s30 + $0xb0] sm:$0xff]  ;;  %v799_v26 = vld [vmem:[%s13269_s2 + $0x4a0] sm:$0xff]  ;;  %v560_v28 = vld [vmem:[%s8386_s30 + $0xa8] sm:$0xff] }
  0x3f   : > { %1119 = vmatprep.subr.mxu1 %v760_v37  ;;  %959 = vmatpush2.msra.mxu0 %v695_v38  ;;  %v563_v27 = vld [vmem:[%s8386_s30 + $0xc0] sm:$0xff]  ;;  %v798_v29 = vld [vmem:[%s13269_s2 + $0x498] sm:$0xff]  ;;  %v797_v31 = vld [vmem:[%s13269_s2 + $0x490] sm:$0xff] }
  0x40   : > { %1120 = vmatpush2.msra.mxu1 %v759_v39  ;;  %960 = vmatprep.subr.mxu0 %v694_v40  ;;  %v562_v30 = vld [vmem:[%s8386_s30 + $0xb8] sm:$0xff]  ;;  %v796_v32 = vld [vmem:[%s13269_s2 + $0x488] sm:$0xff]  ;;  %v795_v34 = vld [vmem:[%s13269_s2 + $0x480] sm:$0xff] }
  0x41   : > { %1121 = vmatprep.subr.mxu1 %v758_v41  ;;  %961 = vmatpush2.msra.mxu0 %v693_v42  ;;  %v568_v33 = vld [vmem:[%s8386_s30 + $0xe8] sm:$0xff]  ;;  %v570_v35 = vld [vmem:[%s8386_s30 + $0xf8] sm:$0xff]  ;;  %v567_v36 = vld [vmem:[%s8386_s30 + $0xe0] sm:$0xff] }
  0x42   : > { %1122 = vmatpush2.msra.mxu1 %v757_v43  ;;  %962 = vmatprep.subr.mxu0 %v692_v44  ;;  %v794_v37 = vld [vmem:[%s13269_s2 + $0x478] sm:$0xff]  ;;  %v569_v38 = vld [vmem:[%s8386_s30 + $0xf0] sm:$0xff]  ;;  %v792_v40 = vld [vmem:[%s13269_s2 + $0x468] sm:$0xff] }
  0x43   : > { %1123 = vmatprep.subr.mxu1 %v756_v45  ;;  %963 = vmatpush2.msra.mxu0 %v691_v46  ;;  %v793_v39 = vld [vmem:[%s13269_s2 + $0x470] sm:$0xff]  ;;  %v575_v41 = vld [vmem:[%s8386_s30 + $0x120] sm:$0xff]  ;;  %v574_v44 = vld [vmem:[%s8386_s30 + $0x118] sm:$0xff] }
  0x44   : > { %1124 = vmatpush2.msra.mxu1 %v755_v47  ;;  %964 = vmatprep.subr.mxu0 %v690_v48  ;;  %v791_v42 = vld [vmem:[%s13269_s2 + $0x460] sm:$0xff]  ;;  %v577_v43 = vld [vmem:[%s8386_s30 + $0x130] sm:$0xff]  ;;  %v790_v45 = vld [vmem:[%s13269_s2 + $0x458] sm:$0xff] }
  0x45   : > { %1125 = vmatprep.subr.mxu1 %v754_v49  ;;  %965 = vmatpush2.msra.mxu0 %v689_v50  ;;  %v576_v46 = vld [vmem:[%s8386_s30 + $0x128] sm:$0xff]  ;;  %v789_v47 = vld [vmem:[%s13269_s2 + $0x450] sm:$0xff]  ;;  %v582_v49 = vld [vmem:[%s8386_s30 + $0x158] sm:$0xff] }
  0x46   : > { %1126 = vmatpush2.msra.mxu1 %v753_v51  ;;  %966 = vmatprep.subr.mxu0 %v688_v52  ;;  %v788_v48 = vld [vmem:[%s13269_s2 + $0x448] sm:$0xff]  ;;  %v787_v50 = vld [vmem:[%s13269_s2 + $0x440] sm:$0xff]  ;;  %v581_v52 = vld [vmem:[%s8386_s30 + $0x150] sm:$0xff] }
  0x47   : > { %1127 = vmatprep.subr.mxu1 %v752_v53  ;;  %967 = vmatpush2.msra.mxu0 %v687_v54  ;;  %v584_v51 = vld [vmem:[%s8386_s30 + $0x168] sm:$0xff]  ;;  %v786_v53 = vld [vmem:[%s13269_s2 + $0x438] sm:$0xff]  ;;  %v583_v54 = vld [vmem:[%s8386_s30 + $0x160] sm:$0xff] }
  0x48   : > { %1128 = vmatpush2.msra.mxu1 %v751_v55  ;;  %968 = vmatprep.subr.mxu0 %v686_v56  ;;  %v785_v55 = vld [vmem:[%s13269_s2 + $0x430] sm:$0xff]  ;;  %v784_v56 = vld [vmem:[%s13269_s2 + $0x428] sm:$0xff] }
  0x49   : > { %1129 = vmatprep.subr.mxu1 %v750_v57  ;;  %969 = vmatpush2.msra.mxu0 %v685_v58  ;;  %v589_v57 = vld [vmem:[%s8386_s30 + $0x190] sm:$0xff]  ;;  %v783_v58 = vld [vmem:[%s13269_s2 + $0x420] sm:$0xff] }
  0x4a   : > { %1130 = vmatpush2.msra.mxu1 %v749_v59  ;;  %970 = vmatprep.subr.mxu0 %v684_v60  ;;  %v591_v59 = vld [vmem:[%s8386_s30 + $0x1a0] sm:$0xff]  ;;  %v588_v60 = vld [vmem:[%s8386_s30 + $0x188] sm:$0xff] }
  0x4b   : > { %972 = vmatprep.mubr.f32.mxu0 %v540_v61  ;;  %971 = vmatpush2.msra.mxu0 %v683_v62  ;;  %v782_v61 = vld [vmem:[%s13269_s2 + $0x418] sm:$0xff] }
  0x4c   : > { %1131 = vmatprep.subr.mxu1 %v748_v63  ;;  %973 = vmatmul.mubr.f32.vlgmr.msra.gmra.mxu0 %v539_v0  ;;  %v590_v62 = vld [vmem:[%s8386_s30 + $0x198] sm:$0xff]  ;;  %v781_v63 = vld [vmem:[%s13269_s2 + $0x410] sm:$0xff]  ;;  %v780_v0 = vld [vmem:[%s13269_s2 + $0x408] sm:$0xff] }
  0x4d   : > { %1132 = vmatpush2.msra.mxu1 %v747_v1  ;;  %1133 = vmatprep.mubr.f32.mxu1 %v542_v2  ;;  %v596_v1 = vld [vmem:[%s8386_s30 + $0x1c8] sm:$0xff]  ;;  %v779_v2 = vld [vmem:[%s13269_s2 + $0x400] sm:$0xff] }
  0x4e   : > { %1230 = vmatprep.subr.mxu0 %v810_v3  ;;  %1134 = vmatmul.mubr.f32.vlgmr.msra.gmra.mxu1 %v541_v4  ;;  %v598_v3 = vld [vmem:[%s8386_s30 + $0x1d8] sm:$0xff]  ;;  %v595_v4 = vld [vmem:[%s8386_s30 + $0x1c0] sm:$0xff] }
  0x4f   : > { %1231 = vmatpush1.msra.mxu0 %v809_v5  ;;  %1419 = vmatprep.subr.mxu1 %v846_v7  ;;  %v842_v5 = vld [vmem:[%s13269_s2 + $0x5f8] sm:$0xff]  ;;  %v841_v7 = vld [vmem:[%s13269_s2 + $0x5f0] sm:$0xff] }
  0x50   : > { %1232 = vmatprep.subr.mxu0 %v808_v6  ;;  %978 = vmatprep.mubr.f32.mxu0 %v547_v8  ;;  %v597_v6 = vld [vmem:[%s8386_s30 + $0x1d0] sm:$0xff]  ;;  %v840_v8 = vld [vmem:[%s13269_s2 + $0x5e8] sm:$0xff] }
  0x51   : > { %1233 = vmatpush1.msra.mxu0 %v807_v9  ;;  %1420 = vmatpush1.msra.mxu1 %v845_v10  ;;  %v844_v9 = vld [vmem:[%s13269_s2 + $0x608] sm:$0xff]  ;;  %v603_v10 = vld [vmem:[%s8386_s30 + $0x200] sm:$0xff] }
  0x52   : > { %979 = vmatmul.mubr.f32.gmra.mxu0 %v546_v11  ;;  %1139 = vmatprep.mubr.f32.mxu1 %v549_v12  ;;  %v839_v11 = vld [vmem:[%s13269_s2 + $0x5e0] sm:$0xff] }
  0x53   : > { %1234 = vmatprep.subr.mxu0 %v806_v13  ;;  %1140 = vmatmul.mubr.f32.gmra.mxu1 %v548_v14  ;;  %v843_v12 = vld [vmem:[%s13269_s2 + $0x600] sm:$0xff]  ;;  %v602_v13 = vld [vmem:[%s8386_s30 + $0x1f8] sm:$0xff]  ;;  %v605_v14 = vld [vmem:[%s8386_s30 + $0x210] sm:$0xff] }
  0x54   : > { %1235 = vmatpush1.msra.mxu0 %v805_v15  ;;  %984 = vmatprep.mubr.f32.mxu0 %v554_v17  ;;  %v838_v15 = vld [vmem:[%s13269_s2 + $0x5d8] sm:$0xff]  ;;  %v837_v17 = vld [vmem:[%s13269_s2 + $0x5d0] sm:$0xff] }
  0x55   : > { %1236 = vmatprep.subr.mxu0 %v804_v16  ;;  %1145 = vmatprep.mubr.f32.mxu1 %v556_v19  ;;  %v604_v16 = vld [vmem:[%s8386_s30 + $0x208] sm:$0xff]  ;;  %v610_v19 = vld [vmem:[%s8386_s30 + $0x238] sm:$0xff] }
  0x56   : > { %1237 = vmatpush1.msra.mxu0 %v803_v18  ;;  %1421 = vmatprep.subr.mxu1 %v844_v9  ;;  %v836_v18 = vld [vmem:[%s13269_s2 + $0x5c8] sm:$0xff]  ;;  %v550_v9 = vld [vmem:[%s8386_s30 + $0x58] sm:$0xff] }
  0x57   : > { %985 = vmatmul.mubr.f32.gmra.mxu0 %v553_v20  ;;  %1238 = vmatprep.subr.mxu0 %v802_v21  ;;  %v835_v20 = vld [vmem:[%s13269_s2 + $0x5c0] sm:$0xff]  ;;  %v612_v21 = vld [vmem:[%s8386_s30 + $0x248] sm:$0xff] }
  0x58   : > { %1146 = vmatmul.mubr.f32.gmra.mxu1 %v555_v22  ;;  %1239 = vmatpush1.msra.mxu0 %v801_v23  ;;  %v609_v22 = vld [vmem:[%s8386_s30 + $0x230] sm:$0xff]  ;;  %v834_v23 = vld [vmem:[%s13269_s2 + $0x5b8] sm:$0xff] }
  0x59   : > { %1240 = vmatprep.subr.mxu0 %v800_v24  ;;  %990 = vmatprep.mubr.f32.mxu0 %v561_v25  ;;  %v611_v24 = vld [vmem:[%s8386_s30 + $0x240] sm:$0xff]  ;;  %v833_v25 = vld [vmem:[%s13269_s2 + $0x5b0] sm:$0xff] }
  0x5a   : > { %1241 = vmatpush1.msra.mxu0 %v799_v26  ;;  %1151 = vmatprep.mubr.f32.mxu1 %v563_v27  ;;  %v832_v26 = vld [vmem:[%s13269_s2 + $0x5a8] sm:$0xff]  ;;  %v617_v27 = vld [vmem:[%s8386_s30 + $0x270] sm:$0xff] }
  0x5b   : > { %991 = vmatmul.mubr.f32.gmra.mxu0 %v560_v28  ;;  %1242 = vmatprep.subr.mxu0 %v798_v29  ;;  %v831_v28 = vld [vmem:[%s13269_s2 + $0x5a0] sm:$0xff] }
  0x5c   : > { %1152 = vmatmul.mubr.f32.gmra.mxu1 %v562_v30  ;;  %1243 = vmatpush1.msra.mxu0 %v797_v31  ;;  %v619_v29 = vld [vmem:[%s8386_s30 + $0x280] sm:$0xff]  ;;  %v616_v30 = vld [vmem:[%s8386_s30 + $0x268] sm:$0xff]  ;;  %v830_v31 = vld [vmem:[%s13269_s2 + $0x598] sm:$0xff] }
  0x5d   : > { %1244 = vmatprep.subr.mxu0 %v796_v32  ;;  %996 = vmatprep.mubr.f32.mxu0 %v568_v33  ;;  %v618_v32 = vld [vmem:[%s8386_s30 + $0x278] sm:$0xff]  ;;  %v829_v33 = vld [vmem:[%s13269_s2 + $0x590] sm:$0xff] }
  0x5e   : > { %1245 = vmatpush1.msra.mxu0 %v795_v34  ;;  %1157 = vmatprep.mubr.f32.mxu1 %v570_v35  ;;  %v828_v34 = vld [vmem:[%s13269_s2 + $0x588] sm:$0xff] }
  0x5f   : > { %997 = vmatmul.mubr.f32.gmra.mxu0 %v567_v36  ;;  %1246 = vmatprep.subr.mxu0 %v794_v37  ;;  %v624_v35 = vld [vmem:[%s8386_s30 + $0x2a8] sm:$0xff]  ;;  %v827_v36 = vld [vmem:[%s13269_s2 + $0x580] sm:$0xff]  ;;  %v626_v37 = vld [vmem:[%s8386_s30 + $0x2b8] sm:$0xff] }
  0x60   : > { %1158 = vmatmul.mubr.f32.gmra.mxu1 %v569_v38  ;;  %1247 = vmatpush1.msra.mxu0 %v793_v39  ;;  %v623_v38 = vld [vmem:[%s8386_s30 + $0x2a0] sm:$0xff]  ;;  %v826_v39 = vld [vmem:[%s13269_s2 + $0x578] sm:$0xff] }
  0x61   : > { %1248 = vmatprep.subr.mxu0 %v792_v40  ;;  %1002 = vmatprep.mubr.f32.mxu0 %v575_v41  ;;  %v625_v40 = vld [vmem:[%s8386_s30 + $0x2b0] sm:$0xff] }
  0x62   : > { %1249 = vmatpush1.msra.mxu0 %v791_v42  ;;  %1163 = vmatprep.mubr.f32.mxu1 %v577_v43  ;;  %v825_v41 = vld [vmem:[%s13269_s2 + $0x570] sm:$0xff]  ;;  %v824_v42 = vld [vmem:[%s13269_s2 + $0x568] sm:$0xff]  ;;  %v631_v43 = vld [vmem:[%s8386_s30 + $0x2e0] sm:$0xff] }
  0x63   : > { %1003 = vmatmul.mubr.f32.gmra.mxu0 %v574_v44  ;;  %1250 = vmatprep.subr.mxu0 %v790_v45  ;;  %v823_v44 = vld [vmem:[%s13269_s2 + $0x560] sm:$0xff]  ;;  %v633_v45 = vld [vmem:[%s8386_s30 + $0x2f0] sm:$0xff] }
  0x64   : > { %1164 = vmatmul.mubr.f32.gmra.mxu1 %v576_v46  ;;  %1251 = vmatpush1.msra.mxu0 %v789_v47  ;;  %v630_v46 = vld [vmem:[%s8386_s30 + $0x2d8] sm:$0xff] }
  0x65   : > { %1252 = vmatprep.subr.mxu0 %v788_v48  ;;  %1008 = vmatprep.mubr.f32.mxu0 %v582_v49  ;;  %v822_v47 = vld [vmem:[%s13269_s2 + $0x558] sm:$0xff]  ;;  %v632_v48 = vld [vmem:[%s8386_s30 + $0x2e8] sm:$0xff]  ;;  %v821_v49 = vld [vmem:[%s13269_s2 + $0x550] sm:$0xff] }
  0x66   : > { %1253 = vmatpush1.msra.mxu0 %v787_v50  ;;  %1169 = vmatprep.mubr.f32.mxu1 %v584_v51  ;;  %v820_v50 = vld [vmem:[%s13269_s2 + $0x548] sm:$0xff]  ;;  %v638_v51 = vld [vmem:[%s8386_s30 + $0x318] sm:$0xff] }
  0x67   : > { %1009 = vmatmul.mubr.f32.gmra.mxu0 %v581_v52  ;;  %1254 = vmatprep.subr.mxu0 %v786_v53  ;;  %v819_v52 = vld [vmem:[%s13269_s2 + $0x540] sm:$0xff]  ;;  %v640_v53 = vld [vmem:[%s8386_s30 + $0x328] sm:$0xff] }
  0x68   : > { %1170 = vmatmul.mubr.f32.gmra.mxu1 %v583_v54  ;;  %1255 = vmatpush1.msra.mxu0 %v785_v55  ;;  %v637_v54 = vld [vmem:[%s8386_s30 + $0x310] sm:$0xff]  ;;  %v818_v55 = vld [vmem:[%s13269_s2 + $0x538] sm:$0xff] }
  0x69   : > { %1256 = vmatprep.subr.mxu0 %v784_v56  ;;  %1014 = vmatprep.mubr.f32.mxu0 %v589_v57  ;;  %v639_v56 = vld [vmem:[%s8386_s30 + $0x320] sm:$0xff]  ;;  %v817_v57 = vld [vmem:[%s13269_s2 + $0x530] sm:$0xff] }
  0x6a   : > { %1257 = vmatpush1.msra.mxu0 %v783_v58  ;;  %1175 = vmatprep.mubr.f32.mxu1 %v591_v59  ;;  %v816_v58 = vld [vmem:[%s13269_s2 + $0x528] sm:$0xff]  ;;  %v645_v59 = vld [vmem:[%s8386_s30 + $0x350] sm:$0xff] }
  0x6b   : > { %1015 = vmatmul.mubr.f32.gmra.mxu0 %v588_v60  ;;  %1258 = vmatprep.subr.mxu0 %v782_v61  ;;  %v815_v60 = vld [vmem:[%s13269_s2 + $0x520] sm:$0xff] }
  0x6c   : > { %1176 = vmatmul.mubr.f32.gmra.mxu1 %v590_v62  ;;  %1259 = vmatpush1.msra.mxu0 %v781_v63  ;;  %v647_v61 = vld [vmem:[%s8386_s30 + $0x360] sm:$0xff]  ;;  %v644_v62 = vld [vmem:[%s8386_s30 + $0x348] sm:$0xff]  ;;  %v814_v63 = vld [vmem:[%s13269_s2 + $0x518] sm:$0xff] }
  0x6d   : > { %1260 = vmatprep.subr.mxu0 %v780_v0  ;;  %1020 = vmatprep.mubr.f32.mxu0 %v596_v1  ;;  %v646_v0 = vld [vmem:[%s8386_s30 + $0x358] sm:$0xff]  ;;  %v813_v1 = vld [vmem:[%s13269_s2 + $0x510] sm:$0xff] }
  0x6e   : > { %1261 = vmatpush1.msra.mxu0 %v779_v2  ;;  %1181 = vmatprep.mubr.f32.mxu1 %v598_v3  ;;  %v812_v2 = vld [vmem:[%s13269_s2 + $0x508] sm:$0xff] }
  0x6f   : > { %1021 = vmatmul.mubr.f32.gmra.mxu0 %v595_v4  ;;  %1262 = vmatprep.subr.mxu0 %v842_v5  ;;  %v544_v3 = vld [vmem:[%s8386_s30 + $0x28] sm:$0xff]  ;;  %v811_v4 = vld [vmem:[%s13269_s2 + $0x500] sm:$0xff] }
  0x70   : > { %1182 = vmatmul.mubr.f32.gmra.mxu1 %v597_v6  ;;  %1263 = vmatpush2.msra.mxu0 %v841_v7  ;;  %v543_v5 = vld [vmem:[%s8386_s30 + $0x20] sm:$0xff]  ;;  %v545_v6 = vld [vmem:[%s8386_s30 + $0x30] sm:$0xff] }
  0x71   : > { %1264 = vmatprep.subr.mxu0 %v840_v8  ;;  %1026 = vmatprep.mubr.f32.mxu0 %v603_v10  ;;  %v551_v7 = vld [vmem:[%s8386_s30 + $0x60] sm:$0xff]  ;;  %v13283_v8 = vmov 0.0   ;;  %v552_v10 = vld [vmem:[%s8386_s30 + $0x68] sm:$0xff] }
  0x72   : > { %1265 = vmatpush2.msra.mxu0 %v839_v11  ;;  %1422 = vmatpush1.msra.mxu1 %v843_v12  ;;  %v558_v11 = vld [vmem:[%s8386_s30 + $0x98] sm:$0xff]  ;;  %v557_v12 = vld [vmem:[%s8386_s30 + $0x90] sm:$0xff] }
  0x73   : > { %1027 = vmatmul.mubr.f32.gmra.mxu0 %v602_v13  ;;  %1187 = vmatprep.mubr.f32.mxu1 %v605_v14  ;;  %v559_v13 = vld [vmem:[%s8386_s30 + $0xa0] sm:$0xff]  ;;  %v565_v14 = vld [vmem:[%s8386_s30 + $0xd0] sm:$0xff] }
  0x74   : > { %1266 = vmatprep.subr.mxu0 %v838_v15  ;;  %1188 = vmatmul.mubr.f32.gmra.mxu1 %v604_v16  ;;  %v564_v15 = vld [vmem:[%s8386_s30 + $0xc8] sm:$0xff]  ;;  %v566_v16 = vld [vmem:[%s8386_s30 + $0xd8] sm:$0xff] }
  0x75   : > { %1267 = vmatpush2.msra.mxu0 %v837_v17  ;;  %1032 = vmatprep.mubr.f32.mxu0 %v610_v19  ;;  %v572_v17 = vld [vmem:[%s8386_s30 + $0x108] sm:$0xff]  ;;  %v573_v19 = vld [vmem:[%s8386_s30 + $0x110] sm:$0xff] }
  0x76   : > { %1268 = vmatprep.subr.mxu0 %v836_v18  ;;  %1193 = vmatprep.mubr.f32.mxu1 %v612_v21  ;;  %v571_v18 = vld [vmem:[%s8386_s30 + $0x100] sm:$0xff]  ;;  %v578_v21 = vld [vmem:[%s8386_s30 + $0x138] sm:$0xff] }
  0x77   : > { %1269 = vmatpush2.msra.mxu0 %v835_v20  ;;  %v579_v20 = vld [vmem:[%s8386_s30 + $0x140] sm:$0xff] }
  0x78   : > { %1033 = vmatmul.mubr.f32.gmra.mxu0 %v609_v22  ;;  %1270 = vmatprep.subr.mxu0 %v834_v23  ;;  %v580_v22 = vld [vmem:[%s8386_s30 + $0x148] sm:$0xff]  ;;  %v586_v23 = vld [vmem:[%s8386_s30 + $0x178] sm:$0xff] }
  0x79   : > { %1194 = vmatmul.mubr.f32.gmra.mxu1 %v611_v24  ;;  %1271 = vmatpush2.msra.mxu0 %v833_v25  ;;  %v585_v24 = vld [vmem:[%s8386_s30 + $0x170] sm:$0xff]  ;;  %v587_v25 = vld [vmem:[%s8386_s30 + $0x180] sm:$0xff] }
  0x7a   : > { %1272 = vmatprep.subr.mxu0 %v832_v26  ;;  %1038 = vmatprep.mubr.f32.mxu0 %v617_v27  ;;  %v593_v26 = vld [vmem:[%s8386_s30 + $0x1b0] sm:$0xff]  ;;  %v592_v27 = vld [vmem:[%s8386_s30 + $0x1a8] sm:$0xff] }
  0x7b   : > { %1273 = vmatpush2.msra.mxu0 %v831_v28  ;;  %1199 = vmatprep.mubr.f32.mxu1 %v619_v29  ;;  %v594_v28 = vld [vmem:[%s8386_s30 + $0x1b8] sm:$0xff]  ;;  %v600_v29 = vld [vmem:[%s8386_s30 + $0x1e8] sm:$0xff] }
  0x7c   : > { %1039 = vmatmul.mubr.f32.gmra.mxu0 %v616_v30  ;;  %1274 = vmatprep.subr.mxu0 %v830_v31  ;;  %v599_v30 = vld [vmem:[%s8386_s30 + $0x1e0] sm:$0xff]  ;;  %v601_v31 = vld [vmem:[%s8386_s30 + $0x1f0] sm:$0xff] }
  0x7d   : > { %1200 = vmatmul.mubr.f32.gmra.mxu1 %v618_v32  ;;  %1275 = vmatpush2.msra.mxu0 %v829_v33  ;;  %v607_v32 = vld [vmem:[%s8386_s30 + $0x220] sm:$0xff]  ;;  %v606_v33 = vld [vmem:[%s8386_s30 + $0x218] sm:$0xff] }
  0x7e   : > { %1276 = vmatprep.subr.mxu0 %v828_v34  ;;  %1044 = vmatprep.mubr.f32.mxu0 %v624_v35  ;;  %v608_v34 = vld [vmem:[%s8386_s30 + $0x228] sm:$0xff]  ;;  %v614_v35 = vld [vmem:[%s8386_s30 + $0x258] sm:$0xff] }
  0x7f   : > { %1277 = vmatpush2.msra.mxu0 %v827_v36  ;;  %1205 = vmatprep.mubr.f32.mxu1 %v626_v37  ;;  %v613_v36 = vld [vmem:[%s8386_s30 + $0x250] sm:$0xff]  ;;  %v615_v37 = vld [vmem:[%s8386_s30 + $0x260] sm:$0xff] }
  0x80   : > { %1045 = vmatmul.mubr.f32.gmra.mxu0 %v623_v38  ;;  %1278 = vmatprep.subr.mxu0 %v826_v39  ;;  %v621_v38 = vld [vmem:[%s8386_s30 + $0x290] sm:$0xff]  ;;  %v620_v39 = vld [vmem:[%s8386_s30 + $0x288] sm:$0xff] }
  0x81   : > { %1206 = vmatmul.mubr.f32.gmra.mxu1 %v625_v40  ;;  %1279 = vmatpush2.msra.mxu0 %v825_v41  ;;  %v622_v40 = vld [vmem:[%s8386_s30 + $0x298] sm:$0xff]  ;;  %v628_v41 = vld [vmem:[%s8386_s30 + $0x2c8] sm:$0xff] }
  0x82   : > { %1280 = vmatprep.subr.mxu0 %v824_v42  ;;  %1050 = vmatprep.mubr.f32.mxu0 %v631_v43  ;;  %v627_v42 = vld [vmem:[%s8386_s30 + $0x2c0] sm:$0xff]  ;;  %v629_v43 = vld [vmem:[%s8386_s30 + $0x2d0] sm:$0xff] }
  0x83   : > { %1281 = vmatpush2.msra.mxu0 %v823_v44  ;;  %1211 = vmatprep.mubr.f32.mxu1 %v633_v45  ;;  %v635_v44 = vld [vmem:[%s8386_s30 + $0x300] sm:$0xff]  ;;  %v634_v45 = vld [vmem:[%s8386_s30 + $0x2f8] sm:$0xff] }
  0x84   : > { %1051 = vmatmul.mubr.f32.gmra.mxu0 %v630_v46  ;;  %1282 = vmatprep.subr.mxu0 %v822_v47  ;;  %v636_v46 = vld [vmem:[%s8386_s30 + $0x308] sm:$0xff]  ;;  %v642_v47 = vld [vmem:[%s8386_s30 + $0x338] sm:$0xff] }
  0x85   : > { %1212 = vmatmul.mubr.f32.gmra.mxu1 %v632_v48  ;;  %1283 = vmatpush2.msra.mxu0 %v821_v49  ;;  %v2159_v48 = vld [vmem:[%s13271_s4 + $0xf8] sm:$0xff]  ;;  %v2158_v49 = vld [vmem:[%s13271_s4 + $0xf0] sm:$0xff] }
  0x86   : > { %1284 = vmatprep.subr.mxu0 %v820_v50  ;;  %1056 = vmatprep.mubr.f32.mxu0 %v638_v51  ;;  %v2157_v50 = vld [vmem:[%s13271_s4 + $0xe8] sm:$0xff]  ;;  %v641_v51 = vld [vmem:[%s8386_s30 + $0x330] sm:$0xff] }
  0x87   : > { %1285 = vmatpush2.msra.mxu0 %v819_v52  ;;  %1217 = vmatprep.mubr.f32.mxu1 %v640_v53  ;;  %v643_v52 = vld [vmem:[%s8386_s30 + $0x340] sm:$0xff]  ;;  %v649_v53 = vld [vmem:[%s8386_s30 + $0x370] sm:$0xff] }
  0x88   : > { %1057 = vmatmul.mubr.f32.gmra.mxu0 %v637_v54  ;;  %1286 = vmatprep.subr.mxu0 %v818_v55  ;;  %v2156_v54 = vld [vmem:[%s13271_s4 + $0xe0] sm:$0xff]  ;;  %v2155_v55 = vld [vmem:[%s13271_s4 + $0xd8] sm:$0xff] }
  0x89   : > { %1218 = vmatmul.mubr.f32.gmra.mxu1 %v639_v56  ;;  %1287 = vmatpush2.msra.mxu0 %v817_v57  ;;  %v648_v56 = vld [vmem:[%s8386_s30 + $0x368] sm:$0xff]  ;;  %v650_v57 = vld [vmem:[%s8386_s30 + $0x378] sm:$0xff]  ;;  %s13014_s30 = scalar_lea.vmem %s13281_s14, %s7067_s24 }
  0x8a   : > { %1288 = vmatprep.subr.mxu0 %v816_v58  ;;  %1062 = vmatprep.mubr.f32.mxu0 %v645_v59  ;;  %v2154_v58 = vld [vmem:[%s13271_s4 + $0xd0] sm:$0xff]  ;;  %v2153_v59 = vld [vmem:[%s13271_s4 + $0xc8] sm:$0xff] }
  0x8b   : > { %1289 = vmatpush2.msra.mxu0 %v815_v60  ;;  %1223 = vmatprep.mubr.f32.mxu1 %v647_v61  ;;  %v2152_v60 = vld [vmem:[%s13271_s4 + $0xc0] sm:$0xff]  ;;  %v2151_v61 = vld [vmem:[%s13271_s4 + $0xb8] sm:$0xff] }
  0x8c   : > { %1063 = vmatmul.mubr.f32.gmra.mxu0 %v644_v62  ;;  %1290 = vmatprep.subr.mxu0 %v814_v63  ;;  %v2150_v62 = vld [vmem:[%s13271_s4 + $0xb0] sm:$0xff]  ;;  %v2149_v63 = vld [vmem:[%s13271_s4 + $0xa8] sm:$0xff] }
  0x8d   : > { %1224 = vmatmul.mubr.f32.gmra.mxu1 %v646_v0  ;;  %1291 = vmatpush2.msra.mxu0 %v813_v1  ;;  %v2148_v0 = vld [vmem:[%s13271_s4 + $0xa0] sm:$0xff]  ;;  %v2147_v1 = vld [vmem:[%s13271_s4 + $0x98] sm:$0xff] }
  0x8e   : > { %1292 = vmatprep.subr.mxu0 %v812_v2  ;;  %1294 = vmatprep.mubr.f32.mxu0 %v544_v3  ;;  %v2146_v2 = vld [vmem:[%s13271_s4 + $0x90] sm:$0xff]  ;;  %v2145_v3 = vld [vmem:[%s13271_s4 + $0x88] sm:$0xff] }
  0x8f   : > { %1293 = vmatpush2.msra.mxu0 %v811_v4  ;;  %1455 = vmatprep.mubr.f32.mxu1 %v13283_v8  ;;  %v2144_v4 = vld [vmem:[%s13271_s4 + $0x80] sm:$0xff] }
  0x90   : > { %1295 = vmatmul.mubr.f32.vlgmr.msra.gmra.mxu0 %v543_v5  ;;  %2204 = vmatprep.subr.mxu0 %v2159_v48  ;;  %v2143_v5 = vld [vmem:[%s13271_s4 + $0x78] sm:$0xff]  ;;  %v2166_v48 = vld [vmem:[%s13271_s4 + $0x130] sm:$0xff] }
  0x91   : > { %6872 = vmatmul.mubr.msk.f32.vlgmr.msra.gmra.mxu1 %vm859_vm0, %v545_v6  ;;  %1300 = vmatprep.mubr.f32.mxu0 %v551_v7  ;;  %v2142_v6 = vld [vmem:[%s13271_s4 + $0x70] sm:$0xff]  ;;  %v2141_v7 = vld [vmem:[%s13271_s4 + $0x68] sm:$0xff] }
  0x92   : > { %1461 = vmatprep.mubr.f32.mxu1 %v13283_v8  ;;  %2205 = vmatpush1.msra.mxu0 %v2158_v49  ;;  %v2165_v49 = vld [vmem:[%s13271_s4 + $0x128] sm:$0xff] }
  0x93   : > { %2206 = vmatprep.subr.mxu0 %v2157_v50  ;;  %v2164_v50 = vld [vmem:[%s13271_s4 + $0x120] sm:$0xff] }
  0x94   : > { %1301 = vmatmul.mubr.f32.gmra.mxu0 %v550_v9  ;;  %v2140_v9 = vld [vmem:[%s13271_s4 + $0x60] sm:$0xff] }
  0x95   : > { %6873 = vmatmul.mubr.msk.f32.gmra.mxu1 %vm859_vm0, %v552_v10  ;;  %1306 = vmatprep.mubr.f32.mxu0 %v558_v11  ;;  %v2139_v10 = vld [vmem:[%s13271_s4 + $0x58] sm:$0xff]  ;;  %v2138_v11 = vld [vmem:[%s13271_s4 + $0x50] sm:$0xff] }
  0x96   : > { %1467 = vmatprep.mubr.f32.mxu1 %v13283_v8  ;;  %2207 = vmatpush1.msra.mxu0 %v2156_v54  ;;  %v2161_v54 = vld [vmem:[%s13271_s4 + $0x108] sm:$0xff] }
  0x97   : > { %2208 = vmatprep.subr.mxu0 %v2155_v55  ;;  %v2160_v55 = vld [vmem:[%s13271_s4 + $0x100] sm:$0xff] }
  0x98   : > { %1307 = vmatmul.mubr.f32.gmra.mxu0 %v557_v12  ;;  %v2137_v12 = vld [vmem:[%s13271_s4 + $0x48] sm:$0xff] }
  0x99   : > { %6874 = vmatmul.mubr.msk.f32.gmra.mxu1 %vm859_vm0, %v559_v13  ;;  %1312 = vmatprep.mubr.f32.mxu0 %v565_v14  ;;  %v2136_v13 = vld [vmem:[%s13271_s4 + $0x40] sm:$0xff]  ;;  %v2135_v14 = vld [vmem:[%s13271_s4 + $0x38] sm:$0xff] }
  0x9a   : > { %1473 = vmatprep.mubr.f32.mxu1 %v13283_v8  ;;  %2209 = vmatpush1.msra.mxu0 %v2154_v58 }
  0x9b   : > { %2210 = vmatprep.subr.mxu0 %v2153_v59 }
  0x9c   : > { %1313 = vmatmul.mubr.f32.gmra.mxu0 %v564_v15  ;;  %v2134_v15 = vld [vmem:[%s13271_s4 + $0x30] sm:$0xff] }
  0x9d   : > { %6875 = vmatmul.mubr.msk.f32.gmra.mxu1 %vm859_vm0, %v566_v16  ;;  %1318 = vmatprep.mubr.f32.mxu0 %v572_v17  ;;  %v2133_v16 = vld [vmem:[%s13271_s4 + $0x28] sm:$0xff]  ;;  %v2132_v17 = vld [vmem:[%s13271_s4 + $0x20] sm:$0xff] }
  0x9e   : > { %1479 = vmatprep.mubr.f32.mxu1 %v13283_v8  ;;  %2211 = vmatpush1.msra.mxu0 %v2152_v60 }
  0x9f   : > { %2212 = vmatprep.subr.mxu0 %v2151_v61 }
  0xa0   : > { %1319 = vmatmul.mubr.f32.gmra.mxu0 %v571_v18  ;;  %v2131_v18 = vld [vmem:[%s13271_s4 + $0x18] sm:$0xff] }
  0xa1   : > { %6876 = vmatmul.mubr.msk.f32.gmra.mxu1 %vm859_vm0, %v573_v19  ;;  %1324 = vmatprep.mubr.f32.mxu0 %v579_v20  ;;  %v2130_v19 = vld [vmem:[%s13271_s4 + $0x10] sm:$0xff]  ;;  %v2129_v20 = vld [vmem:[%s13271_s4 + $0x8] sm:$0xff] }
  0xa2   : > { %1485 = vmatprep.mubr.f32.mxu1 %v13283_v8  ;;  %2213 = vmatpush1.msra.mxu0 %v2150_v62 }
  0xa3   : > { %2214 = vmatprep.subr.mxu0 %v2149_v63 }
  0xa4   : > { %1325 = vmatmul.mubr.f32.gmra.mxu0 %v578_v21  ;;  %v2128_v21 = vld [vmem:[%s13271_s4] sm:$0xff] }
  0xa5   : > { %6877 = vmatmul.mubr.msk.f32.gmra.mxu1 %vm859_vm0, %v580_v22  ;;  %1330 = vmatprep.mubr.f32.mxu0 %v586_v23  ;;  %v2191_v22 = vld [vmem:[%s13271_s4 + $0x1f8] sm:$0xff]  ;;  %v2190_v23 = vld [vmem:[%s13271_s4 + $0x1f0] sm:$0xff] }
  0xa6   : > { %1491 = vmatprep.mubr.f32.mxu1 %v13283_v8  ;;  %2215 = vmatpush1.msra.mxu0 %v2148_v0 }
  0xa7   : > { %2216 = vmatprep.subr.mxu0 %v2147_v1 }
  0xa8   : > { %1331 = vmatmul.mubr.f32.gmra.mxu0 %v585_v24  ;;  %v2189_v24 = vld [vmem:[%s13271_s4 + $0x1e8] sm:$0xff] }
  0xa9   : > { %6878 = vmatmul.mubr.msk.f32.gmra.mxu1 %vm859_vm0, %v587_v25  ;;  %1336 = vmatprep.mubr.f32.mxu0 %v593_v26  ;;  %v2188_v25 = vld [vmem:[%s13271_s4 + $0x1e0] sm:$0xff]  ;;  %v2187_v26 = vld [vmem:[%s13271_s4 + $0x1d8] sm:$0xff] }
  0xaa   : > { %1497 = vmatprep.mubr.f32.mxu1 %v13283_v8  ;;  %2217 = vmatpush1.msra.mxu0 %v2146_v2 }
  0xab   : > { %2218 = vmatprep.subr.mxu0 %v2145_v3 }
  0xac   : > { %1337 = vmatmul.mubr.f32.gmra.mxu0 %v592_v27  ;;  %v2186_v27 = vld [vmem:[%s13271_s4 + $0x1d0] sm:$0xff] }
  0xad   : > { %6879 = vmatmul.mubr.msk.f32.gmra.mxu1 %vm859_vm0, %v594_v28  ;;  %1342 = vmatprep.mubr.f32.mxu0 %v600_v29  ;;  %v2185_v28 = vld [vmem:[%s13271_s4 + $0x1c8] sm:$0xff]  ;;  %v2184_v29 = vld [vmem:[%s13271_s4 + $0x1c0] sm:$0xff] }
  0xae   : > { %1503 = vmatprep.mubr.f32.mxu1 %v13283_v8  ;;  %2219 = vmatpush1.msra.mxu0 %v2144_v4 }
  0xaf   : > { %2220 = vmatprep.subr.mxu0 %v2143_v5 }
  0xb0   : > { %1343 = vmatmul.mubr.f32.gmra.mxu0 %v599_v30  ;;  %v2183_v30 = vld [vmem:[%s13271_s4 + $0x1b8] sm:$0xff] }
  0xb1   : > { %6880 = vmatmul.mubr.msk.f32.gmra.mxu1 %vm859_vm0, %v601_v31  ;;  %1348 = vmatprep.mubr.f32.mxu0 %v607_v32  ;;  %v2182_v31 = vld [vmem:[%s13271_s4 + $0x1b0] sm:$0xff]  ;;  %v2181_v32 = vld [vmem:[%s13271_s4 + $0x1a8] sm:$0xff] }
  0xb2   : > { %1509 = vmatprep.mubr.f32.mxu1 %v13283_v8  ;;  %2221 = vmatpush1.msra.mxu0 %v2142_v6 }
  0xb3   : > { %2222 = vmatprep.subr.mxu0 %v2141_v7 }
  0xb4   : > { %1349 = vmatmul.mubr.f32.gmra.mxu0 %v606_v33  ;;  %v2180_v33 = vld [vmem:[%s13271_s4 + $0x1a0] sm:$0xff] }
  0xb5   : > { %6881 = vmatmul.mubr.msk.f32.gmra.mxu1 %vm859_vm0, %v608_v34  ;;  %1354 = vmatprep.mubr.f32.mxu0 %v614_v35  ;;  %v2179_v34 = vld [vmem:[%s13271_s4 + $0x198] sm:$0xff]  ;;  %v2178_v35 = vld [vmem:[%s13271_s4 + $0x190] sm:$0xff] }
  0xb6   : > { %1515 = vmatprep.mubr.f32.mxu1 %v13283_v8  ;;  %2223 = vmatpush1.msra.mxu0 %v2140_v9 }
  0xb7   : > { %2224 = vmatprep.subr.mxu0 %v2139_v10 }
  0xb8   : > { %1355 = vmatmul.mubr.f32.gmra.mxu0 %v613_v36  ;;  %v2177_v36 = vld [vmem:[%s13271_s4 + $0x188] sm:$0xff] }
  0xb9   : > { %6882 = vmatmul.mubr.msk.f32.gmra.mxu1 %vm859_vm0, %v615_v37  ;;  %1360 = vmatprep.mubr.f32.mxu0 %v621_v38  ;;  %v2176_v37 = vld [vmem:[%s13271_s4 + $0x180] sm:$0xff]  ;;  %v2175_v38 = vld [vmem:[%s13271_s4 + $0x178] sm:$0xff] }
  0xba   : > { %1521 = vmatprep.mubr.f32.mxu1 %v13283_v8  ;;  %2225 = vmatpush1.msra.mxu0 %v2138_v11 }
  0xbb   : > { %2226 = vmatprep.subr.mxu0 %v2137_v12 }
  0xbc   : > { %1361 = vmatmul.mubr.f32.gmra.mxu0 %v620_v39  ;;  %v2174_v39 = vld [vmem:[%s13271_s4 + $0x170] sm:$0xff] }
  0xbd   : > { %6883 = vmatmul.mubr.msk.f32.gmra.mxu1 %vm859_vm0, %v622_v40  ;;  %1366 = vmatprep.mubr.f32.mxu0 %v628_v41  ;;  %v2173_v40 = vld [vmem:[%s13271_s4 + $0x168] sm:$0xff]  ;;  %v2172_v41 = vld [vmem:[%s13271_s4 + $0x160] sm:$0xff] }
  0xbe   : > { %1527 = vmatprep.mubr.f32.mxu1 %v13283_v8  ;;  %2227 = vmatpush1.msra.mxu0 %v2136_v13 }
  0xbf   : > { %2228 = vmatprep.subr.mxu0 %v2135_v14 }
  0xc0   : > { %1367 = vmatmul.mubr.f32.gmra.mxu0 %v627_v42  ;;  %v2171_v42 = vld [vmem:[%s13271_s4 + $0x158] sm:$0xff] }
  0xc1   : > { %6884 = vmatmul.mubr.msk.f32.gmra.mxu1 %vm859_vm0, %v629_v43  ;;  %1372 = vmatprep.mubr.f32.mxu0 %v635_v44  ;;  %v2170_v43 = vld [vmem:[%s13271_s4 + $0x150] sm:$0xff]  ;;  %v2169_v44 = vld [vmem:[%s13271_s4 + $0x148] sm:$0xff] }
  0xc2   : > { %1533 = vmatprep.mubr.f32.mxu1 %v13283_v8  ;;  %2229 = vmatpush1.msra.mxu0 %v2134_v15 }
  0xc3   : > { %2230 = vmatprep.subr.mxu0 %v2133_v16 }
  0xc4   : > { %1373 = vmatmul.mubr.f32.gmra.mxu0 %v634_v45  ;;  %v2168_v45 = vld [vmem:[%s13271_s4 + $0x140] sm:$0xff] }
  0xc5   : > { %6885 = vmatmul.mubr.msk.f32.gmra.mxu1 %vm859_vm0, %v636_v46  ;;  %1378 = vmatprep.mubr.f32.mxu0 %v642_v47  ;;  %v2167_v46 = vld [vmem:[%s13271_s4 + $0x138] sm:$0xff]  ;;  %v849_v47 = vlaneseq }
  0xc6   : > { %1539 = vmatprep.mubr.f32.mxu1 %v13283_v8  ;;  %2231 = vmatpush1.msra.mxu0 %v2132_v17 }
  0xc7   : > { %2232 = vmatprep.subr.mxu0 %v2131_v18 }
  0xc8   : > { %1379 = vmatmul.mubr.f32.gmra.mxu0 %v641_v51  ;;  %v2163_v51 = vld [vmem:[%s13271_s4 + $0x118] sm:$0xff] }
  0xc9   : > { %6886 = vmatmul.mubr.msk.f32.gmra.mxu1 %vm859_vm0, %v643_v52  ;;  %1384 = vmatprep.mubr.f32.mxu0 %v649_v53  ;;  %v8943_v52 = vshrl.u32 %v849_v47, 7  ;;  %v2162_v53 = vld [vmem:[%s13271_s4 + $0x110] sm:$0xff] }
  0xca   : > { %1545 = vmatprep.mubr.f32.mxu1 %v13283_v8  ;;  %2233 = vmatpush1.msra.mxu0 %v2130_v19 }
  0xcb   : > { %2234 = vmatprep.subr.mxu0 %v2129_v20  ;;  %13305 = vst [vmem:[#allocation2_spill] sm:$0xff] %v8943_v52 }
  0xcc   : > { %1385 = vmatmul.mubr.f32.gmra.mxu0 %v648_v56  ;;  %v8955_v56 = vsub.s32 0, %v8943_v52 }
  0xcd   : > { %6887 = vmatmul.mubr.msk.f32.gmra.mxu1 %vm859_vm0, %v650_v57  ;;  %2235 = vmatpush1.msra.mxu0 %v2128_v21  ;;  %v8960_v57 = vld [vmem:[%s13270_s3] sm:$0x3] }
  0xce   : > { %2236 = vmatprep.subr.mxu0 %v2191_v22  ;;  %13306 = vst [vmem:[#allocation3_spill] sm:$0xff] %v8955_v56  ;;  %v8964_v58 = vrot.slane %v8960_v57, %v8955_v56 }
  0xcf   : > { %2237 = vmatpush2.msra.mxu0 %v2190_v23 }
  0xd0   : > { %2238 = vmatprep.subr.mxu0 %v2189_v24 }
  0xd1   : > { %2239 = vmatpush2.msra.mxu0 %v2188_v25 }
  0xd2   : > { %2240 = vmatprep.subr.mxu0 %v2187_v26 }
  0xd3   : > { %2241 = vmatpush2.msra.mxu0 %v2186_v27 }
  0xd4   : > { %2242 = vmatprep.subr.mxu0 %v2185_v28 }
  0xd5   : > { %2243 = vmatpush2.msra.mxu0 %v2184_v29 }
  0xd6   : > { %2244 = vmatprep.subr.mxu0 %v2183_v30 }
  0xd7   : > { %2245 = vmatpush2.msra.mxu0 %v2182_v31 }
  0xd8   : > { %2246 = vmatprep.subr.mxu0 %v2181_v32 }
  0xd9   : > { %2247 = vmatpush2.msra.mxu0 %v2180_v33 }
  0xda   : > { %2248 = vmatprep.subr.mxu0 %v2179_v34 }
  0xdb   : > { %2249 = vmatpush2.msra.mxu0 %v2178_v35 }
  0xdc   : > { %2250 = vmatprep.subr.mxu0 %v2177_v36 }
  0xdd   : > { %2251 = vmatpush2.msra.mxu0 %v2176_v37 }
  0xde   : > { %2252 = vmatprep.subr.mxu0 %v2175_v38 }
  0xdf   : > { %2253 = vmatpush2.msra.mxu0 %v2174_v39 }
  0xe0   : > { %2254 = vmatprep.subr.mxu0 %v2173_v40 }
  0xe1   : > { %2255 = vmatpush2.msra.mxu0 %v2172_v41 }
  0xe2   : > { %2256 = vmatprep.subr.mxu0 %v2171_v42 }
  0xe3   : > { %2257 = vmatpush2.msra.mxu0 %v2170_v43 }
  0xe4   : > { %2258 = vmatprep.subr.mxu0 %v2169_v44 }
  0xe5   : > { %2259 = vmatpush2.msra.mxu0 %v2168_v45 }
  0xe6   : > { %2260 = vmatprep.subr.mxu0 %v2167_v46 }
  0xe7   : > { %2261 = vmatpush2.msra.mxu0 %v2166_v48 }
  0xe8   : > { %2262 = vmatprep.subr.mxu0 %v2165_v49 }
  0xe9   : > { %2263 = vmatpush2.msra.mxu0 %v2164_v50 }
  0xea   : > { %2264 = vmatprep.subr.mxu0 %v2163_v51 }
  0xeb   : > { %2265 = vmatpush2.msra.mxu0 %v2162_v53 }
  0xec   : > { %2266 = vmatprep.subr.mxu0 %v2161_v54 }
  0xed   : > { %2267 = vmatpush2.msra.mxu0 %v2160_v55 }
 0x10c   : > { %v974_v59 = vpop.f32.mrf.mxu0 }
 0x10d   : > { %v975_v60 = vadd.f32 %v974_v59, %v8964_v58 }
 0x10e   : > { %v1135_v61 = vpop.f32.mrf.mxu1  ;;  %v8967_v62 = vpop.f32.mrf.mxu0 }
 0x10f   : > { %v8969_v63 = vadd.f32 %v1135_v61, %v975_v60 }
 0x110   : > { %v8971_v0 = vpop.f32.mrf.mxu1 }
 0x112   : > { %v980_v1 = vpop.f32.mrf.mxu0 }
 0x113   : > { %v981_v2 = vadd.f32 %v980_v1, %v8964_v58  ;;  %v1141_v3 = vpop.f32.mrf.mxu1 }
 0x114   : > { %v8974_v4 = vpop.f32.mrf.mxu0 }
 0x115   : > { %v8976_v5 = vadd.f32 %v1141_v3, %v981_v2  ;;  %v8978_v6 = vpop.f32.mrf.mxu1 }
 0x117   : > { %v986_v7 = vpop.f32.mrf.mxu0 }
 0x118   : > { %v987_v9 = vadd.f32 %v986_v7, %v8964_v58  ;;  %v1147_v10 = vpop.f32.mrf.mxu1 }
 0x119   : > { %v8981_v11 = vpop.f32.mrf.mxu0 }
 0x11a   : > { %v8983_v12 = vadd.f32 %v1147_v10, %v987_v9  ;;  %v8985_v13 = vpop.f32.mrf.mxu1 }
 0x11b   : > { %v992_v14 = vpop.f32.mrf.mxu0 }
 0x11c   : > { %v993_v15 = vadd.f32 %v992_v14, %v8964_v58  ;;  %v1153_v16 = vpop.f32.mrf.mxu1 }
 0x11d   : > { %v8988_v17 = vpop.f32.mrf.mxu0 }
 0x11e   : > { %v8990_v18 = vadd.f32 %v1153_v16, %v993_v15  ;;  %v8992_v19 = vpop.f32.mrf.mxu1 }
 0x11f   : > { %v998_v20 = vpop.f32.mrf.mxu0 }
 0x120   : > { %v999_v21 = vadd.f32 %v998_v20, %v8964_v58  ;;  %v1159_v22 = vpop.f32.mrf.mxu1 }
 0x121   : > { %v8995_v23 = vpop.f32.mrf.mxu0 }
 0x122   : > { %v8997_v24 = vadd.f32 %v1159_v22, %v999_v21  ;;  %v8999_v25 = vpop.f32.mrf.mxu1 }
 0x123   : > { %v1004_v26 = vpop.f32.mrf.mxu0 }
 0x124   : > { %v1005_v27 = vadd.f32 %v1004_v26, %v8964_v58  ;;  %v1165_v28 = vpop.f32.mrf.mxu1 }
 0x125   : > { %v9002_v29 = vpop.f32.mrf.mxu0 }
 0x126   : > { %v9004_v30 = vadd.f32 %v1165_v28, %v1005_v27  ;;  %v9006_v31 = vpop.f32.mrf.mxu1 }
 0x127   : > { %v1010_v32 = vpop.f32.mrf.mxu0 }
 0x128   : > { %v1011_v33 = vadd.f32 %v1010_v32, %v8964_v58  ;;  %v1171_v34 = vpop.f32.mrf.mxu1 }
 0x129   : > { %v9009_v35 = vpop.f32.mrf.mxu0 }
 0x12a   : > { %v9011_v36 = vadd.f32 %v1171_v34, %v1011_v33  ;;  %v9013_v37 = vpop.f32.mrf.mxu1  ;;  %v9058_v34 = vsub.s32 1, %v8943_v52 }
 0x12b   : > { %v1016_v38 = vpop.f32.mrf.mxu0 }
 0x12c   : > { %v1017_v39 = vadd.f32 %v1016_v38, %v8964_v58  ;;  %v1177_v40 = vpop.f32.mrf.mxu1  ;;  %13307 = vst [vmem:[#allocation4_spill] sm:$0xff] %v9058_v34 }
 0x12d   : > { %v9016_v41 = vpop.f32.mrf.mxu0 }
 0x12e   : > { %v9018_v42 = vadd.f32 %v1177_v40, %v1017_v39  ;;  %v9020_v43 = vpop.f32.mrf.mxu1 }
 0x12f   : > { %v1022_v44 = vpop.f32.mrf.mxu0 }
 0x130   : > { %v1023_v45 = vadd.f32 %v1022_v44, %v8964_v58  ;;  %v1183_v46 = vpop.f32.mrf.mxu1 }
 0x131   : > { %v9023_v47 = vpop.f32.mrf.mxu0 }
 0x132   : > { %v9025_v48 = vadd.f32 %v1183_v46, %v1023_v45  ;;  %v9027_v49 = vpop.f32.mrf.mxu1 }
 0x133   : > { %v1028_v50 = vpop.f32.mrf.mxu0 }
 0x134   : > { %v1029_v51 = vadd.f32 %v1028_v50, %v8964_v58  ;;  %v1189_v53 = vpop.f32.mrf.mxu1  ;;  %v9069_v50 = vrot.slane %v8960_v57, %v9058_v34 }
 0x135   : > { %v9030_v54 = vpop.f32.mrf.mxu0 }
 0x136   : > { %v9032_v55 = vadd.f32 %v1189_v53, %v1029_v51  ;;  %v9034_v59 = vpop.f32.mrf.mxu1  ;;  %v1007_v56 = vadd.f32 %v9002_v29, %v9069_v50 }
 0x138   : > { %v1034_v60 = vpop.f32.mrf.mxu0 }
 0x139   : > { %v1035_v61 = vadd.f32 %v1034_v60, %v8964_v58  ;;  %v1195_v1 = vpop.f32.mrf.mxu1 }
 0x13a   : > { %v9037_v2 = vpop.f32.mrf.mxu0 }
 0x13b   : > { %v9039_v3 = vadd.f32 %v1195_v1, %v1035_v61  ;;  %v9041_v7 = vpop.f32.mrf.mxu1 }
 0x13c   : > { %v1040_v9 = vpop.f32.mrf.mxu0 }
 0x13d   : > { %v1041_v10 = vadd.f32 %v1040_v9, %v8964_v58  ;;  %v1201_v14 = vpop.f32.mrf.mxu1 }
 0x13e   : > { %v9044_v15 = vpop.f32.mrf.mxu0 }
 0x13f   : > { %v9046_v16 = vadd.f32 %v1201_v14, %v1041_v10  ;;  %v9048_v20 = vpop.f32.mrf.mxu1  ;;  %v977_v10 = vadd.f32 %v8967_v62, %v9069_v50 }
 0x140   : > { %v1046_v21 = vpop.f32.mrf.mxu0 }
 0x141   : > { %v1047_v22 = vadd.f32 %v1046_v21, %v8964_v58  ;;  %v1207_v26 = vpop.f32.mrf.mxu1 }
 0x142   : > { %v9051_v27 = vpop.f32.mrf.mxu0 }
 0x143   : > { %v9053_v28 = vadd.f32 %v1207_v26, %v1047_v22  ;;  %v9055_v32 = vpop.f32.mrf.mxu1 }
 0x144   : > { %v1052_v33 = vpop.f32.mrf.mxu0 }
 0x145   : > { %v1053_v38 = vadd.f32 %v1052_v33, %v8964_v58  ;;  %v1213_v39 = vpop.f32.mrf.mxu1 }
 0x146   : > { %v9061_v40 = vpop.f32.mrf.mxu0 }
 0x147   : > { %v9063_v44 = vadd.f32 %v1213_v39, %v1053_v38  ;;  %v9065_v45 = vpop.f32.mrf.mxu1  ;;  %v1138_v38 = vadd.f32 %v8971_v0, %v977_v10  ;;  %v983_v39 = vadd.f32 %v8974_v4, %v9069_v50  ;;  %v989_v0 = vadd.f32 %v8981_v11, %v9069_v50 }
 0x148   : > { %v1058_v46 = vpop.f32.mrf.mxu0  ;;  %v1001_v11 = vadd.f32 %v8995_v23, %v9069_v50 }
 0x149   : > { %v1059_v51 = vadd.f32 %v1058_v46, %v8964_v58  ;;  %v1219_v53 = vpop.f32.mrf.mxu1 }
 0x14a   : > { %v9072_v60 = vpop.f32.mrf.mxu0 }
 0x14b   : > { %v9074_v61 = vadd.f32 %v1219_v53, %v1059_v51  ;;  %v9076_v1 = vpop.f32.mrf.mxu1 }
 0x14c   : > { %v1064_v9 = vpop.f32.mrf.mxu0 }
 0x14d   : > { %v1065_v14 = vadd.f32 %v1064_v9, %v8964_v58  ;;  %v1225_v21 = vpop.f32.mrf.mxu1 }
 0x14e   : > { %v9081_v22 = vpop.f32.mrf.mxu0 }
 0x14f   : > { %v9083_v57 = vadd.f32 %v1225_v21, %v1065_v14  ;;  %v9085_v26 = vpop.f32.mrf.mxu1  ;;  %v1144_v14 = vadd.f32 %v8978_v6, %v983_v39  ;;  %v995_v6 = vadd.f32 %v8988_v17, %v9069_v50 }
 0x150   : > { %v1296_v33 = vpop.f32.mrf.mxu0 }
 0x151   : > { %v1297_v46 = vadd.f32 %v1296_v33, %v8969_v63  ;;  %v1457_v51 = vpop.f32.mrf.mxu1 }
 0x152   : > { %v1298_v53 = vpop.f32.mrf.mxu0 }
 0x153   : > { %v9091_v62 = vadd.f32 %v1457_v51, %v1297_v46  ;;  %v1299_v58 = vadd.f32 %v1298_v53, %v1138_v38  ;;  %v1459_v9 = vpop.f32.mrf.mxu1 }
 0x154   : > { %v1302_v8 = vpop.f32.mrf.mxu0 }
 0x155   : > { %v1648_v21 = vand.u32 2147483647, %v9091_v62  ;;  %v9095_v52 = vadd.f32 %v1459_v9, %v1299_v58  ;;  %v1463_v34 = vpop.f32.mrf.mxu1  ;;  %v1303_v10 = vadd.f32 %v1302_v8, %v8976_v5  ;;  %v1150_v9 = vadd.f32 %v8985_v13, %v989_v0 }
 0x156   : > { %v1304_v4 = vpop.f32.mrf.mxu0  ;;  %v1156_v0 = vadd.f32 %v8992_v19, %v995_v6  ;;  %vm1584_vm3 = vcmp.ne.f32.partialorder %v9091_v62, %v9091_v62 }
 0x157   : > { %v1649_v63 = vand.u32 2147483647, %v9095_v52  ;;  %v1305_v33 = vadd.f32 %v1304_v4, %v1144_v14  ;;  %v1465_v46 = vpop.f32.mrf.mxu1  ;;  %v1680_v38 = vsub.f32 0.0, %v1648_v21  ;;  %v9111_v21 = vadd.f32 %v1463_v34, %v1303_v10 }
 0x158   : > { %v1308_v51 = vpop.f32.mrf.mxu0  ;;  %v1013_v34 = vadd.f32 %v9009_v35, %v9069_v50  ;;  %vm1585_vm1 = vcmp.ne.f32.partialorder %v9095_v52, %v9095_v52 }
 0x159   : > { %v1681_v39 = vsub.f32 0.0, %v1649_v63  ;;  %v9103_v53 = vadd.f32 %v1465_v46, %v1305_v33  ;;  %v1469_v58 = vpop.f32.mrf.mxu1  ;;  %v1309_v8 = vadd.f32 %v1308_v51, %v8983_v12  ;;  %v1712_v63 = vmul.f32 1.442695, %v1680_v38 }
 0x15a   : > { %v1310_v5 = vpop.f32.mrf.mxu0  ;;  %v1162_v12 = vadd.f32 %v8999_v25, %v1001_v11  ;;  %v1168_v51 = vadd.f32 %v9006_v31, %v1007_v56  ;;  %v1019_v38 = vadd.f32 %v9016_v41, %v9069_v50  ;;  %v1650_v19 = vand.u32 2147483647, %v9111_v21 }
 0x15b   : > { %v1714_v14 = vmul.f32 1.442695, %v1681_v39  ;;  %v1651_v17 = vand.u32 2147483647, %v9103_v53  ;;  %v1471_v4 = vpop.f32.mrf.mxu1  ;;  %v9114_v33 = vadd.f32 %v1469_v58, %v1309_v8  ;;  %v1311_v46 = vadd.f32 %v1310_v5, %v1150_v9 }
 0x15c   : > { %v1314_v13 = vpop.f32.mrf.mxu0  ;;  %v1025_v58 = vadd.f32 %v9023_v47, %v9069_v50  ;;  %v1031_v25 = vadd.f32 %v9030_v54, %v9069_v50  ;;  %v1037_v9 = vadd.f32 %v9037_v2, %v9069_v50  ;;  %v1043_v41 = vadd.f32 %v9044_v15, %v9069_v50 }
 0x15d   : > { %7079 = vpow2.f32 %v1714_v14  ;;  %v1315_v23 = vadd.f32 %v1314_v13, %v8990_v18  ;;  %v1475_v29 = vpop.f32.mrf.mxu1  ;;  %v1683_v10 = vsub.f32 0.0, %v1651_v17  ;;  %v1652_v56 = vand.u32 2147483647, %v9114_v33 }
 0x15e   : > { %v1316_v39 = vpop.f32.mrf.mxu0  ;;  %7081 = vpow2.f32 %v1712_v63  ;;  %v9130_v31 = vadd.f32 %v1471_v4, %v1311_v46  ;;  %v1174_v5 = vadd.f32 %v9013_v37, %v1013_v34  ;;  %v1049_v54 = vadd.f32 %v9051_v27, %v9069_v50 }
 0x15f   : > { %v1317_v6 = vadd.f32 %v1316_v39, %v1156_v0  ;;  %v1477_v18 = vpop.f32.mrf.mxu1  ;;  %v9136_v47 = vadd.f32 %v1475_v29, %v1315_v23  ;;  %v1718_v14 = vmul.f32 1.442695, %v1683_v10  ;;  %v1055_v2 = vadd.f32 %v9061_v40, %v9069_v50 }
 0x160   : > { %v1320_v35 = vpop.f32.mrf.mxu0  ;;  %v1682_v63 = vsub.f32 0.0, %v1650_v19  ;;  %v9150_v0 = vadd.f32 %v9027_v49, %v1025_v58  ;;  %v1684_v37 = vsub.f32 0.0, %v1652_v56  ;;  %v1653_v27 = vand.u32 2147483647, %v9130_v31 }
 0x161   : > { %v1321_v11 = vadd.f32 %v1320_v35, %v8997_v24  ;;  %v1481_v8 = vpop.f32.mrf.mxu1  ;;  %v9142_v17 = vadd.f32 %v1477_v18, %v1317_v6  ;;  %v1180_v24 = vadd.f32 %v9020_v43, %v1019_v38  ;;  %v9154_v29 = vadd.f32 %v9034_v59, %v1031_v25 }
 0x162   : > { %v1322_v4 = vpop.f32.mrf.mxu0  ;;  %v9157_v34 = vadd.f32 %v9041_v7, %v1037_v9  ;;  %v9160_v40 = vadd.f32 %v9048_v20, %v1043_v41  ;;  %7083 = vpow2.f32 %v1718_v14  ;;  %v9168_v59 = vadd.f32 %v9055_v32, %v1049_v54 }
 0x163   : > { %v9146_v46 = vadd.f32 %v1481_v8, %v1321_v11  ;;  %v1323_v15 = vadd.f32 %v1322_v4, %v1162_v12  ;;  %v1483_v13 = vpop.f32.mrf.mxu1  ;;  %v1654_v12 = vand.u32 2147483647, %v9136_v47  ;;  %v1655_v43 = vand.u32 2147483647, %v9142_v17 }
 0x164   : > { %v1326_v23 = vpop.f32.mrf.mxu0  ;;  %v9171_v7 = vadd.f32 %v9065_v45, %v1055_v2  ;;  %v1716_v58 = vmul.f32 1.442695, %v1682_v63  ;;  %v9176_v6 = vadd.f32 %v9072_v60, %v9069_v50  ;;  %v1720_v18 = vmul.f32 1.442695, %v1684_v37 }
 0x165   : > { %v1487_v10 = vpop.f32.mrf.mxu1  ;;  %v9164_v49 = vadd.f32 %v1483_v13, %v1323_v15  ;;  %v1327_v39 = vadd.f32 %v1326_v23, %v9004_v30  ;;  %v1656_v20 = vand.u32 2147483647, %v9146_v46  ;;  %v1685_v25 = vsub.f32 0.0, %v1653_v27 }
 0x166   : > { %v1328_v38 = vpop.f32.mrf.mxu0  ;;  %v9180_v30 = vadd.f32 %v9081_v22, %v9069_v50  ;;  %v1686_v32 = vsub.f32 0.0, %v1654_v12  ;;  %v1687_v60 = vsub.f32 0.0, %v1655_v43  ;;  %7085 = vpow2.f32 %v1716_v58 }
 0x167   : > { %v1489_v19 = vpop.f32.mrf.mxu1  ;;  %v1329_v56 = vadd.f32 %v1328_v38, %v1168_v51  ;;  %v9182_v9 = vadd.f32 %v1487_v10, %v1327_v39  ;;  %v1657_v54 = vand.u32 2147483647, %v9164_v49  ;;  %v1688_v4 = vsub.f32 0.0, %v1656_v20 }
 0x168   : > { %v1332_v35 = vpop.f32.mrf.mxu0  ;;  %7087 = vpow2.f32 %v1720_v18  ;;  %v1722_v63 = vmul.f32 1.442695, %v1685_v25  ;;  %v1553_v15 = vmax.f32 %v9095_v52, 0.0  ;;  %v1724_v27 = vmul.f32 1.442695, %v1686_v32 }
 0x169   : > { %v1333_v45 = vadd.f32 %v1332_v35, %v9011_v36  ;;  %v1493_v41 = vpop.f32.mrf.mxu1  ;;  %v9189_v14 = vadd.f32 %v1489_v19, %v1329_v56  ;;  %v1658_v23 = vand.u32 2147483647, %v9182_v9  ;;  %v1726_v39 = vmul.f32 1.442695, %v1687_v60 }
 0x16a   : > { %v9185_v11 = vpop.eup %7079  ;;  %v1334_v51 = vpop.f32.mrf.mxu0  ;;  %v1728_v20 = vmul.f32 1.442695, %v1688_v4  ;;  %vm1587_vm6 = vcmp.ne.f32.partialorder %v9103_v53, %v9103_v53  ;;  %vm1586_vm7 = vcmp.ne.f32.partialorder %v9111_v21, %v9111_v21  ;;  %vm1589_vm9 = vcmp.ne.f32.partialorder %v9130_v31, %v9130_v31 }
 0x16b   : > { %v9191_v50 = vadd.f32 %v1493_v41, %v1333_v45  ;;  %v1335_v22 = vadd.f32 %v1334_v51, %v1174_v5  ;;  %v1495_v2 = vpop.f32.mrf.mxu1  ;;  %v1785_v13 = vadd.f32 1.0, %v9185_v11  ;;  %v9195_v37 = vpop.eup %7081  ;;  %v1689_v5 = vsub.f32 0.0, %v1657_v54 }
 0x16c   : > { %v1338_v36 = vpop.f32.mrf.mxu0  ;;  %v1659_v38 = vand.u32 2147483647, %v9189_v14  ;;  %v1690_v41 = vsub.f32 0.0, %v1658_v23  ;;  %vm1588_vm10 = vcmp.ne.f32.partialorder %v9114_v33, %v9114_v33  ;;  %vm1591_vm13 = vcmp.ne.f32.partialorder %v9142_v17, %v9142_v17 }
 0x16d   : > { %v9198_v12 = vadd.f32 %v1495_v2, %v1335_v22  ;;  %v1339_v10 = vadd.f32 %v1338_v36, %v9018_v42  ;;  %v1499_v43 = vpop.f32.mrf.mxu1  ;;  %7089 = vlog2.f32 %v1785_v13  ;;  %v1660_v19 = vand.u32 2147483647, %v9191_v50 }
 0x16e   : > { %v1340_v58 = vpop.f32.mrf.mxu0  ;;  %7091 = vpow2.f32 %v1722_v63  ;;  %v1776_v42 = vadd.f32 1.0, %v9195_v37  ;;  %v1730_v4 = vmul.f32 1.442695, %v1689_v5  ;;  %v1691_v22 = vsub.f32 0.0, %v1659_v38 }
 0x16f   : > { %v9203_v18 = vadd.f32 %v1499_v43, %v1339_v10  ;;  %v1341_v25 = vadd.f32 %v1340_v58, %v1180_v24  ;;  %v1501_v56 = vpop.f32.mrf.mxu1  ;;  %v1661_v35 = vand.u32 2147483647, %v9198_v12  ;;  %7093 = vpow2.f32 %v1724_v27  ;;  %v9212_v63 = vpop.eup %7083 }
 0x170   : > { %v1344_v32 = vpop.f32.mrf.mxu0  ;;  %7095 = vpow2.f32 %v1726_v39  ;;  %v1692_v36 = vsub.f32 0.0, %v1660_v19  ;;  %v1788_v27 = vmul.f32 -0.5, %v9185_v11  ;;  %v1779_v39 = vmul.f32 -0.5, %v9195_v37 }
 0x171   : > { %v1662_v60 = vand.u32 2147483647, %v9203_v18  ;;  %v9209_v54 = vadd.f32 %v1501_v56, %v1341_v25  ;;  %v1505_v51 = vpop.f32.mrf.mxu1  ;;  %v1345_v24 = vadd.f32 %v1344_v32, %v9025_v48  ;;  %7097 = vpow2.f32 %v1728_v20 }
 0x172   : > { %v1346_v2 = vpop.f32.mrf.mxu0  ;;  %v1693_v23 = vsub.f32 0.0, %v1661_v35  ;;  %7099 = vlog2.f32 %v1776_v42  ;;  %v1732_v5 = vmul.f32 1.442695, %v1690_v41  ;;  %v1734_v19 = vmul.f32 1.442695, %v1691_v22 }
 0x173   : > { %v1663_v13 = vand.u32 2147483647, %v9209_v54  ;;  %v1507_v10 = vpop.f32.mrf.mxu1  ;;  %v1347_v43 = vadd.f32 %v1346_v2, %v9150_v0  ;;  %v1694_v38 = vsub.f32 0.0, %v1662_v60  ;;  %v9218_v48 = vadd.f32 %v1505_v51, %v1345_v24  ;;  %v9225_v41 = vpop.eup %7085 }
 0x174   : > { %v1350_v58 = vpop.f32.mrf.mxu0  ;;  %7101 = vpow2.f32 %v1730_v4  ;;  %v1803_v45 = vadd.f32 1.0, %v9212_v63  ;;  %v1736_v35 = vmul.f32 1.442695, %v1692_v36  ;;  %v1789_v2 = vadd.f32 1.0, %v1788_v27 }
 0x175   : > { %13308 = vst [vmem:[#allocation5_spill] sm:$0xff] %v9218_v48  ;;  %v1351_v25 = vadd.f32 %v1350_v58, %v9032_v55  ;;  %v1511_v20 = vpop.f32.mrf.mxu1  ;;  %v1695_v56 = vsub.f32 0.0, %v1663_v13  ;;  %v9222_v8 = vadd.f32 %v1507_v10, %v1347_v43  ;;  %v1738_v60 = vmul.f32 1.442695, %v1693_v23  ;;  %v9230_v22 = vpop.eup %7087 }
 0x176   : > { %v1352_v32 = vpop.f32.mrf.mxu0  ;;  %v1791_v4 = vand.u32 2147483647, %v9185_v11  ;;  %7103 = vlog2.f32 %v1803_v45  ;;  %v1740_v24 = vmul.f32 1.442695, %v1694_v38  ;;  %v1664_v36 = vand.u32 2147483647, %v9218_v48 }
 0x177   : > { %13309 = vst [vmem:[#allocation6_spill] sm:$0xff] %v9222_v8  ;;  %v1353_v0 = vadd.f32 %v1352_v32, %v9154_v29  ;;  %v1513_v42 = vpop.f32.mrf.mxu1  ;;  %v9227_v51 = vadd.f32 %v1511_v20, %v1351_v25  ;;  %7105 = vpow2.f32 %v1732_v5  ;;  %v1780_v29 = vadd.f32 1.0, %v1779_v39  ;;  %v2972_v39 = vld [vmem:[%s13273_s6 + $0xf8] sm:$0xff]  ;;  %v2971_v20 = vld [vmem:[%s13273_s6 + $0xf0] sm:$0xff] }
 0x178   : > { %v1356_v55 = vpop.f32.mrf.mxu0  ;;  %7107 = vpow2.f32 %v1734_v19  ;;  %v1742_v10 = vmul.f32 1.442695, %v1695_v56  ;;  %v1782_v43 = vand.u32 2147483647, %v9195_v37  ;;  %v1665_v45 = vand.u32 2147483647, %v9222_v8  ;;  %6907 = vmatprep.subr.mxu1 %v2972_v39 }
 0x179   : > { %13310 = vst [vmem:[#allocation7_spill] sm:$0xff] %v9227_v51  ;;  %v1517_v13 = vpop.f32.mrf.mxu1  ;;  %v1357_v27 = vadd.f32 %v1356_v55, %v9039_v3  ;;  %7109 = vpow2.f32 %v1736_v35  ;;  %v9238_v5 = vadd.f32 %v1513_v42, %v1353_v0  ;;  %v1790_v25 = vmul.f32 %v9185_v11, %v1789_v2  ;;  %v2956_v3 = vld [vmem:[%s13273_s6 + $0x78] sm:$0xff]  ;;  %v2955_v11 = vld [vmem:[%s13273_s6 + $0x70] sm:$0xff] }
 0x17a   : > { %v1358_v23 = vpop.f32.mrf.mxu0  ;;  %v7090_v58 = vpop.eup %7089  ;;  %7111 = vpow2.f32 %v1738_v60  ;;  %v1666_v19 = vand.u32 2147483647, %v9227_v51  ;;  %v1696_v42 = vsub.f32 0.0, %v1664_v36  ;;  %vm9257_vm2 = vcmp.lt.f32.partialorder %v1791_v4, 0.0004427343  ;;  %6908 = vmatpush3.msra.mxu1 %v2956_v3  ;;  %v2954_v36 = vld [vmem:[%s13273_s6 + $0x68] sm:$0xff] }
 0x17b   : > { %13311 = vst [vmem:[#allocation8_spill] sm:$0xff] %v9238_v5  ;;  %v1519_v38 = vpop.f32.mrf.mxu1  ;;  %v1359_v56 = vadd.f32 %v1358_v23, %v9157_v34  ;;  %v1787_v35 = vmul.f32 0.6931472, %v7090_v58  ;;  %v9255_v0 = vpop.eup %7091  ;;  %7113 = vpow2.f32 %v1740_v24  ;;  %v1781_v60 = vmul.f32 %v9195_v37, %v1780_v29  ;;  %v2970_v34 = vld [vmem:[%s13273_s6 + $0xe8] sm:$0xff]  ;;  %6909 = vmatprep.subr.mxu1 %v2971_v20 }
 0x17c   : > { %v1362_v32 = vpop.f32.mrf.mxu0  ;;  %v9265_v23 = vpop.eup %7093  ;;  %v9267_v58 = vadd.f32 %v1517_v13, %v1357_v27  ;;  %v1806_v37 = vmul.f32 -0.5, %v9212_v63  ;;  %7115 = vpow2.f32 %v1742_v10  ;;  %v1697_v13 = vsub.f32 0.0, %v1665_v45  ;;  %6910 = vmatpush3.msra.mxu1 %v2955_v11 }
 0x17d   : > { %v1523_v2 = vpop.f32.mrf.mxu1  ;;  %v1363_v39 = vadd.f32 %v1362_v32, %v9046_v16  ;;  %v1793_v4 = vsel %vm9257_vm2, %v1790_v25, %v1787_v35  ;;  %v9278_v29 = vpop.eup %7095  ;;  %v1667_v16 = vand.u32 2147483647, %v9238_v5  ;;  %vm9281_vm4 = vcmp.lt.f32.partialorder %v1782_v43, 0.0004427343  ;;  %v2969_v25 = vld [vmem:[%s13273_s6 + $0xe0] sm:$0xff]  ;;  %6911 = vmatprep.subr.mxu1 %v2970_v34 }
 0x17e   : > { %13314 = vst [vmem:[#allocation9_spill] sm:$0xff] %v9267_v58  ;;  %v1364_v24 = vpop.f32.mrf.mxu0  ;;  %v9288_v20 = vpop.eup %7097  ;;  %v1698_v32 = vsub.f32 0.0, %v1666_v19  ;;  %v9290_v35 = vadd.f32 %v1519_v38, %v1359_v56  ;;  %v2065_v55 = vadd.f32 %v1793_v4, %v1553_v15  ;;  %v2953_v43 = vld [vmem:[%s13273_s6 + $0x60] sm:$0xff]  ;;  %v1744_v51 = vmul.f32 1.442695, %v1696_v42  ;;  %6912 = vmatpush3.msra.mxu1 %v2954_v36 }
 0x17f   : > { %v1525_v27 = vpop.f32.mrf.mxu1  ;;  %v1365_v10 = vadd.f32 %v1364_v24, %v9160_v40  ;;  %v7100_v11 = vpop.eup %7099  ;;  %v9298_v5 = vadd.f32 %v1523_v2, %v1363_v39  ;;  %v1809_v38 = vand.u32 2147483647, %v9212_v63  ;;  %v1668_v40 = vand.u32 2147483647, %v9267_v58  ;;  %6913 = vmatprep.subr.mxu1 %v2969_v25 }
 0x180   : > { %v1368_v45 = vpop.f32.mrf.mxu0  ;;  %v2097_v15 = vsel %vm1585_vm1, %v9095_v52, %v2065_v55  ;;  %v1778_v34 = vmul.f32 0.6931472, %v7100_v11  ;;  %v1807_v24 = vadd.f32 1.0, %v1806_v37  ;;  %v1746_v2 = vmul.f32 1.442695, %v1697_v13  ;;  %6914 = vmatpush3.msra.mxu1 %v2953_v43 }
 0x181   : > { %v1369_v48 = vadd.f32 %v1368_v45, %v9053_v28  ;;  %v1529_v19 = vpop.f32.mrf.mxu1  ;;  %v9307_v42 = vpop.eup %7101  ;;  %v1699_v39 = vsub.f32 0.0, %v1667_v16  ;;  %v9309_v28 = vadd.f32 %v1525_v27, %v1365_v10  ;;  %2268 = vmatprep.mubr.f32.mxu0 %v2097_v15  ;;  %v1748_v45 = vmul.f32 1.442695, %v1698_v32 }
 0x182   : > { %v1370_v56 = vpop.f32.mrf.mxu0  ;;  %v1669_v58 = vand.u32 2147483647, %v9290_v35  ;;  %v1784_v52 = vsel %vm9281_vm4, %v1781_v60, %v1778_v34  ;;  %v1670_v13 = vand.u32 2147483647, %v9298_v5  ;;  %v13317_v16 = vmax.f32 %v9091_v62, 0.0 }
 0x183   : > { %v1371_v4 = vadd.f32 %v1370_v56, %v9168_v59  ;;  %v1531_v36 = vpop.f32.mrf.mxu1  ;;  %v9313_v8 = vadd.f32 %v1529_v19, %v1369_v48  ;;  %v7104_v25 = vpop.eup %7103  ;;  %v1794_v59 = vadd.f32 1.0, %v9225_v41  ;;  %v1700_v32 = vsub.f32 0.0, %v1668_v40 }
 0x184   : > { %v1374_v37 = vpop.f32.mrf.mxu0  ;;  %v2064_v27 = vadd.f32 %v1784_v52, %v13317_v16  ;;  %v9323_v55 = vpop.eup %7105  ;;  %v1805_v43 = vmul.f32 0.6931472, %v7104_v25  ;;  %v1808_v3 = vmul.f32 %v9212_v63, %v1807_v24  ;;  %v1750_v19 = vmul.f32 1.442695, %v1699_v39 }
 0x185   : > { %v9320_v10 = vadd.f32 %v1531_v36, %v1371_v4  ;;  %v1375_v48 = vadd.f32 %v1374_v37, %v9063_v44  ;;  %v9327_v11 = vpop.eup %7107  ;;  %v1671_v15 = vand.u32 2147483647, %v9309_v28  ;;  %v1535_v34 = vpop.f32.mrf.mxu1  ;;  %vm1810_vm5 = vcmp.lt.f32.partialorder %v1809_v38, 0.0004427343 }
 0x186   : > { %v1376_v60 = vpop.f32.mrf.mxu0  ;;  %v2096_v56 = vsel %vm1584_vm3, %v9091_v62, %v2064_v27  ;;  %v9334_v4 = vpop.eup %7109  ;;  %v1701_v40 = vsub.f32 0.0, %v1669_v58  ;;  %v1672_v44 = vand.u32 2147483647, %v9313_v8  ;;  %v1811_v24 = vsel %vm1810_vm5, %v1808_v3, %v1805_v43 }
 0x187   : > { %2269 = vmatmul.mubr.f32.vlgmr.msra.gmra.mxu0 %v2096_v56  ;;  %v9337_v63 = vadd.f32 %v1535_v34, %v1375_v48  ;;  %v9339_v36 = vpop.eup %7111  ;;  %v1702_v39 = vsub.f32 0.0, %v1670_v13  ;;  %v1673_v52 = vand.u32 2147483647, %v9320_v10  ;;  %v13318_v37 = vmax.f32 %v9103_v53, 0.0 }
 0x188   : > { %7117 = vlog2.f32 %v1794_v59  ;;  %v9344_v62 = vpop.eup %7113  ;;  %v1752_v38 = vmul.f32 1.442695, %v1700_v32  ;;  %v1377_v58 = vadd.f32 %v1376_v60, %v9171_v7  ;;  %v1380_v16 = vpop.f32.mrf.mxu0  ;;  %v1222_v27 = vadd.f32 %v9076_v1, %v9176_v6 }
 0x189   : > { %v2067_v25 = vadd.f32 %v1811_v24, %v13318_v37  ;;  %7119 = vpow2.f32 %v1744_v51  ;;  %v1703_v13 = vsub.f32 0.0, %v1671_v15  ;;  %v9352_v43 = vpop.eup %7115  ;;  %v1754_v59 = vmul.f32 1.442695, %v1701_v40  ;;  %v1537_v32 = vpop.f32.mrf.mxu1 }
 0x18a   : > { %7121 = vpow2.f32 %v1746_v2  ;;  %v1704_v3 = vsub.f32 0.0, %v1672_v44  ;;  %v1674_v51 = vand.u32 2147483647, %v9337_v63  ;;  %v1756_v56 = vmul.f32 1.442695, %v1702_v39  ;;  %v1382_v2 = vpop.f32.mrf.mxu0 }
 0x18b   : > { %v2099_v48 = vsel %vm1587_vm6, %v9103_v53, %v2067_v25  ;;  %7123 = vpow2.f32 %v1748_v45  ;;  %v1705_v7 = vsub.f32 0.0, %v1673_v52  ;;  %v1821_v60 = vadd.f32 1.0, %v9255_v0  ;;  %v1541_v44 = vpop.f32.mrf.mxu1 }
 0x18c   : > { %2274 = vmatprep.mubr.f32.mxu0 %v2099_v48  ;;  %7125 = vpow2.f32 %v1750_v19  ;;  %v9358_v1 = vadd.f32 %v9085_v26, %v9180_v30  ;;  %v1797_v53 = vmul.f32 -0.5, %v9225_v41  ;;  %v9361_v6 = vadd.f32 %v1537_v32, %v1377_v58 }
 0x18d   : > { %7127 = vpow2.f32 %v1752_v38  ;;  %v1758_v45 = vmul.f32 1.442695, %v1703_v13  ;;  %v1554_v15 = vmax.f32 %v9111_v21, 0.0  ;;  %v1381_v34 = vadd.f32 %v1380_v16, %v9074_v61  ;;  %v1386_v61 = vpop.f32.mrf.mxu0 }
 0x18e   : > { %7129 = vlog2.f32 %v1821_v60  ;;  %v1760_v19 = vmul.f32 1.442695, %v1704_v3  ;;  %v1706_v40 = vsub.f32 0.0, %v1674_v51  ;;  %v1812_v24 = vadd.f32 1.0, %v9230_v22  ;;  %v1543_v3 = vpop.f32.mrf.mxu1 }
 0x18f   : > { %7131 = vpow2.f32 %v1754_v59  ;;  %v1762_v26 = vmul.f32 1.442695, %v1705_v7  ;;  %v1557_v30 = vmax.f32 %v9130_v31, 0.0  ;;  %v1798_v52 = vadd.f32 1.0, %v1797_v53 }
 0x190   : > { %7133 = vpow2.f32 %v1756_v56  ;;  %v1675_v37 = vand.u32 2147483647, %v9361_v6  ;;  %v1824_v25 = vmul.f32 -0.5, %v9255_v0  ;;  %v9372_v38 = vadd.f32 %v1541_v44, %v1381_v34 }
 0x191   : > { %7135 = vlog2.f32 %v1812_v24  ;;  %v1839_v58 = vadd.f32 1.0, %v9278_v29  ;;  %v1764_v13 = vmul.f32 1.442695, %v1706_v40  ;;  %v1800_v48 = vand.u32 2147483647, %v9225_v41 }
 0x192   : > { %7137 = vpow2.f32 %v1758_v45  ;;  %v1383_v59 = vadd.f32 %v1382_v2, %v1222_v27  ;;  %v1387_v51 = vadd.f32 %v1386_v61, %v9083_v57  ;;  %v1799_v60 = vmul.f32 %v9225_v41, %v1798_v52  ;;  %v1388_v2 = vpop.f32.mrf.mxu0  ;;  %v1547_v41 = vpop.f32.mrf.mxu1 }
 0x193   : > { %7139 = vpow2.f32 %v1760_v19  ;;  %v1707_v53 = vsub.f32 0.0, %v1675_v37  ;;  %v1825_v45 = vadd.f32 1.0, %v1824_v25  ;;  %v1676_v40 = vand.u32 2147483647, %v9372_v38 }
 0x194   : > { %7141 = vlog2.f32 %v1839_v58  ;;  %v1815_v27 = vmul.f32 -0.5, %v9230_v22  ;;  %v1830_v57 = vadd.f32 1.0, %v9265_v23  ;;  %vm1801_vm8 = vcmp.lt.f32.partialorder %v1800_v48, 0.0004427343 }
 0x195   : > { %v7118_v7 = vpop.eup %7117  ;;  %7143 = vpow2.f32 %v1762_v26  ;;  %v1827_v24 = vand.u32 2147483647, %v9255_v0  ;;  %v9389_v26 = vadd.f32 %v1543_v3, %v1383_v59  ;;  %v9395_v25 = vadd.f32 %v1547_v41, %v1387_v51 }
 0x196   : > { %v9381_v34 = vpop.eup %7119  ;;  %v1796_v19 = vmul.f32 0.6931472, %v7118_v7  ;;  %7145 = vpow2.f32 %v1764_v13  ;;  %v1842_v61 = vmul.f32 -0.5, %v9278_v29  ;;  %v1766_v48 = vmul.f32 1.442695, %v1707_v53 }
 0x197   : > { %v9386_v44 = vpop.eup %7121  ;;  %13319 = vst [vmem:[#allocation10_spill] sm:$0xff] %v9395_v25  ;;  %7147 = vlog2.f32 %v1830_v57  ;;  %v1826_v7 = vmul.f32 %v9255_v0, %v1825_v45  ;;  %v1389_v59 = vadd.f32 %v1388_v2, %v9358_v1  ;;  %v1708_v56 = vsub.f32 0.0, %v1676_v40  ;;  %v1549_v2 = vpop.f32.mrf.mxu1 }
 0x198   : > { %v9391_v52 = vpop.eup %7123  ;;  %v1802_v37 = vsel %vm1801_vm8, %v1799_v60, %v1796_v19  ;;  %v1816_v60 = vadd.f32 1.0, %v1815_v27  ;;  %v1818_v19 = vand.u32 2147483647, %v9230_v22  ;;  %v1857_v51 = vadd.f32 1.0, %v9307_v42 }
 0x199   : > { %v9398_v58 = vpop.eup %7125  ;;  %v2066_v13 = vadd.f32 %v1802_v37, %v1554_v15  ;;  %v1677_v0 = vand.u32 2147483647, %v9389_v26  ;;  %v1845_v1 = vand.u32 2147483647, %v9278_v29  ;;  %v1848_v15 = vadd.f32 1.0, %v9288_v20 }
 0x19a   : > { %v9402_v3 = vpop.eup %7127  ;;  %v1678_v40 = vand.u32 2147483647, %v9395_v25  ;;  %v1843_v27 = vadd.f32 1.0, %v1842_v61  ;;  %7149 = vlog2.f32 %v1857_v51  ;;  %vm1828_vm11 = vcmp.lt.f32.partialorder %v1827_v24, 0.0004427343 }
 0x19b   : > { %v7130_v41 = vpop.eup %7129  ;;  %v2098_v57 = vsel %vm1586_vm7, %v9111_v21, %v2066_v13  ;;  %v1833_v21 = vmul.f32 -0.5, %v9265_v23  ;;  %v9421_v13 = vadd.f32 %v1549_v2, %v1389_v59  ;;  %7151 = vlog2.f32 %v1848_v15 }
 0x19c   : > { %v9415_v53 = vpop.eup %7131  ;;  %2275 = vmatmul.mubr.f32.gmra.mxu0 %v2098_v57  ;;  %v1823_v45 = vmul.f32 0.6931472, %v7130_v41  ;;  %7153 = vpow2.f32 %v1766_v48  ;;  %v1768_v32 = vmul.f32 1.442695, %v1708_v56  ;;  %vm9423_vm12 = vcmp.lt.f32.partialorder %v1818_v19, 0.0004427343 }
 0x19d   : > { %v9418_v37 = vpop.eup %7133  ;;  %13320 = vst [vmem:[#allocation11_spill] sm:$0xff] %v9421_v13  ;;  %v1817_v59 = vmul.f32 %v9230_v22, %v1816_v60  ;;  %v1709_v41 = vsub.f32 0.0, %v1677_v0  ;;  %v1710_v56 = vsub.f32 0.0, %v1678_v40  ;;  %v1844_v48 = vmul.f32 %v9278_v29, %v1843_v27 }
 0x19e   : > { %v7136_v16 = vpop.eup %7135  ;;  %v1829_v39 = vsel %vm1828_vm11, %v1826_v7, %v1823_v45  ;;  %vm9437_vm14 = vcmp.lt.f32.partialorder %v1845_v1, 0.0004427343  ;;  %v1875_v19 = vadd.f32 1.0, %v9327_v11  ;;  %v13325_v29 = vmax.f32 %v9114_v33, 0.0 }
 0x19f   : > { %v9429_v61 = vpop.eup %7137  ;;  %v2069_v24 = vadd.f32 %v1829_v39, %v1557_v30  ;;  %v1814_v51 = vmul.f32 0.6931472, %v7136_v16  ;;  %v1834_v39 = vadd.f32 1.0, %v1833_v21  ;;  %v1679_v16 = vand.u32 2147483647, %v9421_v13 }
 0x1a0   : > { %v9434_v15 = vpop.eup %7139  ;;  %vm1590_vm15 = vcmp.ne.f32.partialorder %v9136_v47, %v9136_v47  ;;  %v1860_v40 = vmul.f32 -0.5, %v9307_v42  ;;  %7155 = vlog2.f32 %v1875_v19  ;;  %v1836_v27 = vand.u32 2147483647, %v9265_v23 }
 0x1a1   : > { %v7142_v45 = vpop.eup %7141  ;;  %v2101_v30 = vsel %vm1589_vm9, %v9130_v31, %v2069_v24  ;;  %v1820_v22 = vsel %vm9423_vm12, %v1817_v59, %v1814_v51  ;;  %v1770_v31 = vmul.f32 1.442695, %v1709_v41  ;;  %v1851_v2 = vmul.f32 -0.5, %v9288_v20 }
 0x1a2   : > { %v9449_v60 = vpop.eup %7143  ;;  %2280 = vmatprep.mubr.f32.mxu0 %v2101_v30  ;;  %v2068_v0 = vadd.f32 %v1820_v22, %v13325_v29  ;;  %v1841_v1 = vmul.f32 0.6931472, %v7142_v45  ;;  %v1866_v21 = vadd.f32 1.0, %v9323_v55  ;;  %7157 = vpow2.f32 %v1768_v32 }
 0x1a3   : > { %v9459_v57 = vpop.eup %7145  ;;  %v1772_v51 = vmul.f32 1.442695, %v1710_v56  ;;  %v13326_v41 = vmax.f32 %v9142_v17, 0.0  ;;  %v1835_v30 = vmul.f32 %v9265_v23, %v1834_v39  ;;  %v1863_v22 = vand.u32 2147483647, %v9307_v42 }
 0x1a4   : > { %v2100_v24 = vsel %vm1588_vm10, %v9114_v33, %v2068_v0  ;;  %v1847_v59 = vsel %vm9437_vm14, %v1844_v48, %v1841_v1  ;;  %v7148_v19 = vpop.eup %7147  ;;  %7159 = vlog2.f32 %v1866_v21  ;;  %v1711_v29 = vsub.f32 0.0, %v1679_v16 }
 0x1a5   : > { %2281 = vmatmul.mubr.f32.gmra.mxu0 %v2100_v24  ;;  %v2071_v45 = vadd.f32 %v1847_v59, %v13326_v41  ;;  %v1832_v32 = vmul.f32 0.6931472, %v7148_v19  ;;  %v1861_v25 = vadd.f32 1.0, %v1860_v40  ;;  %v1893_v13 = vadd.f32 1.0, %v9339_v36 }
 0x1a6   : > { %7161 = vpow2.f32 %v1770_v31  ;;  %vm1837_vm1 = vcmp.lt.f32.partialorder %v1836_v27, 0.0004427343  ;;  %vm1592_vm2 = vcmp.ne.f32.partialorder %v9146_v46, %v9146_v46  ;;  %v1852_v56 = vadd.f32 1.0, %v1851_v2 }
 0x1a7   : > { %v2103_v33 = vsel %vm1591_vm13, %v9142_v17, %v2071_v45  ;;  %v1838_v23 = vsel %vm1837_vm1, %v1835_v30, %v1832_v32  ;;  %v1854_v48 = vand.u32 2147483647, %v9288_v20  ;;  %v1878_v7 = vmul.f32 -0.5, %v9327_v11  ;;  %v7150_v39 = vpop.eup %7149 }
 0x1a8   : > { %2286 = vmatprep.mubr.f32.mxu0 %v2103_v33  ;;  %7163 = vlog2.f32 %v1893_v13  ;;  %v13327_v16 = vmax.f32 %v9136_v47, 0.0  ;;  %v1561_v1 = vmax.f32 %v9164_v49, 0.0  ;;  %vm9483_vm3 = vcmp.lt.f32.partialorder %v1863_v22, 0.0004427343  ;;  %v7152_v40 = vpop.eup %7151 }
 0x1a9   : > { %7165 = vpow2.f32 %v1772_v51  ;;  %v1774_v31 = vmul.f32 1.442695, %v1711_v29  ;;  %v1859_v27 = vmul.f32 0.6931472, %v7150_v39  ;;  %v1862_v2 = vmul.f32 %v9307_v42, %v1861_v25  ;;  %v9489_v24 = vpop.eup %7153 }
 0x1aa   : > { %v2070_v0 = vadd.f32 %v1838_v23, %v13327_v16  ;;  %v1884_v21 = vadd.f32 1.0, %v9334_v4  ;;  %v1850_v51 = vmul.f32 0.6931472, %v7152_v40  ;;  %v1853_v59 = vmul.f32 %v9288_v20, %v1852_v56 }
 0x1ab   : > { %v1869_v19 = vmul.f32 -0.5, %v9323_v55  ;;  %v1865_v41 = vsel %vm9483_vm3, %v1862_v2, %v1859_v27  ;;  %vm1855_vm4 = vcmp.lt.f32.partialorder %v1854_v48, 0.0004427343  ;;  %v1879_v42 = vadd.f32 1.0, %v1878_v7 }
 0x1ac   : > { %v2102_v13 = vsel %vm1590_vm15, %v9136_v47, %v2070_v0  ;;  %7167 = vlog2.f32 %v1884_v21  ;;  %v2073_v25 = vadd.f32 %v1865_v41, %v1561_v1  ;;  %v1856_v45 = vsel %vm1855_vm4, %v1853_v59, %v1850_v51 }
 0x1ad   : > { %2287 = vmatmul.mubr.f32.gmra.mxu0 %v2102_v13  ;;  %v1881_v30 = vand.u32 2147483647, %v9327_v11  ;;  %v1911_v22 = vadd.f32 1.0, %v9352_v43  ;;  %7169 = vpow2.f32 %v1774_v31  ;;  %vm1593_vm5 = vcmp.ne.f32.partialorder %v9164_v49, %v9164_v49  ;;  %v7156_v29 = vpop.eup %7155 }
 0x1ae   : > { %v13330_v47 = vmax.f32 %v9146_v46, 0.0  ;;  %v1896_v32 = vmul.f32 -0.5, %v9339_v36  ;;  %v2105_v33 = vsel %vm1593_vm5, %v9164_v49, %v2073_v25  ;;  %v1563_v56 = vmax.f32 %v9189_v14, 0.0 }
 0x1af   : > { %v1870_v23 = vadd.f32 1.0, %v1869_v19  ;;  %7171 = vlog2.f32 %v1911_v22  ;;  %2292 = vmatprep.mubr.f32.mxu0 %v2105_v33  ;;  %v1877_v7 = vmul.f32 0.6931472, %v7156_v29  ;;  %v1880_v39 = vmul.f32 %v9327_v11, %v1879_v42  ;;  %v9514_v0 = vpop.eup %7157 }
 0x1b0   : > { %v2072_v20 = vadd.f32 %v1856_v45, %v13330_v47  ;;  %v1872_v16 = vand.u32 2147483647, %v9323_v55  ;;  %vm1595_vm6 = vcmp.ne.f32.partialorder %v9189_v14, %v9189_v14  ;;  %vm1882_vm7 = vcmp.lt.f32.partialorder %v1881_v30, 0.0004427343 }
 0x1b1   : > { %v1899_v49 = vand.u32 2147483647, %v9339_v36  ;;  %v1902_v1 = vadd.f32 1.0, %v9344_v62  ;;  %v7160_v17 = vpop.eup %7159  ;;  %v1883_v40 = vsel %vm1882_vm7, %v1880_v39, %v1877_v7  ;;  %v1897_v31 = vadd.f32 1.0, %v1896_v32 }
 0x1b2   : > { %v2104_v48 = vsel %vm1592_vm2, %v9146_v46, %v2072_v20  ;;  %v1887_v46 = vmul.f32 -0.5, %v9334_v4  ;;  %v1929_v11 = vadd.f32 1.0, %v9386_v44  ;;  %v2075_v27 = vadd.f32 %v1883_v40, %v1563_v56 }
 0x1b3   : > { %2293 = vmatmul.mubr.f32.gmra.mxu0 %v2104_v48  ;;  %v1868_v2 = vmul.f32 0.6931472, %v7160_v17  ;;  %v1871_v21 = vmul.f32 %v9323_v55, %v1870_v23  ;;  %7173 = vlog2.f32 %v1902_v1  ;;  %v9523_v13 = vpop.eup %7161  ;;  %v1562_v51 = vmax.f32 %v9182_v9, 0.0 }
 0x1b4   : > { %vm1873_vm8 = vcmp.lt.f32.partialorder %v1872_v16, 0.0004427343  ;;  %v1914_v59 = vmul.f32 -0.5, %v9352_v43  ;;  %7175 = vlog2.f32 %v1929_v11  ;;  %v2107_v41 = vsel %vm1595_vm6, %v9189_v14, %v2075_v27 }
 0x1b5   : > { %v7164_v19 = vpop.eup %7163  ;;  %vm1594_vm9 = vcmp.ne.f32.partialorder %v9182_v9, %v9182_v9  ;;  %v1874_v42 = vsel %vm1873_vm8, %v1871_v21, %v1868_v2  ;;  %v1565_v55 = vmax.f32 %v9198_v12, 0.0  ;;  %2298 = vmatprep.mubr.f32.mxu0 %v2107_v41  ;;  %v1898_v22 = vmul.f32 %v9339_v36, %v1897_v31 }
 0x1b6   : > { %v9534_v25 = vpop.eup %7165  ;;  %v2074_v45 = vadd.f32 %v1874_v42, %v1562_v51  ;;  %v1895_v30 = vmul.f32 0.6931472, %v7164_v19  ;;  %v1888_v47 = vadd.f32 1.0, %v1887_v46  ;;  %vm1597_vm10 = vcmp.ne.f32.partialorder %v9198_v12, %v9198_v12 }
 0x1b7   : > { %vm1900_vm11 = vcmp.lt.f32.partialorder %v1899_v49, 0.0004427343  ;;  %v1890_v14 = vand.u32 2147483647, %v9334_v4  ;;  %v1920_v20 = vadd.f32 1.0, %v9381_v34  ;;  %v1915_v33 = vadd.f32 1.0, %v1914_v59 }
 0x1b8   : > { %v2106_v32 = vsel %vm1594_vm9, %v9182_v9, %v2074_v45  ;;  %v1901_v29 = vsel %vm1900_vm11, %v1898_v22, %v1895_v30  ;;  %v1905_v56 = vmul.f32 -0.5, %v9344_v62  ;;  %v1564_v36 = vmax.f32 %v9191_v50, 0.0 }
 0x1b9   : > { %v7168_v23 = vpop.eup %7167  ;;  %2299 = vmatmul.mubr.f32.gmra.mxu0 %v2106_v32  ;;  %v2077_v48 = vadd.f32 %v1901_v29, %v1565_v55  ;;  %v1932_v7 = vmul.f32 -0.5, %v9386_v44  ;;  %7177 = vlog2.f32 %v1920_v20  ;;  %v1889_v16 = vmul.f32 %v9334_v4, %v1888_v47 }
 0x1ba   : > { %v1886_v39 = vmul.f32 0.6931472, %v7168_v23  ;;  %v1917_v49 = vand.u32 2147483647, %v9352_v43  ;;  %v1947_v1 = vadd.f32 1.0, %v9398_v58  ;;  %v9548_v9 = vpop.eup %7169  ;;  %vm1596_vm12 = vcmp.ne.f32.partialorder %v9191_v50, %v9191_v50  ;;  %v13331_v23 = vld [vmem:[#allocation6_spill] sm:$0xff] }
 0x1bb   : > { %v2109_v17 = vsel %vm1597_vm10, %v9198_v12, %v2077_v48  ;;  %vm1891_vm13 = vcmp.lt.f32.partialorder %v1890_v14, 0.0004427343  ;;  %v1908_v40 = vand.u32 2147483647, %v9344_v62  ;;  %v1916_v46 = vmul.f32 %v9352_v43, %v1915_v33 }
 0x1bc   : > { %v7172_v31 = vpop.eup %7171  ;;  %2304 = vmatprep.mubr.f32.mxu0 %v2109_v17  ;;  %v1892_v4 = vsel %vm1891_vm13, %v1889_v16, %v1886_v39  ;;  %v1906_v11 = vadd.f32 1.0, %v1905_v56  ;;  %7179 = vlog2.f32 %v1947_v1  ;;  %v1933_v21 = vadd.f32 1.0, %v1932_v7 }
 0x1bd   : > { %v2076_v27 = vadd.f32 %v1892_v4, %v1564_v36  ;;  %v1913_v2 = vmul.f32 0.6931472, %v7172_v31  ;;  %v1938_v51 = vadd.f32 1.0, %v9391_v52  ;;  %v1567_v12 = vmax.f32 %v9209_v54, 0.0 }
 0x1be   : > { %vm1599_vm14 = vcmp.ne.f32.partialorder %v9209_v54, %v9209_v54  ;;  %vm1918_vm15 = vcmp.lt.f32.partialorder %v1917_v49, 0.0004427343  ;;  %v1923_v59 = vmul.f32 -0.5, %v9381_v34  ;;  %v1935_v41 = vand.u32 2147483647, %v9386_v44 }
 0x1bf   : > { %v2108_v43 = vsel %vm1596_vm12, %v9191_v50, %v2076_v27  ;;  %v1919_v19 = vsel %vm1918_vm15, %v1916_v46, %v1913_v2  ;;  %7181 = vlog2.f32 %v1938_v51  ;;  %v1566_v45 = vmax.f32 %v9203_v18, 0.0  ;;  %v13332_v27 = vld [vmem:[#allocation5_spill] sm:$0xff] }
 0x1c0   : > { %v7174_v42 = vpop.eup %7173  ;;  %2305 = vmatmul.mubr.f32.gmra.mxu0 %v2108_v43  ;;  %v2079_v55 = vadd.f32 %v1919_v19, %v1567_v12  ;;  %v1950_v30 = vmul.f32 -0.5, %v9398_v58  ;;  %v1965_v22 = vadd.f32 1.0, %v9415_v53  ;;  %v1907_v20 = vmul.f32 %v9344_v62, %v1906_v11 }
 0x1c1   : > { %v7176_v47 = vpop.eup %7175  ;;  %v1904_v14 = vmul.f32 0.6931472, %v7174_v42  ;;  %vm1909_vm1 = vcmp.lt.f32.partialorder %v1908_v40, 0.0004427343  ;;  %v1934_v50 = vmul.f32 %v9386_v44, %v1933_v21  ;;  %v1924_v33 = vadd.f32 1.0, %v1923_v59  ;;  %v13333_v42 = vld [vmem:[#allocation8_spill] sm:$0xff] }
 0x1c2   : > { %v2111_v32 = vsel %vm1599_vm14, %v9209_v54, %v2079_v55  ;;  %v1931_v29 = vmul.f32 0.6931472, %v7176_v47  ;;  %7183 = vlog2.f32 %v1965_v22  ;;  %v1569_v48 = vmax.f32 %v13331_v23, 0.0  ;;  %v13334_v47 = vld [vmem:[#allocation7_spill] sm:$0xff] }
 0x1c3   : > { %2310 = vmatprep.mubr.f32.mxu0 %v2111_v32  ;;  %v1910_v56 = vsel %vm1909_vm1, %v1907_v20, %v1904_v14  ;;  %vm1936_vm2 = vcmp.lt.f32.partialorder %v1935_v41, 0.0004427343  ;;  %v1926_v36 = vand.u32 2147483647, %v9381_v34  ;;  %v1951_v39 = vadd.f32 1.0, %v1950_v30 }
 0x1c4   : > { %v2078_v7 = vadd.f32 %v1910_v56, %v1566_v45  ;;  %v1937_v62 = vsel %vm1936_vm2, %v1934_v50, %v1931_v29  ;;  %v1956_v44 = vadd.f32 1.0, %v9402_v3  ;;  %vm1598_vm3 = vcmp.ne.f32.partialorder %v9203_v18, %v9203_v18 }
 0x1c5   : > { %vm1601_vm4 = vcmp.ne.f32.partialorder %v13331_v23, %v13331_v23  ;;  %v2081_v54 = vadd.f32 %v1937_v62, %v1569_v48  ;;  %v1941_v16 = vmul.f32 -0.5, %v9391_v52  ;;  %v1925_v17 = vmul.f32 %v9381_v34, %v1924_v33 }
 0x1c6   : > { %v7178_v49 = vpop.eup %7177  ;;  %v2110_v1 = vsel %vm1598_vm3, %v9203_v18, %v2078_v7  ;;  %v1968_v40 = vmul.f32 -0.5, %v9415_v53  ;;  %7185 = vlog2.f32 %v1956_v44  ;;  %v1953_v46 = vand.u32 2147483647, %v9398_v58 }
 0x1c7   : > { %2311 = vmatmul.mubr.f32.gmra.mxu0 %v2110_v1  ;;  %v2113_v31 = vsel %vm1601_vm4, %v13331_v23, %v2081_v54  ;;  %v1922_v4 = vmul.f32 0.6931472, %v7178_v49  ;;  %v1983_v11 = vadd.f32 1.0, %v9429_v61  ;;  %v1568_v2 = vmax.f32 %v13332_v27, 0.0  ;;  %v2968_v54 = vld [vmem:[%s13273_s6 + $0xd8] sm:$0xff] }
 0x1c8   : > { %2316 = vmatprep.mubr.f32.mxu0 %v2113_v31  ;;  %vm1600_vm5 = vcmp.ne.f32.partialorder %v13332_v27, %v13332_v27  ;;  %vm1927_vm6 = vcmp.lt.f32.partialorder %v1926_v36, 0.0004427343  ;;  %v1952_v18 = vmul.f32 %v9398_v58, %v1951_v39  ;;  %v1942_v51 = vadd.f32 1.0, %v1941_v16  ;;  %6915 = vmatprep.subr.mxu1 %v2968_v54  ;;  %v13335_v31 = vld [vmem:[#allocation9_spill] sm:$0xff] }
 0x1c9   : > { %v7180_v34 = vpop.eup %7179  ;;  %v1928_v21 = vsel %vm1927_vm6, %v1925_v17, %v1922_v4  ;;  %7187 = vlog2.f32 %v1983_v11  ;;  %v1974_v12 = vadd.f32 1.0, %v9418_v37  ;;  %v1944_v19 = vand.u32 2147483647, %v9391_v52 }
 0x1ca   : > { %v2080_v59 = vadd.f32 %v1928_v21, %v1568_v2  ;;  %v1949_v43 = vmul.f32 0.6931472, %v7180_v34  ;;  %v1969_v41 = vadd.f32 1.0, %v1968_v40  ;;  %v1571_v55 = vmax.f32 %v13333_v42, 0.0 }
 0x1cb   : > { %vm1954_vm7 = vcmp.lt.f32.partialorder %v1953_v46, 0.0004427343  ;;  %v1959_v45 = vmul.f32 -0.5, %v9402_v3  ;;  %7189 = vlog2.f32 %v1974_v12  ;;  %vm1603_vm8 = vcmp.ne.f32.partialorder %v13333_v42, %v13333_v42 }
 0x1cc   : > { %v7182_v30 = vpop.eup %7181  ;;  %v2112_v58 = vsel %vm1600_vm5, %v13332_v27, %v2080_v59  ;;  %v1955_v22 = vsel %vm1954_vm7, %v1952_v18, %v1949_v43  ;;  %v1570_v14 = vmax.f32 %v13334_v47, 0.0  ;;  %v1943_v32 = vmul.f32 %v9391_v52, %v1942_v51 }
 0x1cd   : > { %2317 = vmatmul.mubr.f32.gmra.mxu0 %v2112_v58  ;;  %v2083_v20 = vadd.f32 %v1955_v22, %v1571_v55  ;;  %v1940_v50 = vmul.f32 0.6931472, %v7182_v30  ;;  %v1971_v29 = vand.u32 2147483647, %v9415_v53  ;;  %vm1602_vm9 = vcmp.ne.f32.partialorder %v13334_v47, %v13334_v47 }
 0x1ce   : > { %vm1945_vm10 = vcmp.lt.f32.partialorder %v1944_v19, 0.0004427343  ;;  %v1970_v33 = vmul.f32 %v9415_v53, %v1969_v41  ;;  %v2001_v56 = vadd.f32 1.0, %v9449_v60  ;;  %v1960_v7 = vadd.f32 1.0, %v1959_v45  ;;  %v2952_v53 = vld [vmem:[%s13273_s6 + $0x58] sm:$0xff] }
 0x1cf   : > { %v7184_v23 = vpop.eup %7183  ;;  %v2115_v48 = vsel %vm1603_vm8, %v13333_v42, %v2083_v20  ;;  %v1946_v36 = vsel %vm1945_vm10, %v1943_v32, %v1940_v50  ;;  %v1986_v62 = vmul.f32 -0.5, %v9429_v61  ;;  %v1977_v44 = vmul.f32 -0.5, %v9418_v37  ;;  %6916 = vmatpush3.msra.mxu1 %v2952_v53 }
 0x1d0   : > { %2322 = vmatprep.mubr.f32.mxu0 %v2115_v48  ;;  %v2082_v39 = vadd.f32 %v1946_v36, %v1570_v14  ;;  %v1967_v52 = vmul.f32 0.6931472, %v7184_v23  ;;  %7191 = vlog2.f32 %v2001_v56  ;;  %v1573_v16 = vmax.f32 %v9290_v35, 0.0 }
 0x1d1   : > { %vm1972_vm11 = vcmp.lt.f32.partialorder %v1971_v29, 0.0004427343  ;;  %v1962_v49 = vand.u32 2147483647, %v9402_v3  ;;  %v1992_v1 = vadd.f32 1.0, %v9434_v15  ;;  %vm1605_vm12 = vcmp.ne.f32.partialorder %v9290_v35, %v9290_v35 }
 0x1d2   : > { %v2114_v17 = vsel %vm1602_vm9, %v13334_v47, %v2082_v39  ;;  %v1973_v40 = vsel %vm1972_vm11, %v1970_v33, %v1967_v52  ;;  %v1572_v4 = vmax.f32 %v13335_v31, 0.0  ;;  %v1961_v27 = vmul.f32 %v9402_v3, %v1960_v7 }
 0x1d3   : > { %v7186_v46 = vpop.eup %7185  ;;  %2323 = vmatmul.mubr.f32.gmra.mxu0 %v2114_v17  ;;  %v2085_v11 = vadd.f32 %v1973_v40, %v1573_v16  ;;  %v1987_v2 = vadd.f32 1.0, %v1986_v62  ;;  %7193 = vlog2.f32 %v1992_v1  ;;  %v1989_v34 = vand.u32 2147483647, %v9429_v61 }
 0x1d4   : > { %v1958_v18 = vmul.f32 0.6931472, %v7186_v46  ;;  %v1978_v21 = vadd.f32 1.0, %v1977_v44  ;;  %v2019_v51 = vadd.f32 1.0, %v9489_v24  ;;  %vm1604_vm13 = vcmp.ne.f32.partialorder %v13335_v31, %v13335_v31 }
 0x1d5   : > { %v2117_v12 = vsel %vm1605_vm12, %v9290_v35, %v2085_v11  ;;  %vm1963_vm14 = vcmp.lt.f32.partialorder %v1962_v49, 0.0004427343  ;;  %v1575_v59 = vmax.f32 %v9309_v28, 0.0  ;;  %v1980_v3 = vand.u32 2147483647, %v9418_v37 }
 0x1d6   : > { %v7188_v43 = vpop.eup %7187  ;;  %2328 = vmatprep.mubr.f32.mxu0 %v2117_v12  ;;  %v1964_v19 = vsel %vm1963_vm14, %v1961_v27, %v1958_v18  ;;  %v2004_v41 = vmul.f32 -0.5, %v9449_v60  ;;  %7195 = vlog2.f32 %v2019_v51  ;;  %v1988_v45 = vmul.f32 %v9429_v61, %v1987_v2 }
 0x1d7   : > { %v2084_v42 = vadd.f32 %v1964_v19, %v1572_v4  ;;  %v1985_v55 = vmul.f32 0.6931472, %v7188_v43  ;;  %v2010_v35 = vadd.f32 1.0, %v9459_v57  ;;  %vm1607_vm15 = vcmp.ne.f32.partialorder %v9309_v28, %v9309_v28  ;;  %v2951_v43 = vld [vmem:[%s13273_s6 + $0x50] sm:$0xff] }
 0x1d8   : > { %v7190_v30 = vpop.eup %7189  ;;  %vm1990_vm1 = vcmp.lt.f32.partialorder %v1989_v34, 0.0004427343  ;;  %v1979_v58 = vmul.f32 %v9418_v37, %v1978_v21  ;;  %v1995_v22 = vmul.f32 -0.5, %v9434_v15  ;;  %v1574_v50 = vmax.f32 %v9298_v5, 0.0 }
 0x1d9   : > { %v2116_v47 = vsel %vm1604_vm13, %v13335_v31, %v2084_v42  ;;  %v1991_v14 = vsel %vm1990_vm1, %v1988_v45, %v1985_v55  ;;  %v1976_v20 = vmul.f32 0.6931472, %v7190_v30  ;;  %7197 = vlog2.f32 %v2010_v35 }
 0x1da   : > { %2329 = vmatmul.mubr.f32.gmra.mxu0 %v2116_v47  ;;  %v2087_v61 = vadd.f32 %v1991_v14, %v1575_v59  ;;  %vm1981_vm2 = vcmp.lt.f32.partialorder %v1980_v3, 0.0004427343  ;;  %v2005_v32 = vadd.f32 1.0, %v2004_v41  ;;  %v2007_v33 = vand.u32 2147483647, %v9449_v60 }
 0x1db   : > { %v1982_v29 = vsel %vm1981_vm2, %v1979_v58, %v1976_v20  ;;  %v2022_v37 = vmul.f32 -0.5, %v9489_v24  ;;  %v2037_v56 = vadd.f32 1.0, %v9523_v13  ;;  %v1996_v36 = vadd.f32 1.0, %v1995_v22 }
 0x1dc   : > { %v2119_v23 = vsel %vm1607_vm15, %v9309_v28, %v2087_v61  ;;  %v2086_v48 = vadd.f32 %v1982_v29, %v1574_v50  ;;  %vm1606_vm3 = vcmp.ne.f32.partialorder %v9298_v5, %v9298_v5  ;;  %v1998_v62 = vand.u32 2147483647, %v9434_v15 }
 0x1dd   : > { %v7192_v7 = vpop.eup %7191  ;;  %2334 = vmatprep.mubr.f32.mxu0 %v2119_v23  ;;  %v2013_v39 = vmul.f32 -0.5, %v9459_v57  ;;  %7199 = vlog2.f32 %v2037_v56  ;;  %v2006_v54 = vmul.f32 %v9449_v60, %v2005_v32  ;;  %v2028_v53 = vadd.f32 1.0, %v9514_v0 }
 0x1de   : > { %v2118_v52 = vsel %vm1606_vm3, %v9298_v5, %v2086_v48  ;;  %v2003_v44 = vmul.f32 0.6931472, %v7192_v7  ;;  %v1577_v28 = vmax.f32 %v9320_v10, 0.0  ;;  %vm2008_vm4 = vcmp.lt.f32.partialorder %v2007_v33, 0.0004427343 }
 0x1df   : > { %2335 = vmatmul.mubr.f32.gmra.mxu0 %v2118_v52  ;;  %v2023_v16 = vadd.f32 1.0, %v2022_v37  ;;  %v1997_v17 = vmul.f32 %v9434_v15, %v1996_v36  ;;  %7201 = vlog2.f32 %v2028_v53  ;;  %v2055_v40 = vadd.f32 1.0, %v9548_v9 }
 0x1e0   : > { %v7194_v49 = vpop.eup %7193  ;;  %v2009_v1 = vsel %vm2008_vm4, %v2006_v54, %v2003_v44  ;;  %v2025_v5 = vand.u32 2147483647, %v9489_v24  ;;  %v2014_v46 = vadd.f32 1.0, %v2013_v39  ;;  %vm1609_vm5 = vcmp.ne.f32.partialorder %v9320_v10, %v9320_v10 }
 0x1e1   : > { %v2089_v31 = vadd.f32 %v2009_v1, %v1577_v28  ;;  %v1994_v4 = vmul.f32 0.6931472, %v7194_v49  ;;  %v1576_v60 = vmax.f32 %v9313_v8, 0.0  ;;  %vm1999_vm6 = vcmp.lt.f32.partialorder %v1998_v62, 0.0004427343  ;;  %v13336_v49 = vld [vmem:[#allocation11_spill] sm:$0xff] }
 0x1e2   : > { %7203 = vlog2.f32 %v2055_v40  ;;  %v2024_v15 = vmul.f32 %v9489_v24, %v2023_v16  ;;  %v2040_v18 = vmul.f32 -0.5, %v9523_v13  ;;  %v2016_v51 = vand.u32 2147483647, %v9459_v57  ;;  %v2967_v24 = vld [vmem:[%s13273_s6 + $0xd0] sm:$0xff] }
 0x1e3   : > { %v7196_v11 = vpop.eup %7195  ;;  %v2121_v27 = vsel %vm1609_vm5, %v9320_v10, %v2089_v31  ;;  %v2000_v2 = vsel %vm1999_vm6, %v1997_v17, %v1994_v4  ;;  %v2046_v12 = vadd.f32 1.0, %v9534_v25  ;;  %vm1608_vm7 = vcmp.ne.f32.partialorder %v9313_v8, %v9313_v8  ;;  %6917 = vmatprep.subr.mxu1 %v2967_v24  ;;  %v2961_v24 = vld [vmem:[%s13273_s6 + $0xa0] sm:$0xff] }
 0x1e4   : > { %2340 = vmatprep.mubr.f32.mxu0 %v2121_v27  ;;  %v2088_v34 = vadd.f32 %v2000_v2, %v1576_v60  ;;  %v2021_v21 = vmul.f32 0.6931472, %v7196_v11  ;;  %v1579_v59 = vmax.f32 %v9361_v6, 0.0  ;;  %vm2026_vm8 = vcmp.lt.f32.partialorder %v2025_v5, 0.0004427343  ;;  %6918 = vmatpush3.msra.mxu1 %v2951_v43  ;;  %v13337_v60 = vld [vmem:[#allocation10_spill] sm:$0xff] }
 0x1e5   : > { %v2015_v10 = vmul.f32 %v9459_v57, %v2014_v46  ;;  %v2031_v42 = vmul.f32 -0.5, %v9514_v0  ;;  %7205 = vlog2.f32 %v2046_v12  ;;  %v2041_v57 = vadd.f32 1.0, %v2040_v18  ;;  %v2965_v27 = vld [vmem:[%s13273_s6 + $0xc0] sm:$0xff]  ;;  %v2964_v18 = vld [vmem:[%s13273_s6 + $0xb8] sm:$0xff]  ;;  %v2947_v12 = vld [vmem:[%s13273_s6 + $0x30] sm:$0xff] }
 0x1e6   : > { %v7198_v19 = vpop.eup %7197  ;;  %v2120_v3 = vsel %vm1608_vm7, %v9313_v8, %v2088_v34  ;;  %v2027_v41 = vsel %vm2026_vm8, %v2024_v15, %v2021_v21  ;;  %v2058_v35 = vmul.f32 -0.5, %v9548_v9  ;;  %vm1611_vm9 = vcmp.ne.f32.partialorder %v9361_v6, %v9361_v6  ;;  %v2948_v34 = vld [vmem:[%s13273_s6 + $0x38] sm:$0xff]  ;;  %v2945_v43 = vld [vmem:[%s13273_s6 + $0x20] sm:$0xff] }
 0x1e7   : > { %2341 = vmatmul.mubr.f32.gmra.mxu0 %v2120_v3  ;;  %v2091_v55 = vadd.f32 %v2027_v41, %v1579_v59  ;;  %v2012_v45 = vmul.f32 0.6931472, %v7198_v19  ;;  %v1578_v30 = vmax.f32 %v9337_v63, 0.0  ;;  %vm2017_vm10 = vcmp.lt.f32.partialorder %v2016_v51, 0.0004427343  ;;  %v2963_v51 = vld [vmem:[%s13273_s6 + $0xb0] sm:$0xff] }
 0x1e8   : > { %v2043_v8 = vand.u32 2147483647, %v9523_v13  ;;  %vm1610_vm11 = vcmp.ne.f32.partialorder %v9337_v63, %v9337_v63  ;;  %v2032_v20 = vadd.f32 1.0, %v2031_v42  ;;  %v2042_v50 = vmul.f32 %v9523_v13, %v2041_v57  ;;  %v2966_v13 = vld [vmem:[%s13273_s6 + $0xc8] sm:$0xff]  ;;  %v2960_v19 = vld [vmem:[%s13273_s6 + $0x98] sm:$0xff]  ;;  %v2959_v41 = vld [vmem:[%s13273_s6 + $0x90] sm:$0xff] }
 0x1e9   : > { %v2123_v58 = vsel %vm1611_vm9, %v9361_v6, %v2091_v55  ;;  %v2018_v22 = vsel %vm2017_vm10, %v2015_v10, %v2012_v45  ;;  %v2034_v32 = vand.u32 2147483647, %v9514_v0  ;;  %v2059_v29 = vadd.f32 1.0, %v2058_v35  ;;  %6919 = vmatprep.subr.mxu1 %v2966_v13  ;;  %v2962_v59 = vld [vmem:[%s13273_s6 + $0xa8] sm:$0xff]  ;;  %v2944_v3 = vld [vmem:[%s13273_s6 + $0x18] sm:$0xff]  ;;  %v2943_v42 = vld [vmem:[%s13273_s6 + $0x10] sm:$0xff] }
 0x1ea   : > { %v7200_v47 = vpop.eup %7199  ;;  %2346 = vmatprep.mubr.f32.mxu0 %v2123_v58  ;;  %v2090_v14 = vadd.f32 %v2018_v22, %v1578_v30  ;;  %v1581_v37 = vmax.f32 %v9389_v26, 0.0  ;;  %vm2044_vm12 = vcmp.lt.f32.partialorder %v2043_v8, 0.0004427343  ;;  %v2049_v6 = vmul.f32 -0.5, %v9534_v25  ;;  %v2946_v10 = vld [vmem:[%s13273_s6 + $0x28] sm:$0xff]  ;;  %v2957_v57 = vld [vmem:[%s13273_s6 + $0x80] sm:$0xff] }
 0x1eb   : > { %v2039_v61 = vmul.f32 0.6931472, %v7200_v47  ;;  %v2061_v48 = vand.u32 2147483647, %v9548_v9  ;;  %v2033_v62 = vmul.f32 %v9514_v0, %v2032_v20  ;;  %vm1613_vm13 = vcmp.ne.f32.partialorder %v9389_v26, %v9389_v26  ;;  %v2958_v55 = vld [vmem:[%s13273_s6 + $0x88] sm:$0xff]  ;;  %v2941_v35 = vld [vmem:[%s13273_s6] sm:$0xff] }
 0x1ec   : > { %v2122_v33 = vsel %vm1610_vm11, %v9337_v63, %v2090_v14  ;;  %v7202_v56 = vpop.eup %7201  ;;  %v2950_v63 = vld [vmem:[%s13273_s6 + $0x48] sm:$0xff]  ;;  %v1580_v52 = vmax.f32 %v9372_v38, 0.0  ;;  %vm2035_vm14 = vcmp.lt.f32.partialorder %v2034_v32, 0.0004427343  ;;  %v2060_v44 = vmul.f32 %v9548_v9, %v2059_v29  ;;  %v2192_v30 = vld [vmem:[%s13272_s5] sm:$0x3] }
 0x1ed   : > { %2347 = vmatmul.mubr.f32.gmra.mxu0 %v2122_v33  ;;  %v2045_v23 = vsel %vm2044_vm12, %v2042_v50, %v2039_v61  ;;  %v2030_v7 = vmul.f32 0.6931472, %v7202_v56  ;;  %v2050_v28 = vadd.f32 1.0, %v2049_v6  ;;  %6920 = vmatpush3.msra.mxu1 %v2950_v63  ;;  %v1583_v1 = vmax.f32 %v13336_v49, 0.0  ;;  %v2942_v45 = vld [vmem:[%s13273_s6 + $0x8] sm:$0xff]  ;;  %v13340_v22 = vld [vmem:[#allocation4_spill] sm:$0xff] }
 0x1ee   : > { %v2093_v36 = vadd.f32 %v2045_v23, %v1581_v37  ;;  %vm2062_vm15 = vcmp.lt.f32.partialorder %v2061_v48, 0.0004427343  ;;  %v2052_v17 = vand.u32 2147483647, %v9534_v25  ;;  %vm1612_vm1 = vcmp.ne.f32.partialorder %v9372_v38, %v9372_v38  ;;  %6921 = vmatprep.subr.mxu1 %v2965_v27  ;;  %v13339_v8 = vld [vmem:[#allocation3_spill] sm:$0xff] }
 0x1ef   : > { %v7204_v39 = vpop.eup %7203  ;;  %v2036_v54 = vsel %vm2035_vm14, %v2033_v62, %v2030_v7  ;;  %vm1615_vm2 = vcmp.ne.f32.partialorder %v13336_v49, %v13336_v49  ;;  %v2051_v5 = vmul.f32 %v9534_v25, %v2050_v28  ;;  %v1582_v11 = vmax.f32 %v13337_v60, 0.0 }
 0x1f0   : > { %v2125_v0 = vsel %vm1613_vm13, %v9389_v26, %v2093_v36  ;;  %v2057_v53 = vmul.f32 0.6931472, %v7204_v39  ;;  %v2092_v16 = vadd.f32 %v2036_v54, %v1580_v52  ;;  %vm2053_vm3 = vcmp.lt.f32.partialorder %v2052_v17, 0.0004427343 }
 0x1f1   : > { %2352 = vmatprep.mubr.f32.mxu0 %v2125_v0  ;;  %vm1614_vm4 = vcmp.ne.f32.partialorder %v13337_v60, %v13337_v60  ;;  %v13338_v21 = vmov 0.0   ;;  %v9787_v58 = vrot.slane %v2192_v30, %v13339_v8  ;;  %v9790_v47 = vrot.slane %v2192_v30, %v13340_v22 }
 0x1f2   : > { %v2063_v40 = vsel %vm2062_vm15, %v2060_v44, %v2057_v53  ;;  %v7206_v31 = vpop.eup %7205  ;;  %v2124_v9 = vsel %vm1612_vm1, %v9372_v38, %v2092_v16  ;;  %v2949_v38 = vld [vmem:[%s13273_s6 + $0x40] sm:$0xff] }
 0x1f3   : > { %v2095_v4 = vadd.f32 %v2063_v40, %v1583_v1  ;;  %2353 = vmatmul.mubr.f32.gmra.mxu0 %v2124_v9  ;;  %v2048_v26 = vmul.f32 0.6931472, %v7206_v31  ;;  %6922 = vmatpush3.msra.mxu1 %v2949_v38 }
 0x1f4   : > { %6923 = vmatprep.subr.mxu1 %v2964_v18 }
 0x1f5   : > { %v2127_v46 = vsel %vm1615_vm2, %v13336_v49, %v2095_v4  ;;  %v2054_v2 = vsel %vm2053_vm3, %v2051_v5, %v2048_v26  ;;  %6924 = vmatpush3.msra.mxu1 %v2948_v34 }
 0x1f6   : > { %2358 = vmatprep.mubr.f32.mxu0 %v2127_v46  ;;  %v2094_v15 = vadd.f32 %v2054_v2, %v1582_v11  ;;  %6925 = vmatprep.subr.mxu1 %v2963_v51 }
 0x1f7   : > { %6926 = vmatpush3.msra.mxu1 %v2947_v12 }
 0x1f8   : > { %v2126_v25 = vsel %vm1614_vm4, %v13337_v60, %v2094_v15  ;;  %6927 = vmatprep.subr.mxu1 %v2962_v59 }
 0x1f9   : > { %2359 = vmatmul.mubr.f32.gmra.mxu0 %v2126_v25  ;;  %6928 = vmatpush3.msra.mxu1 %v2946_v10 }
 0x1fa   : > { %3706 = vmatprep.mubr.f32.mxu0 %v13338_v21  ;;  %6929 = vmatprep.subr.mxu1 %v2961_v24 }
 0x1fb   : > { %6930 = vmatpush3.msra.mxu1 %v2945_v43 }
 0x1fc   : > { %6931 = vmatprep.subr.mxu1 %v2960_v19 }
 0x1fd   : > { %6932 = vmatpush3.msra.mxu1 %v2944_v3 }
 0x1fe   : > { %6933 = vmatprep.subr.mxu1 %v2959_v41 }
 0x1ff   : > { %6934 = vmatpush3.msra.mxu1 %v2943_v42 }
 0x200   : > { %6935 = vmatprep.subr.mxu1 %v2958_v55 }
 0x201   : > { %6936 = vmatpush3.msra.mxu1 %v2942_v45 }
 0x202   : > { %6937 = vmatprep.subr.mxu1 %v2957_v57 }
 0x203   : > { %6938 = vmatpush3.msra.mxu1 %v2941_v35 }
 0x247   : > { %v2270_v14 = vpop.f32.mrf.mxu0 }
 0x248   : > { %v9793_v20 = vadd.f32 %v2270_v14, %v9787_v58 }
 0x249   : > { %v2272_v61 = vpop.f32.mrf.mxu0 }
 0x24a   : > { %v2461_v50 = vand.u32 2147483647, %v9793_v20  ;;  %v9797_v32 = vadd.f32 %v2272_v61, %v9790_v47  ;;  %v2365_v10 = vmax.f32 %v9793_v20, 0.0  ;;  %vm2397_vm7 = vcmp.ne.f32.partialorder %v9793_v20, %v9793_v20 }
 0x24c   : > { %v2493_v29 = vsub.f32 0.0, %v2461_v50  ;;  %v2462_v33 = vand.u32 2147483647, %v9797_v32  ;;  %v2366_v57 = vmax.f32 %v9797_v32, 0.0  ;;  %vm2398_vm8 = vcmp.ne.f32.partialorder %v9797_v32, %v9797_v32 }
 0x24e   : > { %v2525_v37 = vmul.f32 1.442695, %v2493_v29  ;;  %v2494_v6 = vsub.f32 0.0, %v2462_v33 }
 0x250   : > { %7207 = vpow2.f32 %v2525_v37  ;;  %v2527_v56 = vmul.f32 1.442695, %v2494_v6 }
 0x252   : > { %7209 = vpow2.f32 %v2527_v56 }
 0x25c   : > { %v2276_v23 = vpop.f32.mrf.mxu0 }
 0x25d   : > { %v7208_v48 = vpop.eup %7207  ;;  %v9801_v36 = vadd.f32 %v2276_v23, %v9787_v58 }
 0x25e   : > { %v2278_v7 = vpop.f32.mrf.mxu0  ;;  %v2589_v62 = vadd.f32 1.0, %v7208_v48  ;;  %v2592_v1 = vmul.f32 -0.5, %v7208_v48  ;;  %v2595_v46 = vand.u32 2147483647, %v7208_v48 }
 0x25f   : > { %v7210_v13 = vpop.eup %7209  ;;  %v2463_v63 = vand.u32 2147483647, %v9801_v36  ;;  %v9805_v39 = vadd.f32 %v2278_v7, %v9790_v47  ;;  %vm2399_vm10 = vcmp.ne.f32.partialorder %v9801_v36, %v9801_v36 }
 0x260   : > { %v2598_v52 = vadd.f32 1.0, %v7210_v13  ;;  %7211 = vlog2.f32 %v2589_v62  ;;  %v2601_v9 = vmul.f32 -0.5, %v7210_v13  ;;  %v2593_v5 = vadd.f32 1.0, %v2592_v1 }
 0x261   : > { %v2495_v44 = vsub.f32 0.0, %v2463_v63  ;;  %v2464_v0 = vand.u32 2147483647, %v9805_v39  ;;  %v2604_v25 = vand.u32 2147483647, %v7210_v13  ;;  %vm2400_vm9 = vcmp.ne.f32.partialorder %v9805_v39, %v9805_v39 }
 0x262   : > { %7213 = vlog2.f32 %v2598_v52  ;;  %v2602_v38 = vadd.f32 1.0, %v2601_v9  ;;  %v2594_v12 = vmul.f32 %v7208_v48, %v2593_v5  ;;  %vm2596_vm5 = vcmp.lt.f32.partialorder %v2595_v46, 0.0004427343 }
 0x263   : > { %v2529_v54 = vmul.f32 1.442695, %v2495_v44  ;;  %v2496_v53 = vsub.f32 0.0, %v2464_v0  ;;  %vm2605_vm6 = vcmp.lt.f32.partialorder %v2604_v25, 0.0004427343  ;;  %v2367_v25 = vmax.f32 %v9801_v36, 0.0 }
 0x264   : > { %v2603_v3 = vmul.f32 %v7210_v13, %v2602_v38 }
 0x265   : > { %7215 = vpow2.f32 %v2529_v54  ;;  %v2531_v28 = vmul.f32 1.442695, %v2496_v53  ;;  %v2282_v16 = vpop.f32.mrf.mxu0 }
 0x266   : > { %v9809_v49 = vadd.f32 %v2282_v16, %v9787_v58 }
 0x267   : > { %7217 = vpow2.f32 %v2531_v28  ;;  %v2284_v17 = vpop.f32.mrf.mxu0 }
 0x268   : > { %v2465_v40 = vand.u32 2147483647, %v9809_v49  ;;  %v9813_v31 = vadd.f32 %v2284_v17, %v9790_v47  ;;  %vm2401_vm15 = vcmp.ne.f32.partialorder %v9809_v49, %v9809_v49 }
 0x26a   : > { %v2497_v4 = vsub.f32 0.0, %v2465_v40  ;;  %v2466_v26 = vand.u32 2147483647, %v9813_v31  ;;  %vm2402_vm14 = vcmp.ne.f32.partialorder %v9813_v31, %v9813_v31 }
 0x26c   : > { %v2533_v60 = vmul.f32 1.442695, %v2497_v4  ;;  %v2498_v11 = vsub.f32 0.0, %v2466_v26 }
 0x26d   : > { %v2288_v27 = vpop.f32.mrf.mxu0  ;;  %v7212_v2 = vpop.eup %7211 }
 0x26e   : > { %v9817_v15 = vadd.f32 %v2288_v27, %v9787_v58  ;;  %7219 = vpow2.f32 %v2533_v60  ;;  %v2535_v18 = vmul.f32 1.442695, %v2498_v11  ;;  %v2591_v51 = vmul.f32 0.6931472, %v7212_v2 }
 0x26f   : > { %v2290_v34 = vpop.f32.mrf.mxu0  ;;  %v7214_v59 = vpop.eup %7213  ;;  %v2368_v2 = vmax.f32 %v9805_v39, 0.0 }
 0x270   : > { %v2467_v24 = vand.u32 2147483647, %v9817_v15  ;;  %v9822_v43 = vadd.f32 %v2290_v34, %v9790_v47  ;;  %7221 = vpow2.f32 %v2535_v18  ;;  %v2600_v19 = vmul.f32 0.6931472, %v7214_v59 }
 0x271   : > { %v2597_v41 = vsel %vm2596_vm5, %v2594_v12, %v2591_v51  ;;  %v2369_v18 = vmax.f32 %v9809_v49, 0.0  ;;  %v2370_v59 = vmax.f32 %v9813_v31, 0.0  ;;  %vm2403_vm4 = vcmp.ne.f32.partialorder %v9817_v15, %v9817_v15 }
 0x272   : > { %v2499_v42 = vsub.f32 0.0, %v2467_v24  ;;  %v2468_v55 = vand.u32 2147483647, %v9822_v43  ;;  %v9826_v35 = vpop.eup %7215  ;;  %v2606_v14 = vsel %vm2605_vm6, %v2603_v3, %v2600_v19  ;;  %v2877_v61 = vadd.f32 %v2597_v41, %v2365_v10 }
 0x273   : > { %v2294_v45 = vpop.f32.mrf.mxu0  ;;  %v2878_v37 = vadd.f32 %v2606_v14, %v2366_v57  ;;  %v2607_v48 = vadd.f32 1.0, %v9826_v35  ;;  %v2610_v46 = vmul.f32 -0.5, %v9826_v35  ;;  %v2372_v10 = vmax.f32 %v9822_v43, 0.0 }
 0x274   : > { %v9829_v30 = vadd.f32 %v2294_v45, %v9787_v58  ;;  %v2537_v50 = vmul.f32 1.442695, %v2499_v42  ;;  %v2500_v29 = vsub.f32 0.0, %v2468_v55  ;;  %v7218_v6 = vpop.eup %7217  ;;  %v2909_v44 = vsel %vm2397_vm7, %v9793_v20, %v2877_v61 }
 0x275   : > { %v2296_v33 = vpop.f32.mrf.mxu0  ;;  %v2910_v62 = vsel %vm2398_vm8, %v9797_v32, %v2878_v37  ;;  %v2616_v13 = vadd.f32 1.0, %v7218_v6  ;;  %v2619_v40 = vmul.f32 -0.5, %v7218_v6  ;;  %v2622_v38 = vand.u32 2147483647, %v7218_v6 }
 0x276   : > { %v2469_v56 = vand.u32 2147483647, %v9829_v30  ;;  %v9835_v23 = vadd.f32 %v2296_v33, %v9790_v47  ;;  %7223 = vpow2.f32 %v2537_v50  ;;  %v2539_v7 = vmul.f32 1.442695, %v2500_v29  ;;  %3044 = vmatprep.mubr.f32.mxu1 %v2910_v62 }
 0x277   : > { %3045 = vmatmul.mubr.f32.vlgmr.msra.gmra.mxu1 %v2909_v44  ;;  %v2620_v27 = vadd.f32 1.0, %v2619_v40  ;;  %v2371_v24 = vmax.f32 %v9817_v15, 0.0  ;;  %v2611_v41 = vadd.f32 1.0, %v2610_v46  ;;  %vm9876_vm11 = vcmp.lt.f32.partialorder %v2622_v38, 0.0004427343 }
 0x278   : > { %v2501_v63 = vsub.f32 0.0, %v2469_v56  ;;  %v2470_v52 = vand.u32 2147483647, %v9835_v23  ;;  %7225 = vpow2.f32 %v2539_v7  ;;  %v2613_v14 = vand.u32 2147483647, %v9826_v35 }
 0x279   : > { %7227 = vlog2.f32 %v2616_v13  ;;  %v2300_v53 = vpop.f32.mrf.mxu0  ;;  %v2621_v45 = vmul.f32 %v7218_v6, %v2620_v27  ;;  %vm2404_vm2 = vcmp.ne.f32.partialorder %v9822_v43, %v9822_v43  ;;  %vm2406_vm6 = vcmp.ne.f32.partialorder %v9835_v23, %v9835_v23 }
 0x27a   : > { %v2502_v0 = vsub.f32 0.0, %v2470_v52  ;;  %v2541_v54 = vmul.f32 1.442695, %v2501_v63  ;;  %7229 = vlog2.f32 %v2607_v48  ;;  %v9846_v1 = vadd.f32 %v2300_v53, %v9787_v58 }
 0x27b   : > { %v9843_v16 = vpop.eup %7219  ;;  %v2302_v32 = vpop.f32.mrf.mxu0  ;;  %v2612_v52 = vmul.f32 %v9826_v35, %v2611_v41  ;;  %vm2614_vm12 = vcmp.lt.f32.partialorder %v2613_v14, 0.0004427343  ;;  %vm2405_vm7 = vcmp.ne.f32.partialorder %v9829_v30, %v9829_v30 }
 0x27c   : > { %v2543_v28 = vmul.f32 1.442695, %v2502_v0  ;;  %v9849_v17 = vadd.f32 %v2302_v32, %v9790_v47  ;;  %v2625_v20 = vadd.f32 1.0, %v9843_v16  ;;  %v2471_v5 = vand.u32 2147483647, %v9846_v1 }
 0x27d   : > { %v9852_v9 = vpop.eup %7221  ;;  %v2628_v33 = vmul.f32 -0.5, %v9843_v16  ;;  %v2631_v7 = vand.u32 2147483647, %v9843_v16 }
 0x27e   : > { %7231 = vpow2.f32 %v2543_v28  ;;  %v2472_v4 = vand.u32 2147483647, %v9849_v17  ;;  %v2634_v26 = vadd.f32 1.0, %v9852_v9  ;;  %v2503_v19 = vsub.f32 0.0, %v2471_v5 }
 0x27f   : > { %7233 = vpow2.f32 %v2541_v54  ;;  %v2637_v29 = vmul.f32 -0.5, %v9852_v9  ;;  %v2640_v54 = vand.u32 2147483647, %v9852_v9  ;;  %vm9898_vm13 = vcmp.lt.f32.partialorder %v2631_v7, 0.0004427343 }
 0x280   : > { %7235 = vlog2.f32 %v2625_v20  ;;  %v2504_v60 = vsub.f32 0.0, %v2472_v4  ;;  %v2306_v11 = vpop.f32.mrf.mxu0  ;;  %v2545_v62 = vmul.f32 1.442695, %v2503_v19  ;;  %v2629_v4 = vadd.f32 1.0, %v2628_v33 }
 0x281   : > { %7237 = vlog2.f32 %v2634_v26  ;;  %v9886_v48 = vadd.f32 %v2306_v11, %v9787_v58  ;;  %v2638_v20 = vadd.f32 1.0, %v2637_v29  ;;  %vm2641_vm1 = vcmp.lt.f32.partialorder %v2640_v54, 0.0004427343 }
 0x282   : > { %v2547_v51 = vmul.f32 1.442695, %v2504_v60  ;;  %v2308_v12 = vpop.f32.mrf.mxu0  ;;  %v2630_v57 = vmul.f32 %v9843_v16, %v2629_v4  ;;  %v2374_v16 = vmax.f32 %v9835_v23, 0.0 }
 0x283   : > { %v9861_v34 = vpop.eup %7223  ;;  %v9869_v3 = vadd.f32 %v2308_v12, %v9790_v47  ;;  %v2473_v5 = vand.u32 2147483647, %v9886_v48 }
 0x284   : > { %v2643_v42 = vadd.f32 1.0, %v9861_v34  ;;  %7239 = vpow2.f32 %v2547_v51  ;;  %v2646_v60 = vmul.f32 -0.5, %v9861_v34 }
 0x285   : > { %v9874_v55 = vpop.eup %7225  ;;  %v2474_v50 = vand.u32 2147483647, %v9869_v3 }
 0x286   : > { %v7228_v61 = vpop.eup %7227  ;;  %v2652_v37 = vadd.f32 1.0, %v9874_v55  ;;  %7241 = vlog2.f32 %v2643_v42  ;;  %v2655_v38 = vmul.f32 -0.5, %v9874_v55  ;;  %v2639_v42 = vmul.f32 %v9852_v9, %v2638_v20 }
 0x287   : > { %v7230_v56 = vpop.eup %7229  ;;  %v2618_v6 = vmul.f32 0.6931472, %v7228_v61  ;;  %v2312_v13 = vpop.f32.mrf.mxu0  ;;  %v2506_v44 = vsub.f32 0.0, %v2474_v50  ;;  %v2505_v61 = vsub.f32 0.0, %v2473_v5  ;;  %v2658_v29 = vand.u32 2147483647, %v9874_v55 }
 0x288   : > { %v2609_v63 = vmul.f32 0.6931472, %v7230_v56  ;;  %7243 = vlog2.f32 %v2652_v37  ;;  %v9914_v51 = vadd.f32 %v2312_v13, %v9787_v58 }
 0x289   : > { %v2624_v0 = vsel %vm9876_vm11, %v2621_v45, %v2618_v6  ;;  %v2314_v28 = vpop.f32.mrf.mxu0  ;;  %7245 = vpow2.f32 %v2545_v62  ;;  %v2656_v6 = vadd.f32 1.0, %v2655_v38  ;;  %vm9944_vm3 = vcmp.lt.f32.partialorder %v2658_v29, 0.0004427343 }
 0x28a   : > { %v2880_v32 = vadd.f32 %v2624_v0, %v2368_v2  ;;  %v2615_v40 = vsel %vm2614_vm12, %v2612_v52, %v2609_v63  ;;  %v9904_v11 = vadd.f32 %v2314_v28, %v9790_v47  ;;  %v2475_v9 = vand.u32 2147483647, %v9914_v51 }
 0x28b   : > { %v9893_v53 = vpop.eup %7231  ;;  %v2879_v35 = vadd.f32 %v2615_v40, %v2367_v25  ;;  %v2551_v25 = vmul.f32 1.442695, %v2506_v44  ;;  %v2649_v63 = vand.u32 2147483647, %v9861_v34  ;;  %v2549_v52 = vmul.f32 1.442695, %v2505_v61 }
 0x28c   : > { %v9895_v26 = vpop.eup %7233  ;;  %v2912_v27 = vsel %vm2400_vm9, %v9805_v39, %v2880_v32  ;;  %v2670_v39 = vadd.f32 1.0, %v9893_v53  ;;  %v2476_v33 = vand.u32 2147483647, %v9904_v11  ;;  %v2657_v40 = vmul.f32 %v9874_v55, %v2656_v6 }
 0x28d   : > { %v7236_v2 = vpop.eup %7235  ;;  %3049 = vmatprep.mubr.f32.mxu1 %v2912_v27  ;;  %v2911_v12 = vsel %vm2399_vm10, %v9801_v36, %v2879_v35  ;;  %v2318_v41 = vpop.f32.mrf.mxu0  ;;  %v2661_v14 = vadd.f32 1.0, %v9895_v26  ;;  %v2647_v36 = vadd.f32 1.0, %v2646_v60  ;;  %v2507_v35 = vsub.f32 0.0, %v2475_v9 }
 0x28e   : > { %v7238_v19 = vpop.eup %7237  ;;  %3050 = vmatmul.mubr.f32.gmra.mxu1 %v2911_v12  ;;  %v2627_v45 = vmul.f32 0.6931472, %v7236_v2  ;;  %7247 = vlog2.f32 %v2670_v39  ;;  %v2508_v28 = vsub.f32 0.0, %v2476_v33  ;;  %v2673_v60 = vmul.f32 -0.5, %v9893_v53 }
 0x28f   : > { %v2636_v50 = vmul.f32 0.6931472, %v7238_v19  ;;  %v2320_v37 = vpop.f32.mrf.mxu0  ;;  %7249 = vpow2.f32 %v2551_v25  ;;  %v2648_v20 = vmul.f32 %v9861_v34, %v2647_v36  ;;  %vm2650_vm5 = vcmp.lt.f32.partialorder %v2649_v63, 0.0004427343 }
 0x290   : > { %v2633_v56 = vsel %vm9898_vm13, %v2630_v57, %v2627_v45  ;;  %7251 = vlog2.f32 %v2661_v14  ;;  %v9940_v44 = vadd.f32 %v2320_v37, %v9790_v47  ;;  %v2664_v25 = vmul.f32 -0.5, %v9895_v26 }
 0x291   : > { %v9932_v7 = vpop.eup %7239  ;;  %v2642_v62 = vsel %vm2641_vm1, %v2639_v42, %v2636_v50  ;;  %v2881_v13 = vadd.f32 %v2633_v56, %v2369_v18  ;;  %v2373_v19 = vmax.f32 %v9829_v30, 0.0  ;;  %v2674_v45 = vadd.f32 1.0, %v2673_v60 }
 0x292   : > { %v2882_v0 = vadd.f32 %v2642_v62, %v2370_v59  ;;  %v2688_v4 = vadd.f32 1.0, %v9932_v7  ;;  %v9954_v59 = vadd.f32 %v2318_v41, %v9787_v58  ;;  %v2478_v38 = vand.u32 2147483647, %v9940_v44 }
 0x293   : > { %v7242_v18 = vpop.eup %7241  ;;  %v2324_v32 = vpop.f32.mrf.mxu0  ;;  %v2913_v34 = vsel %vm2401_vm15, %v9809_v49, %v2881_v13  ;;  %v2553_v49 = vmul.f32 1.442695, %v2507_v35  ;;  %v2676_v57 = vand.u32 2147483647, %v9893_v53  ;;  %v2667_v29 = vand.u32 2147483647, %v9895_v26 }
 0x294   : > { %v2914_v46 = vsel %vm2402_vm14, %v9813_v31, %v2882_v0  ;;  %v2645_v27 = vmul.f32 0.6931472, %v7242_v18  ;;  %7253 = vlog2.f32 %v2688_v4  ;;  %v2555_v31 = vmul.f32 1.442695, %v2508_v28 }
 0x295   : > { %v7244_v5 = vpop.eup %7243  ;;  %3054 = vmatprep.mubr.f32.mxu1 %v2914_v46  ;;  %7255 = vpow2.f32 %v2549_v52  ;;  %v2326_v2 = vpop.f32.mrf.mxu0  ;;  %v2477_v14 = vand.u32 2147483647, %v9954_v59  ;;  %v9977_v61 = vadd.f32 %v2324_v32, %v9787_v58  ;;  %v2510_v36 = vsub.f32 0.0, %v2478_v38 }
 0x296   : > { %v2654_v55 = vmul.f32 0.6931472, %v7244_v5  ;;  %3055 = vmatmul.mubr.f32.gmra.mxu1 %v2913_v34  ;;  %v2651_v39 = vsel %vm2650_vm5, %v2648_v20, %v2645_v27  ;;  %v9970_v41 = vpop.eup %7245  ;;  %v9985_v33 = vadd.f32 %v2326_v2, %v9790_v47  ;;  %v2665_v56 = vadd.f32 1.0, %v2664_v25 }
 0x297   : > { %v2883_v50 = vadd.f32 %v2651_v39, %v2371_v24  ;;  %7257 = vpow2.f32 %v2555_v31  ;;  %v2376_v6 = vmax.f32 %v9849_v17, 0.0  ;;  %v2691_v9 = vmul.f32 -0.5, %v9932_v7 }
 0x298   : > { %v2660_v12 = vsel %vm9944_vm3, %v2657_v40, %v2654_v55  ;;  %7259 = vpow2.f32 %v2553_v49  ;;  %vm10002_vm8 = vcmp.lt.f32.partialorder %v2676_v57, 0.0004427343  ;;  %v2509_v0 = vsub.f32 0.0, %v2477_v14 }
 0x299   : > { %v2884_v42 = vadd.f32 %v2660_v12, %v2372_v10  ;;  %v2915_v24 = vsel %vm2403_vm4, %v9817_v15, %v2883_v50  ;;  %v2679_v15 = vadd.f32 1.0, %v9970_v41  ;;  %v2479_v54 = vand.u32 2147483647, %v9977_v61 }
 0x29a   : > { %v2330_v10 = vpop.f32.mrf.mxu0  ;;  %v2675_v28 = vmul.f32 %v9893_v53, %v2674_v45  ;;  %v2559_v40 = vmul.f32 1.442695, %v2510_v36  ;;  %v2480_v20 = vand.u32 2147483647, %v9985_v33  ;;  %v2666_v4 = vmul.f32 %v9895_v26, %v2665_v56 }
 0x29b   : > { %v2916_v37 = vsel %vm2404_vm2, %v9822_v43, %v2884_v42  ;;  %v7248_v62 = vpop.eup %7247  ;;  %v10000_v13 = vadd.f32 %v2330_v10, %v9787_v58  ;;  %vm10013_vm9 = vcmp.lt.f32.partialorder %v2667_v29, 0.0004427343  ;;  %v2692_v34 = vadd.f32 1.0, %v2691_v9 }
 0x29c   : > { %3059 = vmatprep.mubr.f32.mxu1 %v2916_v37  ;;  %v2332_v43 = vpop.f32.mrf.mxu0  ;;  %v10007_v52 = vpop.eup %7249  ;;  %v2672_v18 = vmul.f32 0.6931472, %v7248_v62  ;;  %v2694_v55 = vand.u32 2147483647, %v9932_v7  ;;  %7261 = vlog2.f32 %v2679_v15  ;;  %v2511_v38 = vsub.f32 0.0, %v2479_v54 }
 0x29d   : > { %3060 = vmatmul.mubr.f32.gmra.mxu1 %v2915_v24  ;;  %v7252_v32 = vpop.eup %7251  ;;  %v2481_v53 = vand.u32 2147483647, %v10000_v13  ;;  %v10022_v27 = vadd.f32 %v2332_v43, %v9790_v47  ;;  %v2706_v31 = vadd.f32 1.0, %v10007_v52  ;;  %v2557_v39 = vmul.f32 1.442695, %v2509_v0 }
 0x29e   : > { %v2678_v46 = vsel %vm10002_vm8, %v2675_v28, %v2672_v18  ;;  %v2663_v60 = vmul.f32 0.6931472, %v7252_v32  ;;  %7263 = vpow2.f32 %v2559_v40  ;;  %v2512_v45 = vsub.f32 0.0, %v2480_v20 }
 0x29f   : > { %v2336_v35 = vpop.f32.mrf.mxu0  ;;  %v2886_v26 = vadd.f32 %v2678_v46, %v2374_v16  ;;  %v2693_v50 = vmul.f32 %v9932_v7, %v2692_v34  ;;  %vm2695_vm10 = vcmp.lt.f32.partialorder %v2694_v55, 0.0004427343  ;;  %v2513_v29 = vsub.f32 0.0, %v2481_v53 }
 0x2a0   : > { %v10027_v2 = vadd.f32 %v2336_v35, %v9787_v58  ;;  %v2669_v25 = vsel %vm10013_vm9, %v2666_v4, %v2663_v60  ;;  %v2482_v36 = vand.u32 2147483647, %v10022_v27  ;;  %7265 = vlog2.f32 %v2706_v31 }
 0x2a1   : > { %v7254_v12 = vpop.eup %7253  ;;  %v2918_v49 = vsel %vm2406_vm6, %v9835_v23, %v2886_v26  ;;  %v2885_v42 = vadd.f32 %v2669_v25, %v2373_v19  ;;  %v2338_v57 = vpop.f32.mrf.mxu0  ;;  %v2561_v23 = vmul.f32 1.442695, %v2511_v38  ;;  %v2682_v7 = vmul.f32 -0.5, %v9970_v41 }
 0x2a2   : > { %v10036_v16 = vpop.eup %7255  ;;  %3064 = vmatprep.mubr.f32.mxu1 %v2918_v49  ;;  %v2690_v14 = vmul.f32 0.6931472, %v7254_v12  ;;  %v2483_v19 = vand.u32 2147483647, %v10027_v2  ;;  %v10046_v56 = vadd.f32 %v2338_v57, %v9790_v47  ;;  %7267 = vpow2.f32 %v2557_v39 }
 0x2a3   : > { %v2917_v10 = vsel %vm2405_vm7, %v9829_v30, %v2885_v42  ;;  %v2697_v9 = vadd.f32 1.0, %v10036_v16  ;;  %v2563_v62 = vmul.f32 1.442695, %v2512_v45  ;;  %vm2408_vm11 = vcmp.ne.f32.partialorder %v9849_v17, %v9849_v17 }
 0x2a4   : > { %3065 = vmatmul.mubr.f32.gmra.mxu1 %v2917_v10  ;;  %v2696_v37 = vsel %vm2695_vm10, %v2693_v50, %v2690_v14  ;;  %v10052_v30 = vpop.eup %7257  ;;  %v2565_v63 = vmul.f32 1.442695, %v2513_v29  ;;  %v2514_v15 = vsub.f32 0.0, %v2482_v36  ;;  %v2709_v54 = vmul.f32 -0.5, %v10007_v52 }
 0x2a5   : > { %v2888_v24 = vadd.f32 %v2696_v37, %v2376_v6  ;;  %v10056_v18 = vpop.eup %7259  ;;  %v2515_v6 = vsub.f32 0.0, %v2483_v19  ;;  %v2375_v32 = vmax.f32 %v9846_v1, 0.0  ;;  %7269 = vlog2.f32 %v2697_v9 }
 0x2a6   : > { %7271 = vpow2.f32 %v2561_v23  ;;  %v2484_v40 = vand.u32 2147483647, %v10046_v56  ;;  %v2683_v20 = vadd.f32 1.0, %v2682_v7  ;;  %v2377_v4 = vmax.f32 %v9886_v48, 0.0 }
 0x2a7   : > { %v2342_v43 = vpop.f32.mrf.mxu0  ;;  %v2920_v0 = vsel %vm2408_vm11, %v9849_v17, %v2888_v24  ;;  %7273 = vpow2.f32 %v2563_v62  ;;  %vm2407_vm12 = vcmp.ne.f32.partialorder %v9846_v1, %v9846_v1  ;;  %v2685_v17 = vand.u32 2147483647, %v9970_v41 }
 0x2a8   : > { %3069 = vmatprep.mubr.f32.mxu1 %v2920_v0  ;;  %v10062_v5 = vadd.f32 %v2342_v43, %v9787_v58  ;;  %v2724_v35 = vadd.f32 1.0, %v10052_v30  ;;  %7275 = vpow2.f32 %v2565_v63  ;;  %v2567_v46 = vmul.f32 1.442695, %v2514_v15 }
 0x2a9   : > { %v2344_v28 = vpop.f32.mrf.mxu0  ;;  %v2710_v60 = vadd.f32 1.0, %v2709_v54  ;;  %v2712_v34 = vand.u32 2147483647, %v10007_v52  ;;  %v7262_v55 = vpop.eup %7261  ;;  %v2569_v53 = vmul.f32 1.442695, %v2515_v6  ;;  %v2715_v25 = vadd.f32 1.0, %v10056_v18 }
 0x2aa   : > { %v10070_v26 = vadd.f32 %v2344_v28, %v9790_v47  ;;  %7277 = vlog2.f32 %v2724_v35  ;;  %v2516_v31 = vsub.f32 0.0, %v2484_v40  ;;  %v2681_v12 = vmul.f32 0.6931472, %v7262_v55 }
 0x2ab   : > { %v2700_v39 = vmul.f32 -0.5, %v10036_v16  ;;  %v2703_v49 = vand.u32 2147483647, %v10036_v16  ;;  %v10075_v42 = vpop.eup %7263  ;;  %v2485_v45 = vand.u32 2147483647, %v10062_v5  ;;  %v2684_v57 = vmul.f32 %v9970_v41, %v2683_v20 }
 0x2ac   : > { %vm2686_vm13 = vcmp.lt.f32.partialorder %v2685_v17, 0.0004427343  ;;  %7279 = vlog2.f32 %v2715_v25  ;;  %v2378_v50 = vmax.f32 %v9869_v3, 0.0  ;;  %vm2410_vm14 = vcmp.ne.f32.partialorder %v9869_v3, %v9869_v3 }
 0x2ad   : > { %v2348_v38 = vpop.f32.mrf.mxu0  ;;  %7281 = vpow2.f32 %v2567_v46  ;;  %v2711_v29 = vmul.f32 %v10007_v52, %v2710_v60  ;;  %v7266_v36 = vpop.eup %7265  ;;  %v2486_v10 = vand.u32 2147483647, %v10070_v26  ;;  %v2687_v23 = vsel %vm2686_vm13, %v2684_v57, %v2681_v12 }
 0x2ae   : > { %7283 = vpow2.f32 %v2569_v53  ;;  %vm10084_vm15 = vcmp.lt.f32.partialorder %v2712_v34, 0.0004427343  ;;  %v2571_v41 = vmul.f32 1.442695, %v2516_v31  ;;  %v2887_v37 = vadd.f32 %v2687_v23, %v2375_v32 }
 0x2af   : > { %v2350_v14 = vpop.f32.mrf.mxu0  ;;  %v2701_v24 = vadd.f32 1.0, %v2700_v39  ;;  %vm10088_vm1 = vcmp.lt.f32.partialorder %v2703_v49, 0.0004427343  ;;  %v2517_v9 = vsub.f32 0.0, %v2485_v45  ;;  %v10093_v62 = vadd.f32 %v2348_v38, %v9787_v58  ;;  %v10098_v63 = vpop.eup %7267 }
 0x2b0   : > { %v2708_v52 = vmul.f32 0.6931472, %v7266_v36  ;;  %vm2409_vm2 = vcmp.ne.f32.partialorder %v9886_v48, %v9886_v48  ;;  %v2742_v43 = vadd.f32 1.0, %v10075_v42  ;;  %v2919_v0 = vsel %vm2407_vm12, %v9846_v1, %v2887_v37 }
 0x2b1   : > { %v2380_v54 = vmax.f32 %v9904_v11, 0.0  ;;  %v2727_v6 = vmul.f32 -0.5, %v10052_v30  ;;  %v2730_v28 = vand.u32 2147483647, %v10052_v30  ;;  %v2518_v32 = vsub.f32 0.0, %v2486_v10  ;;  %3070 = vmatmul.mubr.f32.gmra.mxu1 %v2919_v0 }
 0x2b2   : > { %v2714_v40 = vsel %vm10084_vm15, %v2711_v29, %v2708_v52  ;;  %v2718_v20 = vmul.f32 -0.5, %v10056_v18  ;;  %7285 = vlog2.f32 %v2742_v43  ;;  %v7270_v17 = vpop.eup %7269  ;;  %v10111_v35 = vadd.f32 %v2350_v14, %v9790_v47 }
 0x2b3   : > { %v2354_v15 = vpop.f32.mrf.mxu0  ;;  %7287 = vpow2.f32 %v2571_v41  ;;  %v2890_v46 = vadd.f32 %v2714_v40, %v2378_v50  ;;  %v2379_v60 = vmax.f32 %v9914_v51, 0.0  ;;  %v10114_v34 = vpop.eup %7271  ;;  %v2573_v55 = vmul.f32 1.442695, %v2517_v9 }
 0x2b4   : > { %v2487_v53 = vand.u32 2147483647, %v10093_v62  ;;  %v2699_v38 = vmul.f32 0.6931472, %v7270_v17  ;;  %v2702_v25 = vmul.f32 %v10036_v16, %v2701_v24  ;;  %v10118_v31 = vpop.eup %7273  ;;  %v10121_v12 = vadd.f32 %v2354_v15, %v9787_v58 }
 0x2b5   : > { %v2356_v1 = vpop.f32.mrf.mxu0  ;;  %v2922_v39 = vsel %vm2410_vm14, %v9869_v3, %v2890_v46  ;;  %vm2412_vm3 = vcmp.ne.f32.partialorder %v9904_v11, %v9904_v11  ;;  %v2728_v49 = vadd.f32 1.0, %v2727_v6  ;;  %vm10129_vm4 = vcmp.lt.f32.partialorder %v2730_v28, 0.0004427343  ;;  %v10133_v57 = vpop.eup %7275 }
 0x2b6   : > { %v2575_v16 = vmul.f32 1.442695, %v2518_v32  ;;  %3074 = vmatprep.mubr.f32.mxu1 %v2922_v39  ;;  %v2705_v14 = vsel %vm10088_vm1, %v2702_v25, %v2699_v38  ;;  %v2719_v50 = vadd.f32 1.0, %v2718_v20  ;;  %v2721_v29 = vand.u32 2147483647, %v10056_v18 }
 0x2b7   : > { %v7278_v36 = vpop.eup %7277  ;;  %v2488_v3 = vand.u32 2147483647, %v10111_v35  ;;  %v10140_v10 = vadd.f32 %v2356_v1, %v9790_v47  ;;  %v2889_v19 = vadd.f32 %v2705_v14, %v2377_v4  ;;  %v2733_v41 = vadd.f32 1.0, %v10098_v63 }
 0x2b8   : > { %7289 = vpow2.f32 %v2573_v55  ;;  %v2519_v37 = vsub.f32 0.0, %v2487_v53  ;;  %v2726_v24 = vmul.f32 0.6931472, %v7278_v36  ;;  %v2745_v7 = vmul.f32 -0.5, %v10075_v42 }
 0x2b9   : > { %v2360_v23 = vpop.f32.mrf.mxu0  ;;  %v7280_v9 = vpop.eup %7279  ;;  %v2489_v52 = vand.u32 2147483647, %v10121_v12  ;;  %v2921_v43 = vsel %vm2409_vm2, %v9886_v48, %v2889_v19  ;;  %v2729_v15 = vmul.f32 %v10052_v30, %v2728_v49  ;;  %7291 = vlog2.f32 %v2733_v41 }
 0x2ba   : > { %v10152_v0 = vpop.eup %7281  ;;  %7293 = vpow2.f32 %v2575_v16  ;;  %v10155_v4 = vadd.f32 %v2360_v23, %v9787_v58  ;;  %3075 = vmatmul.mubr.f32.gmra.mxu1 %v2921_v43  ;;  %v2720_v28 = vmul.f32 %v10056_v18, %v2719_v50  ;;  %vm10158_vm5 = vcmp.lt.f32.partialorder %v2721_v29, 0.0004427343 }
 0x2bb   : > { %v2362_v6 = vpop.f32.mrf.mxu0  ;;  %v10162_v40 = vpop.eup %7283  ;;  %v2520_v48 = vsub.f32 0.0, %v2488_v3  ;;  %v2490_v30 = vand.u32 2147483647, %v10140_v10  ;;  %v2732_v20 = vsel %vm10129_vm4, %v2729_v15, %v2726_v24  ;;  %v2717_v17 = vmul.f32 0.6931472, %v7280_v9 }
 0x2bc   : > { %v2577_v1 = vmul.f32 1.442695, %v2519_v37  ;;  %v2892_v58 = vadd.f32 %v2732_v20, %v2380_v54  ;;  %v2746_v46 = vadd.f32 1.0, %v2745_v7  ;;  %v2748_v55 = vand.u32 2147483647, %v10075_v42 }
 0x2bd   : > { %v2521_v53 = vsub.f32 0.0, %v2489_v52  ;;  %v10169_v18 = vadd.f32 %v2362_v6, %v9790_v47  ;;  %v2723_v38 = vsel %vm10158_vm5, %v2720_v28, %v2717_v17  ;;  %v2760_v25 = vadd.f32 1.0, %v10118_v31 }
 0x2be   : > { %v2491_v39 = vand.u32 2147483647, %v10155_v4  ;;  %v2924_v49 = vsel %vm2412_vm3, %v9904_v11, %v2892_v58  ;;  %v2891_v54 = vadd.f32 %v2723_v38, %v2379_v60  ;;  %v2736_v45 = vmul.f32 -0.5, %v10098_v63 }
 0x2bf   : > { %v7286_v16 = vpop.eup %7285  ;;  %v2579_v14 = vmul.f32 1.442695, %v2520_v48  ;;  %v2522_v50 = vsub.f32 0.0, %v2490_v30  ;;  %3079 = vmatprep.mubr.f32.mxu1 %v2924_v49  ;;  %vm2411_vm6 = vcmp.ne.f32.partialorder %v9914_v51, %v9914_v51  ;;  %7295 = vlog2.f32 %v2760_v25 }
 0x2c0   : > { %v10182_v47 = vpop.eup %7287  ;;  %v2923_v29 = vsel %vm2411_vm6, %v9914_v51, %v2891_v54  ;;  %v2744_v36 = vmul.f32 0.6931472, %v7286_v16  ;;  %v2747_v3 = vmul.f32 %v10075_v42, %v2746_v46  ;;  %vm2749_vm7 = vcmp.lt.f32.partialorder %v2748_v55, 0.0004427343 }
 0x2c1   : > { %v2581_v11 = vmul.f32 1.442695, %v2521_v53  ;;  %v2492_v60 = vand.u32 2147483647, %v10169_v18  ;;  %3080 = vmatmul.mubr.f32.gmra.mxu1 %v2923_v29  ;;  %v2382_v23 = vmax.f32 %v9940_v44, 0.0  ;;  %v2751_v19 = vadd.f32 1.0, %v10114_v34 }
 0x2c2   : > { %7297 = vpow2.f32 %v2577_v1  ;;  %v2523_v41 = vsub.f32 0.0, %v2491_v39  ;;  %v2750_v37 = vsel %vm2749_vm7, %v2747_v3, %v2744_v36  ;;  %v2737_v24 = vadd.f32 1.0, %v2736_v45 }
 0x2c3   : > { %v2583_v7 = vmul.f32 1.442695, %v2522_v50  ;;  %v2894_v9 = vadd.f32 %v2750_v37, %v2382_v23  ;;  %v2763_v51 = vmul.f32 -0.5, %v10118_v31  ;;  %7299 = vlog2.f32 %v2751_v19 }
 0x2c4   : > { %7301 = vpow2.f32 %v2579_v14  ;;  %vm2414_vm8 = vcmp.ne.f32.partialorder %v9940_v44, %v9940_v44  ;;  %v2739_v42 = vand.u32 2147483647, %v10098_v63  ;;  %v2778_v52 = vadd.f32 1.0, %v10152_v0 }
 0x2c5   : > { %v10194_v43 = vpop.eup %7289  ;;  %7303 = vpow2.f32 %v2581_v11  ;;  %v2524_v15 = vsub.f32 0.0, %v2492_v60  ;;  %v2926_v6 = vsel %vm2414_vm8, %v9940_v44, %v2894_v9  ;;  %v2585_v32 = vmul.f32 1.442695, %v2523_v41 }
 0x2c6   : > { %v7292_v28 = vpop.eup %7291  ;;  %3084 = vmatprep.mubr.f32.mxu1 %v2926_v6  ;;  %v2381_v48 = vmax.f32 %v9954_v59, 0.0  ;;  %7305 = vlog2.f32 %v2778_v52  ;;  %v2769_v30 = vadd.f32 1.0, %v10133_v57  ;;  %v2738_v1 = vmul.f32 %v10098_v63, %v2737_v24 }
 0x2c7   : > { %v10199_v20 = vpop.eup %7293  ;;  %7307 = vpow2.f32 %v2583_v7  ;;  %v2735_v17 = vmul.f32 0.6931472, %v7292_v28  ;;  %v2764_v58 = vadd.f32 1.0, %v2763_v51  ;;  %vm2413_vm9 = vcmp.ne.f32.partialorder %v9954_v59, %v9954_v59 }
 0x2c8   : > { %vm2740_vm10 = vcmp.lt.f32.partialorder %v2739_v42, 0.0004427343  ;;  %v2766_v44 = vand.u32 2147483647, %v10118_v31  ;;  %7309 = vlog2.f32 %v2769_v30  ;;  %v2587_v46 = vmul.f32 1.442695, %v2524_v15 }
 0x2c9   : > { %v2741_v55 = vsel %vm2740_vm10, %v2738_v1, %v2735_v17  ;;  %v2754_v53 = vmul.f32 -0.5, %v10114_v34  ;;  %v2796_v38 = vadd.f32 1.0, %v10182_v47  ;;  %7311 = vpow2.f32 %v2585_v32 }
 0x2ca   : > { %v2893_v25 = vadd.f32 %v2741_v55, %v2381_v48  ;;  %v2384_v39 = vmax.f32 %v9985_v33, 0.0  ;;  %vm2416_vm11 = vcmp.ne.f32.partialorder %v9985_v33, %v9985_v33  ;;  %v2765_v63 = vmul.f32 %v10118_v31, %v2764_v58 }
 0x2cb   : > { %v2383_v49 = vmax.f32 %v9977_v61, 0.0  ;;  %v2781_v54 = vmul.f32 -0.5, %v10152_v0  ;;  %7313 = vlog2.f32 %v2796_v38  ;;  %vm10217_vm12 = vcmp.lt.f32.partialorder %v2766_v44, 0.0004427343 }
 0x2cc   : > { %v7296_v45 = vpop.eup %7295  ;;  %v2925_v16 = vsel %vm2413_vm9, %v9954_v59, %v2893_v25  ;;  %v2757_v50 = vand.u32 2147483647, %v10114_v34  ;;  %v2787_v29 = vadd.f32 1.0, %v10162_v40  ;;  %7315 = vpow2.f32 %v2587_v46 }
 0x2cd   : > { %3085 = vmatmul.mubr.f32.gmra.mxu1 %v2925_v16  ;;  %v2762_v31 = vmul.f32 0.6931472, %v7296_v45  ;;  %vm2415_vm13 = vcmp.ne.f32.partialorder %v9977_v61, %v9977_v61  ;;  %v2755_v36 = vadd.f32 1.0, %v2754_v53  ;;  %v2784_v3 = vand.u32 2147483647, %v10152_v0 }
 0x2ce   : > { %v2772_v11 = vmul.f32 -0.5, %v10133_v57  ;;  %7317 = vlog2.f32 %v2787_v29  ;;  %v2814_v59 = vadd.f32 1.0, %v10199_v20  ;;  %v2386_v19 = vmax.f32 %v10022_v27, 0.0 }
 0x2cf   : > { %v10228_v60 = vpop.eup %7297  ;;  %v2768_v23 = vsel %vm10217_vm12, %v2765_v63, %v2762_v31  ;;  %v2782_v41 = vadd.f32 1.0, %v2781_v54  ;;  %v2799_v37 = vmul.f32 -0.5, %v10182_v47  ;;  %vm10234_vm14 = vcmp.lt.f32.partialorder %v2757_v50, 0.0004427343 }
 0x2d0   : > { %v7300_v24 = vpop.eup %7299  ;;  %v2896_v7 = vadd.f32 %v2768_v23, %v2384_v39  ;;  %vm2418_vm15 = vcmp.ne.f32.partialorder %v10022_v27, %v10022_v27  ;;  %7319 = vlog2.f32 %v2814_v59  ;;  %v2756_v52 = vmul.f32 %v10114_v34, %v2755_v36 }
 0x2d1   : > { %v10240_v51 = vpop.eup %7301  ;;  %v2753_v42 = vmul.f32 0.6931472, %v7300_v24  ;;  %v2385_v15 = vmax.f32 %v10000_v13, 0.0  ;;  %v2775_v6 = vand.u32 2147483647, %v10133_v57  ;;  %vm2417_vm2 = vcmp.ne.f32.partialorder %v10000_v13, %v10000_v13 }
 0x2d2   : > { %v10245_v28 = vpop.eup %7303  ;;  %v2928_v32 = vsel %vm2416_vm11, %v9985_v33, %v2896_v7  ;;  %vm10251_vm1 = vcmp.lt.f32.partialorder %v2784_v3, 0.0004427343  ;;  %v2773_v30 = vadd.f32 1.0, %v2772_v11  ;;  %v2805_v34 = vadd.f32 1.0, %v10194_v43 }
 0x2d3   : > { %v7306_v17 = vpop.eup %7305  ;;  %3089 = vmatprep.mubr.f32.mxu1 %v2928_v32  ;;  %v2759_v1 = vsel %vm10234_vm14, %v2756_v52, %v2753_v42  ;;  %v2783_v58 = vmul.f32 %v10152_v0, %v2782_v41  ;;  %v2388_v44 = vmax.f32 %v10046_v56, 0.0  ;;  %v2800_v33 = vadd.f32 1.0, %v2799_v37 }
 0x2d4   : > { %v10262_v46 = vpop.eup %7307  ;;  %v2895_v55 = vadd.f32 %v2759_v1, %v2383_v49  ;;  %v2780_v53 = vmul.f32 0.6931472, %v7306_v17  ;;  %v2790_v38 = vmul.f32 -0.5, %v10162_v40  ;;  %7321 = vlog2.f32 %v2805_v34 }
 0x2d5   : > { %v7310_v25 = vpop.eup %7309  ;;  %vm10265_vm3 = vcmp.lt.f32.partialorder %v2775_v6, 0.0004427343  ;;  %vm2420_vm4 = vcmp.ne.f32.partialorder %v10046_v56, %v10046_v56  ;;  %v2802_v0 = vand.u32 2147483647, %v10182_v47  ;;  %v2817_v63 = vmul.f32 -0.5, %v10199_v20 }
 0x2d6   : > { %v2832_v54 = vadd.f32 1.0, %v10240_v51  ;;  %v2927_v49 = vsel %vm2415_vm13, %v9977_v61, %v2895_v55  ;;  %v2786_v45 = vsel %vm10251_vm1, %v2783_v58, %v2780_v53  ;;  %v2771_v16 = vmul.f32 0.6931472, %v7310_v25  ;;  %v10281_v50 = vpop.eup %7311 }
 0x2d7   : > { %v2774_v14 = vmul.f32 %v10133_v57, %v2773_v30  ;;  %3090 = vmatmul.mubr.f32.gmra.mxu1 %v2927_v49  ;;  %v2898_v29 = vadd.f32 %v2786_v45, %v2386_v19  ;;  %v2801_v31 = vmul.f32 %v10182_v47, %v2800_v33  ;;  %v2387_v36 = vmax.f32 %v10027_v2, 0.0 }
 0x2d8   : > { %7323 = vlog2.f32 %v2832_v54  ;;  %v7314_v3 = vpop.eup %7313  ;;  %v2791_v61 = vadd.f32 1.0, %v2790_v38  ;;  %v2793_v59 = vand.u32 2147483647, %v10162_v40  ;;  %v2823_v23 = vadd.f32 1.0, %v10228_v60 }
 0x2d9   : > { %v2777_v11 = vsel %vm10265_vm3, %v2774_v14, %v2771_v16  ;;  %v2930_v57 = vsel %vm2418_vm15, %v10022_v27, %v2898_v29  ;;  %v2798_v41 = vmul.f32 0.6931472, %v7314_v3  ;;  %v2818_v47 = vadd.f32 1.0, %v2817_v63  ;;  %v10293_v37 = vpop.eup %7315 }
 0x2da   : > { %v2897_v19 = vadd.f32 %v2777_v11, %v2385_v15  ;;  %3094 = vmatprep.mubr.f32.mxu1 %v2930_v57  ;;  %vm2803_vm5 = vcmp.lt.f32.partialorder %v2802_v0, 0.0004427343  ;;  %vm2419_vm6 = vcmp.ne.f32.partialorder %v10027_v2, %v10027_v2  ;;  %v2808_v24 = vmul.f32 -0.5, %v10194_v43 }
 0x2db   : > { %7325 = vlog2.f32 %v2823_v23  ;;  %v7318_v7 = vpop.eup %7317  ;;  %v2804_v27 = vsel %vm2803_vm5, %v2801_v31, %v2798_v41  ;;  %v2820_v42 = vand.u32 2147483647, %v10199_v20  ;;  %v2850_v52 = vadd.f32 1.0, %v10262_v46 }
 0x2dc   : > { %v2929_v9 = vsel %vm2417_vm2, %v10000_v13, %v2897_v19  ;;  %v2900_v15 = vadd.f32 %v2804_v27, %v2388_v44  ;;  %v2789_v6 = vmul.f32 0.6931472, %v7318_v7  ;;  %v2792_v32 = vmul.f32 %v10162_v40, %v2791_v61 }
 0x2dd   : > { %3095 = vmatmul.mubr.f32.gmra.mxu1 %v2929_v9  ;;  %v2835_v48 = vmul.f32 -0.5, %v10240_v51  ;;  %v7320_v30 = vpop.eup %7319  ;;  %vm2794_vm7 = vcmp.lt.f32.partialorder %v2793_v59, 0.0004427343  ;;  %v2819_v34 = vmul.f32 %v10199_v20, %v2818_v47  ;;  %v2811_v17 = vand.u32 2147483647, %v10194_v43 }
 0x2de   : > { %7327 = vlog2.f32 %v2850_v52  ;;  %v2932_v13 = vsel %vm2420_vm4, %v10046_v56, %v2900_v15  ;;  %v2795_v1 = vsel %vm2794_vm7, %v2792_v32, %v2789_v6  ;;  %v2816_v58 = vmul.f32 0.6931472, %v7320_v30 }
 0x2df   : > { %v2809_v44 = vadd.f32 1.0, %v2808_v24  ;;  %3099 = vmatprep.mubr.f32.mxu1 %v2932_v13  ;;  %v2899_v33 = vadd.f32 %v2795_v1, %v2387_v36  ;;  %v2390_v40 = vmax.f32 %v10070_v26, 0.0  ;;  %vm2821_vm8 = vcmp.lt.f32.partialorder %v2820_v42, 0.0004427343 }
 0x2e0   : > { %v2826_v55 = vmul.f32 -0.5, %v10228_v60  ;;  %vm2422_vm9 = vcmp.ne.f32.partialorder %v10070_v26, %v10070_v26  ;;  %v2822_v20 = vsel %vm2821_vm8, %v2819_v34, %v2816_v58  ;;  %v2836_v53 = vadd.f32 1.0, %v2835_v48 }
 0x2e1   : > { %v2841_v38 = vadd.f32 1.0, %v10245_v28  ;;  %v7322_v25 = vpop.eup %7321  ;;  %v2931_v56 = vsel %vm2419_vm6, %v10027_v2, %v2899_v33  ;;  %v2902_v39 = vadd.f32 %v2822_v20, %v2390_v40  ;;  %v2389_v0 = vmax.f32 %v10062_v5, 0.0 }
 0x2e2   : > { %vm2812_vm10 = vcmp.lt.f32.partialorder %v2811_v17, 0.0004427343  ;;  %3100 = vmatmul.mubr.f32.gmra.mxu1 %v2931_v56  ;;  %v2807_v63 = vmul.f32 0.6931472, %v7322_v25  ;;  %v2810_v54 = vmul.f32 %v10194_v43, %v2809_v44  ;;  %v2838_v49 = vand.u32 2147483647, %v10240_v51 }
 0x2e3   : > { %7329 = vlog2.f32 %v2841_v38  ;;  %v2934_v45 = vsel %vm2422_vm9, %v10070_v26, %v2902_v39  ;;  %v2827_v16 = vadd.f32 1.0, %v2826_v55  ;;  %v2853_v14 = vmul.f32 -0.5, %v10262_v46 }
 0x2e4   : > { %v2868_v29 = vadd.f32 1.0, %v10293_v37  ;;  %3104 = vmatprep.mubr.f32.mxu1 %v2934_v45  ;;  %vm2421_vm11 = vcmp.ne.f32.partialorder %v10062_v5, %v10062_v5  ;;  %v2813_v2 = vsel %vm2812_vm10, %v2810_v54, %v2807_v63  ;;  %v2837_v36 = vmul.f32 %v10240_v51, %v2836_v53 }
 0x2e5   : > { %v7324_v31 = vpop.eup %7323  ;;  %v2901_v3 = vadd.f32 %v2813_v2, %v2389_v0  ;;  %v2829_v11 = vand.u32 2147483647, %v10228_v60  ;;  %v2392_v26 = vmax.f32 %v10111_v35, 0.0  ;;  %vm2839_vm12 = vcmp.lt.f32.partialorder %v2838_v49, 0.0004427343 }
 0x2e6   : > { %v2834_v43 = vmul.f32 0.6931472, %v7324_v31  ;;  %7331 = vlog2.f32 %v2868_v29  ;;  %v2856_v61 = vand.u32 2147483647, %v10262_v46  ;;  %v2859_v59 = vadd.f32 1.0, %v10281_v50 }
 0x2e7   : > { %v2933_v57 = vsel %vm2421_vm11, %v10062_v5, %v2901_v3  ;;  %v2828_v41 = vmul.f32 %v10228_v60, %v2827_v16  ;;  %v2854_v47 = vadd.f32 1.0, %v2853_v14  ;;  %v2844_v7 = vmul.f32 -0.5, %v10245_v28 }
 0x2e8   : > { %v7326_v23 = vpop.eup %7325  ;;  %v2840_v19 = vsel %vm2839_vm12, %v2837_v36, %v2834_v43  ;;  %3105 = vmatmul.mubr.f32.gmra.mxu1 %v2933_v57  ;;  %7333 = vlog2.f32 %v2859_v59  ;;  %vm2424_vm13 = vcmp.ne.f32.partialorder %v10111_v35, %v10111_v35  ;;  %v2391_v9 = vmax.f32 %v10093_v62, 0.0 }
 0x2e9   : > { %v2904_v51 = vadd.f32 %v2840_v19, %v2392_v26  ;;  %v2825_v24 = vmul.f32 0.6931472, %v7326_v23  ;;  %vm2830_vm14 = vcmp.lt.f32.partialorder %v2829_v11, 0.0004427343  ;;  %v2855_v15 = vmul.f32 %v10262_v46, %v2854_v47 }
 0x2ea   : > { %v2871_v6 = vmul.f32 -0.5, %v10293_v37  ;;  %vm2423_vm15 = vcmp.ne.f32.partialorder %v10093_v62, %v10093_v62  ;;  %v2394_v32 = vmax.f32 %v10140_v10, 0.0  ;;  %vm2857_vm1 = vcmp.lt.f32.partialorder %v2856_v61, 0.0004427343 }
 0x2eb   : > { %v7328_v27 = vpop.eup %7327  ;;  %v2936_v42 = vsel %vm2424_vm13, %v10111_v35, %v2904_v51  ;;  %v2831_v5 = vsel %vm2830_vm14, %v2828_v41, %v2825_v24  ;;  %v2845_v48 = vadd.f32 1.0, %v2844_v7  ;;  %v2847_v35 = vand.u32 2147483647, %v10245_v28 }
 0x2ec   : > { %3109 = vmatprep.mubr.f32.mxu1 %v2936_v42  ;;  %v2903_v52 = vadd.f32 %v2831_v5, %v2391_v9  ;;  %v2852_v60 = vmul.f32 0.6931472, %v7328_v27  ;;  %v2862_v13 = vmul.f32 -0.5, %v10281_v50  ;;  %vm2426_vm2 = vcmp.ne.f32.partialorder %v10140_v10, %v10140_v10 }
 0x2ed   : > { %v2872_v46 = vadd.f32 1.0, %v2871_v6  ;;  %v2846_v33 = vmul.f32 %v10245_v28, %v2845_v48  ;;  %v2874_v40 = vand.u32 2147483647, %v10293_v37  ;;  %vm2848_vm3 = vcmp.lt.f32.partialorder %v2847_v35, 0.0004427343 }
 0x2ee   : > { %v2935_v30 = vsel %vm2423_vm15, %v10093_v62, %v2903_v52  ;;  %v2858_v34 = vsel %vm2857_vm1, %v2855_v15, %v2852_v60  ;;  %v2393_v62 = vmax.f32 %v10121_v12, 0.0  ;;  %v2863_v53 = vadd.f32 1.0, %v2862_v13  ;;  %v3580_v13 = vld [vmem:[%s13275_s8 + $0x38] sm:$0xff] }
 0x2ef   : > { %3110 = vmatmul.mubr.f32.gmra.mxu1 %v2935_v30  ;;  %v2906_v17 = vadd.f32 %v2858_v34, %v2394_v32  ;;  %v2873_v56 = vmul.f32 %v10293_v37, %v2872_v46  ;;  %v2865_v39 = vand.u32 2147483647, %v10281_v50  ;;  %vm2425_vm4 = vcmp.ne.f32.partialorder %v10121_v12, %v10121_v12  ;;  %3666 = vmatprep.subr.mxu0 %v3580_v13 }
 0x2f0   : > { %v7330_v1 = vpop.eup %7329  ;;  %vm2875_vm5 = vcmp.lt.f32.partialorder %v2874_v40, 0.0004427343  ;;  %v2864_v45 = vmul.f32 %v10281_v50, %v2863_v53  ;;  %vm2428_vm6 = vcmp.ne.f32.partialorder %v10169_v18, %v10169_v18  ;;  %v2395_v37 = vmax.f32 %v10155_v4, 0.0  ;;  %v10372_v50 = vld [vmem:[%s13274_s7] ss:$0 sm:$0xff] }
 0x2f1   : > { %v2938_v58 = vsel %vm2426_vm2, %v10140_v10, %v2906_v17  ;;  %v2843_v44 = vmul.f32 0.6931472, %v7330_v1  ;;  %v2396_v10 = vmax.f32 %v10169_v18, 0.0  ;;  %vm2866_vm7 = vcmp.lt.f32.partialorder %v2865_v39, 0.0004427343  ;;  %v3579_v1 = vld [vmem:[%s13275_s8 + $0x30] sm:$0xff] }
 0x2f2   : > { %3114 = vmatprep.mubr.f32.mxu1 %v2938_v58  ;;  %vm2427_vm8 = vcmp.ne.f32.partialorder %v10155_v4, %v10155_v4  ;;  %3667 = vmatpush1.msra.mxu0 %v3579_v1 }
 0x2f3   : > { %v7332_v55 = vpop.eup %7331  ;;  %v2849_v20 = vsel %vm2848_vm3, %v2846_v33, %v2843_v44 }
 0x2f4   : > { %v2905_v38 = vadd.f32 %v2849_v20, %v2393_v62  ;;  %v2870_v25 = vmul.f32 0.6931472, %v7332_v55 }
 0x2f5   : > { %v7334_v28 = vpop.eup %7333 }
 0x2f6   : > { %v2937_v0 = vsel %vm2425_vm4, %v10121_v12, %v2905_v38  ;;  %v2876_v63 = vsel %vm2875_vm5, %v2873_v56, %v2870_v25  ;;  %v2861_v49 = vmul.f32 0.6931472, %v7334_v28 }
 0x2f7   : > { %3115 = vmatmul.mubr.f32.gmra.mxu1 %v2937_v0  ;;  %v2908_v54 = vadd.f32 %v2876_v63, %v2396_v10 }
 0x2f8   : > { %v2867_v14 = vsel %vm2866_vm7, %v2864_v45, %v2861_v49  ;;  %v3578_v45 = vld [vmem:[%s13275_s8 + $0x28] sm:$0xff] }
 0x2f9   : > { %v2940_v16 = vsel %vm2428_vm6, %v10169_v18, %v2908_v54  ;;  %v2907_v29 = vadd.f32 %v2867_v14, %v2395_v37  ;;  %v3577_v37 = vld [vmem:[%s13275_s8 + $0x20] sm:$0xff]  ;;  %3668 = vmatprep.subr.mxu0 %v3578_v45  ;;  %v3575_v14 = vld [vmem:[%s13275_s8 + $0x10] sm:$0xff] }
 0x2fa   : > { %3119 = vmatprep.mubr.f32.mxu1 %v2940_v16  ;;  %v3576_v16 = vld [vmem:[%s13275_s8 + $0x18] sm:$0xff]  ;;  %3669 = vmatpush1.msra.mxu0 %v3577_v37 }
 0x2fb   : > { %v2939_v12 = vsel %vm2427_vm8, %v10155_v4, %v2907_v29  ;;  %v3574_v29 = vld [vmem:[%s13275_s8 + $0x8] sm:$0xff]  ;;  %3670 = vmatprep.subr.mxu0 %v3576_v16 }
 0x2fc   : > { %3120 = vmatmul.mubr.f32.gmra.mxu1 %v2939_v12  ;;  %3671 = vmatpush1.msra.mxu0 %v3575_v14 }
 0x2fd   : > { %3672 = vmatprep.subr.mxu0 %v3574_v29 }
 0x337   : > { %v6939_v31 = vpop.f32.mrf.mxu1 }
 0x339   : > { %v6940_v2 = vpop.f32.mrf.mxu1 }
 0x33a   : > { %v6941_v36 = vadd.f32 %v6940_v2, %v6939_v31  ;;  %v3573_v31 = vld [vmem:[%s13275_s8] sm:$0xff] }
 0x33b   : > { %3673 = vmatpush1.msra.mxu0 %v3573_v31 }
 0x33c   : > { %v3047_v3 = vadd.f32 %v6941_v36, %v10372_v50 }
 0x33e   : > { %v3173_v18 = vand.u32 2147483647, %v3047_v3  ;;  %v3125_v58 = vmax.f32 %v3047_v3, 0.0  ;;  %vm3141_vm10 = vcmp.ne.f32.partialorder %v3047_v3, %v3047_v3 }
 0x340   : > { %v3189_v43 = vsub.f32 0.0, %v3173_v18 }
 0x342   : > { %v3205_v11 = vmul.f32 1.442695, %v3189_v43 }
 0x344   : > { %7335 = vpow2.f32 %v3205_v11 }
 0x34e   : > { %v6942_v26 = vpop.f32.mrf.mxu1 }
 0x350   : > { %v6943_v61 = vpop.f32.mrf.mxu1 }
 0x351   : > { %v6944_v59 = vadd.f32 %v6943_v61, %v6942_v26  ;;  %v7336_v23 = vpop.eup %7335 }
 0x352   : > { %v3237_v57 = vadd.f32 1.0, %v7336_v23  ;;  %v3240_v9 = vmul.f32 -0.5, %v7336_v23  ;;  %v3243_v32 = vand.u32 2147483647, %v7336_v23 }
 0x353   : > { %v10376_v4 = vadd.f32 %v6944_v59, %v10372_v50 }
 0x354   : > { %7337 = vlog2.f32 %v3237_v57  ;;  %v3241_v60 = vadd.f32 1.0, %v3240_v9  ;;  %vm3244_vm9 = vcmp.lt.f32.partialorder %v3243_v32, 0.0004427343 }
 0x355   : > { %v3174_v19 = vand.u32 2147483647, %v10376_v4  ;;  %vm3142_vm12 = vcmp.ne.f32.partialorder %v10376_v4, %v10376_v4 }
 0x356   : > { %v6945_v47 = vpop.f32.mrf.mxu1  ;;  %v3242_v17 = vmul.f32 %v7336_v23, %v3241_v60  ;;  %v3126_v23 = vmax.f32 %v10376_v4, 0.0 }
 0x357   : > { %v3190_v41 = vsub.f32 0.0, %v3174_v19 }
 0x358   : > { %v6946_v24 = vpop.f32.mrf.mxu1 }
 0x359   : > { %v3207_v51 = vmul.f32 1.442695, %v3190_v41  ;;  %v6947_v7 = vadd.f32 %v6946_v24, %v6945_v47 }
 0x35b   : > { %7339 = vpow2.f32 %v3207_v51  ;;  %v10380_v27 = vadd.f32 %v6947_v7, %v10372_v50 }
 0x35d   : > { %v6948_v42 = vpop.f32.mrf.mxu1  ;;  %v3175_v5 = vand.u32 2147483647, %v10380_v27  ;;  %vm3143_vm14 = vcmp.ne.f32.partialorder %v10380_v27, %v10380_v27 }
 0x35f   : > { %v6949_v52 = vpop.f32.mrf.mxu1  ;;  %v3191_v15 = vsub.f32 0.0, %v3175_v5 }
 0x360   : > { %v6950_v6 = vadd.f32 %v6949_v52, %v6948_v42 }
 0x361   : > { %v7338_v48 = vpop.eup %7337  ;;  %v3209_v30 = vmul.f32 1.442695, %v3191_v15 }
 0x362   : > { %v10384_v34 = vadd.f32 %v6950_v6, %v10372_v50  ;;  %v3239_v35 = vmul.f32 0.6931472, %v7338_v48 }
 0x363   : > { %7341 = vpow2.f32 %v3209_v30 }
 0x364   : > { %v3176_v46 = vand.u32 2147483647, %v10384_v34  ;;  %v3245_v44 = vsel %vm3244_vm9, %v3242_v17, %v3239_v35  ;;  %v6951_v40 = vpop.f32.mrf.mxu1  ;;  %vm3144_vm1 = vcmp.ne.f32.partialorder %v10384_v34, %v10384_v34 }
 0x365   : > { %v3381_v62 = vadd.f32 %v3245_v44, %v3125_v58 }
 0x366   : > { %v3192_v33 = vsub.f32 0.0, %v3176_v46  ;;  %v6952_v53 = vpop.f32.mrf.mxu1 }
 0x367   : > { %v10393_v38 = vsel %vm3141_vm10, %v3047_v3, %v3381_v62  ;;  %v6953_v25 = vadd.f32 %v6952_v53, %v6951_v40 }
 0x368   : > { %v7340_v55 = vpop.eup %7339  ;;  %v3211_v20 = vmul.f32 1.442695, %v3192_v33  ;;  %3493 = vrot.lane.b32.xlu0 %v10393_v38, %s7920_s27 }
 0x369   : > { %v3246_v56 = vadd.f32 1.0, %v7340_v55  ;;  %v10398_v39 = vadd.f32 %v6953_v25, %v10372_v50  ;;  %v3249_v54 = vmul.f32 -0.5, %v7340_v55  ;;  %v3252_v36 = vand.u32 2147483647, %v7340_v55 }
 0x36a   : > { %7343 = vpow2.f32 %v3211_v20 }
 0x36b   : > { %7345 = vlog2.f32 %v3246_v56  ;;  %v3177_v10 = vand.u32 2147483647, %v10398_v39  ;;  %v3250_v12 = vadd.f32 1.0, %v3249_v54  ;;  %vm3253_vm11 = vcmp.lt.f32.partialorder %v3252_v36, 0.0004427343 }
 0x36c   : > { %vm3145_vm3 = vcmp.ne.f32.partialorder %v10398_v39, %v10398_v39 }
 0x36d   : > { %v3193_v28 = vsub.f32 0.0, %v3177_v10  ;;  %v3251_v59 = vmul.f32 %v7340_v55, %v3250_v12 }
 0x36f   : > { %v3213_v63 = vmul.f32 1.442695, %v3193_v28 }
 0x370   : > { %v7342_v0 = vpop.eup %7341 }
 0x371   : > { %v3255_v49 = vadd.f32 1.0, %v7342_v0  ;;  %7347 = vpow2.f32 %v3213_v63  ;;  %v6954_v2 = vpop.f32.mrf.mxu1  ;;  %v3258_v57 = vmul.f32 -0.5, %v7342_v0  ;;  %v3261_v5 = vand.u32 2147483647, %v7342_v0 }
 0x373   : > { %7349 = vlog2.f32 %v3255_v49  ;;  %v6955_v43 = vpop.f32.mrf.mxu1  ;;  %v3259_v9 = vadd.f32 1.0, %v3258_v57  ;;  %vm3262_vm13 = vcmp.lt.f32.partialorder %v3261_v5, 0.0004427343 }
 0x374   : > { %v6956_v26 = vadd.f32 %v6955_v43, %v6954_v2 }
 0x375   : > { %v3260_v17 = vmul.f32 %v7342_v0, %v3259_v9  ;;  %v3128_v0 = vmax.f32 %v10384_v34, 0.0 }
 0x376   : > { %v10421_v19 = vadd.f32 %v6956_v26, %v10372_v50  ;;  %v3129_v26 = vmax.f32 %v10398_v39, 0.0 }
 0x377   : > { %v7344_v3 = vpop.eup %7343 }
 0x378   : > { %v7346_v18 = vpop.eup %7345  ;;  %v3264_v11 = vadd.f32 1.0, %v7344_v3  ;;  %v3178_v51 = vand.u32 2147483647, %v10421_v19  ;;  %v3267_v15 = vmul.f32 -0.5, %v7344_v3  ;;  %v3270_v40 = vand.u32 2147483647, %v7344_v3 }
 0x379   : > { %v3248_v61 = vmul.f32 0.6931472, %v7346_v18  ;;  %vm3146_vm5 = vcmp.ne.f32.partialorder %v10421_v19, %v10421_v19 }
 0x37a   : > { %7351 = vlog2.f32 %v3264_v11  ;;  %v6957_v24 = vpop.f32.mrf.mxu1  ;;  %v3194_v42 = vsub.f32 0.0, %v3178_v51  ;;  %v3268_v46 = vadd.f32 1.0, %v3267_v15  ;;  %vm3271_vm15 = vcmp.lt.f32.partialorder %v3270_v40, 0.0004427343 }
 0x37b   : > { %v3254_v41 = vsel %vm3253_vm11, %v3251_v59, %v3248_v61 }
 0x37c   : > { %v3382_v47 = vadd.f32 %v3254_v41, %v3126_v23  ;;  %v6958_v60 = vpop.f32.mrf.mxu1  ;;  %v3215_v32 = vmul.f32 1.442695, %v3194_v42  ;;  %v3269_v10 = vmul.f32 %v7344_v3, %v3268_v46 }
 0x37d   : > { %v6959_v48 = vadd.f32 %v6958_v60, %v6957_v24 }
 0x37e   : > { %v10427_v7 = vsel %vm3142_vm12, %v10376_v4, %v3382_v47  ;;  %v7348_v52 = vpop.eup %7347  ;;  %7353 = vpow2.f32 %v3215_v32  ;;  %v3127_v4 = vmax.f32 %v10380_v27, 0.0 }
 0x37f   : > { %3495 = vrot.lane.b32.xlu0 %v10427_v7, %s7920_s27  ;;  %v3273_v30 = vadd.f32 1.0, %v7348_v52  ;;  %v10432_v13 = vadd.f32 %v6959_v48, %v10372_v50  ;;  %v3276_v49 = vmul.f32 -0.5, %v7348_v52  ;;  %v3279_v29 = vand.u32 2147483647, %v7348_v52 }
 0x380   : > { %v7350_v6 = vpop.eup %7349 }
 0x381   : > { %v3257_v35 = vmul.f32 0.6931472, %v7350_v6  ;;  %7355 = vlog2.f32 %v3273_v30  ;;  %v3179_v58 = vand.u32 2147483647, %v10432_v13  ;;  %v6960_v44 = vpop.f32.mrf.mxu1  ;;  %v3277_v14 = vadd.f32 1.0, %v3276_v49 }
 0x382   : > { %vm3280_vm2 = vcmp.lt.f32.partialorder %v3279_v29, 0.0004427343  ;;  %vm3147_vm7 = vcmp.ne.f32.partialorder %v10432_v13, %v10432_v13 }
 0x383   : > { %v3263_v1 = vsel %vm3262_vm13, %v3260_v17, %v3257_v35  ;;  %v3195_v55 = vsub.f32 0.0, %v3179_v58  ;;  %v6961_v20 = vpop.f32.mrf.mxu1  ;;  %v3278_v43 = vmul.f32 %v7348_v52, %v3277_v14 }
 0x384   : > { %v3383_v33 = vadd.f32 %v3263_v1, %v3127_v4  ;;  %v6962_v25 = vadd.f32 %v6961_v20, %v6960_v44  ;;  %v3130_v44 = vmax.f32 %v10421_v19, 0.0 }
 0x385   : > { %v3217_v28 = vmul.f32 1.442695, %v3195_v55 }
 0x386   : > { %v10439_v53 = vsel %vm3143_vm14, %v10380_v27, %v3383_v33  ;;  %v10445_v63 = vadd.f32 %v6962_v25, %v10372_v50 }
 0x387   : > { %v7352_v62 = vpop.eup %7351  ;;  %3497 = vrot.lane.b32.xlu1 %v10439_v53, %s7920_s27  ;;  %7357 = vpow2.f32 %v3217_v28 }
 0x388   : > { %v3266_v56 = vmul.f32 0.6931472, %v7352_v62  ;;  %v3180_v27 = vand.u32 2147483647, %v10445_v63  ;;  %vm3148_vm9 = vcmp.ne.f32.partialorder %v10445_v63, %v10445_v63 }
 0x38a   : > { %v3272_v54 = vsel %vm3271_vm15, %v3269_v10, %v3266_v56  ;;  %v3196_v16 = vsub.f32 0.0, %v3180_v27 }
 0x38b   : > { %v3384_v45 = vadd.f32 %v3272_v54, %v3128_v0  ;;  %v7354_v12 = vpop.eup %7353 }
 0x38c   : > { %v3219_v31 = vmul.f32 1.442695, %v3196_v16  ;;  %v3282_v3 = vadd.f32 1.0, %v7354_v12  ;;  %v3285_v51 = vmul.f32 -0.5, %v7354_v12  ;;  %v3288_v6 = vand.u32 2147483647, %v7354_v12 }
 0x38d   : > { %v10451_v37 = vsel %vm3144_vm1, %v10384_v34, %v3384_v45  ;;  %v6963_v36 = vpop.f32.mrf.mxu1 }
 0x38e   : > { %3499 = vrot.lane.b32.xlu1 %v10451_v37, %s7920_s27  ;;  %v7356_v2 = vpop.eup %7355  ;;  %7359 = vpow2.f32 %v3219_v31  ;;  %v3286_v60 = vadd.f32 1.0, %v3285_v51  ;;  %vm3289_vm4 = vcmp.lt.f32.partialorder %v3288_v6, 0.0004427343  ;;  %v3131_v31 = vmax.f32 %v10432_v13, 0.0 }
 0x38f   : > { %v3275_v18 = vmul.f32 0.6931472, %v7356_v2  ;;  %v6964_v11 = vpop.f32.mrf.mxu1  ;;  %7361 = vlog2.f32 %v3282_v3 }
 0x390   : > { %v6965_v34 = vadd.f32 %v6964_v11, %v6963_v36  ;;  %v3287_v4 = vmul.f32 %v7354_v12, %v3286_v60  ;;  %v3132_v60 = vmax.f32 %v10445_v63, 0.0 }
 0x391   : > { %v3281_v61 = vsel %vm3280_vm2, %v3278_v43, %v3275_v18 }
 0x392   : > { %v3385_v59 = vadd.f32 %v3281_v61, %v3129_v26  ;;  %v10457_v23 = vadd.f32 %v6965_v34, %v10372_v50 }
 0x394   : > { %v10462_v57 = vsel %vm3145_vm3, %v10398_v39, %v3385_v59  ;;  %v7358_v41 = vpop.eup %7357  ;;  %v3181_v47 = vand.u32 2147483647, %v10457_v23  ;;  %vm3149_vm11 = vcmp.ne.f32.partialorder %v10457_v23, %v10457_v23 }
 0x395   : > { %3501 = vrot.lane.b32.xlu0 %v10462_v57, %s7920_s27  ;;  %v3291_v24 = vadd.f32 1.0, %v7358_v41  ;;  %v3294_v1 = vmul.f32 -0.5, %v7358_v41  ;;  %v3297_v0 = vand.u32 2147483647, %v7358_v41 }
 0x396   : > { %v3197_v9 = vsub.f32 0.0, %v3181_v47 }
 0x397   : > { %v6966_v42 = vpop.f32.mrf.mxu1  ;;  %7363 = vlog2.f32 %v3291_v24  ;;  %v3295_v25 = vadd.f32 1.0, %v3294_v1  ;;  %vm3298_vm6 = vcmp.lt.f32.partialorder %v3297_v0, 0.0004427343 }
 0x398   : > { %v3221_v5 = vmul.f32 1.442695, %v3197_v9 }
 0x399   : > { %v6967_v52 = vpop.f32.mrf.mxu1  ;;  %v3296_v12 = vmul.f32 %v7358_v41, %v3295_v25 }
 0x39a   : > { %7365 = vpow2.f32 %v3221_v5  ;;  %v6968_v15 = vadd.f32 %v6967_v52, %v6966_v42 }
 0x39b   : > { %v7360_v32 = vpop.eup %7359 }
 0x39c   : > { %v7362_v39 = vpop.eup %7361  ;;  %v10468_v48 = vadd.f32 %v6968_v15, %v10372_v50  ;;  %v3300_v35 = vadd.f32 1.0, %v7360_v32  ;;  %v3303_v27 = vmul.f32 -0.5, %v7360_v32  ;;  %v3306_v61 = vand.u32 2147483647, %v7360_v32 }
 0x39d   : > { %v6969_v30 = vpop.f32.mrf.mxu1  ;;  %v3284_v17 = vmul.f32 0.6931472, %v7362_v39 }
 0x39e   : > { %v3182_v46 = vand.u32 2147483647, %v10468_v48  ;;  %7367 = vlog2.f32 %v3300_v35  ;;  %v3304_v11 = vadd.f32 1.0, %v3303_v27  ;;  %vm3307_vm8 = vcmp.lt.f32.partialorder %v3306_v61, 0.0004427343 }
 0x39f   : > { %v6970_v58 = vpop.f32.mrf.mxu1  ;;  %v3290_v40 = vsel %vm3289_vm4, %v3287_v4, %v3284_v17  ;;  %vm3150_vm13 = vcmp.ne.f32.partialorder %v10468_v48, %v10468_v48 }
 0x3a0   : > { %v6971_v33 = vadd.f32 %v6970_v58, %v6969_v30  ;;  %v3198_v62 = vsub.f32 0.0, %v3182_v46  ;;  %v3386_v55 = vadd.f32 %v3290_v40, %v3130_v44  ;;  %v3305_v42 = vmul.f32 %v7360_v32, %v3304_v11 }
 0x3a2   : > { %v10473_v20 = vadd.f32 %v6971_v33, %v10372_v50  ;;  %v3223_v56 = vmul.f32 1.442695, %v3198_v62  ;;  %v6972_v10 = vpop.f32.mrf.mxu1  ;;  %v10478_v28 = vsel %vm3146_vm5, %v10421_v19, %v3386_v55 }
 0x3a3   : > { %3503 = vrot.lane.b32.xlu1 %v10478_v28, %s7920_s27 }
 0x3a4   : > { %v3183_v54 = vand.u32 2147483647, %v10473_v20  ;;  %v7364_v49 = vpop.eup %7363  ;;  %7369 = vpow2.f32 %v3223_v56  ;;  %v6973_v45 = vpop.f32.mrf.mxu1  ;;  %vm3151_vm15 = vcmp.ne.f32.partialorder %v10473_v20, %v10473_v20 }
 0x3a5   : > { %v6974_v14 = vadd.f32 %v6973_v45, %v6972_v10  ;;  %v3293_v29 = vmul.f32 0.6931472, %v7364_v49 }
 0x3a6   : > { %v3199_v16 = vsub.f32 0.0, %v3183_v54  ;;  %v3133_v54 = vmax.f32 %v10457_v23, 0.0 }
 0x3a7   : > { %v7366_v2 = vpop.eup %7365  ;;  %v10485_v36 = vadd.f32 %v6974_v14, %v10372_v50  ;;  %v3299_v3 = vsel %vm3298_vm6, %v3296_v12, %v3293_v29  ;;  %vm3593_vm6 = vcmask 261120  }
 0x3a8   : > { %v3225_v19 = vmul.f32 1.442695, %v3199_v16  ;;  %v6975_v18 = vpop.f32.mrf.mxu1  ;;  %v3387_v43 = vadd.f32 %v3299_v3, %v3131_v31  ;;  %v3309_v26 = vadd.f32 1.0, %v7366_v2  ;;  %v3312_v35 = vmul.f32 -0.5, %v7366_v2 }
 0x3a9   : > { %v3184_v34 = vand.u32 2147483647, %v10485_v36  ;;  %v3315_v62 = vand.u32 2147483647, %v7366_v2  ;;  %vm3152_vm2 = vcmp.ne.f32.partialorder %v10485_v36, %v10485_v36 }
 0x3aa   : > { %7371 = vpow2.f32 %v3225_v19  ;;  %v6976_v59 = vpop.f32.mrf.mxu1  ;;  %v10491_v41 = vsel %vm3147_vm7, %v10432_v13, %v3387_v43  ;;  %v3313_v33 = vadd.f32 1.0, %v3312_v35 }
 0x3ab   : > { %7373 = vlog2.f32 %v3309_v26  ;;  %v7368_v47 = vpop.eup %7367  ;;  %v3200_v51 = vsub.f32 0.0, %v3184_v34  ;;  %v6977_v24 = vadd.f32 %v6976_v59, %v6975_v18  ;;  %3505 = vrot.lane.b32.xlu0 %v10491_v41, %s7920_s27  ;;  %vm3316_vm10 = vcmp.lt.f32.partialorder %v3315_v62, 0.0004427343 }
 0x3ac   : > { %v3302_v9 = vmul.f32 0.6931472, %v7368_v47  ;;  %v3314_v45 = vmul.f32 %v7366_v2, %v3313_v33  ;;  %v3135_v62 = vmax.f32 %v10473_v20, 0.0 }
 0x3ad   : > { %v3227_v5 = vmul.f32 1.442695, %v3200_v51  ;;  %v10496_v52 = vadd.f32 %v6977_v24, %v10372_v50 }
 0x3ae   : > { %v3308_v6 = vsel %vm3307_vm8, %v3305_v42, %v3302_v9 }
 0x3af   : > { %v6978_v15 = vpop.f32.mrf.mxu1  ;;  %7375 = vpow2.f32 %v3227_v5  ;;  %v3185_v13 = vand.u32 2147483647, %v10496_v52  ;;  %v3388_v39 = vadd.f32 %v3308_v6, %v3132_v60  ;;  %vm3153_vm4 = vcmp.ne.f32.partialorder %v10496_v52, %v10496_v52 }
 0x3b1   : > { %v6979_v30 = vpop.f32.mrf.mxu1  ;;  %v7370_v17 = vpop.eup %7369  ;;  %v3201_v32 = vsub.f32 0.0, %v3185_v13  ;;  %v10503_v1 = vsel %vm3148_vm9, %v10445_v63, %v3388_v39 }
 0x3b2   : > { %v6980_v4 = vadd.f32 %v6979_v30, %v6978_v15  ;;  %3507 = vrot.lane.b32.xlu1 %v10503_v1, %s7920_s27  ;;  %v3318_v46 = vadd.f32 1.0, %v7370_v17  ;;  %v3321_v29 = vmul.f32 -0.5, %v7370_v17  ;;  %v3324_v34 = vand.u32 2147483647, %v7370_v17 }
 0x3b3   : > { %v3229_v58 = vmul.f32 1.442695, %v3201_v32 }
 0x3b4   : > { %v10508_v44 = vadd.f32 %v6980_v4, %v10372_v50  ;;  %7377 = vlog2.f32 %v3318_v46  ;;  %v3322_v26 = vadd.f32 1.0, %v3321_v29  ;;  %vm3325_vm12 = vcmp.lt.f32.partialorder %v3324_v34, 0.0004427343 }
 0x3b5   : > { %7379 = vpow2.f32 %v3229_v58  ;;  %v3137_v34 = vmax.f32 %v10496_v52, 0.0 }
 0x3b6   : > { %v3186_v40 = vand.u32 2147483647, %v10508_v44  ;;  %v3323_v60 = vmul.f32 %v7370_v17, %v3322_v26  ;;  %vm3154_vm7 = vcmp.ne.f32.partialorder %v10508_v44, %v10508_v44 }
 0x3b7   : > { %v7372_v55 = vpop.eup %7371  ;;  %v6981_v25 = vpop.f32.mrf.mxu1 }
 0x3b8   : > { %v7374_v56 = vpop.eup %7373  ;;  %v3202_v10 = vsub.f32 0.0, %v3186_v40  ;;  %v3327_v63 = vadd.f32 1.0, %v7372_v55  ;;  %v3330_v47 = vmul.f32 -0.5, %v7372_v55  ;;  %v3333_v30 = vand.u32 2147483647, %v7372_v55 }
 0x3b9   : > { %v6982_v0 = vpop.f32.mrf.mxu1  ;;  %v3311_v49 = vmul.f32 0.6931472, %v7374_v56 }
 0x3ba   : > { %v3231_v27 = vmul.f32 1.442695, %v3202_v10  ;;  %v6983_v16 = vadd.f32 %v6982_v0, %v6981_v25  ;;  %7381 = vlog2.f32 %v3327_v63  ;;  %v3331_v6 = vadd.f32 1.0, %v3330_v47 }
 0x3bb   : > { %v3317_v14 = vsel %vm3316_vm10, %v3314_v45, %v3311_v49  ;;  %vm3334_vm14 = vcmp.lt.f32.partialorder %v3333_v30, 0.0004427343 }
 0x3bc   : > { %7383 = vpow2.f32 %v3231_v27  ;;  %v10513_v12 = vadd.f32 %v6983_v16, %v10372_v50  ;;  %v3389_v31 = vadd.f32 %v3317_v14, %v3133_v54  ;;  %v7376_v19 = vpop.eup %7375  ;;  %v6984_v3 = vpop.f32.mrf.mxu1  ;;  %v3332_v33 = vmul.f32 %v7372_v55, %v3331_v6 }
 0x3bd   : > { %v3336_v43 = vadd.f32 1.0, %v7376_v19  ;;  %v3339_v4 = vmul.f32 -0.5, %v7376_v19  ;;  %v3342_v0 = vand.u32 2147483647, %v7376_v19  ;;  %v3136_v27 = vmax.f32 %v10485_v36, 0.0 }
 0x3be   : > { %v3187_v18 = vand.u32 2147483647, %v10513_v12  ;;  %v10519_v2 = vsel %vm3149_vm11, %v10457_v23, %v3389_v31  ;;  %v6985_v11 = vpop.f32.mrf.mxu1  ;;  %v3134_v23 = vmax.f32 %v10468_v48, 0.0  ;;  %v3138_v6 = vmax.f32 %v10508_v44, 0.0 }
 0x3bf   : > { %3509 = vrot.lane.b32.xlu0 %v10519_v2, %s7920_s27  ;;  %v6986_v59 = vadd.f32 %v6985_v11, %v6984_v3  ;;  %7385 = vlog2.f32 %v3336_v43  ;;  %v3340_v56 = vadd.f32 1.0, %v3339_v4  ;;  %vm3343_vm1 = vcmp.lt.f32.partialorder %v3342_v0, 0.0004427343 }
 0x3c0   : > { %v3203_v61 = vsub.f32 0.0, %v3187_v18  ;;  %vm3155_vm9 = vcmp.ne.f32.partialorder %v10513_v12, %v10513_v12 }
 0x3c1   : > { %v7378_v51 = vpop.eup %7377  ;;  %v10524_v9 = vadd.f32 %v6986_v59, %v10372_v50  ;;  %v3341_v45 = vmul.f32 %v7376_v19, %v3340_v56 }
 0x3c2   : > { %v3233_v24 = vmul.f32 1.442695, %v3203_v61  ;;  %v7380_v42 = vpop.eup %7379  ;;  %v3320_v5 = vmul.f32 0.6931472, %v7378_v51 }
 0x3c3   : > { %v3188_v15 = vand.u32 2147483647, %v10524_v9  ;;  %v3345_v13 = vadd.f32 1.0, %v7380_v42  ;;  %v3351_v3 = vand.u32 2147483647, %v7380_v42  ;;  %vm3156_vm11 = vcmp.ne.f32.partialorder %v10524_v9, %v10524_v9 }
 0x3c4   : > { %7387 = vpow2.f32 %v3233_v24  ;;  %v3326_v39 = vsel %vm3325_vm12, %v3323_v60, %v3320_v5  ;;  %vm6705_vm12 = vcmask 523264  }
 0x3c5   : > { %v3204_v35 = vsub.f32 0.0, %v3188_v15  ;;  %v3390_v32 = vadd.f32 %v3326_v39, %v3134_v23  ;;  %7389 = vlog2.f32 %v3345_v13  ;;  %vm3352_vm3 = vcmp.lt.f32.partialorder %v3351_v3, 0.0004427343 }
 0x3c7   : > { %v7382_v46 = vpop.eup %7381  ;;  %v3235_v50 = vmul.f32 1.442695, %v3204_v35  ;;  %v10531_v58 = vsel %vm3150_vm13, %v10468_v48, %v3390_v32  ;;  %v3348_v48 = vmul.f32 -0.5, %v7380_v42  ;;  %vm6722_vm13 = vcmask 785408  }
 0x3c8   : > { %v3329_v17 = vmul.f32 0.6931472, %v7382_v46  ;;  %3511 = vrot.lane.b32.xlu1 %v10531_v58, %s7920_s27 }
 0x3c9   : > { %v7384_v40 = vpop.eup %7383  ;;  %7391 = vpow2.f32 %v3235_v50  ;;  %v3349_v14 = vadd.f32 1.0, %v3348_v48 }
 0x3ca   : > { %v3335_v25 = vsel %vm3334_vm14, %v3332_v33, %v3329_v17  ;;  %v3354_v10 = vadd.f32 1.0, %v7384_v40  ;;  %v3360_v24 = vand.u32 2147483647, %v7384_v40 }
 0x3cb   : > { %v3391_v63 = vadd.f32 %v3335_v25, %v3135_v62  ;;  %v3350_v26 = vmul.f32 %v7380_v42, %v3349_v14  ;;  %v3139_v25 = vmax.f32 %v10513_v12, 0.0  ;;  %v3462_v14 = vld [vmem:[%s10555_s21 + $0x8] sm:$0xff] }
 0x3cc   : > { %7393 = vlog2.f32 %v3354_v10  ;;  %v7386_v55 = vpop.eup %7385  ;;  %vm3361_vm5 = vcmp.lt.f32.partialorder %v3360_v24, 0.0004427343  ;;  %v3466_v24 = vld [vmem:[%s10555_s21 + $0x28] sm:$0xff] }
 0x3cd   : > { %v10539_v54 = vsel %vm3151_vm15, %v10473_v20, %v3391_v63  ;;  %v3338_v49 = vmul.f32 0.6931472, %v7386_v55  ;;  %v3357_v20 = vmul.f32 -0.5, %v7384_v40 }
 0x3ce   : > { %3513 = vrot.lane.b32.xlu0 %v10539_v54, %s7920_s27 }
 0x3cf   : > { %v3344_v16 = vsel %vm3343_vm1, %v3341_v45, %v3338_v49  ;;  %v3358_v59 = vadd.f32 1.0, %v3357_v20  ;;  %v3140_v45 = vmax.f32 %v10524_v9, 0.0  ;;  %v3463_v20 = vld [vmem:[%s10555_s21 + $0x10] sm:$0xff] }
 0x3d0   : > { %v3392_v31 = vadd.f32 %v3344_v16, %v3136_v27 }
 0x3d1   : > { %v7388_v29 = vpop.eup %7387  ;;  %v3359_v39 = vmul.f32 %v7384_v40, %v3358_v59  ;;  %v3465_v59 = vld [vmem:[%s10555_s21 + $0x20] sm:$0xff] }
 0x3d2   : > { %v3363_v18 = vadd.f32 1.0, %v7388_v29  ;;  %v7390_v43 = vpop.eup %7389  ;;  %v10548_v11 = vsel %vm3152_vm2, %v10485_v36, %v3392_v31  ;;  %v3461_v36 = vld [vmem:[%s10555_s21] sm:$0xff]  ;;  %v3366_v30 = vmul.f32 -0.5, %v7388_v29  ;;  %v3369_v50 = vand.u32 2147483647, %v7388_v29 }
 0x3d3   : > { %3515 = vrot.lane.b32.xlu1 %v10548_v11, %s7920_s27  ;;  %v3347_v19 = vmul.f32 0.6931472, %v7390_v43 }
 0x3d4   : > { %7395 = vlog2.f32 %v3363_v18  ;;  %v3367_v46 = vadd.f32 1.0, %v3366_v30  ;;  %vm3370_vm8 = vcmp.lt.f32.partialorder %v3369_v50, 0.0004427343  ;;  %v3468_v30 = vld [vmem:[%s10555_s21 + $0x38] sm:$0xff] }
 0x3d5   : > { %v3353_v61 = vsel %vm3352_vm3, %v3350_v26, %v3347_v19  ;;  %v3464_v19 = vld [vmem:[%s10555_s21 + $0x18] sm:$0xff] }
 0x3d6   : > { %v7392_v47 = vpop.eup %7391  ;;  %v3393_v51 = vadd.f32 %v3353_v61, %v3137_v34  ;;  %v3368_v62 = vmul.f32 %v7388_v29, %v3367_v46  ;;  %v3469_v46 = vld [vmem:[%s10555_s21 + $0x40] sm:$0xff] }
 0x3d7   : > { %v3372_v23 = vadd.f32 1.0, %v7392_v47  ;;  %v3375_v17 = vmul.f32 -0.5, %v7392_v47  ;;  %v3378_v0 = vand.u32 2147483647, %v7392_v47 }
 0x3d8   : > { %v10564_v15 = vsel %vm3153_vm4, %v10496_v52, %v3393_v51 }
 0x3d9   : > { %v7394_v60 = vpop.eup %7393  ;;  %3517 = vrot.lane.b32.xlu0 %v10564_v15, %s7920_s27  ;;  %7397 = vlog2.f32 %v3372_v23  ;;  %v3376_v10 = vadd.f32 1.0, %v3375_v17  ;;  %vm3379_vm10 = vcmp.lt.f32.partialorder %v3378_v0, 0.0004427343 }
 0x3da   : > { %v3494_v5 = vpop.permute.xlu0 %3493  ;;  %v3356_v13 = vmul.f32 0.6931472, %v7394_v60  ;;  %7399 = vlog2.f32 %v10393_v38 }
 0x3db   : > { %v3541_v42 = vmul.f32 %v3494_v5, %v3461_v36  ;;  %v3377_v49 = vmul.f32 %v7392_v47, %v3376_v10  ;;  %v3471_v10 = vld [vmem:[%s10555_s21 + $0x50] sm:$0xff]  ;;  %7401 = vlog2.f32 %v10427_v7 }
 0x3dc   : > { %v3362_v32 = vsel %vm3361_vm5, %v3359_v39, %v3356_v13  ;;  %7403 = vlog2.f32 %v10439_v53 }
 0x3dd   : > { %v3557_v35 = vadd.f32 %v3541_v42, %v10393_v38  ;;  %v3394_v4 = vadd.f32 %v3362_v32, %v3138_v6  ;;  %v3467_v42 = vld [vmem:[%s10555_s21 + $0x30] sm:$0xff]  ;;  %7405 = vlog2.f32 %v10451_v37 }
 0x3de   : > { %7407 = vlog2.f32 %v10462_v57 }
 0x3df   : > { %6889 = vmatmul.mubr.msk.f32.vlgmr.msra.gmra.mxu0 %vm3593_vm6, %v3557_v35  ;;  %v10575_v52 = vsel %vm3154_vm7, %v10508_v44, %v3394_v4  ;;  %7409 = vlog2.f32 %v10478_v28 }
 0x3e0   : > { %3712 = vmatprep.mubr.f32.mxu0 %v13338_v21  ;;  %3519 = vrot.lane.b32.xlu1 %v10575_v52, %s7920_s27  ;;  %7411 = vlog2.f32 %v10491_v41 }
 0x3e1   : > { %v7396_v33 = vpop.eup %7395  ;;  %7413 = vlog2.f32 %v10503_v1 }
 0x3e2   : > { %v3365_v40 = vmul.f32 0.6931472, %v7396_v33  ;;  %7415 = vlog2.f32 %v10519_v2 }
 0x3e3   : > { %7417 = vlog2.f32 %v10531_v58 }
 0x3e4   : > { %v3371_v56 = vsel %vm3370_vm8, %v3368_v62, %v3365_v40  ;;  %v3470_v40 = vld [vmem:[%s10555_s21 + $0x48] sm:$0xff]  ;;  %7419 = vlog2.f32 %v10539_v54 }
 0x3e5   : > { %v3395_v63 = vadd.f32 %v3371_v56, %v3139_v25  ;;  %7421 = vlog2.f32 %v10548_v11 }
 0x3e6   : > { %v7398_v44 = vpop.eup %7397 }
 0x3e7   : > { %v10583_v48 = vsel %vm3155_vm9, %v10513_v12, %v3395_v63  ;;  %v3374_v55 = vmul.f32 0.6931472, %v7398_v44 }
 0x3e8   : > { %3521 = vrot.lane.b32.xlu0 %v10583_v48, %s7920_s27 }
 0x3e9   : > { %v3380_v27 = vsel %vm3379_vm10, %v3377_v49, %v3374_v55  ;;  %v3472_v55 = vld [vmem:[%s10555_s21 + $0x58] sm:$0xff] }
 0x3ea   : > { %v3396_v16 = vadd.f32 %v3380_v27, %v3140_v45 }
 0x3ec   : > { %6641 = vrot.lane.b32.xlu0 %v3557_v35, %s7921_s22  ;;  %v10593_v12 = vsel %vm3156_vm11, %v10524_v9, %v3396_v16  ;;  %v3473_v16 = vld [vmem:[%s10555_s21 + $0x60] sm:$0xff] }
 0x3ed   : > { %3523 = vrot.lane.b32.xlu1 %v10593_v12, %s7920_s27 }
 0x3f1   : > { %v3496_v29 = vpop.permute.xlu0 %3495 }
 0x3f2   : > { %v3542_v31 = vmul.f32 %v3496_v29, %v3462_v14 }
 0x3f4   : > { %v3558_v3 = vadd.f32 %v3542_v31, %v10427_v7 }
 0x3f6   : > { %6643 = vrot.lane.b32.xlu1 %v3558_v3, %s7921_s22  ;;  %6890 = vmatmul.mubr.msk.f32.gmra.mxu0 %vm3593_vm6, %v3558_v3  ;;  %v3474_v3 = vld [vmem:[%s10555_s21 + $0x68] sm:$0xff] }
 0x3f7   : > { %3718 = vmatprep.mubr.f32.mxu0 %v13338_v21 }
 0x3f9   : > { %v3498_v18 = vpop.permute.xlu1 %3497 }
 0x3fa   : > { %v3543_v43 = vmul.f32 %v3498_v18, %v3463_v20 }
 0x3fc   : > { %v3559_v9 = vadd.f32 %v3543_v43, %v10439_v53  ;;  %v7400_v43 = vpop.eup %7399 }
 0x3fe   : > { %6645 = vrot.lane.b32.xlu0 %v3559_v9, %s7921_s22  ;;  %6891 = vmatmul.mubr.msk.f32.gmra.mxu0 %vm3593_vm6, %v3559_v9 }
 0x3ff   : > { %3724 = vmatprep.mubr.f32.mxu0 %v13338_v21 }
 0x400   : > { %v3500_v26 = vpop.permute.xlu1 %3499 }
 0x401   : > { %v3544_v34 = vmul.f32 %v3500_v26, %v3464_v19  ;;  %v3414_v19 = vmul.f32 0.6931472, %v7400_v43  ;;  %v3475_v26 = vld [vmem:[%s10555_s21 + $0x70] sm:$0xff] }
 0x403   : > { %v3560_v61 = vadd.f32 %v3544_v34, %v10451_v37  ;;  %v7402_v34 = vpop.eup %7401 }
 0x405   : > { %6647 = vrot.lane.b32.xlu1 %v3560_v61, %s7921_s22  ;;  %6892 = vmatmul.mubr.msk.f32.gmra.mxu0 %vm3593_vm6, %v3560_v61 }
 0x406   : > { %3730 = vmatprep.mubr.f32.mxu0 %v13338_v21 }
 0x407   : > { %v3502_v36 = vpop.permute.xlu0 %3501 }
 0x408   : > { %v3545_v47 = vmul.f32 %v3502_v36, %v3465_v59  ;;  %v3445_v59 = vmul.f32 2.0, %v3414_v19  ;;  %v4410_v36 = vld [vmem:[%s13277_s10 + $0xf8] sm:$0xff] }
 0x409   : > { %4455 = vmatprep.subr.mxu1 %v4410_v36  ;;  %v4387_v36 = vld [vmem:[%s13277_s10 + $0x40] sm:$0xff] }
 0x40a   : > { %v3561_v51 = vadd.f32 %v3545_v47, %v10462_v57  ;;  %v4409_v47 = vld [vmem:[%s13277_s10 + $0xf0] sm:$0xff] }
 0x40b   : > { %4456 = vmatpush1.msra.mxu1 %v4409_v47 }
 0x40c   : > { %6649 = vrot.lane.b32.xlu0 %v3561_v51, %s7921_s22  ;;  %6893 = vmatmul.mubr.msk.f32.gmra.mxu0 %vm3593_vm6, %v3561_v51  ;;  %v4408_v51 = vld [vmem:[%s13277_s10 + $0xe8] sm:$0xff] }
 0x40d   : > { %3736 = vmatprep.mubr.f32.mxu0 %v13338_v21  ;;  %4457 = vmatprep.subr.mxu1 %v4408_v51  ;;  %v4386_v51 = vld [vmem:[%s13277_s10 + $0x38] sm:$0xff] }
 0x415   : > { %v3504_v23 = vpop.permute.xlu1 %3503 }
 0x416   : > { %v3546_v5 = vmul.f32 %v3504_v23, %v3466_v24  ;;  %v4407_v23 = vld [vmem:[%s13277_s10 + $0xe0] sm:$0xff] }
 0x417   : > { %4458 = vmatpush1.msra.mxu1 %v4407_v23 }
 0x418   : > { %v3562_v60 = vadd.f32 %v3546_v5, %v10478_v28  ;;  %v3416_v5 = vmul.f32 0.6931472, %v7402_v34 }
 0x41a   : > { %6651 = vrot.lane.b32.xlu1 %v3562_v60, %s7921_s22  ;;  %6894 = vmatmul.mubr.msk.f32.gmra.mxu0 %vm3593_vm6, %v3562_v60 }
 0x41b   : > { %3742 = vmatprep.mubr.f32.mxu0 %v13338_v21 }
 0x41d   : > { %v3506_v6 = vpop.permute.xlu0 %3505 }
 0x41e   : > { %v3547_v13 = vmul.f32 %v3506_v6, %v3467_v42  ;;  %v4406_v42 = vld [vmem:[%s13277_s10 + $0xd8] sm:$0xff] }
 0x41f   : > { %v3476_v6 = vld [vmem:[%s10555_s21 + $0x78] sm:$0xff]  ;;  %4459 = vmatprep.subr.mxu1 %v4406_v42  ;;  %v4384_v42 = vld [vmem:[%s13277_s10 + $0x28] sm:$0xff] }
 0x420   : > { %v3563_v39 = vadd.f32 %v3547_v13, %v10491_v41 }
 0x422   : > { %6653 = vrot.lane.b32.xlu0 %v3563_v39, %s7921_s22  ;;  %6895 = vmatmul.mubr.msk.f32.gmra.mxu0 %vm3593_vm6, %v3563_v39  ;;  %v6689_v39 = vsel %vm3593_vm6, %v10393_v38, %v3445_v59  ;;  %v4388_v59 = vld [vmem:[%s13277_s10 + $0x48] sm:$0xff] }
 0x423   : > { %3748 = vmatprep.mubr.f32.mxu0 %v13338_v21 }
 0x424   : > { %v3508_v35 = vpop.permute.xlu1 %3507 }
 0x425   : > { %v3548_v32 = vmul.f32 %v3508_v35, %v3468_v30  ;;  %v4405_v30 = vld [vmem:[%s13277_s10 + $0xd0] sm:$0xff] }
 0x426   : > { %4460 = vmatpush1.msra.mxu1 %v4405_v30  ;;  %v4381_v30 = vld [vmem:[%s13277_s10 + $0x10] sm:$0xff] }
 0x427   : > { %v3564_v4 = vadd.f32 %v3548_v32, %v10503_v1  ;;  %v4404_v32 = vld [vmem:[%s13277_s10 + $0xc8] sm:$0xff] }
 0x428   : > { %4461 = vmatprep.subr.mxu1 %v4404_v32 }
 0x429   : > { %6655 = vrot.lane.b32.xlu1 %v3564_v4, %s7921_s22  ;;  %6896 = vmatmul.mubr.msk.f32.gmra.mxu0 %vm3593_vm6, %v3564_v4 }
 0x42a   : > { %3754 = vmatprep.mubr.f32.mxu0 %v13338_v21 }
 0x431   : > { %v3510_v50 = vpop.permute.xlu0 %3509 }
 0x432   : > { %v3549_v17 = vmul.f32 %v3510_v50, %v3469_v46  ;;  %v3446_v46 = vmul.f32 2.0, %v3416_v5  ;;  %v4403_v50 = vld [vmem:[%s13277_s10 + $0xc0] sm:$0xff]  ;;  %v4385_v5 = vld [vmem:[%s13277_s10 + $0x30] sm:$0xff] }
 0x433   : > { %4462 = vmatpush1.msra.mxu1 %v4403_v50  ;;  %v4440_v50 = vld [vmem:[%s13277_s10 + $0x1e8] sm:$0xff] }
 0x434   : > { %v3565_v33 = vadd.f32 %v3549_v17, %v10519_v2 }
 0x436   : > { %6657 = vrot.lane.b32.xlu0 %v3565_v33, %s7921_s22  ;;  %6897 = vmatmul.mubr.msk.f32.gmra.mxu0 %vm3593_vm6, %v3565_v33  ;;  %v4402_v33 = vld [vmem:[%s13277_s10 + $0xb8] sm:$0xff] }
 0x437   : > { %3760 = vmatprep.mubr.f32.mxu0 %v13338_v21  ;;  %4463 = vmatprep.subr.mxu1 %v4402_v33 }
 0x43a   : > { %v3512_v62 = vpop.permute.xlu1 %3511 }
 0x43b   : > { %v3550_v25 = vmul.f32 %v3512_v62, %v3470_v40  ;;  %v7404_v40 = vpop.eup %7403 }
 0x43d   : > { %v3566_v56 = vadd.f32 %v3550_v25, %v10531_v58  ;;  %v6690_v25 = vsel %vm3593_vm6, %v10427_v7, %v3446_v46  ;;  %v4441_v46 = vld [vmem:[%s13277_s10 + $0x1f0] sm:$0xff] }
 0x43f   : > { %6659 = vrot.lane.b32.xlu1 %v3566_v56, %s7921_s22  ;;  %6898 = vmatmul.mubr.msk.f32.gmra.mxu0 %vm3593_vm6, %v3566_v56 }
 0x440   : > { %v3514_v63 = vpop.permute.xlu0 %3513  ;;  %3766 = vmatprep.mubr.f32.mxu0 %v13338_v21 }
 0x441   : > { %v3551_v0 = vmul.f32 %v3514_v63, %v3471_v10  ;;  %v4400_v10 = vld [vmem:[%s13277_s10 + $0xa8] sm:$0xff] }
 0x443   : > { %v3567_v44 = vadd.f32 %v3551_v0, %v10539_v54  ;;  %v3418_v0 = vmul.f32 0.6931472, %v7404_v40  ;;  %v4439_v40 = vld [vmem:[%s13277_s10 + $0x1e0] sm:$0xff] }
 0x445   : > { %6661 = vrot.lane.b32.xlu0 %v3567_v44, %s7921_s22  ;;  %6899 = vmatmul.mubr.msk.f32.gmra.mxu0 %vm3593_vm6, %v3567_v44  ;;  %v3516_v49 = vpop.permute.xlu1 %3515  ;;  %v4399_v44 = vld [vmem:[%s13277_s10 + $0xa0] sm:$0xff] }
 0x446   : > { %3772 = vmatprep.mubr.f32.mxu0 %v13338_v21  ;;  %v3552_v45 = vmul.f32 %v3516_v49, %v3472_v55  ;;  %v4398_v55 = vld [vmem:[%s13277_s10 + $0x98] sm:$0xff]  ;;  %v4397_v49 = vld [vmem:[%s13277_s10 + $0x90] sm:$0xff] }
 0x448   : > { %v3568_v27 = vadd.f32 %v3552_v45, %v10548_v11  ;;  %v7406_v45 = vpop.eup %7405 }
 0x449   : > { %v7408_v47 = vpop.eup %7407 }
 0x44a   : > { %6663 = vrot.lane.b32.xlu1 %v3568_v27, %s7921_s22  ;;  %6900 = vmatmul.mubr.msk.f32.gmra.mxu0 %vm3593_vm6, %v3568_v27  ;;  %v4396_v27 = vld [vmem:[%s13277_s10 + $0x88] sm:$0xff] }
 0x44b   : > { %v3518_v14 = vpop.permute.xlu0 %3517  ;;  %3778 = vmatprep.mubr.f32.mxu0 %v13338_v21 }
 0x44c   : > { %v3553_v29 = vmul.f32 %v3518_v14, %v3473_v16  ;;  %v3447_v16 = vmul.f32 2.0, %v3418_v0  ;;  %v4395_v14 = vld [vmem:[%s13277_s10 + $0x80] sm:$0xff]  ;;  %v4434_v0 = vld [vmem:[%s13277_s10 + $0x1b8] sm:$0xff] }
 0x44e   : > { %v3569_v31 = vadd.f32 %v3553_v29, %v10564_v15  ;;  %v4394_v29 = vld [vmem:[%s13277_s10 + $0x78] sm:$0xff] }
 0x450   : > { %6665 = vrot.lane.b32.xlu0 %v3569_v31, %s7921_s22  ;;  %6901 = vmatmul.mubr.msk.f32.gmra.mxu0 %vm3593_vm6, %v3569_v31  ;;  %v3420_v31 = vmul.f32 0.6931472, %v7406_v45  ;;  %v4430_v45 = vld [vmem:[%s13277_s10 + $0x198] sm:$0xff] }
 0x451   : > { %3784 = vmatprep.mubr.f32.mxu0 %v13338_v21 }
 0x452   : > { %v3520_v20 = vpop.permute.xlu1 %3519 }
 0x453   : > { %v3554_v18 = vmul.f32 %v3520_v20, %v3474_v3  ;;  %v4393_v3 = vld [vmem:[%s13277_s10 + $0x70] sm:$0xff]  ;;  %v4392_v20 = vld [vmem:[%s13277_s10 + $0x68] sm:$0xff] }
 0x455   : > { %v3570_v9 = vadd.f32 %v3554_v18, %v10575_v52  ;;  %v6691_v18 = vsel %vm3593_vm6, %v10439_v53, %v3447_v16  ;;  %v4389_v53 = vld [vmem:[%s13277_s10 + $0x50] sm:$0xff] }
 0x457   : > { %6667 = vrot.lane.b32.xlu1 %v3570_v9, %s7921_s22  ;;  %6902 = vmatmul.mubr.msk.f32.gmra.mxu0 %vm3593_vm6, %v3570_v9  ;;  %v4391_v9 = vld [vmem:[%s13277_s10 + $0x60] sm:$0xff] }
 0x458   : > { %3790 = vmatprep.mubr.f32.mxu0 %v13338_v21 }
 0x45a   : > { %v3522_v61 = vpop.permute.xlu0 %3521 }
 0x45b   : > { %v3555_v24 = vmul.f32 %v3522_v61, %v3475_v26  ;;  %v4390_v26 = vld [vmem:[%s13277_s10 + $0x58] sm:$0xff]  ;;  %v3448_v61 = vmul.f32 2.0, %v3420_v31  ;;  %v4427_v31 = vld [vmem:[%s13277_s10 + $0x180] sm:$0xff] }
 0x45d   : > { %v3571_v60 = vadd.f32 %v3555_v24, %v10583_v48  ;;  %v6692_v24 = vsel %vm3593_vm6, %v10451_v37, %v3448_v61  ;;  %v4383_v37 = vld [vmem:[%s13277_s10 + $0x20] sm:$0xff] }
 0x45e   : > { %v6642_v13 = vpop.permute.xlu0 %6641 }
 0x45f   : > { %6669 = vrot.lane.b32.xlu0 %v3571_v60, %s7921_s22  ;;  %6903 = vmatmul.mubr.msk.f32.gmra.mxu0 %vm3593_vm6, %v3571_v60  ;;  %v6706_v35 = vsel %vm6705_vm12, %v6689_v39, %v6642_v13  ;;  %v3524_v4 = vpop.permute.xlu1 %3523  ;;  %v3422_v13 = vmul.f32 0.6931472, %v7408_v47  ;;  %v4382_v39 = vld [vmem:[%s13277_s10 + $0x18] sm:$0xff]  ;;  %v4420_v47 = vld [vmem:[%s13277_s10 + $0x148] sm:$0xff] }
 0x460   : > { %3796 = vmatprep.mubr.f32.mxu0 %v13338_v21  ;;  %v6723_v38 = vsel %vm6722_vm13, %v6706_v35, 0.0  ;;  %v3556_v17 = vmul.f32 %v3524_v4, %v3476_v6  ;;  %v4401_v21 = vld [vmem:[%s13277_s10 + $0xb0] sm:$0xff]  ;;  %v4380_v35 = vld [vmem:[%s13277_s10 + $0x8] sm:$0xff]  ;;  %v4379_v4 = vld [vmem:[%s13277_s10] sm:$0xff] }
 0x461   : > { %6739 = vst [vmem:[%s10687_s25] sm:$0xff] %v6723_v38  ;;  %4464 = vmatpush1.msra.mxu1 %v4401_v21  ;;  %v3449_v32 = vmul.f32 2.0, %v3422_v13  ;;  %v4442_v38 = vld [vmem:[%s13277_s10 + $0x1f8] sm:$0xff] }
 0x462   : > { %v3572_v62 = vadd.f32 %v3556_v17, %v10593_v12  ;;  %4465 = vmatprep.subr.mxu1 %v4400_v10  ;;  %v4438_v21 = vld [vmem:[%s13277_s10 + $0x1d8] sm:$0xff]  ;;  %v7410_v10 = vpop.eup %7409 }
 0x463   : > { %4466 = vmatpush1.msra.mxu1 %v4399_v44  ;;  %v6693_v17 = vsel %vm3593_vm6, %v10462_v57, %v3449_v32  ;;  %v4437_v57 = vld [vmem:[%s13277_s10 + $0x1d0] sm:$0xff] }
 0x464   : > { %6671 = vrot.lane.b32.xlu1 %v3572_v62, %s7921_s22  ;;  %6904 = vmatmul.mubr.msk.f32.gmra.mxu0 %vm3593_vm6, %v3572_v62  ;;  %v4433_v44 = vld [vmem:[%s13277_s10 + $0x1b0] sm:$0xff] }
 0x465   : > { %4467 = vmatprep.subr.mxu1 %v4398_v55  ;;  %v4432_v55 = vld [vmem:[%s13277_s10 + $0x1a8] sm:$0xff]  ;;  %v4413_v32 = vld [vmem:[%s13277_s10 + $0x110] sm:$0xff] }
 0x466   : > { %4468 = vmatpush1.msra.mxu1 %v4397_v49  ;;  %v4431_v49 = vld [vmem:[%s13277_s10 + $0x1a0] sm:$0xff] }
 0x467   : > { %4469 = vmatprep.subr.mxu1 %v4396_v27  ;;  %v4429_v27 = vld [vmem:[%s13277_s10 + $0x190] sm:$0xff] }
 0x468   : > { %v6644_v56 = vpop.permute.xlu1 %6643  ;;  %4470 = vmatpush1.msra.mxu1 %v4395_v14  ;;  %v4428_v14 = vld [vmem:[%s13277_s10 + $0x188] sm:$0xff] }
 0x469   : > { %v6707_v63 = vsel %vm6705_vm12, %v6690_v25, %v6644_v56  ;;  %4471 = vmatprep.subr.mxu1 %v4394_v29  ;;  %v4436_v56 = vld [vmem:[%s13277_s10 + $0x1c8] sm:$0xff]  ;;  %v7412_v29 = vpop.eup %7411 }
 0x46a   : > { %v6724_v7 = vsel %vm6722_vm13, %v6707_v63, 0.0  ;;  %4472 = vmatpush1.msra.mxu1 %v4393_v3  ;;  %v4435_v63 = vld [vmem:[%s13277_s10 + $0x1c0] sm:$0xff]  ;;  %v4426_v3 = vld [vmem:[%s13277_s10 + $0x178] sm:$0xff] }
 0x46b   : > { %6740 = vst [vmem:[%s10687_s25 + $0x8] sm:$0xff] %v6724_v7  ;;  %4473 = vmatprep.subr.mxu1 %v4392_v20  ;;  %v3424_v7 = vmul.f32 0.6931472, %v7410_v10  ;;  %v4425_v20 = vld [vmem:[%s13277_s10 + $0x170] sm:$0xff] }
 0x46c   : > { %4474 = vmatpush1.msra.mxu1 %v4391_v9  ;;  %v3426_v9 = vmul.f32 0.6931472, %v7412_v29 }
 0x46d   : > { %4475 = vmatprep.subr.mxu1 %v4390_v26  ;;  %v3450_v16 = vmul.f32 2.0, %v3424_v7 }
 0x46e   : > { %4476 = vmatpush1.msra.mxu1 %v4389_v53  ;;  %v4421_v53 = vld [vmem:[%s13277_s10 + $0x150] sm:$0xff] }
 0x46f   : > { %4477 = vmatprep.subr.mxu1 %v4388_v59  ;;  %v7414_v59 = vpop.eup %7413 }
 0x470   : > { %v6646_v43 = vpop.permute.xlu0 %6645  ;;  %4478 = vmatpush1.msra.mxu1 %v4387_v36  ;;  %v3451_v36 = vmul.f32 2.0, %v3426_v9 }
 0x471   : > { %v6708_v19 = vsel %vm6705_vm12, %v6691_v18, %v6646_v43  ;;  %4479 = vmatprep.subr.mxu1 %v4386_v51  ;;  %v6694_v18 = vsel %vm3593_vm6, %v10478_v28, %v3450_v16  ;;  %v4422_v28 = vld [vmem:[%s13277_s10 + $0x158] sm:$0xff]  ;;  %v4419_v51 = vld [vmem:[%s13277_s10 + $0x140] sm:$0xff] }
 0x472   : > { %v6725_v34 = vsel %vm6722_vm13, %v6708_v19, 0.0  ;;  %4480 = vmatpush1.msra.mxu1 %v4385_v5  ;;  %v4424_v19 = vld [vmem:[%s13277_s10 + $0x168] sm:$0xff]  ;;  %v4417_v5 = vld [vmem:[%s13277_s10 + $0x130] sm:$0xff] }
 0x473   : > { %6741 = vst [vmem:[%s10687_s25 + $0x10] sm:$0xff] %v6725_v34  ;;  %4481 = vmatprep.subr.mxu1 %v4384_v42  ;;  %v4423_v34 = vld [vmem:[%s13277_s10 + $0x160] sm:$0xff] }
 0x474   : > { %4482 = vmatpush1.msra.mxu1 %v4383_v37  ;;  %v4415_v37 = vld [vmem:[%s13277_s10 + $0x120] sm:$0xff] }
 0x475   : > { %4483 = vmatprep.subr.mxu1 %v4382_v39 }
 0x476   : > { %4484 = vmatpush1.msra.mxu1 %v4381_v30  ;;  %v3581_v30 = vld [vmem:[%s13276_s9] sm:$0x3] }
 0x477   : > { %v6648_v23 = vpop.permute.xlu1 %6647  ;;  %4485 = vmatprep.subr.mxu1 %v4380_v35 }
 0x478   : > { %v6709_v60 = vsel %vm6705_vm12, %v6692_v24, %v6648_v23  ;;  %4486 = vmatpush1.msra.mxu1 %v4379_v4  ;;  %v4418_v24 = vld [vmem:[%s13277_s10 + $0x138] sm:$0xff]  ;;  %v3428_v23 = vmul.f32 0.6931472, %v7414_v59  ;;  %v4412_v4 = vld [vmem:[%s13277_s10 + $0x108] sm:$0xff] }
 0x479   : > { %v6726_v6 = vsel %vm6722_vm13, %v6709_v60, 0.0  ;;  %4487 = vmatprep.subr.mxu1 %v4442_v38  ;;  %v6695_v60 = vsel %vm3593_vm6, %v10491_v41, %v3451_v36  ;;  %v4414_v41 = vld [vmem:[%s13277_s10 + $0x118] sm:$0xff]  ;;  %v10915_v38 = vrot.slane %v3581_v30, %v13339_v8 }
 0x47a   : > { %6742 = vst [vmem:[%s10687_s25 + $0x18] sm:$0xff] %v6726_v6  ;;  %4488 = vmatpush2.msra.mxu1 %v4441_v46  ;;  %v4416_v6 = vld [vmem:[%s13277_s10 + $0x128] sm:$0xff]  ;;  %v3452_v35 = vmul.f32 2.0, %v3428_v23  ;;  %v4411_v46 = vld [vmem:[%s13277_s10 + $0x100] sm:$0xff] }
 0x47b   : > { %4489 = vmatprep.subr.mxu1 %v4440_v50 }
 0x47c   : > { %4490 = vmatpush2.msra.mxu1 %v4439_v40  ;;  %v6696_v50 = vsel %vm3593_vm6, %v10503_v1, %v3452_v35  ;;  %v7416_v40 = vpop.eup %7415 }
 0x47d   : > { %4491 = vmatprep.subr.mxu1 %v4438_v21  ;;  %v3430_v1 = vmul.f32 0.6931472, %v7416_v40 }
 0x47e   : > { %v6650_v33 = vpop.permute.xlu0 %6649  ;;  %4492 = vmatpush2.msra.mxu1 %v4437_v57 }
 0x47f   : > { %v6710_v62 = vsel %vm6705_vm12, %v6693_v17, %v6650_v33  ;;  %4493 = vmatprep.subr.mxu1 %v4436_v56  ;;  %v10923_v33 = vrot.slane %v3581_v30, %v13340_v22  ;;  %v3453_v7 = vmul.f32 2.0, %v3430_v1 }
 0x480   : > { %v6727_v25 = vsel %vm6722_vm13, %v6710_v62, 0.0  ;;  %4494 = vmatpush2.msra.mxu1 %v4435_v63 }
 0x481   : > { %6743 = vst [vmem:[%s10687_s25 + $0x20] sm:$0xff] %v6727_v25  ;;  %4495 = vmatprep.subr.mxu1 %v4434_v0  ;;  %v6697_v16 = vsel %vm3593_vm6, %v10519_v2, %v3453_v7 }
 0x482   : > { %4496 = vmatpush2.msra.mxu1 %v4433_v44 }
 0x483   : > { %4497 = vmatprep.subr.mxu1 %v4432_v55 }
 0x484   : > { %4498 = vmatpush2.msra.mxu1 %v4431_v49 }
 0x485   : > { %4499 = vmatprep.subr.mxu1 %v4430_v45 }
 0x486   : > { %4500 = vmatpush2.msra.mxu1 %v4429_v27  ;;  %v7418_v27 = vpop.eup %7417 }
 0x487   : > { %4501 = vmatprep.subr.mxu1 %v4428_v14 }
 0x488   : > { %4502 = vmatpush2.msra.mxu1 %v4427_v31 }
 0x489   : > { %4503 = vmatprep.subr.mxu1 %v4426_v3  ;;  %v3432_v3 = vmul.f32 0.6931472, %v7418_v27 }
 0x48a   : > { %4504 = vmatpush2.msra.mxu1 %v4425_v20  ;;  %v7420_v20 = vpop.eup %7419 }
 0x48b   : > { %4505 = vmatprep.subr.mxu1 %v4424_v19  ;;  %v7422_v9 = vpop.eup %7421 }
 0x48c   : > { %v6652_v43 = vpop.permute.xlu1 %6651  ;;  %4506 = vmatpush2.msra.mxu1 %v4423_v34 }
 0x48d   : > { %v6711_v26 = vsel %vm6705_vm12, %v6694_v18, %v6652_v43  ;;  %4507 = vmatprep.subr.mxu1 %v4422_v28  ;;  %v3454_v18 = vmul.f32 2.0, %v3432_v3  ;;  %v3434_v43 = vmul.f32 0.6931472, %v7420_v20 }
 0x48e   : > { %v6728_v61 = vsel %vm6722_vm13, %v6711_v26, 0.0  ;;  %4508 = vmatpush2.msra.mxu1 %v4421_v53 }
 0x48f   : > { %6744 = vst [vmem:[%s10687_s25 + $0x28] sm:$0xff] %v6728_v61  ;;  %4509 = vmatprep.subr.mxu1 %v4420_v47  ;;  %v6698_v2 = vsel %vm3593_vm6, %v10531_v58, %v3454_v18  ;;  %v3455_v61 = vmul.f32 2.0, %v3434_v43 }
 0x490   : > { %4510 = vmatpush2.msra.mxu1 %v4419_v51  ;;  %v3436_v51 = vmul.f32 0.6931472, %v7422_v9 }
 0x491   : > { %4511 = vmatprep.subr.mxu1 %v4418_v24 }
 0x492   : > { %4512 = vmatpush2.msra.mxu1 %v4417_v5 }
 0x493   : > { %4513 = vmatprep.subr.mxu1 %v4416_v6 }
 0x494   : > { %v6654_v42 = vpop.permute.xlu0 %6653  ;;  %4514 = vmatpush2.msra.mxu1 %v4415_v37 }
 0x495   : > { %v6712_v13 = vsel %vm6705_vm12, %v6695_v60, %v6654_v42  ;;  %4515 = vmatprep.subr.mxu1 %v4414_v41  ;;  %v6699_v42 = vsel %vm3593_vm6, %v10539_v54, %v3455_v61  ;;  %v3456_v41 = vmul.f32 2.0, %v3436_v51 }
 0x496   : > { %v6729_v39 = vsel %vm6722_vm13, %v6712_v13, 0.0  ;;  %4516 = vmatpush2.msra.mxu1 %v4413_v32 }
 0x497   : > { %6745 = vst [vmem:[%s10687_s25 + $0x30] sm:$0xff] %v6729_v39  ;;  %4517 = vmatprep.subr.mxu1 %v4412_v4  ;;  %v6700_v40 = vsel %vm3593_vm6, %v10548_v11, %v3456_v41 }
 0x498   : > { %4518 = vmatpush2.msra.mxu1 %v4411_v46 }
 0x49b   : > { %v6656_v17 = vpop.permute.xlu1 %6655 }
 0x49c   : > { %v6713_v62 = vsel %vm6705_vm12, %v6696_v50, %v6656_v17 }
 0x49d   : > { %v6730_v25 = vsel %vm6722_vm13, %v6713_v62, 0.0 }
 0x49e   : > { %6746 = vst [vmem:[%s10687_s25 + $0x38] sm:$0xff] %v6730_v25 }
 0x49f   : > { %v3708_v21 = vpop.f32.mrf.mxu0 }
 0x4a0   : > { %v10928_v57 = vadd.f32 %v3708_v21, %v10915_v38 }
 0x4a1   : > { %v3710_v56 = vpop.f32.mrf.mxu0 }
 0x4a2   : > { %v3899_v10 = vand.u32 2147483647, %v10928_v57  ;;  %v10934_v63 = vadd.f32 %v3710_v56, %v10923_v33  ;;  %vm3835_vm2 = vcmp.ne.f32.partialorder %v10928_v57, %v10928_v57 }
 0x4a4   : > { %v3931_v0 = vsub.f32 0.0, %v3899_v10  ;;  %v3900_v44 = vand.u32 2147483647, %v10934_v63  ;;  %v3804_v61 = vmax.f32 %v10934_v63, 0.0  ;;  %vm3836_vm1 = vcmp.ne.f32.partialorder %v10934_v63, %v10934_v63 }
 0x4a6   : > { %v3963_v55 = vmul.f32 1.442695, %v3931_v0  ;;  %v3932_v49 = vsub.f32 0.0, %v3900_v44 }
 0x4a8   : > { %7423 = vpow2.f32 %v3963_v55  ;;  %v3965_v45 = vmul.f32 1.442695, %v3932_v49  ;;  %v6658_v14 = vpop.permute.xlu0 %6657 }
 0x4a9   : > { %v6714_v29 = vsel %vm6705_vm12, %v6697_v16, %v6658_v14 }
 0x4aa   : > { %7425 = vpow2.f32 %v3965_v45  ;;  %v6731_v31 = vsel %vm6722_vm13, %v6714_v29, 0.0 }
 0x4ab   : > { %7427 = vlog2.f32 %v10564_v15  ;;  %6747 = vst [vmem:[%s10687_s25 + $0x40] sm:$0xff] %v6731_v31 }
 0x4ac   : > { %7429 = vlog2.f32 %v10575_v52 }
 0x4b1   : > { %v6660_v19 = vpop.permute.xlu1 %6659 }
 0x4b2   : > { %v6715_v34 = vsel %vm6705_vm12, %v6698_v2, %v6660_v19 }
 0x4b3   : > { %v6732_v53 = vsel %vm6722_vm13, %v6715_v34, 0.0  ;;  %v3803_v34 = vmax.f32 %v10928_v57, 0.0 }
 0x4b4   : > { %6748 = vst [vmem:[%s10687_s25 + $0x48] sm:$0xff] %v6732_v53 }
 0x4b5   : > { %v10947_v26 = vpop.eup %7423 }
 0x4b6   : > { %v3714_v28 = vpop.f32.mrf.mxu0  ;;  %v4027_v36 = vadd.f32 1.0, %v10947_v26  ;;  %v4030_v17 = vmul.f32 -0.5, %v10947_v26  ;;  %v4033_v31 = vand.u32 2147483647, %v10947_v26 }
 0x4b7   : > { %v10952_v59 = vadd.f32 %v3714_v28, %v10915_v38  ;;  %v10955_v47 = vpop.eup %7425  ;;  %v6662_v6 = vpop.permute.xlu0 %6661 }
 0x4b8   : > { %v3716_v24 = vpop.f32.mrf.mxu0  ;;  %v7428_v58 = vpop.eup %7427  ;;  %v4036_v60 = vadd.f32 1.0, %v10955_v47  ;;  %7431 = vlog2.f32 %v4027_v36  ;;  %v6716_v13 = vsel %vm6705_vm12, %v6699_v42, %v6662_v6  ;;  %v4039_v0 = vmul.f32 -0.5, %v10955_v47 }
 0x4b9   : > { %v3901_v23 = vand.u32 2147483647, %v10952_v59  ;;  %v10960_v5 = vadd.f32 %v3716_v24, %v10923_v33  ;;  %v6733_v30 = vsel %vm6722_vm13, %v6716_v13, 0.0  ;;  %v3438_v35 = vmul.f32 0.6931472, %v7428_v58  ;;  %v7430_v46 = vpop.eup %7429 }
 0x4ba   : > { %7433 = vlog2.f32 %v4036_v60  ;;  %6749 = vst [vmem:[%s10687_s25 + $0x50] sm:$0xff] %v6733_v30  ;;  %v3440_v1 = vmul.f32 0.6931472, %v7430_v46  ;;  %v4031_v11 = vadd.f32 1.0, %v4030_v17  ;;  %v4040_v29 = vadd.f32 1.0, %v4039_v0 }
 0x4bb   : > { %v3933_v37 = vsub.f32 0.0, %v3901_v23  ;;  %v3902_v39 = vand.u32 2147483647, %v10960_v5  ;;  %7435 = vlog2.f32 %v10583_v48  ;;  %v3457_v21 = vmul.f32 2.0, %v3438_v35 }
 0x4bc   : > { %v6664_v62 = vpop.permute.xlu1 %6663  ;;  %v3458_v16 = vmul.f32 2.0, %v3440_v1  ;;  %v4042_v9 = vand.u32 2147483647, %v10955_v47  ;;  %v4032_v28 = vmul.f32 %v10947_v26, %v4031_v11  ;;  %v4041_v42 = vmul.f32 %v10955_v47, %v4040_v29 }
 0x4bd   : > { %v3967_v32 = vmul.f32 1.442695, %v3933_v37  ;;  %v3934_v4 = vsub.f32 0.0, %v3902_v39  ;;  %v6717_v56 = vsel %vm6705_vm12, %v6700_v40, %v6664_v62  ;;  %v6701_v27 = vsel %vm3593_vm6, %v10564_v15, %v3457_v21 }
 0x4be   : > { %v3720_v50 = vpop.f32.mrf.mxu0  ;;  %v6734_v44 = vsel %vm6722_vm13, %v6717_v56, 0.0  ;;  %vm4043_vm14 = vcmp.lt.f32.partialorder %v4042_v9, 0.0004427343  ;;  %vm4034_vm15 = vcmp.lt.f32.partialorder %v4033_v31, 0.0004427343  ;;  %v6702_v26 = vsel %vm3593_vm6, %v10575_v52, %v3458_v16 }
 0x4bf   : > { %7437 = vpow2.f32 %v3967_v32  ;;  %v3969_v54 = vmul.f32 1.442695, %v3934_v4  ;;  %v10975_v25 = vadd.f32 %v3720_v50, %v10915_v38  ;;  %6750 = vst [vmem:[%s10687_s25 + $0x58] sm:$0xff] %v6734_v44  ;;  %vm3838_vm5 = vcmp.ne.f32.partialorder %v10960_v5, %v10960_v5 }
 0x4c0   : > { %7439 = vlog2.f32 %v10593_v12  ;;  %v3722_v10 = vpop.f32.mrf.mxu0 }
 0x4c1   : > { %7441 = vpow2.f32 %v3969_v54  ;;  %v3903_v7 = vand.u32 2147483647, %v10975_v25  ;;  %v10982_v55 = vadd.f32 %v3722_v10, %v10923_v33  ;;  %vm3839_vm9 = vcmp.ne.f32.partialorder %v10975_v25, %v10975_v25 }
 0x4c2   : > { %v6666_v3 = vpop.permute.xlu0 %6665 }
 0x4c3   : > { %v3935_v49 = vsub.f32 0.0, %v3903_v7  ;;  %v3904_v45 = vand.u32 2147483647, %v10982_v55  ;;  %v6718_v19 = vsel %vm6705_vm12, %v6701_v27, %v6666_v3  ;;  %vm3840_vm8 = vcmp.ne.f32.partialorder %v10982_v55, %v10982_v55 }
 0x4c4   : > { %v6735_v36 = vsel %vm6722_vm13, %v6718_v19, 0.0 }
 0x4c5   : > { %v3726_v14 = vpop.f32.mrf.mxu0  ;;  %v3971_v20 = vmul.f32 1.442695, %v3935_v49  ;;  %v3936_v18 = vsub.f32 0.0, %v3904_v45  ;;  %v7432_v2 = vpop.eup %7431  ;;  %6751 = vst [vmem:[%s10687_s25 + $0x60] sm:$0xff] %v6735_v36 }
 0x4c6   : > { %v10990_v43 = vadd.f32 %v3726_v14, %v10915_v38  ;;  %v4029_v6 = vmul.f32 0.6931472, %v7432_v2 }
 0x4c7   : > { %v3728_v15 = vpop.f32.mrf.mxu0  ;;  %v7434_v53 = vpop.eup %7433  ;;  %7443 = vpow2.f32 %v3971_v20  ;;  %v3973_v51 = vmul.f32 1.442695, %v3936_v18 }
 0x4c8   : > { %v3905_v24 = vand.u32 2147483647, %v10990_v43  ;;  %v7436_v58 = vpop.eup %7435  ;;  %v11001_v23 = vadd.f32 %v3728_v15, %v10923_v33  ;;  %v4038_v60 = vmul.f32 0.6931472, %v7434_v53  ;;  %v4035_v30 = vsel %vm4034_vm15, %v4032_v28, %v4029_v6 }
 0x4c9   : > { %7445 = vpow2.f32 %v3973_v51  ;;  %v6668_v35 = vpop.permute.xlu1 %6667  ;;  %v3442_v32 = vmul.f32 0.6931472, %v7436_v58  ;;  %v4315_v47 = vadd.f32 %v4035_v30, %v3803_v34  ;;  %v3806_v53 = vmax.f32 %v10960_v5, 0.0 }
 0x4ca   : > { %v3937_v13 = vsub.f32 0.0, %v3905_v24  ;;  %v3906_v37 = vand.u32 2147483647, %v11001_v23  ;;  %v4044_v39 = vsel %vm4043_vm14, %v4041_v42, %v4038_v60  ;;  %v6719_v50 = vsel %vm6705_vm12, %v6702_v26, %v6668_v35 }
 0x4cb   : > { %v4316_v46 = vadd.f32 %v4044_v39, %v3804_v61  ;;  %v6736_v62 = vsel %vm6722_vm13, %v6719_v50, 0.0  ;;  %v4347_v10 = vsel %vm3835_vm2, %v10928_v57, %v4315_v47  ;;  %v3459_v7 = vmul.f32 2.0, %v3442_v32 }
 0x4cc   : > { %v11007_v41 = vpop.eup %7437  ;;  %v3975_v4 = vmul.f32 1.442695, %v3937_v13  ;;  %v3938_v17 = vsub.f32 0.0, %v3906_v37  ;;  %6752 = vst [vmem:[%s10687_s25 + $0x68] sm:$0xff] %v6736_v62  ;;  %v3732_v1 = vpop.f32.mrf.mxu0  ;;  %v3805_v60 = vmax.f32 %v10952_v59, 0.0  ;;  %v3808_v30 = vmax.f32 %v10982_v55, 0.0 }
 0x4cd   : > { %v7440_v54 = vpop.eup %7439  ;;  %v4045_v52 = vadd.f32 1.0, %v11007_v41  ;;  %v4348_v21 = vsel %vm3836_vm1, %v10934_v63, %v4316_v46  ;;  %v11023_v44 = vadd.f32 %v3732_v1, %v10915_v38  ;;  %v6703_v14 = vsel %vm3593_vm6, %v10583_v48, %v3459_v7  ;;  %v5279_v62 = vld [vmem:[%s13279_s12 + $0x2b8] sm:$0xff] }
 0x4ce   : > { %v11013_v40 = vpop.eup %7441  ;;  %7447 = vpow2.f32 %v3975_v4  ;;  %v3977_v56 = vmul.f32 1.442695, %v3938_v17  ;;  %4519 = vmatprep.mubr.f32.mxu1 %v4348_v21  ;;  %v3444_v11 = vmul.f32 0.6931472, %v7440_v54  ;;  %v3734_v63 = vpop.f32.mrf.mxu0  ;;  %v4048_v3 = vmul.f32 -0.5, %v11007_v41  ;;  %v5270_v21 = vld [vmem:[%s13279_s12 + $0x270] sm:$0xff] }
 0x4cf   : > { %v4054_v0 = vadd.f32 1.0, %v11013_v40  ;;  %4520 = vmatmul.mubr.f32.vlgmr.msra.gmra.mxu1 %v4347_v10  ;;  %7449 = vlog2.f32 %v4045_v52  ;;  %v3907_v49 = vand.u32 2147483647, %v11023_v44  ;;  %v11027_v45 = vadd.f32 %v3734_v63, %v10923_v33  ;;  %v5300_v63 = vld [vmem:[%s13279_s12 + $0x360] sm:$0xff] }
 0x4d0   : > { %7451 = vpow2.f32 %v3977_v56  ;;  %v3460_v31 = vmul.f32 2.0, %v3444_v11  ;;  %v4057_v61 = vmul.f32 -0.5, %v11013_v40  ;;  %v4049_v36 = vadd.f32 1.0, %v4048_v3  ;;  %v5298_v11 = vld [vmem:[%s13279_s12 + $0x350] sm:$0xff]  ;;  %5614 = vmatprep.subr.mxu1 %v5300_v63 }
 0x4d1   : > { %7453 = vlog2.f32 %v4054_v0  ;;  %v3939_v27 = vsub.f32 0.0, %v3907_v49  ;;  %v3908_v57 = vand.u32 2147483647, %v11027_v45  ;;  %v6670_v29 = vpop.permute.xlu0 %6669  ;;  %v4060_v58 = vand.u32 2147483647, %v11013_v40  ;;  %5453 = vmatprep.subr.mxu0 %v5298_v11 }
 0x4d2   : > { %v6720_v20 = vsel %vm6705_vm12, %v6703_v14, %v6670_v29  ;;  %v6704_v28 = vsel %vm3593_vm6, %v10593_v12, %v3460_v31  ;;  %v4051_v42 = vand.u32 2147483647, %v11007_v41  ;;  %v4058_v13 = vadd.f32 1.0, %v4057_v61  ;;  %v5299_v14 = vld [vmem:[%s13279_s12 + $0x358] sm:$0xff] }
 0x4d3   : > { %v3979_v18 = vmul.f32 1.442695, %v3939_v27  ;;  %v3940_v9 = vsub.f32 0.0, %v3908_v57  ;;  %v6737_v34 = vsel %vm6722_vm13, %v6720_v20, 0.0  ;;  %v3807_v12 = vmax.f32 %v10975_v25, 0.0  ;;  %v5291_v29 = vld [vmem:[%s13279_s12 + $0x318] sm:$0xff]  ;;  %5615 = vmatpush1.msra.mxu1 %v5299_v14 }
 0x4d4   : > { %v11030_v16 = vpop.eup %7443  ;;  %6753 = vst [vmem:[%s10687_s25 + $0x70] sm:$0xff] %v6737_v34  ;;  %v3809_v32 = vmax.f32 %v10990_v43, 0.0  ;;  %v4050_v54 = vmul.f32 %v11007_v41, %v4049_v36  ;;  %vm11066_vm3 = vcmp.lt.f32.partialorder %v4060_v58, 0.0004427343  ;;  %vm11070_vm4 = vcmp.lt.f32.partialorder %v4051_v42, 0.0004427343 }
 0x4d5   : > { %v4063_v2 = vadd.f32 1.0, %v11030_v16  ;;  %7455 = vpow2.f32 %v3979_v18  ;;  %v3981_v15 = vmul.f32 1.442695, %v3940_v9  ;;  %v4066_v35 = vmul.f32 -0.5, %v11030_v16  ;;  %v5293_v9 = vld [vmem:[%s13279_s12 + $0x328] sm:$0xff]  ;;  %v5286_v36 = vld [vmem:[%s13279_s12 + $0x2f0] sm:$0xff] }
 0x4d6   : > { %v11037_v19 = vpop.eup %7445  ;;  %v6672_v24 = vpop.permute.xlu1 %6671  ;;  %v4059_v41 = vmul.f32 %v11013_v40, %v4058_v13  ;;  %v4069_v7 = vand.u32 2147483647, %v11030_v16  ;;  %v5297_v40 = vld [vmem:[%s13279_s12 + $0x348] sm:$0xff]  ;;  %5616 = vmatprep.subr.mxu1 %v5293_v9  ;;  %vm3837_vm6 = vcmp.ne.f32.partialorder %v10952_v59, %v10952_v59  ;;  %v5263_v14 = vld [vmem:[%s13279_s12 + $0x238] sm:$0xff]  ;;  %v5262_v9 = vld [vmem:[%s13279_s12 + $0x230] sm:$0xff]  ;;  %vm3841_vm14 = vcmp.ne.f32.partialorder %v10990_v43, %v10990_v43 }
 0x4d7   : > { %v4072_v48 = vadd.f32 1.0, %v11037_v19  ;;  %7457 = vlog2.f32 %v4063_v2  ;;  %v6721_v6 = vsel %vm6705_vm12, %v6704_v28, %v6672_v24  ;;  %v4075_v50 = vmul.f32 -0.5, %v11037_v19  ;;  %5454 = vmatpush1.msra.mxu0 %v5297_v40  ;;  %v5290_v2 = vld [vmem:[%s13279_s12 + $0x310] sm:$0xff]  ;;  %v5284_v28 = vld [vmem:[%s13279_s12 + $0x2e0] sm:$0xff]  ;;  %v5277_v42 = vld [vmem:[%s13279_s12 + $0x2a8] sm:$0xff] }
 0x4d8   : > { %7459 = vpow2.f32 %v3981_v15  ;;  %v6738_v39 = vsel %vm6722_vm13, %v6721_v6, 0.0  ;;  %v4067_v57 = vadd.f32 1.0, %v4066_v35  ;;  %v4078_v18 = vand.u32 2147483647, %v11037_v19  ;;  %5455 = vmatprep.subr.mxu0 %v5291_v29  ;;  %v5285_v35 = vld [vmem:[%s13279_s12 + $0x2e8] sm:$0xff]  ;;  %v5272_v40 = vld [vmem:[%s13279_s12 + $0x280] sm:$0xff] }
 0x4d9   : > { %7461 = vlog2.f32 %v4072_v48  ;;  %6754 = vst [vmem:[%s10687_s25 + $0x78] sm:$0xff] %v6738_v39  ;;  %v4076_v20 = vadd.f32 1.0, %v4075_v50  ;;  %v5292_v48 = vld [vmem:[%s13279_s12 + $0x320] sm:$0xff]  ;;  %vm11121_vm7 = vcmp.lt.f32.partialorder %v4069_v7, 0.0004427343  ;;  %5456 = vmatpush1.msra.mxu0 %v5290_v2  ;;  %vm3842_vm13 = vcmp.ne.f32.partialorder %v11001_v23, %v11001_v23 }
 0x4da   : > { %v3738_v46 = vpop.f32.mrf.mxu0  ;;  %5617 = vmatpush1.msra.mxu1 %v5292_v48  ;;  %v4068_v39 = vmul.f32 %v11030_v16, %v4067_v57  ;;  %5457 = vmatprep.subr.mxu0 %v5284_v28  ;;  %vm11193_vm10 = vcmp.lt.f32.partialorder %v4078_v18, 0.0004427343  ;;  %vm3844_vm2 = vcmp.ne.f32.partialorder %v11027_v45, %v11027_v45 }
 0x4db   : > { %v11046_v51 = vpop.eup %7447  ;;  %v11064_v52 = vadd.f32 %v3738_v46, %v10915_v38  ;;  %5618 = vmatprep.subr.mxu1 %v5286_v36  ;;  %v5276_v46 = vld [vmem:[%s13279_s12 + $0x2a0] sm:$0xff]  ;;  %v4077_v16 = vmul.f32 %v11037_v19, %v4076_v20  ;;  %v5271_v20 = vld [vmem:[%s13279_s12 + $0x278] sm:$0xff] }
 0x4dc   : > { %v4081_v26 = vadd.f32 1.0, %v11046_v51  ;;  %v7450_v37 = vpop.eup %7449  ;;  %v3740_v1 = vpop.f32.mrf.mxu0  ;;  %v4084_v58 = vmul.f32 -0.5, %v11046_v51  ;;  %v4087_v50 = vand.u32 2147483647, %v11046_v51  ;;  %5619 = vmatpush1.msra.mxu1 %v5285_v35  ;;  %v5256_v19 = vld [vmem:[%s13279_s12 + $0x200] sm:$0xff] }
 0x4dd   : > { %v11058_v4 = vpop.eup %7451  ;;  %v4047_v47 = vmul.f32 0.6931472, %v7450_v37  ;;  %v3909_v49 = vand.u32 2147483647, %v11064_v52  ;;  %v11087_v27 = vadd.f32 %v3740_v1, %v10923_v33  ;;  %5620 = vmatprep.subr.mxu1 %v5279_v62 }
 0x4de   : > { %7463 = vlog2.f32 %v4081_v26  ;;  %v7454_v17 = vpop.eup %7453  ;;  %v4090_v56 = vadd.f32 1.0, %v11058_v4  ;;  %vm11222_vm11 = vcmp.lt.f32.partialorder %v4087_v50, 0.0004427343  ;;  %v5249_v50 = vld [vmem:[%s13279_s12 + $0x1c8] sm:$0xff] }
 0x4df   : > { %v4056_v10 = vmul.f32 0.6931472, %v7454_v17  ;;  %v4053_v0 = vsel %vm11070_vm4, %v4050_v54, %v4047_v47  ;;  %v3941_v34 = vsub.f32 0.0, %v3909_v49  ;;  %v3910_v15 = vand.u32 2147483647, %v11087_v27 }
 0x4e0   : > { %7465 = vlog2.f32 %v4090_v56  ;;  %v4317_v3 = vadd.f32 %v4053_v0, %v3805_v60  ;;  %v5283_v60 = vld [vmem:[%s13279_s12 + $0x2d8] sm:$0xff]  ;;  %v5269_v0 = vld [vmem:[%s13279_s12 + $0x268] sm:$0xff]  ;;  %v4085_v49 = vadd.f32 1.0, %v4084_v58  ;;  %vm3846_vm4 = vcmp.ne.f32.partialorder %v11087_v27, %v11087_v27 }
 0x4e1   : > { %v4062_v31 = vsel %vm11066_vm3, %v4059_v41, %v4056_v10  ;;  %v3983_v13 = vmul.f32 1.442695, %v3941_v34  ;;  %v3942_v26 = vsub.f32 0.0, %v3910_v15  ;;  %5458 = vmatpush1.msra.mxu0 %v5283_v60  ;;  %v5278_v41 = vld [vmem:[%s13279_s12 + $0x2b0] sm:$0xff]  ;;  %v3810_v15 = vmax.f32 %v11001_v23, 0.0 }
 0x4e2   : > { %v4318_v61 = vadd.f32 %v4062_v31, %v3806_v53  ;;  %v4093_v53 = vmul.f32 -0.5, %v11058_v4  ;;  %v11133_v6 = vpop.eup %7455  ;;  %v3744_v54 = vpop.f32.mrf.mxu0  ;;  %5459 = vmatprep.subr.mxu0 %v5277_v42  ;;  %5621 = vmatpush1.msra.mxu1 %v5278_v41  ;;  %v4096_v60 = vand.u32 2147483647, %v11058_v4  ;;  %vm3843_vm3 = vcmp.ne.f32.partialorder %v11023_v44, %v11023_v44 }
 0x4e3   : > { %v4099_v17 = vadd.f32 1.0, %v11133_v6  ;;  %7467 = vpow2.f32 %v3983_v13  ;;  %v11166_v1 = vadd.f32 %v3744_v54, %v10915_v38  ;;  %5460 = vmatpush1.msra.mxu0 %v5276_v46  ;;  %5622 = vmatprep.subr.mxu1 %v5272_v40  ;;  %v4086_v13 = vmul.f32 %v11046_v51, %v4085_v49  ;;  %v5255_v51 = vld [vmem:[%s13279_s12 + $0x1f8] sm:$0xff] }
 0x4e4   : > { %v4350_v37 = vsel %vm3838_vm5, %v10960_v5, %v4318_v61  ;;  %v7458_v47 = vpop.eup %7457  ;;  %v4349_v5 = vsel %vm3837_vm6, %v10952_v59, %v4317_v3  ;;  %v3985_v59 = vmul.f32 1.442695, %v3942_v26  ;;  %v3746_v11 = vpop.f32.mrf.mxu0  ;;  %v4094_v63 = vadd.f32 1.0, %v4093_v53  ;;  %5461 = vmatprep.subr.mxu0 %v5270_v21  ;;  %v5265_v61 = vld [vmem:[%s13279_s12 + $0x248] sm:$0xff]  ;;  %v5264_v53 = vld [vmem:[%s13279_s12 + $0x240] sm:$0xff]  ;;  %5623 = vmatpush1.msra.mxu1 %v5271_v20 }
 0x4e5   : > { %4525 = vmatprep.mubr.f32.mxu1 %v4350_v37  ;;  %v11163_v56 = vpop.eup %7459  ;;  %v4065_v10 = vmul.f32 0.6931472, %v7458_v47  ;;  %7469 = vlog2.f32 %v4099_v17  ;;  %v3911_v29 = vand.u32 2147483647, %v11166_v1  ;;  %v11183_v31 = vadd.f32 %v3746_v11, %v10923_v33  ;;  %5462 = vmatpush1.msra.mxu0 %v5269_v0 }
 0x4e6   : > { %4526 = vmatmul.mubr.f32.gmra.mxu1 %v4349_v5  ;;  %v7462_v7 = vpop.eup %7461  ;;  %v4108_v57 = vadd.f32 1.0, %v11163_v56  ;;  %7471 = vpow2.f32 %v3985_v59  ;;  %5463 = vmatprep.subr.mxu0 %v5263_v14  ;;  %v4095_v35 = vmul.f32 %v11058_v4, %v4094_v63  ;;  %v4102_v5 = vmul.f32 -0.5, %v11133_v6  ;;  %v5251_v59 = vld [vmem:[%s13279_s12 + $0x1d8] sm:$0xff] }
 0x4e7   : > { %v4074_v3 = vmul.f32 0.6931472, %v7462_v7  ;;  %v4071_v34 = vsel %vm11121_vm7, %v4068_v39, %v4065_v10  ;;  %v3943_v48 = vsub.f32 0.0, %v3911_v29  ;;  %v3912_v28 = vand.u32 2147483647, %v11183_v31  ;;  %5464 = vmatpush1.msra.mxu0 %v5262_v9  ;;  %5624 = vmatprep.subr.mxu1 %v5265_v61  ;;  %v5248_v10 = vld [vmem:[%s13279_s12 + $0x1c0] sm:$0xff] }
 0x4e8   : > { %7473 = vlog2.f32 %v4108_v57  ;;  %v4319_v24 = vadd.f32 %v4071_v34, %v3807_v12  ;;  %v5258_v12 = vld [vmem:[%s13279_s12 + $0x210] sm:$0xff]  ;;  %5465 = vmatprep.subr.mxu0 %v5256_v19  ;;  %5625 = vmatpush1.msra.mxu1 %v5264_v53  ;;  %vm4097_vm12 = vcmp.lt.f32.partialorder %v4096_v60, 0.0004427343  ;;  %v4111_v7 = vmul.f32 -0.5, %v11163_v56 }
 0x4e9   : > { %v4080_v36 = vsel %vm11193_vm10, %v4077_v16, %v4074_v3  ;;  %v3987_v26 = vmul.f32 1.442695, %v3943_v48  ;;  %v3944_v37 = vsub.f32 0.0, %v3912_v28  ;;  %v3750_v39 = vpop.f32.mrf.mxu0  ;;  %v5257_v16 = vld [vmem:[%s13279_s12 + $0x208] sm:$0xff]  ;;  %5626 = vmatprep.subr.mxu1 %v5258_v12  ;;  %5466 = vmatpush1.msra.mxu0 %v5255_v51  ;;  %v4103_v14 = vadd.f32 1.0, %v4102_v5 }
 0x4ea   : > { %v4320_v58 = vadd.f32 %v4080_v36, %v3808_v30  ;;  %v11230_v47 = vadd.f32 %v3750_v39, %v10915_v38  ;;  %5627 = vmatpush1.msra.mxu1 %v5257_v16  ;;  %5467 = vmatprep.subr.mxu0 %v5249_v50  ;;  %v4105_v29 = vand.u32 2147483647, %v11133_v6  ;;  %v4112_v2 = vadd.f32 1.0, %v4111_v7 }
 0x4eb   : > { %v7464_v18 = vpop.eup %7463  ;;  %7475 = vpow2.f32 %v3987_v26  ;;  %v3989_v17 = vmul.f32 1.442695, %v3944_v37  ;;  %v3752_v62 = vpop.f32.mrf.mxu0  ;;  %5628 = vmatprep.subr.mxu1 %v5251_v59  ;;  %5468 = vmatpush1.msra.mxu0 %v5248_v10  ;;  %v4114_v61 = vand.u32 2147483647, %v11163_v56  ;;  %v4104_v36 = vmul.f32 %v11133_v6, %v4103_v14 }
 0x4ec   : > { %v4083_v42 = vmul.f32 0.6931472, %v7464_v18  ;;  %v4352_v54 = vsel %vm3840_vm8, %v10982_v55, %v4320_v58  ;;  %v4351_v55 = vsel %vm3839_vm9, %v10975_v25, %v4319_v24  ;;  %v3913_v41 = vand.u32 2147483647, %v11230_v47  ;;  %v5250_v25 = vld [vmem:[%s13279_s12 + $0x1d0] sm:$0xff] }
 0x4ed   : > { %v7466_v30 = vpop.eup %7465  ;;  %4531 = vmatprep.mubr.f32.mxu1 %v4352_v54  ;;  %v11257_v0 = vadd.f32 %v3752_v62, %v10923_v33  ;;  %7477 = vpow2.f32 %v3989_v17  ;;  %5629 = vmatpush1.msra.mxu1 %v5250_v25  ;;  %vm4106_vm15 = vcmp.lt.f32.partialorder %v4105_v29, 0.0004427343  ;;  %v4113_v58 = vmul.f32 %v11163_v56, %v4112_v2 }
 0x4ee   : > { %v4089_v4 = vsel %vm11222_vm11, %v4086_v13, %v4083_v42  ;;  %v4092_v21 = vmul.f32 0.6931472, %v7466_v30  ;;  %4532 = vmatmul.mubr.f32.gmra.mxu1 %v4351_v55  ;;  %v3945_v49 = vsub.f32 0.0, %v3913_v41  ;;  %v3812_v13 = vmax.f32 %v11027_v45, 0.0 }
 0x4ef   : > { %v4321_v63 = vadd.f32 %v4089_v4, %v3809_v32  ;;  %v3914_v57 = vand.u32 2147483647, %v11257_v0  ;;  %vm4115_vm1 = vcmp.lt.f32.partialorder %v4114_v61, 0.0004427343  ;;  %v3814_v25 = vmax.f32 %v11087_v27, 0.0 }
 0x4f0   : > { %v4098_v11 = vsel %vm4097_vm12, %v4095_v35, %v4092_v21  ;;  %v11271_v3 = vpop.eup %7467  ;;  %v3991_v32 = vmul.f32 1.442695, %v3945_v49  ;;  %vm3845_vm5 = vcmp.ne.f32.partialorder %v11064_v52, %v11064_v52  ;;  %vm3848_vm8 = vcmp.ne.f32.partialorder %v11183_v31, %v11183_v31 }
 0x4f1   : > { %v4322_v40 = vadd.f32 %v4098_v11, %v3810_v15  ;;  %v3946_v20 = vsub.f32 0.0, %v3914_v57  ;;  %v4353_v15 = vsel %vm3841_vm14, %v10990_v43, %v4321_v63  ;;  %v4117_v19 = vadd.f32 1.0, %v11271_v3 }
 0x4f2   : > { %v7470_v34 = vpop.eup %7469  ;;  %7479 = vpow2.f32 %v3991_v32  ;;  %v4120_v30 = vmul.f32 -0.5, %v11271_v3  ;;  %v4123_v59 = vand.u32 2147483647, %v11271_v3  ;;  %v3813_v11 = vmax.f32 %v11064_v52, 0.0 }
 0x4f3   : > { %v4354_v9 = vsel %vm3842_vm13, %v11001_v23, %v4322_v40  ;;  %v11277_v18 = vpop.eup %7471  ;;  %v3993_v48 = vmul.f32 1.442695, %v3946_v20  ;;  %v4101_v28 = vmul.f32 0.6931472, %v7470_v34  ;;  %v3811_v23 = vmax.f32 %v11023_v44, 0.0 }
 0x4f4   : > { %4537 = vmatprep.mubr.f32.mxu1 %v4354_v9  ;;  %v4126_v53 = vadd.f32 1.0, %v11277_v18  ;;  %7481 = vlog2.f32 %v4117_v19  ;;  %v4129_v17 = vmul.f32 -0.5, %v11277_v18  ;;  %v4121_v21 = vadd.f32 1.0, %v4120_v30 }
 0x4f5   : > { %4538 = vmatmul.mubr.f32.gmra.mxu1 %v4353_v15  ;;  %v7474_v24 = vpop.eup %7473  ;;  %7483 = vpow2.f32 %v3993_v48  ;;  %v4107_v60 = vsel %vm4106_vm15, %v4104_v36, %v4101_v28  ;;  %v4132_v57 = vand.u32 2147483647, %v11277_v18  ;;  %vm11322_vm6 = vcmp.lt.f32.partialorder %v4123_v59, 0.0004427343 }
 0x4f6   : > { %v4110_v43 = vmul.f32 0.6931472, %v7474_v24  ;;  %v3756_v42 = vpop.f32.mrf.mxu0  ;;  %7485 = vlog2.f32 %v4126_v53  ;;  %v4323_v26 = vadd.f32 %v4107_v60, %v3811_v23  ;;  %v4122_v32 = vmul.f32 %v11271_v3, %v4121_v21 }
 0x4f7   : > { %v11285_v12 = vadd.f32 %v3756_v42, %v10915_v38  ;;  %v3816_v9 = vmax.f32 %v11183_v31, 0.0  ;;  %vm4133_vm7 = vcmp.lt.f32.partialorder %v4132_v57, 0.0004427343  ;;  %vm3847_vm11 = vcmp.ne.f32.partialorder %v11166_v1, %v11166_v1 }
 0x4f8   : > { %v4116_v6 = vsel %vm4115_vm1, %v4113_v58, %v4110_v43  ;;  %v3758_v37 = vpop.f32.mrf.mxu0  ;;  %v11287_v35 = vpop.eup %7475  ;;  %v4355_v50 = vsel %vm3843_vm3, %v11023_v44, %v4323_v26  ;;  %v4130_v44 = vadd.f32 1.0, %v4129_v17  ;;  %vm3850_vm12 = vcmp.ne.f32.partialorder %v11257_v0, %v11257_v0 }
 0x4f9   : > { %v4324_v39 = vadd.f32 %v4116_v6, %v3812_v13  ;;  %v3915_v46 = vand.u32 2147483647, %v11285_v12  ;;  %v11291_v51 = vadd.f32 %v3758_v37, %v10923_v33  ;;  %v4135_v54 = vadd.f32 1.0, %v11287_v35 }
 0x4fa   : > { %v11300_v4 = vpop.eup %7477  ;;  %v4138_v61 = vmul.f32 -0.5, %v11287_v35  ;;  %v4131_v28 = vmul.f32 %v11277_v18, %v4130_v44  ;;  %v4141_v37 = vand.u32 2147483647, %v11287_v35  ;;  %vm3849_vm14 = vcmp.ne.f32.partialorder %v11230_v47, %v11230_v47 }
 0x4fb   : > { %v4356_v56 = vsel %vm3844_vm2, %v11027_v45, %v4324_v39  ;;  %v3947_v5 = vsub.f32 0.0, %v3915_v46  ;;  %v3916_v16 = vand.u32 2147483647, %v11291_v51  ;;  %v4144_v45 = vadd.f32 1.0, %v11300_v4 }
 0x4fc   : > { %4543 = vmatprep.mubr.f32.mxu1 %v4356_v56  ;;  %7487 = vlog2.f32 %v4135_v54  ;;  %v4147_v36 = vmul.f32 -0.5, %v11300_v4  ;;  %v4139_v26 = vadd.f32 1.0, %v4138_v61  ;;  %v4150_v56 = vand.u32 2147483647, %v11300_v4 }
 0x4fd   : > { %4544 = vmatmul.mubr.f32.gmra.mxu1 %v4355_v50  ;;  %v3995_v62 = vmul.f32 1.442695, %v3947_v5  ;;  %v3948_v55 = vsub.f32 0.0, %v3916_v16  ;;  %7489 = vlog2.f32 %v4144_v45  ;;  %vm11361_vm9 = vcmp.lt.f32.partialorder %v4141_v37, 0.0004427343 }
 0x4fe   : > { %v4148_v46 = vadd.f32 1.0, %v4147_v36  ;;  %vm11367_vm10 = vcmp.lt.f32.partialorder %v4150_v56, 0.0004427343  ;;  %vm3852_vm1 = vcmp.ne.f32.partialorder %v11291_v51, %v11291_v51  ;;  %vm3851_vm2 = vcmp.ne.f32.partialorder %v11285_v12, %v11285_v12 }
 0x4ff   : > { %7491 = vpow2.f32 %v3995_v62  ;;  %v3997_v10 = vmul.f32 1.442695, %v3948_v55  ;;  %v11307_v41 = vpop.eup %7479  ;;  %v3762_v7 = vpop.f32.mrf.mxu0 }
 0x500   : > { %v11314_v49 = vadd.f32 %v3762_v7, %v10915_v38  ;;  %v4153_v42 = vadd.f32 1.0, %v11307_v41 }
 0x501   : > { %v7482_v63 = vpop.eup %7481  ;;  %7493 = vpow2.f32 %v3997_v10  ;;  %v3764_v14 = vpop.f32.mrf.mxu0  ;;  %v4140_v10 = vmul.f32 %v11287_v35, %v4139_v26 }
 0x502   : > { %v11319_v40 = vpop.eup %7483  ;;  %v4119_v29 = vmul.f32 0.6931472, %v7482_v63  ;;  %v3917_v34 = vand.u32 2147483647, %v11314_v49  ;;  %v11329_v15 = vadd.f32 %v3764_v14, %v10923_v33  ;;  %v4149_v14 = vmul.f32 %v11300_v4, %v4148_v46 }
 0x503   : > { %v7486_v2 = vpop.eup %7485  ;;  %v4162_v19 = vadd.f32 1.0, %v11319_v40  ;;  %v4165_v30 = vmul.f32 -0.5, %v11319_v40 }
 0x504   : > { %v4128_v48 = vmul.f32 0.6931472, %v7486_v2  ;;  %v4125_v3 = vsel %vm11322_vm6, %v4122_v32, %v4119_v29  ;;  %v3949_v24 = vsub.f32 0.0, %v3917_v34  ;;  %v3918_v23 = vand.u32 2147483647, %v11329_v15 }
 0x505   : > { %v3768_v53 = vpop.f32.mrf.mxu0  ;;  %7495 = vlog2.f32 %v4162_v19  ;;  %v4325_v60 = vadd.f32 %v4125_v3, %v3813_v11  ;;  %v3815_v11 = vmax.f32 %v11166_v1, 0.0  ;;  %v4166_v2 = vadd.f32 1.0, %v4165_v30 }
 0x506   : > { %v11339_v43 = vadd.f32 %v3768_v53, %v10915_v38  ;;  %v4134_v58 = vsel %vm4133_vm7, %v4131_v28, %v4128_v48  ;;  %v3950_v13 = vsub.f32 0.0, %v3918_v23  ;;  %v3999_v5 = vmul.f32 1.442695, %v3949_v24 }
 0x507   : > { %v3770_v18 = vpop.f32.mrf.mxu0  ;;  %v4326_v6 = vadd.f32 %v4134_v58, %v3814_v25  ;;  %v4357_v62 = vsel %vm3845_vm5, %v11064_v52, %v4325_v60  ;;  %7497 = vlog2.f32 %v4153_v42  ;;  %v4168_v3 = vand.u32 2147483647, %v11319_v40 }
 0x508   : > { %v11344_v39 = vadd.f32 %v3770_v18, %v10923_v33  ;;  %v4001_v16 = vmul.f32 1.442695, %v3950_v13  ;;  %v3919_v50 = vand.u32 2147483647, %v11339_v43  ;;  %v4156_v53 = vmul.f32 -0.5, %v11307_v41 }
 0x509   : > { %v7488_v54 = vpop.eup %7487  ;;  %v4358_v17 = vsel %vm3846_vm4, %v11087_v27, %v4326_v6  ;;  %v3818_v42 = vmax.f32 %v11257_v0, 0.0  ;;  %v4167_v13 = vmul.f32 %v11319_v40, %v4166_v2  ;;  %vm4169_vm13 = vcmp.lt.f32.partialorder %v4168_v3, 0.0004427343 }
 0x50a   : > { %v3920_v45 = vand.u32 2147483647, %v11344_v39  ;;  %4549 = vmatprep.mubr.f32.mxu1 %v4358_v17  ;;  %v4137_v55 = vmul.f32 0.6931472, %v7488_v54  ;;  %v7490_v21 = vpop.eup %7489  ;;  %7499 = vpow2.f32 %v4001_v16  ;;  %v3774_v59 = vpop.f32.mrf.mxu0  ;;  %v3951_v63 = vsub.f32 0.0, %v3919_v50 }
 0x50b   : > { %4550 = vmatmul.mubr.f32.gmra.mxu1 %v4357_v62  ;;  %v4146_v44 = vmul.f32 0.6931472, %v7490_v21  ;;  %7501 = vpow2.f32 %v3999_v5  ;;  %v11378_v20 = vadd.f32 %v3774_v59, %v10915_v38  ;;  %v4157_v40 = vadd.f32 1.0, %v4156_v53 }
 0x50c   : > { %v11365_v7 = vpop.eup %7491  ;;  %v3952_v25 = vsub.f32 0.0, %v3920_v45  ;;  %v3776_v57 = vpop.f32.mrf.mxu0  ;;  %v4143_v35 = vsel %vm11361_vm9, %v4140_v10, %v4137_v55  ;;  %v4003_v36 = vmul.f32 1.442695, %v3951_v63  ;;  %v4159_v30 = vand.u32 2147483647, %v11307_v41 }
 0x50d   : > { %v4171_v34 = vadd.f32 1.0, %v11365_v7  ;;  %v11382_v61 = vadd.f32 %v3776_v57, %v10923_v33  ;;  %v4152_v19 = vsel %vm11367_vm10, %v4149_v14, %v4146_v44  ;;  %v4327_v48 = vadd.f32 %v4143_v35, %v3815_v11 }
 0x50e   : > { %v11375_v29 = vpop.eup %7493  ;;  %v4005_v32 = vmul.f32 1.442695, %v3952_v25  ;;  %v4328_v28 = vadd.f32 %v4152_v19, %v3816_v9  ;;  %v3921_v60 = vand.u32 2147483647, %v11378_v20  ;;  %v3819_v17 = vmax.f32 %v11285_v12, 0.0 }
 0x50f   : > { %v4180_v4 = vadd.f32 1.0, %v11375_v29  ;;  %v3922_v24 = vand.u32 2147483647, %v11382_v61  ;;  %v4359_v26 = vsel %vm3847_vm11, %v11166_v1, %v4327_v48  ;;  %v4183_v16 = vmul.f32 -0.5, %v11375_v29 }
 0x510   : > { %7503 = vpow2.f32 %v4005_v32  ;;  %v3780_v23 = vpop.f32.mrf.mxu0  ;;  %v4360_v9 = vsel %vm3848_vm8, %v11183_v31, %v4328_v28  ;;  %v3953_v54 = vsub.f32 0.0, %v3921_v60  ;;  %v3817_v55 = vmax.f32 %v11230_v47, 0.0 }
 0x511   : > { %7505 = vlog2.f32 %v4180_v4  ;;  %v3954_v18 = vsub.f32 0.0, %v3922_v24  ;;  %4555 = vmatprep.mubr.f32.mxu1 %v4360_v9  ;;  %v11403_v46 = vadd.f32 %v3780_v23, %v10915_v38  ;;  %v3820_v27 = vmax.f32 %v11291_v51, 0.0 }
 0x512   : > { %v7496_v58 = vpop.eup %7495  ;;  %v3782_v6 = vpop.f32.mrf.mxu0  ;;  %7507 = vlog2.f32 %v4171_v34  ;;  %4556 = vmatmul.mubr.f32.gmra.mxu1 %v4359_v26  ;;  %v4174_v25 = vmul.f32 -0.5, %v11365_v7  ;;  %v4158_v11 = vmul.f32 %v11307_v41, %v4157_v40  ;;  %vm4160_vm15 = vcmp.lt.f32.partialorder %v4159_v30, 0.0004427343 }
 0x513   : > { %v4164_v37 = vmul.f32 0.6931472, %v7496_v58  ;;  %v11406_v56 = vadd.f32 %v3782_v6, %v10923_v33  ;;  %7509 = vpow2.f32 %v4003_v36  ;;  %v4009_v1 = vmul.f32 1.442695, %v3954_v18 }
 0x514   : > { %v7498_v50 = vpop.eup %7497  ;;  %v3923_v59 = vand.u32 2147483647, %v11403_v46  ;;  %v4007_v14 = vmul.f32 1.442695, %v3953_v54  ;;  %v4186_v48 = vand.u32 2147483647, %v11375_v29  ;;  %vm3854_vm5 = vcmp.ne.f32.partialorder %v11329_v15, %v11329_v15 }
 0x515   : > { %v4170_v31 = vsel %vm4169_vm13, %v4167_v13, %v4164_v37  ;;  %v3924_v45 = vand.u32 2147483647, %v11406_v56  ;;  %v4155_v52 = vmul.f32 0.6931472, %v7498_v50  ;;  %7511 = vpow2.f32 %v4009_v1 }
 0x516   : > { %v4330_v5 = vadd.f32 %v4170_v31, %v3818_v42  ;;  %v3955_v41 = vsub.f32 0.0, %v3923_v59  ;;  %v4175_v4 = vadd.f32 1.0, %v4174_v25  ;;  %v3821_v3 = vmax.f32 %v11314_v49, 0.0 }
 0x517   : > { %v3786_v62 = vpop.f32.mrf.mxu0  ;;  %v11417_v21 = vpop.eup %7499  ;;  %v3956_v32 = vsub.f32 0.0, %v3924_v45  ;;  %v4161_v34 = vsel %vm4160_vm15, %v4158_v11, %v4155_v52  ;;  %v4177_v24 = vand.u32 2147483647, %v11365_v7  ;;  %vm4187_vm3 = vcmp.lt.f32.partialorder %v4186_v48, 0.0004427343 }
 0x518   : > { %v4362_v10 = vsel %vm3850_vm12, %v11257_v0, %v4330_v5  ;;  %v4198_v63 = vadd.f32 1.0, %v11417_v21  ;;  %v11428_v57 = vpop.eup %7501  ;;  %v11431_v35 = vadd.f32 %v3786_v62, %v10915_v38  ;;  %v4184_v0 = vadd.f32 1.0, %v4183_v16 }
 0x519   : > { %v3788_v44 = vpop.f32.mrf.mxu0  ;;  %4561 = vmatprep.mubr.f32.mxu1 %v4362_v10  ;;  %v4329_v19 = vadd.f32 %v4161_v34, %v3817_v55  ;;  %v4189_v23 = vadd.f32 1.0, %v11428_v57  ;;  %v4013_v42 = vmul.f32 1.442695, %v3956_v32  ;;  %v4011_v26 = vmul.f32 1.442695, %v3955_v41 }
 0x51a   : > { %v11434_v2 = vadd.f32 %v3788_v44, %v10923_v33  ;;  %7513 = vlog2.f32 %v4198_v63  ;;  %v3925_v58 = vand.u32 2147483647, %v11431_v35  ;;  %v4185_v9 = vmul.f32 %v11375_v29, %v4184_v0 }
 0x51b   : > { %7515 = vpow2.f32 %v4007_v14  ;;  %v4361_v60 = vsel %vm3849_vm14, %v11230_v47, %v4329_v19  ;;  %v4176_v31 = vmul.f32 %v11365_v7, %v4175_v4  ;;  %v4201_v54 = vmul.f32 -0.5, %v11417_v21 }
 0x51c   : > { %v3926_v36 = vand.u32 2147483647, %v11434_v2  ;;  %4562 = vmatmul.mubr.f32.gmra.mxu1 %v4361_v60  ;;  %7517 = vlog2.f32 %v4189_v23  ;;  %v3957_v5 = vsub.f32 0.0, %v3925_v58  ;;  %v4192_v45 = vmul.f32 -0.5, %v11428_v57 }
 0x51d   : > { %v11439_v28 = vpop.eup %7503  ;;  %vm4178_vm4 = vcmp.lt.f32.partialorder %v4177_v24, 0.0004427343  ;;  %v4202_v44 = vadd.f32 1.0, %v4201_v54  ;;  %v4204_v52 = vand.u32 2147483647, %v11417_v21  ;;  %vm3853_vm7 = vcmp.ne.f32.partialorder %v11314_v49, %v11314_v49 }
 0x51e   : > { %v7506_v53 = vpop.eup %7505  ;;  %v3958_v13 = vsub.f32 0.0, %v3926_v36  ;;  %v4216_v40 = vadd.f32 1.0, %v11439_v28  ;;  %v4015_v11 = vmul.f32 1.442695, %v3957_v5  ;;  %v4193_v14 = vadd.f32 1.0, %v4192_v45 }
 0x51f   : > { %v4182_v18 = vmul.f32 0.6931472, %v7506_v53  ;;  %v7508_v6 = vpop.eup %7507  ;;  %v3792_v37 = vpop.f32.mrf.mxu0  ;;  %v4219_v0 = vmul.f32 -0.5, %v11439_v28  ;;  %v3822_v36 = vmax.f32 %v11329_v15, 0.0  ;;  %v4203_v23 = vmul.f32 %v11417_v21, %v4202_v44 }
 0x520   : > { %v11456_v47 = vadd.f32 %v3792_v37, %v10915_v38  ;;  %v4173_v30 = vmul.f32 0.6931472, %v7508_v6  ;;  %v11459_v1 = vpop.eup %7509  ;;  %7519 = vlog2.f32 %v4216_v40  ;;  %v4017_v62 = vmul.f32 1.442695, %v3958_v13 }
 0x521   : > { %v4188_v29 = vsel %vm4187_vm3, %v4185_v9, %v4182_v18  ;;  %v3794_v16 = vpop.f32.mrf.mxu0  ;;  %7521 = vpow2.f32 %v4013_v42  ;;  %v4207_v32 = vadd.f32 1.0, %v11459_v1  ;;  %vm11489_vm6 = vcmp.lt.f32.partialorder %v4204_v52, 0.0004427343 }
 0x522   : > { %v4332_v50 = vadd.f32 %v4188_v29, %v3820_v27  ;;  %v11463_v7 = vadd.f32 %v3794_v16, %v10923_v33  ;;  %7523 = vpow2.f32 %v4011_v26  ;;  %v3927_v55 = vand.u32 2147483647, %v11456_v47  ;;  %v11476_v34 = vpop.eup %7511 }
 0x523   : > { %v4179_v10 = vsel %vm4178_vm4, %v4176_v31, %v4173_v30  ;;  %7525 = vpow2.f32 %v4017_v62  ;;  %v4195_v53 = vand.u32 2147483647, %v11428_v57  ;;  %v4220_v60 = vadd.f32 1.0, %v4219_v0 }
 0x524   : > { %v4364_v59 = vsel %vm3852_vm1, %v11291_v51, %v4332_v50  ;;  %v3928_v27 = vand.u32 2147483647, %v11463_v7  ;;  %v4331_v25 = vadd.f32 %v4179_v10, %v3819_v17  ;;  %v3798_v63 = vpop.f32.mrf.mxu0  ;;  %v3959_v48 = vsub.f32 0.0, %v3927_v55 }
 0x525   : > { %4567 = vmatprep.mubr.f32.mxu1 %v4364_v59  ;;  %v11479_v41 = vadd.f32 %v3798_v63, %v10915_v38  ;;  %7527 = vlog2.f32 %v4207_v32  ;;  %v4194_v13 = vmul.f32 %v11428_v57, %v4193_v14  ;;  %v4222_v21 = vand.u32 2147483647, %v11439_v28  ;;  %v5242_v38 = vld [vmem:[%s13279_s12 + $0x190] sm:$0xff] }
 0x526   : > { %v3960_v51 = vsub.f32 0.0, %v3928_v27  ;;  %v4363_v17 = vsel %vm3851_vm2, %v11285_v12, %v4331_v25  ;;  %v3800_v4 = vpop.f32.mrf.mxu0  ;;  %7529 = vpow2.f32 %v4015_v11  ;;  %v4234_v18 = vadd.f32 1.0, %v11476_v34  ;;  %5469 = vmatprep.subr.mxu0 %v5242_v38  ;;  %v5213_v38 = vld [vmem:[%s13279_s12 + $0xa8] sm:$0xff] }
 0x527   : > { %v7514_v19 = vpop.eup %7513  ;;  %4568 = vmatmul.mubr.f32.gmra.mxu1 %v4363_v17  ;;  %v11495_v12 = vadd.f32 %v3800_v4, %v10923_v33  ;;  %v3929_v42 = vand.u32 2147483647, %v11479_v41  ;;  %v4019_v26 = vmul.f32 1.442695, %v3959_v48  ;;  %v4210_v29 = vmul.f32 -0.5, %v11459_v1 }
 0x528   : > { %v4021_v24 = vmul.f32 1.442695, %v3960_v51  ;;  %v4200_v58 = vmul.f32 0.6931472, %v7514_v19  ;;  %v11497_v9 = vpop.eup %7515  ;;  %vm4196_vm8 = vcmp.lt.f32.partialorder %v4195_v53, 0.0004427343  ;;  %v4221_v57 = vmul.f32 %v11439_v28, %v4220_v60 }
 0x529   : > { %v7518_v6 = vpop.eup %7517  ;;  %v3930_v37 = vand.u32 2147483647, %v11495_v12  ;;  %v3961_v5 = vsub.f32 0.0, %v3929_v42  ;;  %v4225_v45 = vadd.f32 1.0, %v11497_v9  ;;  %v3824_v27 = vmax.f32 %v11344_v39, 0.0  ;;  %v5241_v60 = vld [vmem:[%s13279_s12 + $0x188] sm:$0xff] }
 0x52a   : > { %7531 = vpow2.f32 %v4021_v24  ;;  %v4206_v33 = vsel %vm11489_vm6, %v4203_v23, %v4200_v58  ;;  %v4191_v40 = vmul.f32 0.6931472, %v7518_v6  ;;  %vm4223_vm9 = vcmp.lt.f32.partialorder %v4222_v21, 0.0004427343  ;;  %v5243_v42 = vld [vmem:[%s13279_s12 + $0x198] sm:$0xff]  ;;  %5470 = vmatpush1.msra.mxu0 %v5241_v60 }
 0x52b   : > { %v4334_v31 = vadd.f32 %v4206_v33, %v3822_v36  ;;  %7533 = vlog2.f32 %v4234_v18  ;;  %v3962_v30 = vsub.f32 0.0, %v3930_v37  ;;  %v4211_v25 = vadd.f32 1.0, %v4210_v29  ;;  %v5237_v37 = vld [vmem:[%s13279_s12 + $0x168] sm:$0xff]  ;;  %v5234_v33 = vld [vmem:[%s13279_s12 + $0x150] sm:$0xff] }
 0x52c   : > { %v4197_v50 = vsel %vm4196_vm8, %v4194_v13, %v4191_v40  ;;  %7535 = vpow2.f32 %v4019_v26  ;;  %v4213_v52 = vand.u32 2147483647, %v11459_v1  ;;  %v4237_v11 = vmul.f32 -0.5, %v11476_v34  ;;  %v5235_v13 = vld [vmem:[%s13279_s12 + $0x158] sm:$0xff] }
 0x52d   : > { %v7520_v54 = vpop.eup %7519  ;;  %v4366_v16 = vsel %vm3854_vm5, %v11329_v15, %v4334_v31  ;;  %v4025_v55 = vmul.f32 1.442695, %v3962_v30  ;;  %v4333_v59 = vadd.f32 %v4197_v50, %v3821_v3  ;;  %7537 = vlog2.f32 %v4225_v45  ;;  %5471 = vmatprep.subr.mxu0 %v5235_v13  ;;  %v5209_v13 = vld [vmem:[%s13279_s12 + $0x88] sm:$0xff] }
 0x52e   : > { %v11515_v62 = vpop.eup %7521  ;;  %4573 = vmatprep.mubr.f32.mxu1 %v4366_v16  ;;  %v4218_v10 = vmul.f32 0.6931472, %v7520_v54  ;;  %v4023_v63 = vmul.f32 1.442695, %v3961_v5  ;;  %vm3856_vm10 = vcmp.ne.f32.partialorder %v11344_v39, %v11344_v39  ;;  %v4212_v48 = vmul.f32 %v11459_v1, %v4211_v25  ;;  %v5228_v54 = vld [vmem:[%s13279_s12 + $0x120] sm:$0xff]  ;;  %v5230_v5 = vld [vmem:[%s13279_s12 + $0x130] sm:$0xff]  ;;  %5472 = vmatpush1.msra.mxu0 %v5234_v33 }
 0x52f   : > { %v11519_v28 = vpop.eup %7523  ;;  %v4365_v15 = vsel %vm3853_vm7, %v11314_v49, %v4333_v59  ;;  %7539 = vpow2.f32 %v4025_v55  ;;  %v4252_v14 = vadd.f32 1.0, %v11515_v62  ;;  %v3823_v49 = vmax.f32 %v11339_v43, 0.0  ;;  %v5227_v55 = vld [vmem:[%s13279_s12 + $0x118] sm:$0xff]  ;;  %5473 = vmatprep.subr.mxu0 %v5228_v54  ;;  %v5208_v33 = vld [vmem:[%s13279_s12 + $0x80] sm:$0xff] }
 0x530   : > { %v4224_v44 = vsel %vm4223_vm9, %v4221_v57, %v4218_v10  ;;  %4574 = vmatmul.mubr.f32.gmra.mxu1 %v4365_v15  ;;  %v11529_v0 = vpop.eup %7525  ;;  %v4243_v32 = vadd.f32 1.0, %v11519_v28  ;;  %v4238_v4 = vadd.f32 1.0, %v4237_v11  ;;  %v3825_v24 = vmax.f32 %v11378_v20, 0.0  ;;  %v5236_v57 = vld [vmem:[%s13279_s12 + $0x160] sm:$0xff]  ;;  %v5223_v25 = vld [vmem:[%s13279_s12 + $0xf8] sm:$0xff]  ;;  %5474 = vmatpush1.msra.mxu0 %v5227_v55 }
 0x531   : > { %v4336_v3 = vadd.f32 %v4224_v44, %v3824_v27  ;;  %7541 = vlog2.f32 %v4252_v14  ;;  %vm4214_vm11 = vcmp.lt.f32.partialorder %v4213_v52, 0.0004427343  ;;  %v4228_v23 = vmul.f32 -0.5, %v11497_v9  ;;  %v5221_v27 = vld [vmem:[%s13279_s12 + $0xe8] sm:$0xff]  ;;  %v5214_v14 = vld [vmem:[%s13279_s12 + $0xb0] sm:$0xff] }
 0x532   : > { %v7528_v51 = vpop.eup %7527  ;;  %7543 = vlog2.f32 %v4243_v32  ;;  %v4240_v1 = vand.u32 2147483647, %v11476_v34  ;;  %v4270_v58 = vadd.f32 1.0, %v11529_v0  ;;  %v3827_v18 = vmax.f32 %v11403_v46, 0.0  ;;  %5475 = vmatprep.subr.mxu0 %v5221_v27  ;;  %v5193_v27 = vld [vmem:[%s13279_s12 + $0x8] sm:$0xff] }
 0x533   : > { %v4368_v17 = vsel %vm3856_vm10, %v11344_v39, %v4336_v3  ;;  %v4209_v19 = vmul.f32 0.6931472, %v7528_v51  ;;  %v11537_v36 = vpop.eup %7529  ;;  %7545 = vpow2.f32 %v4023_v63  ;;  %v5244_v39 = vld [vmem:[%s13279_s12 + $0x1a0] sm:$0xff]  ;;  %vm3855_vm12 = vcmp.ne.f32.partialorder %v11339_v43, %v11339_v43  ;;  %v5222_v3 = vld [vmem:[%s13279_s12 + $0xf0] sm:$0xff] }
 0x534   : > { %4579 = vmatprep.mubr.f32.mxu1 %v4368_v17  ;;  %5630 = vmatprep.subr.mxu1 %v5244_v39  ;;  %v3826_v26 = vmax.f32 %v11382_v61, 0.0  ;;  %v4239_v40 = vmul.f32 %v11476_v34, %v4238_v4  ;;  %v4231_v29 = vand.u32 2147483647, %v11497_v9  ;;  %7547 = vlog2.f32 %v4270_v58  ;;  %v5220_v63 = vld [vmem:[%s13279_s12 + $0xe0] sm:$0xff]  ;;  %v5215_v39 = vld [vmem:[%s13279_s12 + $0xb8] sm:$0xff] }
 0x535   : > { %v4215_v53 = vsel %vm4214_vm11, %v4212_v48, %v4209_v19  ;;  %5631 = vmatpush1.msra.mxu1 %v5243_v42  ;;  %v4261_v30 = vadd.f32 1.0, %v11537_v36  ;;  %v4229_v50 = vadd.f32 1.0, %v4228_v23  ;;  %v4255_v45 = vmul.f32 -0.5, %v11515_v62  ;;  %v5216_v19 = vld [vmem:[%s13279_s12 + $0xc0] sm:$0xff]  ;;  %5476 = vmatpush1.msra.mxu0 %v5220_v63  ;;  %v5207_v42 = vld [vmem:[%s13279_s12 + $0x78] sm:$0xff] }
 0x536   : > { %v4335_v6 = vadd.f32 %v4215_v53, %v3823_v49  ;;  %5632 = vmatprep.subr.mxu1 %v5237_v37  ;;  %vm11590_vm13 = vcmp.lt.f32.partialorder %v4240_v1, 0.0004427343  ;;  %v4246_v10 = vmul.f32 -0.5, %v11519_v28  ;;  %v4258_v52 = vand.u32 2147483647, %v11515_v62  ;;  %5477 = vmatprep.subr.mxu0 %v5214_v14  ;;  %v5206_v37 = vld [vmem:[%s13279_s12 + $0x70] sm:$0xff] }
 0x537   : > { %v11558_v21 = vpop.eup %7531  ;;  %5633 = vmatpush1.msra.mxu1 %v5236_v57  ;;  %7549 = vlog2.f32 %v4261_v30  ;;  %vm3858_vm14 = vcmp.ne.f32.partialorder %v11382_v61, %v11382_v61  ;;  %vm11621_vm15 = vcmp.lt.f32.partialorder %v4231_v29, 0.0004427343  ;;  %v4249_v17 = vand.u32 2147483647, %v11519_v28  ;;  %5478 = vmatpush1.msra.mxu0 %v5213_v38  ;;  %v5200_v57 = vld [vmem:[%s13279_s12 + $0x40] sm:$0xff]  ;;  %v5194_v14 = vld [vmem:[%s13279_s12 + $0x10] sm:$0xff] }
 0x538   : > { %v7534_v31 = vpop.eup %7533  ;;  %v4367_v34 = vsel %vm3855_vm12, %v11339_v43, %v4335_v6  ;;  %v5229_v43 = vld [vmem:[%s13279_s12 + $0x128] sm:$0xff]  ;;  %v4288_v11 = vadd.f32 1.0, %v11558_v21  ;;  %5634 = vmatprep.subr.mxu1 %v5230_v5  ;;  %v4230_v4 = vmul.f32 %v11497_v9, %v4229_v50  ;;  %v4256_v23 = vadd.f32 1.0, %v4255_v45  ;;  %5479 = vmatprep.subr.mxu0 %v5207_v42  ;;  %v5199_v50 = vld [vmem:[%s13279_s12 + $0x38] sm:$0xff] }
 0x539   : > { %v4236_v16 = vmul.f32 0.6931472, %v7534_v31  ;;  %4580 = vmatmul.mubr.f32.gmra.mxu1 %v4367_v34  ;;  %v11604_v15 = vpop.eup %7535  ;;  %v4247_v9 = vadd.f32 1.0, %v4246_v10  ;;  %v4273_v58 = vmul.f32 -0.5, %v11529_v0  ;;  %vm3857_vm1 = vcmp.ne.f32.partialorder %v11378_v20, %v11378_v20  ;;  %5480 = vmatpush1.msra.mxu0 %v5206_v37 }
 0x53a   : > { %v7538_v32 = vpop.eup %7537  ;;  %5635 = vmatpush1.msra.mxu1 %v5229_v43  ;;  %7551 = vlog2.f32 %v4288_v11  ;;  %v4279_v60 = vadd.f32 1.0, %v11604_v15  ;;  %v3828_v6 = vmax.f32 %v11406_v56, 0.0  ;;  %vm11655_vm2 = vcmp.lt.f32.partialorder %v4258_v52, 0.0004427343  ;;  %v5201_v43 = vld [vmem:[%s13279_s12 + $0x48] sm:$0xff]  ;;  %5481 = vmatprep.subr.mxu0 %v5200_v57  ;;  %v5192_v52 = vld [vmem:[%s13279_s12] sm:$0xff] }
 0x53b   : > { %v4242_v44 = vsel %vm11590_vm13, %v4239_v40, %v4236_v16  ;;  %v4227_v48 = vmul.f32 0.6931472, %v7538_v32  ;;  %5636 = vmatprep.subr.mxu1 %v5223_v25  ;;  %vm11667_vm3 = vcmp.lt.f32.partialorder %v4249_v17, 0.0004427343  ;;  %v4264_v30 = vmul.f32 -0.5, %v11537_v36  ;;  %v5202_v16 = vld [vmem:[%s13279_s12 + $0x50] sm:$0xff]  ;;  %5482 = vmatpush1.msra.mxu0 %v5199_v50 }
 0x53c   : > { %v4338_v51 = vadd.f32 %v4242_v44, %v3826_v26  ;;  %v11636_v53 = vpop.eup %7539  ;;  %5637 = vmatpush1.msra.mxu1 %v5222_v3  ;;  %7553 = vlog2.f32 %v4279_v60  ;;  %vm3860_vm4 = vcmp.ne.f32.partialorder %v11406_v56, %v11406_v56  ;;  %v4248_v59 = vmul.f32 %v11519_v28, %v4247_v9  ;;  %v5195_v28 = vld [vmem:[%s13279_s12 + $0x18] sm:$0xff]  ;;  %5483 = vmatprep.subr.mxu0 %v5193_v27  ;;  %v5402_v26 = vld [vmem:[%s13279_s12 + $0x690] sm:$0xff] }
 0x53d   : > { %5638 = vmatprep.subr.mxu1 %v5216_v19  ;;  %v4306_v34 = vadd.f32 1.0, %v11636_v53  ;;  %v4274_v10 = vadd.f32 1.0, %v4273_v58  ;;  %v4291_v44 = vmul.f32 -0.5, %v11558_v21  ;;  %vm3859_vm5 = vcmp.ne.f32.partialorder %v11403_v46, %v11403_v46  ;;  %5484 = vmatpush1.msra.mxu0 %v5192_v52  ;;  %v5411_v58 = vld [vmem:[%s13279_s12 + $0x6d8] sm:$0xff] }
 0x53e   : > { %v4370_v1 = vsel %vm3858_vm14, %v11382_v61, %v4338_v51  ;;  %v4233_v61 = vsel %vm11621_vm15, %v4230_v4, %v4227_v48  ;;  %v7542_v31 = vpop.eup %7541  ;;  %5639 = vmatpush1.msra.mxu1 %v5215_v39  ;;  %v4265_v3 = vadd.f32 1.0, %v4264_v30  ;;  %v3830_v49 = vmax.f32 %v11434_v2, 0.0  ;;  %v5410_v48 = vld [vmem:[%s13279_s12 + $0x6d0] sm:$0xff]  ;;  %v5412_v39 = vld [vmem:[%s13279_s12 + $0x6e0] sm:$0xff]  ;;  %v5403_v60 = vld [vmem:[%s13279_s12 + $0x698] sm:$0xff] }
 0x53f   : > { %4585 = vmatprep.mubr.f32.mxu1 %v4370_v1  ;;  %v4337_v40 = vadd.f32 %v4233_v61, %v3825_v24  ;;  %v7544_v54 = vpop.eup %7543  ;;  %v4254_v5 = vmul.f32 0.6931472, %v7542_v31  ;;  %v4257_v24 = vmul.f32 %v11515_v62, %v4256_v23  ;;  %5640 = vmatprep.subr.mxu1 %v5209_v13  ;;  %7555 = vlog2.f32 %v4306_v34  ;;  %v5409_v1 = vld [vmem:[%s13279_s12 + $0x6c8] sm:$0xff] }
 0x540   : > { %v11685_v45 = vpop.eup %7545  ;;  %v4245_v62 = vmul.f32 0.6931472, %v7544_v54  ;;  %5641 = vmatpush1.msra.mxu1 %v5208_v33  ;;  %v4267_v17 = vand.u32 2147483647, %v11537_v36  ;;  %v4282_v38 = vmul.f32 -0.5, %v11604_v15  ;;  %v4266_v61 = vmul.f32 %v11537_v36, %v4265_v3  ;;  %5485 = vmatprep.subr.mxu0 %v5410_v48  ;;  %v5404_v36 = vld [vmem:[%s13279_s12 + $0x6a0] sm:$0xff] }
 0x541   : > { %v4369_v55 = vsel %vm3857_vm1, %v11378_v20, %v4337_v40  ;;  %v4260_v25 = vsel %vm11655_vm2, %v4257_v24, %v4254_v5  ;;  %v4276_v20 = vand.u32 2147483647, %v11529_v0  ;;  %5642 = vmatprep.subr.mxu1 %v5202_v16  ;;  %v7548_v32 = vpop.eup %7547  ;;  %v4297_v19 = vadd.f32 1.0, %v11685_v45  ;;  %5486 = vmatpush2.msra.mxu0 %v5409_v1 }
 0x542   : > { %4586 = vmatmul.mubr.f32.gmra.mxu1 %v4369_v55  ;;  %v4340_v11 = vadd.f32 %v4260_v25, %v3828_v6  ;;  %v4251_v63 = vsel %vm11667_vm3, %v4248_v59, %v4245_v62  ;;  %v4272_v23 = vmul.f32 0.6931472, %v7548_v32  ;;  %v4294_v6 = vand.u32 2147483647, %v11558_v21  ;;  %5487 = vmatprep.subr.mxu0 %v5403_v60  ;;  %v5398_v32 = vld [vmem:[%s13279_s12 + $0x670] sm:$0xff]  ;;  %v5381_v60 = vld [vmem:[%s13279_s12 + $0x5e8] sm:$0xff] }
 0x543   : > { %v4339_v51 = vadd.f32 %v4251_v63, %v3827_v18  ;;  %5643 = vmatpush1.msra.mxu1 %v5201_v43  ;;  %v4275_v18 = vmul.f32 %v11529_v0, %v4274_v10  ;;  %vm4277_vm6 = vcmp.lt.f32.partialorder %v4276_v20, 0.0004427343  ;;  %v4292_v0 = vadd.f32 1.0, %v4291_v44  ;;  %5488 = vmatpush2.msra.mxu0 %v5402_v26  ;;  %v5370_v26 = vld [vmem:[%s13279_s12 + $0x590] sm:$0xff] }
 0x544   : > { %v4372_v4 = vsel %vm3860_vm4, %v11406_v56, %v4340_v11  ;;  %5644 = vmatprep.subr.mxu1 %v5195_v28  ;;  %v7550_v9 = vpop.eup %7549  ;;  %7557 = vlog2.f32 %v4297_v19  ;;  %v3829_v37 = vmax.f32 %v11431_v35, 0.0  ;;  %vm4268_vm7 = vcmp.lt.f32.partialorder %v4267_v17, 0.0004427343  ;;  %v5397_v17 = vld [vmem:[%s13279_s12 + $0x668] sm:$0xff] }
 0x545   : > { %4591 = vmatprep.mubr.f32.mxu1 %v4372_v4  ;;  %v4371_v56 = vsel %vm3859_vm5, %v11403_v46, %v4339_v51  ;;  %5645 = vmatpush1.msra.mxu1 %v5194_v14  ;;  %v4278_v42 = vsel %vm4277_vm6, %v4275_v18, %v4272_v23  ;;  %v4263_v13 = vmul.f32 0.6931472, %v7550_v9  ;;  %v5405_v46 = vld [vmem:[%s13279_s12 + $0x6a8] sm:$0xff]  ;;  %v4309_v31 = vmul.f32 -0.5, %v11636_v53  ;;  %v5388_v23 = vld [vmem:[%s13279_s12 + $0x620] sm:$0xff] }
 0x546   : > { %4592 = vmatmul.mubr.f32.gmra.mxu1 %v4371_v56  ;;  %v4342_v33 = vadd.f32 %v4278_v42, %v3830_v49  ;;  %5646 = vmatprep.subr.mxu1 %v5412_v39  ;;  %vm3862_vm8 = vcmp.ne.f32.partialorder %v11434_v2, %v11434_v2  ;;  %v4283_v30 = vadd.f32 1.0, %v4282_v38  ;;  %v4285_v57 = vand.u32 2147483647, %v11604_v15  ;;  %v5389_v4 = vld [vmem:[%s13279_s12 + $0x628] sm:$0xff]  ;;  %v5390_v39 = vld [vmem:[%s13279_s12 + $0x630] sm:$0xff]  ;;  %v5383_v42 = vld [vmem:[%s13279_s12 + $0x5f8] sm:$0xff] }
 0x547   : > { %v7552_v40 = vpop.eup %7551  ;;  %v4269_v29 = vsel %vm4268_vm7, %v4266_v61, %v4263_v13  ;;  %5647 = vmatpush2.msra.mxu1 %v5411_v58  ;;  %v4293_v34 = vmul.f32 %v11558_v21, %v4292_v0  ;;  %vm3861_vm9 = vcmp.ne.f32.partialorder %v11431_v35, %v11431_v35  ;;  %v3832_v16 = vmax.f32 %v11463_v7, 0.0  ;;  %v5382_v58 = vld [vmem:[%s13279_s12 + $0x5f0] sm:$0xff]  ;;  %v5377_v13 = vld [vmem:[%s13279_s12 + $0x5c8] sm:$0xff] }
 0x548   : > { %v4374_v54 = vsel %vm3862_vm8, %v11434_v2, %v4342_v33  ;;  %v4341_v5 = vadd.f32 %v4269_v29, %v3829_v37  ;;  %v4290_v24 = vmul.f32 0.6931472, %v7552_v40  ;;  %5648 = vmatprep.subr.mxu1 %v5405_v46  ;;  %vm4295_vm10 = vcmp.lt.f32.partialorder %v4294_v6, 0.0004427343  ;;  %v5374_v61 = vld [vmem:[%s13279_s12 + $0x5b0] sm:$0xff]  ;;  %v5376_v6 = vld [vmem:[%s13279_s12 + $0x5c0] sm:$0xff] }
 0x549   : > { %4597 = vmatprep.mubr.f32.mxu1 %v4374_v54  ;;  %v4312_v50 = vand.u32 2147483647, %v11636_v53  ;;  %5649 = vmatpush2.msra.mxu1 %v5404_v36  ;;  %v7554_v55 = vpop.eup %7553  ;;  %v4310_v59 = vadd.f32 1.0, %v4309_v31  ;;  %v4300_v10 = vmul.f32 -0.5, %v11685_v45  ;;  %v4284_v27 = vmul.f32 %v11604_v15, %v4283_v30  ;;  %v5368_v46 = vld [vmem:[%s13279_s12 + $0x580] sm:$0xff]  ;;  %v5367_v37 = vld [vmem:[%s13279_s12 + $0x578] sm:$0xff] }
 0x54a   : > { %v4373_v62 = vsel %vm3861_vm9, %v11431_v35, %v4341_v5  ;;  %v4296_v2 = vsel %vm4295_vm10, %v4293_v34, %v4290_v24  ;;  %v4281_v43 = vmul.f32 0.6931472, %v7554_v55  ;;  %v3831_v25 = vmax.f32 %v11456_v47, 0.0  ;;  %5650 = vmatprep.subr.mxu1 %v5398_v32  ;;  %v5369_v33 = vld [vmem:[%s13279_s12 + $0x588] sm:$0xff]  ;;  %v5363_v36 = vld [vmem:[%s13279_s12 + $0x558] sm:$0xff]  ;;  %v5360_v40 = vld [vmem:[%s13279_s12 + $0x540] sm:$0xff] }
 0x54b   : > { %4598 = vmatmul.mubr.f32.gmra.mxu1 %v4373_v62  ;;  %v4344_v21 = vadd.f32 %v4296_v2, %v3832_v16  ;;  %vm3864_vm11 = vcmp.ne.f32.partialorder %v11463_v7, %v11463_v7  ;;  %vm4286_vm12 = vcmp.lt.f32.partialorder %v4285_v57, 0.0004427343  ;;  %vm11774_vm13 = vcmp.lt.f32.partialorder %v4312_v50, 0.0004427343  ;;  %v5361_v31 = vld [vmem:[%s13279_s12 + $0x548] sm:$0xff]  ;;  %v5362_v29 = vld [vmem:[%s13279_s12 + $0x550] sm:$0xff] }
 0x54c   : > { %v7556_v20 = vpop.eup %7555  ;;  %v4287_v28 = vsel %vm4286_vm12, %v4284_v27, %v4281_v43  ;;  %v4311_v63 = vmul.f32 %v11636_v53, %v4310_v59  ;;  %v4301_v15 = vadd.f32 1.0, %v4300_v10  ;;  %vm3863_vm14 = vcmp.ne.f32.partialorder %v11456_v47, %v11456_v47  ;;  %v5395_v53 = vld [vmem:[%s13279_s12 + $0x658] sm:$0xff]  ;;  %5651 = vmatpush2.msra.mxu1 %v5397_v17  ;;  %v5354_v30 = vld [vmem:[%s13279_s12 + $0x510] sm:$0xff]  ;;  %v5356_v57 = vld [vmem:[%s13279_s12 + $0x520] sm:$0xff] }
 0x54d   : > { %v4376_v44 = vsel %vm3864_vm11, %v11463_v7, %v4344_v21  ;;  %v4343_v52 = vadd.f32 %v4287_v28, %v3831_v25  ;;  %v4308_v11 = vmul.f32 0.6931472, %v7556_v20  ;;  %v3834_v3 = vmax.f32 %v11495_v12, 0.0  ;;  %v5396_v7 = vld [vmem:[%s13279_s12 + $0x660] sm:$0xff]  ;;  %v5353_v54 = vld [vmem:[%s13279_s12 + $0x508] sm:$0xff]  ;;  %v5355_v5 = vld [vmem:[%s13279_s12 + $0x518] sm:$0xff] }
 0x54e   : > { %4603 = vmatprep.mubr.f32.mxu1 %v4376_v44  ;;  %v4303_v14 = vand.u32 2147483647, %v11685_v45  ;;  %5489 = vmatprep.subr.mxu0 %v5396_v7  ;;  %vm3866_vm15 = vcmp.ne.f32.partialorder %v11495_v12, %v11495_v12  ;;  %v4302_v38 = vmul.f32 %v11685_v45, %v4301_v15  ;;  %v3833_v1 = vmax.f32 %v11479_v41, 0.0  ;;  %v5347_v24 = vld [vmem:[%s13279_s12 + $0x4d8] sm:$0xff]  ;;  %v5349_v34 = vld [vmem:[%s13279_s12 + $0x4e8] sm:$0xff]  ;;  %v5346_v16 = vld [vmem:[%s13279_s12 + $0x4d0] sm:$0xff] }
 0x54f   : > { %v4375_v51 = vsel %vm3863_vm14, %v11456_v47, %v4343_v52  ;;  %v4314_v49 = vsel %vm11774_vm13, %v4311_v63, %v4308_v11  ;;  %5490 = vmatpush2.msra.mxu0 %v5395_v53  ;;  %v5391_v47 = vld [vmem:[%s13279_s12 + $0x638] sm:$0xff]  ;;  %vm3865_vm2 = vcmp.ne.f32.partialorder %v11479_v41, %v11479_v41  ;;  %v5348_v50 = vld [vmem:[%s13279_s12 + $0x4e0] sm:$0xff]  ;;  %v5342_v62 = vld [vmem:[%s13279_s12 + $0x4b0] sm:$0xff] }
 0x550   : > { %4604 = vmatmul.mubr.f32.gmra.mxu1 %v4375_v51  ;;  %v4346_v48 = vadd.f32 %v4314_v49, %v3834_v3  ;;  %5491 = vmatprep.subr.mxu0 %v5389_v4  ;;  %vm4304_vm1 = vcmp.lt.f32.partialorder %v4303_v14, 0.0004427343  ;;  %v5340_v55 = vld [vmem:[%s13279_s12 + $0x4a0] sm:$0xff]  ;;  %v5339_v2 = vld [vmem:[%s13279_s12 + $0x498] sm:$0xff]  ;;  %v5341_v59 = vld [vmem:[%s13279_s12 + $0x4a8] sm:$0xff] }
 0x551   : > { %v7558_v19 = vpop.eup %7557  ;;  %5652 = vmatprep.subr.mxu1 %v5391_v47  ;;  %5492 = vmatpush2.msra.mxu0 %v5388_v23  ;;  %v5333_v10 = vld [vmem:[%s13279_s12 + $0x468] sm:$0xff]  ;;  %v5335_v21 = vld [vmem:[%s13279_s12 + $0x478] sm:$0xff]  ;;  %v5332_v43 = vld [vmem:[%s13279_s12 + $0x460] sm:$0xff] }
 0x552   : > { %v4299_v18 = vmul.f32 0.6931472, %v7558_v19  ;;  %v4378_v9 = vsel %vm3866_vm15, %v11495_v12, %v4346_v48  ;;  %5653 = vmatpush2.msra.mxu1 %v5390_v39  ;;  %v5384_v12 = vld [vmem:[%s13279_s12 + $0x600] sm:$0xff]  ;;  %5493 = vmatprep.subr.mxu0 %v5382_v58  ;;  %v5334_v27 = vld [vmem:[%s13279_s12 + $0x470] sm:$0xff]  ;;  %v5325_v44 = vld [vmem:[%s13279_s12 + $0x428] sm:$0xff] }
 0x553   : > { %4609 = vmatprep.mubr.f32.mxu1 %v4378_v9  ;;  %5654 = vmatprep.subr.mxu1 %v5384_v12  ;;  %v5326_v25 = vld [vmem:[%s13279_s12 + $0x430] sm:$0xff]  ;;  %v5328_v20 = vld [vmem:[%s13279_s12 + $0x440] sm:$0xff]  ;;  %v5327_v35 = vld [vmem:[%s13279_s12 + $0x438] sm:$0xff] }
 0x554   : > { %v4305_v56 = vsel %vm4304_vm1, %v4302_v38, %v4299_v18  ;;  %5494 = vmatpush2.msra.mxu0 %v5381_v60  ;;  %5655 = vmatpush2.msra.mxu1 %v5383_v42  ;;  %v4443_v28 = vld [vmem:[%s13278_s11] sm:$0x3]  ;;  %v5319_v52 = vld [vmem:[%s13279_s12 + $0x3f8] sm:$0xff]  ;;  %v5321_v11 = vld [vmem:[%s13279_s12 + $0x408] sm:$0xff] }
 0x555   : > { %v4345_v0 = vadd.f32 %v4305_v56, %v3833_v1  ;;  %5656 = vmatprep.subr.mxu1 %v5377_v13  ;;  %v5318_v63 = vld [vmem:[%s13279_s12 + $0x3f0] sm:$0xff]  ;;  %v5320_v15 = vld [vmem:[%s13279_s12 + $0x400] sm:$0xff]  ;;  %v11942_v3 = vrot.slane %v4443_v28, %v13339_v8  ;;  %v11945_v14 = vrot.slane %v4443_v28, %v13340_v22  ;;  %v5311_v49 = vld [vmem:[%s13279_s12 + $0x3b8] sm:$0xff] }
 0x556   : > { %5657 = vmatpush2.msra.mxu1 %v5376_v6  ;;  %v5312_v53 = vld [vmem:[%s13279_s12 + $0x3c0] sm:$0xff]  ;;  %v5314_v51 = vld [vmem:[%s13279_s12 + $0x3d0] sm:$0xff]  ;;  %v5313_v19 = vld [vmem:[%s13279_s12 + $0x3c8] sm:$0xff] }
 0x557   : > { %v4377_v45 = vsel %vm3865_vm2, %v11479_v41, %v4345_v0  ;;  %v5375_v41 = vld [vmem:[%s13279_s12 + $0x5b8] sm:$0xff]  ;;  %5658 = vmatprep.subr.mxu1 %v5370_v26  ;;  %v5305_v47 = vld [vmem:[%s13279_s12 + $0x388] sm:$0xff]  ;;  %v5304_v18 = vld [vmem:[%s13279_s12 + $0x380] sm:$0xff] }
 0x558   : > { %4610 = vmatmul.mubr.f32.gmra.mxu1 %v4377_v45  ;;  %5495 = vmatprep.subr.mxu0 %v5375_v41  ;;  %v5307_v23 = vld [vmem:[%s13279_s12 + $0x398] sm:$0xff]  ;;  %v5306_v38 = vld [vmem:[%s13279_s12 + $0x390] sm:$0xff] }
 0x559   : > { %5496 = vmatpush2.msra.mxu0 %v5374_v61  ;;  %5659 = vmatpush2.msra.mxu1 %v5369_v33  ;;  %v5302_v9 = vld [vmem:[%s13279_s12 + $0x370] sm:$0xff]  ;;  %v5415_v56 = vld [vmem:[%s13279_s12 + $0x6f8] sm:$0xff] }
 0x55a   : > { %5497 = vmatprep.subr.mxu0 %v5368_v46  ;;  %5660 = vmatprep.subr.mxu1 %v5363_v36 }
 0x55b   : > { %5498 = vmatpush2.msra.mxu0 %v5367_v37  ;;  %5661 = vmatpush2.msra.mxu1 %v5362_v29 }
 0x55c   : > { %5499 = vmatprep.subr.mxu0 %v5361_v31  ;;  %5662 = vmatprep.subr.mxu1 %v5356_v57 }
 0x55d   : > { %5500 = vmatpush2.msra.mxu0 %v5360_v40  ;;  %5663 = vmatpush2.msra.mxu1 %v5355_v5 }
 0x55e   : > { %5501 = vmatprep.subr.mxu0 %v5354_v30  ;;  %5664 = vmatprep.subr.mxu1 %v5349_v34 }
 0x55f   : > { %5502 = vmatpush2.msra.mxu0 %v5353_v54  ;;  %5665 = vmatpush2.msra.mxu1 %v5348_v50 }
 0x560   : > { %5503 = vmatprep.subr.mxu0 %v5347_v24  ;;  %5666 = vmatprep.subr.mxu1 %v5342_v62 }
 0x561   : > { %5504 = vmatpush2.msra.mxu0 %v5346_v16  ;;  %5667 = vmatpush2.msra.mxu1 %v5341_v59 }
 0x562   : > { %5505 = vmatprep.subr.mxu0 %v5340_v55  ;;  %5668 = vmatprep.subr.mxu1 %v5335_v21 }
 0x563   : > { %5506 = vmatpush2.msra.mxu0 %v5339_v2  ;;  %5669 = vmatpush2.msra.mxu1 %v5334_v27 }
 0x564   : > { %5507 = vmatprep.subr.mxu0 %v5333_v10  ;;  %5670 = vmatprep.subr.mxu1 %v5328_v20 }
 0x565   : > { %5508 = vmatpush2.msra.mxu0 %v5332_v43  ;;  %5671 = vmatpush2.msra.mxu1 %v5327_v35 }
 0x566   : > { %5509 = vmatprep.subr.mxu0 %v5326_v25  ;;  %5672 = vmatprep.subr.mxu1 %v5321_v11 }
 0x567   : > { %5510 = vmatpush2.msra.mxu0 %v5325_v44  ;;  %5673 = vmatpush2.msra.mxu1 %v5320_v15 }
 0x568   : > { %5511 = vmatprep.subr.mxu0 %v5319_v52  ;;  %5674 = vmatprep.subr.mxu1 %v5314_v51 }
 0x569   : > { %5512 = vmatpush2.msra.mxu0 %v5318_v63  ;;  %5675 = vmatpush2.msra.mxu1 %v5313_v19 }
 0x56a   : > { %5513 = vmatprep.subr.mxu0 %v5312_v53  ;;  %5676 = vmatprep.subr.mxu1 %v5307_v23 }
 0x56b   : > { %5514 = vmatpush2.msra.mxu0 %v5311_v49  ;;  %5677 = vmatpush2.msra.mxu1 %v5306_v38 }
 0x56c   : > { %5515 = vmatprep.subr.mxu0 %v5305_v47  ;;  %6987 = vmatprep.subr.mxu1 %v5415_v56 }
 0x56d   : > { %5516 = vmatpush2.msra.mxu0 %v5304_v18 }
 0x56e   : > { %5775 = vmatprep.subr.mxu0 %v5302_v9 }
 0x58f   : > { %v4521_v7 = vpop.f32.mrf.mxu1 }
 0x590   : > { %v11948_v32 = vadd.f32 %v4521_v7, %v11942_v3 }
 0x591   : > { %v4523_v17 = vpop.f32.mrf.mxu1 }
 0x592   : > { %v4712_v48 = vand.u32 2147483647, %v11948_v32  ;;  %v11964_v4 = vadd.f32 %v4523_v17, %v11945_v14  ;;  %v4616_v52 = vmax.f32 %v11948_v32, 0.0  ;;  %vm4648_vm5 = vcmp.ne.f32.partialorder %v11948_v32, %v11948_v32 }
 0x594   : > { %v4744_v39 = vsub.f32 0.0, %v4712_v48  ;;  %v4713_v1 = vand.u32 2147483647, %v11964_v4  ;;  %v4617_v17 = vmax.f32 %v11964_v4, 0.0  ;;  %vm4649_vm6 = vcmp.ne.f32.partialorder %v11964_v4, %v11964_v4 }
 0x596   : > { %v4776_v0 = vmul.f32 1.442695, %v4744_v39  ;;  %v4745_v45 = vsub.f32 0.0, %v4713_v1 }
 0x598   : > { %7559 = vpow2.f32 %v4776_v0  ;;  %v4778_v58 = vmul.f32 1.442695, %v4745_v45 }
 0x59a   : > { %7561 = vpow2.f32 %v4778_v58  ;;  %v5301_v58 = vld [vmem:[%s13279_s12 + $0x368] sm:$0xff] }
 0x5a5   : > { %v7560_v12 = vpop.eup %7559 }
 0x5a6   : > { %v4840_v60 = vadd.f32 1.0, %v7560_v12  ;;  %v4527_v42 = vpop.f32.mrf.mxu1  ;;  %v4843_v31 = vmul.f32 -0.5, %v7560_v12  ;;  %v4846_v50 = vand.u32 2147483647, %v7560_v12 }
 0x5a7   : > { %v7562_v41 = vpop.eup %7561  ;;  %v11986_v13 = vadd.f32 %v4527_v42, %v11942_v3 }
 0x5a8   : > { %7563 = vlog2.f32 %v4840_v60  ;;  %v4529_v61 = vpop.f32.mrf.mxu1  ;;  %v4849_v6 = vadd.f32 1.0, %v7562_v41  ;;  %v4844_v54 = vadd.f32 1.0, %v4843_v31  ;;  %v4852_v24 = vmul.f32 -0.5, %v7562_v41  ;;  %v5288_v31 = vld [vmem:[%s13279_s12 + $0x300] sm:$0xff] }
 0x5a9   : > { %v4714_v46 = vand.u32 2147483647, %v11986_v13  ;;  %v11990_v26 = vadd.f32 %v4529_v61, %v11945_v14  ;;  %v4855_v43 = vand.u32 2147483647, %v7562_v41  ;;  %vm4847_vm3 = vcmp.lt.f32.partialorder %v4846_v50, 0.0004427343 }
 0x5aa   : > { %7565 = vlog2.f32 %v4849_v6  ;;  %v4845_v59 = vmul.f32 %v7560_v12, %v4844_v54  ;;  %v4853_v21 = vadd.f32 1.0, %v4852_v24  ;;  %v5303_v12 = vld [vmem:[%s13279_s12 + $0x378] sm:$0xff]  ;;  %v5294_v6 = vld [vmem:[%s13279_s12 + $0x330] sm:$0xff]  ;;  %vm4650_vm8 = vcmp.ne.f32.partialorder %v11986_v13, %v11986_v13 }
 0x5ab   : > { %v4746_v37 = vsub.f32 0.0, %v4714_v46  ;;  %v4715_v33 = vand.u32 2147483647, %v11990_v26  ;;  %vm4856_vm4 = vcmp.lt.f32.partialorder %v4855_v43, 0.0004427343  ;;  %v5296_v46 = vld [vmem:[%s13279_s12 + $0x340] sm:$0xff]  ;;  %vm4651_vm7 = vcmp.ne.f32.partialorder %v11990_v26, %v11990_v26 }
 0x5ac   : > { %v4854_v51 = vmul.f32 %v7562_v41, %v4853_v21  ;;  %v5408_v41 = vld [vmem:[%s13279_s12 + $0x6c0] sm:$0xff]  ;;  %v5394_v24 = vld [vmem:[%s13279_s12 + $0x650] sm:$0xff] }
 0x5ad   : > { %v4780_v36 = vmul.f32 1.442695, %v4746_v37  ;;  %v4747_v40 = vsub.f32 0.0, %v4715_v33  ;;  %v5282_v50 = vld [vmem:[%s13279_s12 + $0x2d0] sm:$0xff] }
 0x5ae   : > { %v4533_v30 = vpop.f32.mrf.mxu1 }
 0x5af   : > { %7567 = vpow2.f32 %v4780_v36  ;;  %v4782_v29 = vmul.f32 1.442695, %v4747_v40  ;;  %v11994_v57 = vadd.f32 %v4533_v30, %v11942_v3  ;;  %v5401_v36 = vld [vmem:[%s13279_s12 + $0x688] sm:$0xff]  ;;  %v5287_v40 = vld [vmem:[%s13279_s12 + $0x2f8] sm:$0xff] }
 0x5b0   : > { %v4535_v5 = vpop.f32.mrf.mxu1 }
 0x5b1   : > { %7569 = vpow2.f32 %v4782_v29  ;;  %v4716_v34 = vand.u32 2147483647, %v11994_v57  ;;  %v11998_v16 = vadd.f32 %v4535_v5, %v11945_v14  ;;  %v5289_v29 = vld [vmem:[%s13279_s12 + $0x308] sm:$0xff]  ;;  %vm4652_vm11 = vcmp.ne.f32.partialorder %v11994_v57, %v11994_v57 }
 0x5b2   : > { %v5281_v5 = vld [vmem:[%s13279_s12 + $0x2c8] sm:$0xff] }
 0x5b3   : > { %v4748_v55 = vsub.f32 0.0, %v4716_v34  ;;  %v4717_v62 = vand.u32 2147483647, %v11998_v16  ;;  %v5280_v34 = vld [vmem:[%s13279_s12 + $0x2c0] sm:$0xff]  ;;  %vm4653_vm14 = vcmp.ne.f32.partialorder %v11998_v16, %v11998_v16 }
 0x5b5   : > { %v7564_v2 = vpop.eup %7563  ;;  %v4539_v10 = vpop.f32.mrf.mxu1  ;;  %v4784_v25 = vmul.f32 1.442695, %v4748_v55  ;;  %v4749_v20 = vsub.f32 0.0, %v4717_v62 }
 0x5b6   : > { %v4842_v27 = vmul.f32 0.6931472, %v7564_v2  ;;  %v12002_v44 = vadd.f32 %v4539_v10, %v11942_v3  ;;  %v5387_v10 = vld [vmem:[%s13279_s12 + $0x618] sm:$0xff] }
 0x5b7   : > { %v7566_v28 = vpop.eup %7565  ;;  %v4541_v35 = vpop.f32.mrf.mxu1  ;;  %7571 = vpow2.f32 %v4784_v25  ;;  %v4786_v63 = vmul.f32 1.442695, %v4749_v20  ;;  %v5275_v25 = vld [vmem:[%s13279_s12 + $0x298] sm:$0xff] }
 0x5b8   : > { %v4848_v11 = vsel %vm4847_vm3, %v4845_v59, %v4842_v27  ;;  %v4718_v15 = vand.u32 2147483647, %v12002_v44  ;;  %v12007_v7 = vadd.f32 %v4541_v35, %v11945_v14  ;;  %v4851_v53 = vmul.f32 0.6931472, %v7566_v28  ;;  %v5274_v59 = vld [vmem:[%s13279_s12 + $0x290] sm:$0xff]  ;;  %v5273_v27 = vld [vmem:[%s13279_s12 + $0x288] sm:$0xff] }
 0x5b9   : > { %v5128_v49 = vadd.f32 %v4848_v11, %v4616_v52  ;;  %7573 = vpow2.f32 %v4786_v63  ;;  %v5267_v35 = vld [vmem:[%s13279_s12 + $0x258] sm:$0xff]  ;;  %v5380_v52 = vld [vmem:[%s13279_s12 + $0x5e0] sm:$0xff]  ;;  %vm4654_vm3 = vcmp.ne.f32.partialorder %v12002_v44, %v12002_v44 }
 0x5ba   : > { %v4750_v19 = vsub.f32 0.0, %v4718_v15  ;;  %v4719_v48 = vand.u32 2147483647, %v12007_v7  ;;  %v4857_v47 = vsel %vm4856_vm4, %v4854_v51, %v4851_v53  ;;  %v5266_v15 = vld [vmem:[%s13279_s12 + $0x250] sm:$0xff]  ;;  %v5268_v53 = vld [vmem:[%s13279_s12 + $0x260] sm:$0xff]  ;;  %vm4655_vm2 = vcmp.ne.f32.partialorder %v12007_v7, %v12007_v7 }
 0x5bb   : > { %v5129_v18 = vadd.f32 %v4857_v47, %v4617_v17  ;;  %v12024_v45 = vsel %vm4648_vm5, %v11948_v32, %v5128_v49  ;;  %v5295_v32 = vld [vmem:[%s13279_s12 + $0x338] sm:$0xff]  ;;  %v5260_v51 = vld [vmem:[%s13279_s12 + $0x220] sm:$0xff]  ;;  %v5373_v49 = vld [vmem:[%s13279_s12 + $0x5a8] sm:$0xff] }
 0x5bc   : > { %v12011_v23 = vpop.eup %7567  ;;  %v4788_v38 = vmul.f32 1.442695, %v4750_v19  ;;  %v4751_v39 = vsub.f32 0.0, %v4719_v48  ;;  %v5259_v48 = vld [vmem:[%s13279_s12 + $0x218] sm:$0xff]  ;;  %v5261_v47 = vld [vmem:[%s13279_s12 + $0x228] sm:$0xff] }
 0x5bd   : > { %v4858_v1 = vadd.f32 1.0, %v12011_v23  ;;  %v4545_v56 = vpop.f32.mrf.mxu1  ;;  %v12021_v0 = vsel %vm4649_vm6, %v11964_v4, %v5129_v18  ;;  %v4861_v21 = vmul.f32 -0.5, %v12011_v23  ;;  %v4864_v18 = vand.u32 2147483647, %v12011_v23 }
 0x5be   : > { %v12018_v9 = vpop.eup %7569  ;;  %7575 = vpow2.f32 %v4788_v38  ;;  %v4790_v60 = vmul.f32 1.442695, %v4751_v39  ;;  %v12033_v42 = vadd.f32 %v4545_v56, %v11942_v3  ;;  %5517 = vmatprep.mubr.f32.mxu0 %v12021_v0  ;;  %5678 = vmatprep.mubr.f32.mxu1 %v12021_v0  ;;  %v5253_v38 = vld [vmem:[%s13279_s12 + $0x1e8] sm:$0xff]  ;;  %v5366_v39 = vld [vmem:[%s13279_s12 + $0x570] sm:$0xff]  ;;  %v4618_v56 = vmax.f32 %v11986_v13, 0.0 }
 0x5bf   : > { %v4867_v4 = vadd.f32 1.0, %v12018_v9  ;;  %v4547_v61 = vpop.f32.mrf.mxu1  ;;  %5518 = vmatmul.mubr.f32.vlgmr.msra.gmra.mxu0 %v12024_v45  ;;  %5679 = vmatmul.mubr.f32.vlgmr.msra.gmra.mxu1 %v12024_v45  ;;  %7577 = vlog2.f32 %v4858_v1  ;;  %v4870_v11 = vmul.f32 -0.5, %v12018_v9  ;;  %v4873_v17 = vand.u32 2147483647, %v12018_v9 }
 0x5c0   : > { %7579 = vpow2.f32 %v4790_v60  ;;  %v4720_v37 = vand.u32 2147483647, %v12033_v42  ;;  %v12054_v33 = vadd.f32 %v4547_v61, %v11945_v14  ;;  %5776 = vmatpush1.msra.mxu0 %v5301_v58  ;;  %6988 = vmatpush3.msra.mxu1 %v5303_v12  ;;  %v4862_v19 = vadd.f32 1.0, %v4861_v21  ;;  %v5252_v12 = vld [vmem:[%s13279_s12 + $0x1e0] sm:$0xff]  ;;  %v5254_v60 = vld [vmem:[%s13279_s12 + $0x1f0] sm:$0xff] }
 0x5c1   : > { %5777 = vmatprep.subr.mxu0 %v5295_v32  ;;  %7581 = vlog2.f32 %v4867_v4  ;;  %6989 = vmatprep.subr.mxu1 %v5408_v41  ;;  %v4871_v58 = vadd.f32 1.0, %v4870_v11  ;;  %v4619_v4 = vmax.f32 %v11990_v26, 0.0  ;;  %vm12160_vm9 = vcmp.lt.f32.partialorder %v4873_v17, 0.0004427343  ;;  %v5231_v17 = vld [vmem:[%s13279_s12 + $0x138] sm:$0xff] }
 0x5c2   : > { %v4752_v30 = vsub.f32 0.0, %v4720_v37  ;;  %v4721_v54 = vand.u32 2147483647, %v12054_v33  ;;  %5778 = vmatpush1.msra.mxu0 %v5294_v6  ;;  %6990 = vmatpush3.msra.mxu1 %v5296_v46  ;;  %v5246_v46 = vld [vmem:[%s13279_s12 + $0x1b0] sm:$0xff]  ;;  %v5359_v37 = vld [vmem:[%s13279_s12 + $0x538] sm:$0xff]  ;;  %vm4657_vm6 = vcmp.ne.f32.partialorder %v12054_v33, %v12054_v33 }
 0x5c3   : > { %5779 = vmatprep.subr.mxu0 %v5288_v31  ;;  %6991 = vmatprep.subr.mxu1 %v5401_v36  ;;  %vm12171_vm10 = vcmp.lt.f32.partialorder %v4864_v18, 0.0004427343 }
 0x5c4   : > { %v12081_v55 = vpop.eup %7571  ;;  %v4792_v62 = vmul.f32 1.442695, %v4752_v30  ;;  %v4753_v2 = vsub.f32 0.0, %v4721_v54  ;;  %5780 = vmatpush1.msra.mxu0 %v5287_v40  ;;  %6992 = vmatpush3.msra.mxu1 %v5289_v29  ;;  %v4863_v30 = vmul.f32 %v12011_v23, %v4862_v19  ;;  %v5245_v54 = vld [vmem:[%s13279_s12 + $0x1a8] sm:$0xff] }
 0x5c5   : > { %5781 = vmatprep.subr.mxu0 %v5281_v5  ;;  %v4876_v43 = vadd.f32 1.0, %v12081_v55  ;;  %6993 = vmatprep.subr.mxu1 %v5394_v24  ;;  %v4879_v61 = vmul.f32 -0.5, %v12081_v55  ;;  %v5247_v5 = vld [vmem:[%s13279_s12 + $0x1b8] sm:$0xff]  ;;  %v4882_v11 = vand.u32 2147483647, %v12081_v55  ;;  %v5233_v19 = vld [vmem:[%s13279_s12 + $0x148] sm:$0xff] }
 0x5c6   : > { %v12097_v20 = vpop.eup %7573  ;;  %7583 = vpow2.f32 %v4792_v62  ;;  %v4794_v28 = vmul.f32 1.442695, %v4753_v2  ;;  %5782 = vmatpush1.msra.mxu0 %v5280_v34  ;;  %6994 = vmatpush3.msra.mxu1 %v5282_v50  ;;  %v5239_v2 = vld [vmem:[%s13279_s12 + $0x178] sm:$0xff] }
 0x5c7   : > { %v4885_v63 = vadd.f32 1.0, %v12097_v20  ;;  %7585 = vlog2.f32 %v4876_v43  ;;  %5783 = vmatprep.subr.mxu0 %v5274_v59  ;;  %6995 = vmatprep.subr.mxu1 %v5387_v10  ;;  %v4888_v62 = vmul.f32 -0.5, %v12097_v20  ;;  %v5352_v59 = vld [vmem:[%s13279_s12 + $0x500] sm:$0xff]  ;;  %vm12227_vm12 = vcmp.lt.f32.partialorder %v4882_v11, 0.0004427343 }
 0x5c8   : > { %7587 = vpow2.f32 %v4794_v28  ;;  %5784 = vmatpush1.msra.mxu0 %v5273_v27  ;;  %6996 = vmatpush3.msra.mxu1 %v5275_v25  ;;  %v4872_v27 = vmul.f32 %v12018_v9, %v4871_v58  ;;  %v5238_v25 = vld [vmem:[%s13279_s12 + $0x170] sm:$0xff]  ;;  %v5240_v28 = vld [vmem:[%s13279_s12 + $0x180] sm:$0xff]  ;;  %v4621_v58 = vmax.f32 %v11998_v16, 0.0 }
 0x5c9   : > { %7589 = vlog2.f32 %v4885_v63  ;;  %5785 = vmatprep.subr.mxu0 %v5267_v35  ;;  %6997 = vmatprep.subr.mxu1 %v5380_v52  ;;  %v4880_v52 = vadd.f32 1.0, %v4879_v61  ;;  %v5232_v9 = vld [vmem:[%s13279_s12 + $0x140] sm:$0xff]  ;;  %v5345_v63 = vld [vmem:[%s13279_s12 + $0x4c8] sm:$0xff]  ;;  %v4889_v18 = vadd.f32 1.0, %v4888_v62 }
 0x5ca   : > { %5786 = vmatpush1.msra.mxu0 %v5266_v15  ;;  %6998 = vmatpush3.msra.mxu1 %v5268_v53  ;;  %v4620_v15 = vmax.f32 %v11994_v57, 0.0  ;;  %v5317_v61 = vld [vmem:[%s13279_s12 + $0x3e8] sm:$0xff] }
 0x5cb   : > { %v12133_v1 = vpop.eup %7575  ;;  %5787 = vmatprep.subr.mxu0 %v5260_v51  ;;  %6999 = vmatprep.subr.mxu1 %v5373_v49  ;;  %v4551_v41 = vpop.f32.mrf.mxu1 }
 0x5cc   : > { %v7578_v32 = vpop.eup %7577  ;;  %v4894_v6 = vadd.f32 1.0, %v12133_v1  ;;  %5788 = vmatpush1.msra.mxu0 %v5259_v48  ;;  %7000 = vmatpush3.msra.mxu1 %v5261_v47  ;;  %v12158_v36 = vadd.f32 %v4551_v41, %v11942_v3 }
 0x5cd   : > { %v12155_v31 = vpop.eup %7579  ;;  %v4860_v29 = vmul.f32 0.6931472, %v7578_v32  ;;  %5789 = vmatprep.subr.mxu0 %v5253_v38  ;;  %7001 = vmatprep.subr.mxu1 %v5366_v39  ;;  %v4553_v34 = vpop.f32.mrf.mxu1  ;;  %v4897_v38 = vmul.f32 -0.5, %v12133_v1  ;;  %v4891_v32 = vand.u32 2147483647, %v12097_v20 }
 0x5ce   : > { %v7582_v24 = vpop.eup %7581  ;;  %v4903_v23 = vadd.f32 1.0, %v12155_v31  ;;  %7591 = vlog2.f32 %v4894_v6  ;;  %5790 = vmatpush1.msra.mxu0 %v5252_v12  ;;  %7002 = vmatpush3.msra.mxu1 %v5254_v60  ;;  %v4722_v10 = vand.u32 2147483647, %v12158_v36  ;;  %v12185_v21 = vadd.f32 %v4553_v34, %v11945_v14 }
 0x5cf   : > { %v4869_v43 = vmul.f32 0.6931472, %v7582_v24  ;;  %5791 = vmatprep.subr.mxu0 %v5246_v46  ;;  %7003 = vmatprep.subr.mxu1 %v5359_v37  ;;  %v4866_v35 = vsel %vm12171_vm10, %v4863_v30, %v4860_v29  ;;  %v4906_v6 = vmul.f32 -0.5, %v12155_v31  ;;  %v5225_v46 = vld [vmem:[%s13279_s12 + $0x108] sm:$0xff]  ;;  %v4898_v50 = vadd.f32 1.0, %v4897_v38 }
 0x5d0   : > { %7593 = vlog2.f32 %v4903_v23  ;;  %5792 = vmatpush1.msra.mxu0 %v5245_v54  ;;  %7004 = vmatpush3.msra.mxu1 %v5247_v5  ;;  %v4754_v53 = vsub.f32 0.0, %v4722_v10  ;;  %v4723_v51 = vand.u32 2147483647, %v12185_v21  ;;  %v5130_v47 = vadd.f32 %v4866_v35, %v4618_v56  ;;  %v5224_v54 = vld [vmem:[%s13279_s12 + $0x100] sm:$0xff]  ;;  %v5226_v5 = vld [vmem:[%s13279_s12 + $0x110] sm:$0xff] }
 0x5d1   : > { %v4875_v49 = vsel %vm12160_vm9, %v4872_v27, %v4869_v43  ;;  %5793 = vmatprep.subr.mxu0 %v5239_v2  ;;  %7005 = vmatprep.subr.mxu1 %v5352_v59  ;;  %v5218_v23 = vld [vmem:[%s13279_s12 + $0xd0] sm:$0xff]  ;;  %v5217_v2 = vld [vmem:[%s13279_s12 + $0xc8] sm:$0xff]  ;;  %v5331_v59 = vld [vmem:[%s13279_s12 + $0x458] sm:$0xff]  ;;  %vm4892_vm13 = vcmp.lt.f32.partialorder %v4891_v32, 0.0004427343  ;;  %vm4659_vm10 = vcmp.ne.f32.partialorder %v12185_v21, %v12185_v21 }
 0x5d2   : > { %v5131_v48 = vadd.f32 %v4875_v49, %v4619_v4  ;;  %5794 = vmatpush1.msra.mxu0 %v5238_v25  ;;  %7006 = vmatpush3.msra.mxu1 %v5240_v28  ;;  %v4796_v12 = vmul.f32 1.442695, %v4754_v53  ;;  %v4755_v60 = vsub.f32 0.0, %v4723_v51  ;;  %v4881_v4 = vmul.f32 %v12081_v55, %v4880_v52  ;;  %v4557_v40 = vpop.f32.mrf.mxu1  ;;  %v5211_v25 = vld [vmem:[%s13279_s12 + $0x98] sm:$0xff]  ;;  %v5324_v35 = vld [vmem:[%s13279_s12 + $0x420] sm:$0xff]  ;;  %v5210_v49 = vld [vmem:[%s13279_s12 + $0x90] sm:$0xff] }
 0x5d3   : > { %v12214_v39 = vpop.eup %7583  ;;  %5795 = vmatprep.subr.mxu0 %v5232_v9  ;;  %7007 = vmatprep.subr.mxu1 %v5345_v63  ;;  %v12246_v29 = vsel %vm4650_vm8, %v11986_v13, %v5130_v47  ;;  %v12255_v34 = vadd.f32 %v4557_v40, %v11942_v3  ;;  %v4890_v13 = vmul.f32 %v12097_v20, %v4889_v18  ;;  %v5219_v28 = vld [vmem:[%s13279_s12 + $0xd8] sm:$0xff]  ;;  %v4900_v9 = vand.u32 2147483647, %v12133_v1  ;;  %v5205_v40 = vld [vmem:[%s13279_s12 + $0x68] sm:$0xff] }
 0x5d4   : > { %v7586_v41 = vpop.eup %7585  ;;  %v12222_v56 = vsel %vm4651_vm7, %v11990_v26, %v5131_v48  ;;  %5796 = vmatpush1.msra.mxu0 %v5231_v17  ;;  %7008 = vmatpush3.msra.mxu1 %v5233_v19  ;;  %v5338_v26 = vld [vmem:[%s13279_s12 + $0x490] sm:$0xff]  ;;  %7595 = vpow2.f32 %v4796_v12  ;;  %v4798_v55 = vmul.f32 1.442695, %v4755_v60  ;;  %v4559_v10 = vpop.f32.mrf.mxu1  ;;  %v4912_v27 = vadd.f32 1.0, %v12214_v39  ;;  %v5212_v17 = vld [vmem:[%s13279_s12 + $0xa0] sm:$0xff] }
 0x5d5   : > { %v12238_v37 = vpop.eup %7587  ;;  %5523 = vmatprep.mubr.f32.mxu0 %v12222_v56  ;;  %5684 = vmatprep.mubr.f32.mxu1 %v12222_v56  ;;  %v4878_v30 = vmul.f32 0.6931472, %v7586_v41  ;;  %v4724_v52 = vand.u32 2147483647, %v12255_v34  ;;  %v12284_v11 = vadd.f32 %v4559_v10, %v11945_v14  ;;  %v4907_v51 = vadd.f32 1.0, %v4906_v6  ;;  %v5204_v60 = vld [vmem:[%s13279_s12 + $0x60] sm:$0xff] }
 0x5d6   : > { %v7590_v24 = vpop.eup %7589  ;;  %5524 = vmatmul.mubr.f32.gmra.mxu0 %v12246_v29  ;;  %5685 = vmatmul.mubr.f32.gmra.mxu1 %v12246_v29  ;;  %v4921_v62 = vadd.f32 1.0, %v12238_v37  ;;  %7597 = vpow2.f32 %v4798_v55  ;;  %v4622_v18 = vmax.f32 %v12002_v44, 0.0  ;;  %v4909_v38 = vand.u32 2147483647, %v12155_v31  ;;  %v5203_v55 = vld [vmem:[%s13279_s12 + $0x58] sm:$0xff]  ;;  %v5414_v10 = vld [vmem:[%s13279_s12 + $0x6f0] sm:$0xff] }
 0x5d7   : > { %v4887_v43 = vmul.f32 0.6931472, %v7590_v24  ;;  %v4884_v20 = vsel %vm12227_vm12, %v4881_v4, %v4878_v30  ;;  %5797 = vmatprep.subr.mxu0 %v5225_v46  ;;  %7009 = vmatprep.subr.mxu1 %v5338_v26  ;;  %v4756_v19 = vsub.f32 0.0, %v4724_v52  ;;  %v4725_v48 = vand.u32 2147483647, %v12284_v11  ;;  %v5393_v46 = vld [vmem:[%s13279_s12 + $0x648] sm:$0xff] }
 0x5d8   : > { %5798 = vmatpush1.msra.mxu0 %v5224_v54  ;;  %7010 = vmatpush3.msra.mxu1 %v5226_v5  ;;  %v5132_v53 = vadd.f32 %v4884_v20, %v4620_v15  ;;  %7599 = vlog2.f32 %v4921_v62  ;;  %v4899_v12 = vmul.f32 %v12133_v1, %v4898_v50  ;;  %vm12321_vm15 = vcmp.lt.f32.partialorder %v4900_v9, 0.0004427343  ;;  %v5197_v54 = vld [vmem:[%s13279_s12 + $0x28] sm:$0xff]  ;;  %v5310_v5 = vld [vmem:[%s13279_s12 + $0x3b0] sm:$0xff] }
 0x5d9   : > { %v4893_v63 = vsel %vm4892_vm13, %v4890_v13, %v4887_v43  ;;  %5799 = vmatprep.subr.mxu0 %v5218_v23  ;;  %7011 = vmatprep.subr.mxu1 %v5331_v59  ;;  %7601 = vlog2.f32 %v4912_v27  ;;  %v4800_v32 = vmul.f32 1.442695, %v4756_v19  ;;  %v4757_v41 = vsub.f32 0.0, %v4725_v48  ;;  %v5196_v13 = vld [vmem:[%s13279_s12 + $0x20] sm:$0xff]  ;;  %v5198_v50 = vld [vmem:[%s13279_s12 + $0x30] sm:$0xff]  ;;  %v5407_v19 = vld [vmem:[%s13279_s12 + $0x6b8] sm:$0xff] }
 0x5da   : > { %v5133_v15 = vadd.f32 %v4893_v63, %v4621_v58  ;;  %5800 = vmatpush1.msra.mxu0 %v5217_v2  ;;  %7012 = vmatpush3.msra.mxu1 %v5219_v28  ;;  %v12318_v6 = vsel %vm4652_vm11, %v11994_v57, %v5132_v53  ;;  %v4924_v26 = vmul.f32 -0.5, %v12238_v37  ;;  %v4623_v24 = vmax.f32 %v12007_v7, 0.0  ;;  %v5413_v63 = vld [vmem:[%s13279_s12 + $0x6e8] sm:$0xff] }
 0x5db   : > { %v7592_v47 = vpop.eup %7591  ;;  %5801 = vmatprep.subr.mxu0 %v5211_v25  ;;  %7013 = vmatprep.subr.mxu1 %v5324_v35  ;;  %7603 = vpow2.f32 %v4800_v32  ;;  %v4802_v30 = vmul.f32 1.442695, %v4757_v41  ;;  %vm4910_vm1 = vcmp.lt.f32.partialorder %v4909_v38, 0.0004427343  ;;  %v4915_v59 = vmul.f32 -0.5, %v12214_v39 }
 0x5dc   : > { %v12307_v58 = vsel %vm4653_vm14, %v11998_v16, %v5133_v15  ;;  %v4896_v4 = vmul.f32 0.6931472, %v7592_v47  ;;  %5802 = vmatpush1.msra.mxu0 %v5210_v49  ;;  %7014 = vmatpush3.msra.mxu1 %v5212_v17  ;;  %v4908_v16 = vmul.f32 %v12155_v31, %v4907_v51  ;;  %v4563_v62 = vpop.f32.mrf.mxu1  ;;  %v4925_v28 = vadd.f32 1.0, %v4924_v26 }
 0x5dd   : > { %v7594_v1 = vpop.eup %7593  ;;  %5529 = vmatprep.mubr.f32.mxu0 %v12307_v58  ;;  %5690 = vmatprep.mubr.f32.mxu1 %v12307_v58  ;;  %7605 = vpow2.f32 %v4802_v30  ;;  %v12354_v43 = vadd.f32 %v4563_v62, %v11942_v3  ;;  %v4916_v49 = vadd.f32 1.0, %v4915_v59  ;;  %v5386_v62 = vld [vmem:[%s13279_s12 + $0x610] sm:$0xff]  ;;  %vm4656_vm7 = vcmp.ne.f32.partialorder %v12033_v42, %v12033_v42 }
 0x5de   : > { %5530 = vmatmul.mubr.f32.gmra.mxu0 %v12318_v6  ;;  %5691 = vmatmul.mubr.f32.gmra.mxu1 %v12318_v6  ;;  %v4905_v57 = vmul.f32 0.6931472, %v7594_v1  ;;  %v4902_v31 = vsel %vm12321_vm15, %v4899_v12, %v4896_v4  ;;  %v4565_v25 = vpop.f32.mrf.mxu1  ;;  %v4926_v38 = vmul.f32 %v12238_v37, %v4925_v28  ;;  %v4918_v12 = vand.u32 2147483647, %v12214_v39 }
 0x5df   : > { %5803 = vmatprep.subr.mxu0 %v5204_v60  ;;  %7015 = vmatprep.subr.mxu1 %v5317_v61  ;;  %v5134_v2 = vadd.f32 %v4902_v31, %v4622_v18  ;;  %v4726_v35 = vand.u32 2147483647, %v12354_v43  ;;  %v12362_v52 = vadd.f32 %v4565_v25, %v11945_v14  ;;  %v5400_v60 = vld [vmem:[%s13279_s12 + $0x680] sm:$0xff]  ;;  %v5399_v61 = vld [vmem:[%s13279_s12 + $0x678] sm:$0xff]  ;;  %vm4658_vm11 = vcmp.ne.f32.partialorder %v12158_v36, %v12158_v36 }
 0x5e0   : > { %v4911_v23 = vsel %vm4910_vm1, %v4908_v16, %v4905_v57  ;;  %5804 = vmatpush1.msra.mxu0 %v5203_v55  ;;  %7016 = vmatpush3.msra.mxu1 %v5205_v40  ;;  %v4917_v16 = vmul.f32 %v12214_v39, %v4916_v49  ;;  %v5392_v57 = vld [vmem:[%s13279_s12 + $0x640] sm:$0xff]  ;;  %vm12410_vm5 = vcmp.lt.f32.partialorder %v4918_v12, 0.0004427343  ;;  %v5371_v12 = vld [vmem:[%s13279_s12 + $0x598] sm:$0xff]  ;;  %vm4661_vm14 = vcmp.ne.f32.partialorder %v12284_v11, %v12284_v11 }
 0x5e1   : > { %v5135_v20 = vadd.f32 %v4911_v23, %v4623_v24  ;;  %5805 = vmatprep.subr.mxu0 %v5197_v54  ;;  %7017 = vmatprep.subr.mxu1 %v5310_v5  ;;  %v12356_v27 = vpop.eup %7595  ;;  %v12377_v51 = vsel %vm4654_vm3, %v12002_v44, %v5134_v2  ;;  %v4758_v48 = vsub.f32 0.0, %v4726_v35  ;;  %v4727_v15 = vand.u32 2147483647, %v12362_v52  ;;  %v5406_v44 = vld [vmem:[%s13279_s12 + $0x6b0] sm:$0xff] }
 0x5e2   : > { %5806 = vmatpush1.msra.mxu0 %v5196_v13  ;;  %7018 = vmatpush3.msra.mxu1 %v5198_v50  ;;  %v4930_v17 = vadd.f32 1.0, %v12356_v27  ;;  %v4624_v24 = vmax.f32 %v12033_v42, 0.0  ;;  %vm4660_vm15 = vcmp.ne.f32.partialorder %v12255_v34, %v12255_v34  ;;  %vm4662_vm1 = vcmp.ne.f32.partialorder %v12354_v43, %v12354_v43 }
 0x5e3   : > { %v12365_v9 = vsel %vm4655_vm2, %v12007_v7, %v5135_v20  ;;  %5807 = vmatprep.subr.mxu0 %v5414_v10  ;;  %v12372_v53 = vpop.eup %7597  ;;  %v4927_v7 = vand.u32 2147483647, %v12238_v37  ;;  %v4804_v32 = vmul.f32 1.442695, %v4758_v48  ;;  %v4759_v41 = vsub.f32 0.0, %v4727_v15  ;;  %v5385_v20 = vld [vmem:[%s13279_s12 + $0x608] sm:$0xff] }
 0x5e4   : > { %5535 = vmatprep.mubr.f32.mxu0 %v12365_v9  ;;  %5696 = vmatprep.mubr.f32.mxu1 %v12365_v9  ;;  %v4939_v47 = vadd.f32 1.0, %v12372_v53  ;;  %7607 = vlog2.f32 %v4930_v17  ;;  %v4625_v37 = vmax.f32 %v12054_v33, 0.0  ;;  %v4933_v10 = vmul.f32 -0.5, %v12356_v27  ;;  %v5379_v17 = vld [vmem:[%s13279_s12 + $0x5d8] sm:$0xff]  ;;  %v5378_v15 = vld [vmem:[%s13279_s12 + $0x5d0] sm:$0xff] }
 0x5e5   : > { %5536 = vmatmul.mubr.f32.gmra.mxu0 %v12377_v51  ;;  %5697 = vmatmul.mubr.f32.gmra.mxu1 %v12377_v51  ;;  %v7600_v18 = vpop.eup %7599  ;;  %vm4928_vm4 = vcmp.lt.f32.partialorder %v4927_v7, 0.0004427343  ;;  %v4806_v26 = vmul.f32 1.442695, %v4759_v41  ;;  %v4942_v35 = vmul.f32 -0.5, %v12372_v53  ;;  %v5365_v41 = vld [vmem:[%s13279_s12 + $0x568] sm:$0xff]  ;;  %vm4663_vm2 = vcmp.ne.f32.partialorder %v12362_v52, %v12362_v52 }
 0x5e6   : > { %5808 = vmatpush2.msra.mxu0 %v5413_v63  ;;  %v4923_v4 = vmul.f32 0.6931472, %v7600_v18  ;;  %7609 = vlog2.f32 %v4939_v47  ;;  %v7602_v1 = vpop.eup %7601  ;;  %v4936_v48 = vand.u32 2147483647, %v12356_v27  ;;  %v4934_v18 = vadd.f32 1.0, %v4933_v10 }
 0x5e7   : > { %5809 = vmatprep.subr.mxu0 %v5407_v19  ;;  %7611 = vpow2.f32 %v4804_v32  ;;  %v4569_v55 = vpop.f32.mrf.mxu1  ;;  %v4914_v30 = vmul.f32 0.6931472, %v7602_v1  ;;  %v4945_v32 = vand.u32 2147483647, %v12372_v53  ;;  %v5364_v1 = vld [vmem:[%s13279_s12 + $0x560] sm:$0xff] }
 0x5e8   : > { %5810 = vmatpush2.msra.mxu0 %v5406_v44  ;;  %v4929_v40 = vsel %vm4928_vm4, %v4926_v38, %v4923_v4  ;;  %v12408_v31 = vadd.f32 %v4569_v55, %v11942_v3  ;;  %v12414_v5 = vpop.eup %7603  ;;  %7613 = vpow2.f32 %v4806_v26  ;;  %v4943_v38 = vadd.f32 1.0, %v4942_v35  ;;  %v5350_v35 = vld [vmem:[%s13279_s12 + $0x4f0] sm:$0xff] }
 0x5e9   : > { %5811 = vmatprep.subr.mxu0 %v5400_v60  ;;  %v5137_v54 = vadd.f32 %v4929_v40, %v4625_v37  ;;  %v4571_v13 = vpop.f32.mrf.mxu1  ;;  %v4920_v50 = vsel %vm12410_vm5, %v4917_v16, %v4914_v30  ;;  %v4948_v63 = vadd.f32 1.0, %v12414_v5  ;;  %v4935_v26 = vmul.f32 %v12356_v27, %v4934_v18  ;;  %v5358_v40 = vld [vmem:[%s13279_s12 + $0x530] sm:$0xff]  ;;  %v5357_v27 = vld [vmem:[%s13279_s12 + $0x528] sm:$0xff] }
 0x5ea   : > { %5812 = vmatpush2.msra.mxu0 %v5399_v61  ;;  %v4728_v23 = vand.u32 2147483647, %v12408_v31  ;;  %v12426_v2 = vadd.f32 %v4571_v13, %v11945_v14  ;;  %v12435_v25 = vpop.eup %7605  ;;  %v5136_v28 = vadd.f32 %v4920_v50, %v4624_v24  ;;  %v4626_v61 = vmax.f32 %v12158_v36, 0.0 }
 0x5eb   : > { %5813 = vmatprep.subr.mxu0 %v5393_v46  ;;  %v12429_v59 = vsel %vm4657_vm6, %v12054_v33, %v5137_v54  ;;  %v4957_v49 = vadd.f32 1.0, %v12435_v25  ;;  %7615 = vlog2.f32 %v4948_v63  ;;  %vm12472_vm8 = vcmp.lt.f32.partialorder %v4936_v48, 0.0004427343 }
 0x5ec   : > { %5814 = vmatpush2.msra.mxu0 %v5392_v57  ;;  %5541 = vmatprep.mubr.f32.mxu0 %v12429_v59  ;;  %v4760_v33 = vsub.f32 0.0, %v4728_v23  ;;  %v4729_v7 = vand.u32 2147483647, %v12426_v2  ;;  %v12449_v19 = vsel %vm4656_vm7, %v12033_v42, %v5136_v28  ;;  %v5372_v42 = vld [vmem:[%s13279_s12 + $0x5a0] sm:$0xff]  ;;  %v4944_v54 = vmul.f32 %v12372_v53, %v4943_v38  ;;  %v5351_v53 = vld [vmem:[%s13279_s12 + $0x4f8] sm:$0xff] }
 0x5ed   : > { %5702 = vmatprep.mubr.f32.mxu1 %v12429_v59  ;;  %5815 = vmatprep.subr.mxu0 %v5386_v62  ;;  %7617 = vlog2.f32 %v4957_v49  ;;  %v4951_v39 = vmul.f32 -0.5, %v12414_v5  ;;  %v4627_v13 = vmax.f32 %v12185_v21, 0.0  ;;  %vm4946_vm9 = vcmp.lt.f32.partialorder %v4945_v32, 0.0004427343 }
 0x5ee   : > { %5816 = vmatpush2.msra.mxu0 %v5385_v20  ;;  %v4808_v47 = vmul.f32 1.442695, %v4760_v33  ;;  %v4761_v44 = vsub.f32 0.0, %v4729_v7  ;;  %5703 = vmatmul.mubr.f32.gmra.mxu1 %v12449_v19  ;;  %v4960_v23 = vmul.f32 -0.5, %v12435_v25  ;;  %v4954_v49 = vand.u32 2147483647, %v12414_v5 }
 0x5ef   : > { %5542 = vmatmul.mubr.f32.gmra.mxu0 %v12449_v19  ;;  %5817 = vmatprep.subr.mxu0 %v5379_v17  ;;  %v4963_v38 = vand.u32 2147483647, %v12435_v25  ;;  %vm4665_vm7 = vcmp.ne.f32.partialorder %v12426_v2, %v12426_v2 }
 0x5f0   : > { %7619 = vpow2.f32 %v4808_v47  ;;  %v4810_v60 = vmul.f32 1.442695, %v4761_v44  ;;  %5818 = vmatpush2.msra.mxu0 %v5378_v15  ;;  %v4575_v16 = vpop.f32.mrf.mxu1  ;;  %v4952_v47 = vadd.f32 1.0, %v4951_v39  ;;  %vm12538_vm12 = vcmp.lt.f32.partialorder %v4954_v49, 0.0004427343 }
 0x5f1   : > { %v7608_v4 = vpop.eup %7607  ;;  %5819 = vmatprep.subr.mxu0 %v5372_v42  ;;  %v12480_v30 = vadd.f32 %v4575_v16, %v11942_v3  ;;  %v4961_v42 = vadd.f32 1.0, %v4960_v23  ;;  %vm4964_vm13 = vcmp.lt.f32.partialorder %v4963_v38, 0.0004427343  ;;  %v5322_v38 = vld [vmem:[%s13279_s12 + $0x410] sm:$0xff] }
 0x5f2   : > { %7621 = vpow2.f32 %v4810_v60  ;;  %v4932_v46 = vmul.f32 0.6931472, %v7608_v4  ;;  %5820 = vmatpush2.msra.mxu0 %v5371_v12  ;;  %v4577_v50 = vpop.f32.mrf.mxu1  ;;  %v5344_v12 = vld [vmem:[%s13279_s12 + $0x4c0] sm:$0xff]  ;;  %v4953_v55 = vmul.f32 %v12414_v5, %v4952_v47  ;;  %v4629_v5 = vmax.f32 %v12284_v11, 0.0 }
 0x5f3   : > { %v7610_v37 = vpop.eup %7609  ;;  %5821 = vmatprep.subr.mxu0 %v5365_v41  ;;  %v4730_v10 = vand.u32 2147483647, %v12480_v30  ;;  %v12498_v20 = vadd.f32 %v4577_v50, %v11945_v14  ;;  %v5343_v41 = vld [vmem:[%s13279_s12 + $0x4b8] sm:$0xff]  ;;  %v4962_v39 = vmul.f32 %v12435_v25, %v4961_v42  ;;  %v5329_v25 = vld [vmem:[%s13279_s12 + $0x448] sm:$0xff] }
 0x5f4   : > { %v4941_v57 = vmul.f32 0.6931472, %v7610_v37  ;;  %v12487_v24 = vpop.eup %7611  ;;  %v4938_v62 = vsel %vm12472_vm8, %v4935_v26, %v4932_v46  ;;  %5822 = vmatpush2.msra.mxu0 %v5364_v1  ;;  %v5337_v1 = vld [vmem:[%s13279_s12 + $0x488] sm:$0xff]  ;;  %vm4664_vm8 = vcmp.ne.f32.partialorder %v12408_v31, %v12408_v31 }
 0x5f5   : > { %5823 = vmatprep.subr.mxu0 %v5358_v40  ;;  %v12505_v63 = vpop.eup %7613  ;;  %v5138_v7 = vadd.f32 %v4938_v62, %v4626_v61  ;;  %v4966_v17 = vadd.f32 1.0, %v12487_v24  ;;  %v4762_v48 = vsub.f32 0.0, %v4730_v10  ;;  %v4731_v15 = vand.u32 2147483647, %v12498_v20 }
 0x5f6   : > { %v4947_v28 = vsel %vm4946_vm9, %v4944_v54, %v4941_v57  ;;  %5824 = vmatpush2.msra.mxu0 %v5357_v27  ;;  %v4975_v44 = vadd.f32 1.0, %v12505_v63  ;;  %v4628_v61 = vmax.f32 %v12255_v34, 0.0  ;;  %v5330_v27 = vld [vmem:[%s13279_s12 + $0x450] sm:$0xff] }
 0x5f7   : > { %v5139_v33 = vadd.f32 %v4947_v28, %v4627_v13  ;;  %5825 = vmatprep.subr.mxu0 %v5351_v53  ;;  %v4812_v60 = vmul.f32 1.442695, %v4762_v48  ;;  %v4763_v32 = vsub.f32 0.0, %v4731_v15  ;;  %v4978_v28 = vmul.f32 -0.5, %v12505_v63 }
 0x5f8   : > { %5826 = vmatpush2.msra.mxu0 %v5350_v35  ;;  %7623 = vlog2.f32 %v4975_v44  ;;  %v7616_v4 = vpop.eup %7615  ;;  %v5323_v35 = vld [vmem:[%s13279_s12 + $0x418] sm:$0xff]  ;;  %v4969_v15 = vmul.f32 -0.5, %v12487_v24 }
 0x5f9   : > { %v12512_v18 = vsel %vm4659_vm10, %v12185_v21, %v5139_v33  ;;  %v12523_v21 = vsel %vm4658_vm11, %v12158_v36, %v5138_v7  ;;  %7625 = vlog2.f32 %v4966_v17  ;;  %v5336_v36 = vld [vmem:[%s13279_s12 + $0x480] sm:$0xff]  ;;  %v4814_v16 = vmul.f32 1.442695, %v4763_v32  ;;  %v4581_v46 = vpop.f32.mrf.mxu1  ;;  %5827 = vmatprep.subr.mxu0 %v5344_v12 }
 0x5fa   : > { %5547 = vmatprep.mubr.f32.mxu0 %v12512_v18  ;;  %5708 = vmatprep.mubr.f32.mxu1 %v12512_v18  ;;  %v7618_v37 = vpop.eup %7617  ;;  %v4950_v26 = vmul.f32 0.6931472, %v7616_v4  ;;  %7627 = vpow2.f32 %v4812_v60  ;;  %v12543_v57 = vadd.f32 %v4581_v46, %v11942_v3  ;;  %v4979_v32 = vadd.f32 1.0, %v4978_v28  ;;  %v5315_v4 = vld [vmem:[%s13279_s12 + $0x3d8] sm:$0xff] }
 0x5fb   : > { %5548 = vmatmul.mubr.f32.gmra.mxu0 %v12523_v21  ;;  %5709 = vmatmul.mubr.f32.gmra.mxu1 %v12523_v21  ;;  %v4959_v54 = vmul.f32 0.6931472, %v7618_v37  ;;  %7629 = vpow2.f32 %v4814_v16  ;;  %v4583_v50 = vpop.f32.mrf.mxu1  ;;  %v5309_v37 = vld [vmem:[%s13279_s12 + $0x3a8] sm:$0xff]  ;;  %v4630_v16 = vmax.f32 %v12354_v43, 0.0  ;;  %vm4667_vm10 = vcmp.ne.f32.partialorder %v12498_v20, %v12498_v20 }
 0x5fc   : > { %5828 = vmatpush2.msra.mxu0 %v5343_v41  ;;  %v4956_v62 = vsel %vm12538_vm12, %v4953_v55, %v4950_v26  ;;  %v4732_v23 = vand.u32 2147483647, %v12543_v57  ;;  %v12559_v53 = vadd.f32 %v4583_v50, %v11945_v14  ;;  %v4981_v41 = vand.u32 2147483647, %v12505_v63  ;;  %v5308_v55 = vld [vmem:[%s13279_s12 + $0x3a0] sm:$0xff] }
 0x5fd   : > { %v12549_v13 = vpop.eup %7619  ;;  %5829 = vmatprep.subr.mxu0 %v5337_v1  ;;  %v4965_v10 = vsel %vm4964_vm13, %v4962_v39, %v4959_v54  ;;  %v5140_v49 = vadd.f32 %v4956_v62, %v4628_v61  ;;  %v4970_v1 = vadd.f32 1.0, %v4969_v15  ;;  %v4631_v54 = vmax.f32 %v12362_v52, 0.0 }
 0x5fe   : > { %5830 = vmatpush2.msra.mxu0 %v5336_v36  ;;  %v5141_v7 = vadd.f32 %v4965_v10, %v4629_v5  ;;  %v4984_v17 = vadd.f32 1.0, %v12549_v13  ;;  %v4733_v48 = vand.u32 2147483647, %v12559_v53  ;;  %v4764_v44 = vsub.f32 0.0, %v4732_v23 }
 0x5ff   : > { %v12565_v33 = vpop.eup %7621  ;;  %5831 = vmatprep.subr.mxu0 %v5330_v27  ;;  %v12584_v60 = vsel %vm4660_vm15, %v12255_v34, %v5140_v49  ;;  %v4972_v36 = vand.u32 2147483647, %v12487_v24  ;;  %v4980_v27 = vmul.f32 %v12505_v63, %v4979_v32  ;;  %v4987_v5 = vmul.f32 -0.5, %v12549_v13 }
 0x600   : > { %v4993_v47 = vadd.f32 1.0, %v12565_v33  ;;  %5832 = vmatpush2.msra.mxu0 %v5329_v25  ;;  %v12574_v42 = vsel %vm4661_vm14, %v12284_v11, %v5141_v7  ;;  %v4765_v12 = vsub.f32 0.0, %v4733_v48  ;;  %v5316_v11 = vld [vmem:[%s13279_s12 + $0x3e0] sm:$0xff]  ;;  %v4816_v46 = vmul.f32 1.442695, %v4764_v44 }
 0x601   : > { %5833 = vmatprep.subr.mxu0 %v5323_v35  ;;  %5553 = vmatprep.mubr.f32.mxu0 %v12574_v42  ;;  %vm4982_vm3 = vcmp.lt.f32.partialorder %v4981_v41, 0.0004427343  ;;  %v4971_v28 = vmul.f32 %v12487_v24, %v4970_v1  ;;  %vm4973_vm4 = vcmp.lt.f32.partialorder %v4972_v36, 0.0004427343  ;;  %v4999_v1 = vand.u32 2147483647, %v12565_v33 }
 0x602   : > { %5714 = vmatprep.mubr.f32.mxu1 %v12574_v42  ;;  %7631 = vlog2.f32 %v4993_v47  ;;  %5554 = vmatmul.mubr.f32.gmra.mxu0 %v12584_v60  ;;  %v4818_v61 = vmul.f32 1.442695, %v4765_v12  ;;  %v4587_v34 = vpop.f32.mrf.mxu1  ;;  %vm4666_vm12 = vcmp.ne.f32.partialorder %v12480_v30, %v12480_v30  ;;  %vm4669_vm14 = vcmp.ne.f32.partialorder %v12559_v53, %v12559_v53 }
 0x603   : > { %5715 = vmatmul.mubr.f32.gmra.mxu1 %v12584_v60  ;;  %7633 = vlog2.f32 %v4984_v17  ;;  %5834 = vmatpush2.msra.mxu0 %v5322_v38  ;;  %v12601_v26 = vadd.f32 %v4587_v34, %v11942_v3  ;;  %v4996_v17 = vmul.f32 -0.5, %v12565_v33  ;;  %vm5000_vm5 = vcmp.lt.f32.partialorder %v4999_v1, 0.0004427343 }
 0x604   : > { %5835 = vmatprep.subr.mxu0 %v5316_v11  ;;  %v4589_v39 = vpop.f32.mrf.mxu1  ;;  %7635 = vpow2.f32 %v4818_v61  ;;  %v4988_v11 = vadd.f32 1.0, %v4987_v5  ;;  %vm4668_vm15 = vcmp.ne.f32.partialorder %v12543_v57, %v12543_v57 }
 0x605   : > { %v7624_v40 = vpop.eup %7623  ;;  %5836 = vmatpush2.msra.mxu0 %v5315_v4  ;;  %v4734_v62 = vand.u32 2147483647, %v12601_v26  ;;  %v12615_v25 = vadd.f32 %v4589_v39, %v11945_v14  ;;  %7637 = vpow2.f32 %v4816_v46  ;;  %v4632_v39 = vmax.f32 %v12408_v31, 0.0 }
 0x606   : > { %v7626_v50 = vpop.eup %7625  ;;  %v4977_v23 = vmul.f32 0.6931472, %v7624_v40  ;;  %5837 = vmatprep.subr.mxu0 %v5309_v37  ;;  %v4593_v7 = vpop.f32.mrf.mxu1  ;;  %v4990_v40 = vand.u32 2147483647, %v12549_v13  ;;  %v4989_v5 = vmul.f32 %v12549_v13, %v4988_v11 }
 0x607   : > { %v4968_v10 = vmul.f32 0.6931472, %v7626_v50  ;;  %5838 = vmatpush2.msra.mxu0 %v5308_v55  ;;  %v12618_v35 = vpop.eup %7627  ;;  %v4735_v63 = vand.u32 2147483647, %v12615_v25  ;;  %v4766_v15 = vsub.f32 0.0, %v4734_v62  ;;  %v12625_v47 = vadd.f32 %v4593_v7, %v11942_v3 }
 0x608   : > { %v4983_v49 = vsel %vm4982_vm3, %v4980_v27, %v4977_v23  ;;  %v12622_v48 = vpop.eup %7629  ;;  %v4595_v12 = vpop.f32.mrf.mxu1  ;;  %v5002_v46 = vadd.f32 1.0, %v12618_v35  ;;  %v4633_v27 = vmax.f32 %v12426_v2, 0.0  ;;  %vm4991_vm6 = vcmp.lt.f32.partialorder %v4990_v40, 0.0004427343 }
 0x609   : > { %v5143_v44 = vadd.f32 %v4983_v49, %v4631_v54  ;;  %v4974_v38 = vsel %vm4973_vm4, %v4971_v28, %v4968_v10  ;;  %v4767_v24 = vsub.f32 0.0, %v4735_v63  ;;  %v5011_v41 = vadd.f32 1.0, %v12622_v48 }
 0x60a   : > { %v5142_v32 = vadd.f32 %v4974_v38, %v4630_v16  ;;  %v4736_v4 = vand.u32 2147483647, %v12625_v47  ;;  %v12630_v61 = vadd.f32 %v4595_v12, %v11945_v14  ;;  %v4997_v16 = vadd.f32 1.0, %v4996_v17 }
 0x60b   : > { %v12636_v34 = vsel %vm4663_vm2, %v12362_v52, %v5143_v44  ;;  %v4822_v36 = vmul.f32 1.442695, %v4767_v24  ;;  %v4820_v55 = vmul.f32 1.442695, %v4766_v15  ;;  %7639 = vlog2.f32 %v5011_v41 }
 0x60c   : > { %5559 = vmatprep.mubr.f32.mxu0 %v12636_v34  ;;  %5720 = vmatprep.mubr.f32.mxu1 %v12636_v34  ;;  %v12645_v37 = vsel %vm4662_vm1, %v12354_v43, %v5142_v32  ;;  %v4737_v52 = vand.u32 2147483647, %v12630_v61  ;;  %v4599_v43 = vpop.f32.mrf.mxu1  ;;  %v4768_v62 = vsub.f32 0.0, %v4736_v4  ;;  %v4998_v7 = vmul.f32 %v12565_v33, %v4997_v16 }
 0x60d   : > { %5560 = vmatmul.mubr.f32.gmra.mxu0 %v12645_v37  ;;  %5721 = vmatmul.mubr.f32.gmra.mxu1 %v12645_v37  ;;  %7641 = vpow2.f32 %v4822_v36  ;;  %v12656_v10 = vadd.f32 %v4599_v43, %v11942_v3  ;;  %v5014_v17 = vmul.f32 -0.5, %v12622_v48  ;;  %vm4670_vm2 = vcmp.ne.f32.partialorder %v12601_v26, %v12601_v26 }
 0x60e   : > { %v4769_v23 = vsub.f32 0.0, %v4737_v52  ;;  %v4601_v63 = vpop.f32.mrf.mxu1  ;;  %7643 = vlog2.f32 %v5002_v46  ;;  %v4824_v32 = vmul.f32 1.442695, %v4768_v62  ;;  %v5005_v52 = vmul.f32 -0.5, %v12618_v35 }
 0x60f   : > { %v7632_v54 = vpop.eup %7631  ;;  %7645 = vpow2.f32 %v4820_v55  ;;  %v4738_v15 = vand.u32 2147483647, %v12656_v10  ;;  %v12662_v44 = vadd.f32 %v4601_v63, %v11945_v14  ;;  %v5015_v1 = vadd.f32 1.0, %v5014_v17 }
 0x610   : > { %v7634_v50 = vpop.eup %7633  ;;  %v4995_v28 = vmul.f32 0.6931472, %v7632_v54  ;;  %v4826_v13 = vmul.f32 1.442695, %v4769_v23  ;;  %v4605_v4 = vpop.f32.mrf.mxu1  ;;  %v5017_v62 = vand.u32 2147483647, %v12622_v48  ;;  %vm4671_vm3 = vcmp.ne.f32.partialorder %v12615_v25, %v12615_v25 }
 0x611   : > { %v4986_v49 = vmul.f32 0.6931472, %v7634_v50  ;;  %v12664_v12 = vpop.eup %7635  ;;  %v4739_v41 = vand.u32 2147483647, %v12662_v44  ;;  %v4770_v16 = vsub.f32 0.0, %v4738_v15  ;;  %v12674_v46 = vadd.f32 %v4605_v4, %v11942_v3 }
 0x612   : > { %v5001_v38 = vsel %vm5000_vm5, %v4998_v7, %v4995_v28  ;;  %v12671_v36 = vpop.eup %7637  ;;  %7647 = vpow2.f32 %v4826_v13  ;;  %v4607_v54 = vpop.f32.mrf.mxu1  ;;  %v5006_v17 = vadd.f32 1.0, %v5005_v52  ;;  %v5008_v15 = vand.u32 2147483647, %v12618_v35 }
 0x613   : > { %v4992_v24 = vsel %vm4991_vm6, %v4989_v5, %v4986_v49  ;;  %v5145_v11 = vadd.f32 %v5001_v38, %v4633_v27  ;;  %v4771_v40 = vsub.f32 0.0, %v4739_v41  ;;  %v5029_v27 = vadd.f32 1.0, %v12664_v12 }
 0x614   : > { %v5144_v33 = vadd.f32 %v4992_v24, %v4632_v39  ;;  %7649 = vpow2.f32 %v4824_v32  ;;  %v4740_v43 = vand.u32 2147483647, %v12674_v46  ;;  %v4634_v5 = vmax.f32 %v12480_v30, 0.0 }
 0x615   : > { %v12677_v55 = vsel %vm4665_vm7, %v12426_v2, %v5145_v11  ;;  %v12688_v2 = vadd.f32 %v4607_v54, %v11945_v14  ;;  %v4830_v50 = vmul.f32 1.442695, %v4771_v40  ;;  %7651 = vlog2.f32 %v5029_v27 }
 0x616   : > { %5565 = vmatprep.mubr.f32.mxu0 %v12677_v55  ;;  %5726 = vmatprep.mubr.f32.mxu1 %v12677_v55  ;;  %v12683_v39 = vsel %vm4664_vm8, %v12408_v31, %v5144_v33  ;;  %v4828_v31 = vmul.f32 1.442695, %v4770_v16  ;;  %v4772_v23 = vsub.f32 0.0, %v4740_v43  ;;  %v5020_v63 = vadd.f32 1.0, %v12671_v36 }
 0x617   : > { %5566 = vmatmul.mubr.f32.gmra.mxu0 %v12683_v39  ;;  %5727 = vmatmul.mubr.f32.gmra.mxu1 %v12683_v39  ;;  %v4741_v28 = vand.u32 2147483647, %v12688_v2  ;;  %7653 = vpow2.f32 %v4830_v50  ;;  %v5016_v49 = vmul.f32 %v12622_v48, %v5015_v1  ;;  %v4635_v33 = vmax.f32 %v12498_v20, 0.0 }
 0x618   : > { %v7640_v7 = vpop.eup %7639  ;;  %v4832_v38 = vmul.f32 1.442695, %v4772_v23  ;;  %v4611_v32 = vpop.f32.mrf.mxu1  ;;  %7655 = vlog2.f32 %v5020_v63  ;;  %vm5018_vm9 = vcmp.lt.f32.partialorder %v5017_v62, 0.0004427343  ;;  %v5032_v4 = vmul.f32 -0.5, %v12664_v12 }
 0x619   : > { %v4773_v24 = vsub.f32 0.0, %v4741_v28  ;;  %v5013_v11 = vmul.f32 0.6931472, %v7640_v7  ;;  %v12702_v41 = vadd.f32 %v4611_v32, %v11942_v3  ;;  %7657 = vpow2.f32 %v4828_v31 }
 0x61a   : > { %v12698_v13 = vpop.eup %7641  ;;  %v4613_v1 = vpop.f32.mrf.mxu1  ;;  %7659 = vpow2.f32 %v4832_v38  ;;  %v5007_v62 = vmul.f32 %v12618_v35, %v5006_v17  ;;  %vm5009_vm11 = vcmp.lt.f32.partialorder %v5008_v15, 0.0004427343  ;;  %v5033_v63 = vadd.f32 1.0, %v5032_v4 }
 0x61b   : > { %v7644_v16 = vpop.eup %7643  ;;  %v4834_v48 = vmul.f32 1.442695, %v4773_v24  ;;  %v5019_v52 = vsel %vm5018_vm9, %v5016_v49, %v5013_v11  ;;  %v5047_v40 = vadd.f32 1.0, %v12698_v13  ;;  %v4742_v27 = vand.u32 2147483647, %v12702_v41 }
 0x61c   : > { %v12706_v54 = vpop.eup %7645  ;;  %v12710_v43 = vadd.f32 %v4613_v1, %v11945_v14  ;;  %v5147_v3 = vadd.f32 %v5019_v52, %v4635_v33  ;;  %v5004_v50 = vmul.f32 0.6931472, %v7644_v16  ;;  %v5023_v7 = vmul.f32 -0.5, %v12671_v36 }
 0x61d   : > { %7661 = vpow2.f32 %v4834_v48  ;;  %v4774_v31 = vsub.f32 0.0, %v4742_v27  ;;  %v5038_v35 = vadd.f32 1.0, %v12706_v54  ;;  %v4636_v32 = vmax.f32 %v12543_v57, 0.0 }
 0x61e   : > { %v4743_v23 = vand.u32 2147483647, %v12710_v43  ;;  %v12717_v28 = vsel %vm4667_vm10, %v12498_v20, %v5147_v3  ;;  %v5010_v14 = vsel %vm5009_vm11, %v5007_v62, %v5004_v50  ;;  %7663 = vlog2.f32 %v5047_v40 }
 0x61f   : > { %5571 = vmatprep.mubr.f32.mxu0 %v12717_v28  ;;  %5732 = vmatprep.mubr.f32.mxu1 %v12717_v28  ;;  %v5146_v38 = vadd.f32 %v5010_v14, %v4634_v5  ;;  %v12723_v17 = vpop.eup %7647  ;;  %v4836_v15 = vmul.f32 1.442695, %v4774_v31  ;;  %v5035_v20 = vand.u32 2147483647, %v12664_v12  ;;  %v5034_v5 = vmul.f32 %v12664_v12, %v5033_v63 }
 0x620   : > { %v4775_v49 = vsub.f32 0.0, %v4743_v23  ;;  %v5024_v16 = vadd.f32 1.0, %v5023_v7  ;;  %v5026_v48 = vand.u32 2147483647, %v12671_v36  ;;  %7665 = vlog2.f32 %v5038_v35 }
 0x621   : > { %v12728_v24 = vpop.eup %7649  ;;  %v12732_v33 = vsel %vm4666_vm12, %v12480_v30, %v5146_v38  ;;  %v5050_v52 = vmul.f32 -0.5, %v12698_v13  ;;  %v5065_v40 = vadd.f32 1.0, %v12723_v17  ;;  %v4637_v30 = vmax.f32 %v12559_v53, 0.0 }
 0x622   : > { %v4838_v11 = vmul.f32 1.442695, %v4775_v49  ;;  %v7652_v4 = vpop.eup %7651  ;;  %5572 = vmatmul.mubr.f32.gmra.mxu0 %v12732_v33  ;;  %5733 = vmatmul.mubr.f32.gmra.mxu1 %v12732_v33  ;;  %vm5036_vm13 = vcmp.lt.f32.partialorder %v5035_v20, 0.0004427343  ;;  %v5056_v3 = vadd.f32 1.0, %v12728_v24  ;;  %v5025_v23 = vmul.f32 %v12671_v36, %v5024_v16 }
 0x623   : > { %v5031_v1 = vmul.f32 0.6931472, %v7652_v4  ;;  %v4638_v63 = vmax.f32 %v12601_v26, 0.0  ;;  %v4639_v7 = vmax.f32 %v12615_v25, 0.0  ;;  %vm5027_vm1 = vcmp.lt.f32.partialorder %v5026_v48, 0.0004427343 }
 0x624   : > { %7667 = vpow2.f32 %v4838_v11  ;;  %v12740_v27 = vpop.eup %7653  ;;  %v5051_v49 = vadd.f32 1.0, %v5050_v52  ;;  %v4640_v36 = vmax.f32 %v12625_v47, 0.0  ;;  %v4641_v4 = vmax.f32 %v12630_v61, 0.0 }
 0x625   : > { %7669 = vpow2.f32 %v4836_v15  ;;  %v7656_v50 = vpop.eup %7655  ;;  %v5037_v12 = vsel %vm5036_vm13, %v5034_v5, %v5031_v1  ;;  %v5041_v15 = vmul.f32 -0.5, %v12706_v54  ;;  %v5083_v20 = vadd.f32 1.0, %v12740_v27 }
 0x626   : > { %7671 = vlog2.f32 %v5065_v40  ;;  %v5149_v62 = vadd.f32 %v5037_v12, %v4637_v30  ;;  %v5022_v31 = vmul.f32 0.6931472, %v7656_v50  ;;  %v12749_v14 = vpop.eup %7657  ;;  %v5053_v16 = vand.u32 2147483647, %v12698_v13 }
 0x627   : > { %7673 = vlog2.f32 %v5056_v3  ;;  %v12758_v11 = vpop.eup %7659  ;;  %v5068_v1 = vmul.f32 -0.5, %v12723_v17  ;;  %v5074_v52 = vadd.f32 1.0, %v12749_v14  ;;  %v5059_v50 = vmul.f32 -0.5, %v12728_v24 }
 0x628   : > { %v12754_v38 = vsel %vm4669_vm14, %v12559_v53, %v5149_v62  ;;  %v5028_v35 = vsel %vm5027_vm1, %v5025_v23, %v5022_v31  ;;  %7675 = vlog2.f32 %v5083_v20  ;;  %v5052_v62 = vmul.f32 %v12698_v13, %v5051_v49 }
 0x629   : > { %5577 = vmatprep.mubr.f32.mxu0 %v12754_v38  ;;  %5738 = vmatprep.mubr.f32.mxu1 %v12754_v38  ;;  %v5148_v5 = vadd.f32 %v5028_v35, %v4636_v32  ;;  %v5042_v31 = vadd.f32 1.0, %v5041_v15  ;;  %7677 = vlog2.f32 %v5074_v52  ;;  %vm5054_vm4 = vcmp.lt.f32.partialorder %v5053_v16, 0.0004427343 }
 0x62a   : > { %v12765_v53 = vpop.eup %7661  ;;  %v5069_v20 = vadd.f32 1.0, %v5068_v1  ;;  %v5060_v3 = vadd.f32 1.0, %v5059_v50  ;;  %v5086_v15 = vmul.f32 -0.5, %v12740_v27  ;;  %v5062_v30 = vand.u32 2147483647, %v12728_v24 }
 0x62b   : > { %v7664_v40 = vpop.eup %7663  ;;  %v12776_v32 = vsel %vm4668_vm15, %v12543_v57, %v5148_v5  ;;  %v5044_v57 = vand.u32 2147483647, %v12706_v54  ;;  %v5101_v23 = vadd.f32 1.0, %v12765_v53  ;;  %v5071_v5 = vand.u32 2147483647, %v12723_v17 }
 0x62c   : > { %5578 = vmatmul.mubr.f32.gmra.mxu0 %v12776_v32  ;;  %5739 = vmatmul.mubr.f32.gmra.mxu1 %v12776_v32  ;;  %v5049_v12 = vmul.f32 0.6931472, %v7664_v40  ;;  %v5092_v40 = vadd.f32 1.0, %v12758_v11  ;;  %v5043_v16 = vmul.f32 %v12706_v54, %v5042_v31  ;;  %vm4673_vm6 = vcmp.ne.f32.partialorder %v12630_v61, %v12630_v61 }
 0x62d   : > { %v7666_v13 = vpop.eup %7665  ;;  %7679 = vlog2.f32 %v5101_v23  ;;  %vm5045_vm5 = vcmp.lt.f32.partialorder %v5044_v57, 0.0004427343  ;;  %vm12809_vm7 = vcmp.lt.f32.partialorder %v5071_v5, 0.0004427343  ;;  %vm5063_vm8 = vcmp.lt.f32.partialorder %v5062_v30, 0.0004427343 }
 0x62e   : > { %v5055_v35 = vsel %vm5054_vm4, %v5052_v62, %v5049_v12  ;;  %v5040_v48 = vmul.f32 0.6931472, %v7666_v13  ;;  %7681 = vlog2.f32 %v5092_v40  ;;  %v5070_v62 = vmul.f32 %v12723_v17, %v5069_v20 }
 0x62f   : > { %v5151_v49 = vadd.f32 %v5055_v35, %v4639_v7  ;;  %v5077_v7 = vmul.f32 -0.5, %v12749_v14  ;;  %v5061_v40 = vmul.f32 %v12728_v24, %v5060_v3  ;;  %v5087_v13 = vadd.f32 1.0, %v5086_v15 }
 0x630   : > { %v5046_v54 = vsel %vm5045_vm5, %v5043_v16, %v5040_v48  ;;  %v5089_v48 = vand.u32 2147483647, %v12740_v27  ;;  %v5095_v3 = vmul.f32 -0.5, %v12758_v11  ;;  %vm4672_vm9 = vcmp.ne.f32.partialorder %v12625_v47, %v12625_v47 }
 0x631   : > { %v12791_v52 = vpop.eup %7667  ;;  %v12801_v1 = vsel %vm4671_vm3, %v12615_v25, %v5151_v49  ;;  %v5150_v23 = vadd.f32 %v5046_v54, %v4638_v63  ;;  %v5078_v5 = vadd.f32 1.0, %v5077_v7  ;;  %v5104_v63 = vmul.f32 -0.5, %v12765_v53 }
 0x632   : > { %v12795_v12 = vpop.eup %7669  ;;  %5583 = vmatprep.mubr.f32.mxu0 %v12801_v1  ;;  %5744 = vmatprep.mubr.f32.mxu1 %v12801_v1  ;;  %v5119_v25 = vadd.f32 1.0, %v12791_v52  ;;  %v5088_v7 = vmul.f32 %v12740_v27, %v5087_v13  ;;  %vm5090_vm10 = vcmp.lt.f32.partialorder %v5089_v48, 0.0004427343  ;;  %v13411_v13 = vmax.f32 %v12662_v44, 0.0 }
 0x633   : > { %v7672_v50 = vpop.eup %7671  ;;  %v12822_v17 = vsel %vm4670_vm2, %v12601_v26, %v5150_v23  ;;  %v5110_v15 = vadd.f32 1.0, %v12795_v12  ;;  %v5079_v27 = vmul.f32 %v12749_v14, %v5078_v5  ;;  %v5096_v23 = vadd.f32 1.0, %v5095_v3 }
 0x634   : > { %v7674_v57 = vpop.eup %7673  ;;  %v5067_v35 = vmul.f32 0.6931472, %v7672_v50  ;;  %7683 = vlog2.f32 %v5119_v25  ;;  %5584 = vmatmul.mubr.f32.gmra.mxu0 %v12822_v17  ;;  %5745 = vmatmul.mubr.f32.gmra.mxu1 %v12822_v17  ;;  %v5080_v50 = vand.u32 2147483647, %v12749_v14  ;;  %v5105_v25 = vadd.f32 1.0, %v5104_v63 }
 0x635   : > { %v5058_v49 = vmul.f32 0.6931472, %v7674_v57  ;;  %v7676_v26 = vpop.eup %7675  ;;  %7685 = vlog2.f32 %v5110_v15  ;;  %vm4675_vm12 = vcmp.ne.f32.partialorder %v12662_v44, %v12662_v44  ;;  %vm4674_vm13 = vcmp.ne.f32.partialorder %v12656_v10, %v12656_v10 }
 0x636   : > { %v5073_v20 = vsel %vm12809_vm7, %v5070_v62, %v5067_v35  ;;  %v5085_v54 = vmul.f32 0.6931472, %v7676_v26  ;;  %v5107_v62 = vand.u32 2147483647, %v12765_v53  ;;  %v7678_v31 = vpop.eup %7677  ;;  %v5122_v35 = vmul.f32 -0.5, %v12791_v52 }
 0x637   : > { %v5153_v24 = vadd.f32 %v5073_v20, %v4641_v4  ;;  %v5064_v30 = vsel %vm5063_vm8, %v5061_v40, %v5058_v49  ;;  %v5076_v57 = vmul.f32 0.6931472, %v7678_v31  ;;  %v4645_v40 = vmax.f32 %v12688_v2, 0.0 }
 0x638   : > { %v5152_v16 = vadd.f32 %v5064_v30, %v4640_v36  ;;  %vm5081_vm11 = vcmp.lt.f32.partialorder %v5080_v50, 0.0004427343  ;;  %vm12863_vm14 = vcmp.lt.f32.partialorder %v5107_v62, 0.0004427343  ;;  %v5106_v15 = vmul.f32 %v12765_v53, %v5105_v25 }
 0x639   : > { %v12843_v4 = vsel %vm4673_vm6, %v12630_v61, %v5153_v24  ;;  %v5091_v61 = vsel %vm5090_vm10, %v5088_v7, %v5085_v54  ;;  %v5082_v14 = vsel %vm5081_vm11, %v5079_v27, %v5076_v57  ;;  %v13414_v24 = vmax.f32 %v12656_v10, 0.0 }
 0x63a   : > { %5589 = vmatprep.mubr.f32.mxu0 %v12843_v4  ;;  %5750 = vmatprep.mubr.f32.mxu1 %v12843_v4  ;;  %v12849_v36 = vsel %vm4672_vm9, %v12625_v47, %v5152_v16  ;;  %v5155_v49 = vadd.f32 %v5091_v61, %v13411_v13  ;;  %v5098_v47 = vand.u32 2147483647, %v12758_v11  ;;  %v7680_v48 = vpop.eup %7679  ;;  %v5097_v16 = vmul.f32 %v12758_v11, %v5096_v23 }
 0x63b   : > { %5590 = vmatmul.mubr.f32.gmra.mxu0 %v12849_v36  ;;  %5751 = vmatmul.mubr.f32.gmra.mxu1 %v12849_v36  ;;  %v7682_v5 = vpop.eup %7681  ;;  %v5154_v30 = vadd.f32 %v5082_v14, %v13414_v24  ;;  %v5103_v3 = vmul.f32 0.6931472, %v7680_v48  ;;  %v5123_v7 = vadd.f32 1.0, %v5122_v35  ;;  %v5113_v50 = vmul.f32 -0.5, %v12795_v12 }
 0x63c   : > { %v12868_v63 = vsel %vm4675_vm12, %v12662_v44, %v5155_v49  ;;  %v5094_v26 = vmul.f32 0.6931472, %v7682_v5  ;;  %vm5099_vm15 = vcmp.lt.f32.partialorder %v5098_v47, 0.0004427343  ;;  %v5125_v62 = vand.u32 2147483647, %v12791_v52 }
 0x63d   : > { %5595 = vmatprep.mubr.f32.mxu0 %v12868_v63  ;;  %5756 = vmatprep.mubr.f32.mxu1 %v12868_v63  ;;  %v12878_v54 = vsel %vm4674_vm13, %v12656_v10, %v5154_v30  ;;  %v5109_v44 = vsel %vm12863_vm14, %v5106_v15, %v5103_v3  ;;  %vm4677_vm1 = vcmp.ne.f32.partialorder %v12688_v2, %v12688_v2  ;;  %v13415_v10 = vmax.f32 %v12674_v46, 0.0 }
 0x63e   : > { %v5157_v53 = vadd.f32 %v5109_v44, %v4645_v40  ;;  %v5100_v31 = vsel %vm5099_vm15, %v5097_v16, %v5094_v26  ;;  %vm4676_vm2 = vcmp.ne.f32.partialorder %v12674_v46, %v12674_v46  ;;  %v5124_v57 = vmul.f32 %v12791_v52, %v5123_v7 }
 0x63f   : > { %5596 = vmatmul.mubr.f32.gmra.mxu0 %v12878_v54  ;;  %5757 = vmatmul.mubr.f32.gmra.mxu1 %v12878_v54  ;;  %v5156_v11 = vadd.f32 %v5100_v31, %v13415_v10  ;;  %v5114_v23 = vadd.f32 1.0, %v5113_v50  ;;  %v4647_v35 = vmax.f32 %v12710_v43, 0.0  ;;  %vm5126_vm3 = vcmp.lt.f32.partialorder %v5125_v62, 0.0004427343 }
 0x640   : > { %v12892_v25 = vsel %vm4677_vm1, %v12688_v2, %v5157_v53  ;;  %v5116_v13 = vand.u32 2147483647, %v12795_v12  ;;  %vm4679_vm4 = vcmp.ne.f32.partialorder %v12710_v43, %v12710_v43  ;;  %v4646_v14 = vmax.f32 %v12702_v41, 0.0 }
 0x641   : > { %v7684_v27 = vpop.eup %7683  ;;  %5601 = vmatprep.mubr.f32.mxu0 %v12892_v25  ;;  %5762 = vmatprep.mubr.f32.mxu1 %v12892_v25  ;;  %v12899_v40 = vsel %vm4676_vm2, %v12674_v46, %v5156_v11  ;;  %v5115_v48 = vmul.f32 %v12795_v12, %v5114_v23  ;;  %vm4678_vm6 = vcmp.ne.f32.partialorder %v12702_v41, %v12702_v41 }
 0x642   : > { %v5121_v61 = vmul.f32 0.6931472, %v7684_v27  ;;  %v7686_v49 = vpop.eup %7685  ;;  %vm5117_vm5 = vcmp.lt.f32.partialorder %v5116_v13, 0.0004427343 }
 0x643   : > { %5602 = vmatmul.mubr.f32.gmra.mxu0 %v12899_v40  ;;  %5763 = vmatmul.mubr.f32.gmra.mxu1 %v12899_v40  ;;  %v5112_v47 = vmul.f32 0.6931472, %v7686_v49 }
 0x644   : > { %v5127_v2 = vsel %vm5126_vm3, %v5124_v57, %v5121_v61 }
 0x645   : > { %v5159_v52 = vadd.f32 %v5127_v2, %v4647_v35  ;;  %v5118_v20 = vsel %vm5117_vm5, %v5115_v48, %v5112_v47 }
 0x646   : > { %v5158_v5 = vadd.f32 %v5118_v20, %v4646_v14 }
 0x647   : > { %v12909_v46 = vsel %vm4679_vm4, %v12710_v43, %v5159_v52 }
 0x648   : > { %5607 = vmatprep.mubr.f32.mxu0 %v12909_v46  ;;  %5768 = vmatprep.mubr.f32.mxu1 %v12909_v46  ;;  %v12916_v24 = vsel %vm4678_vm6, %v12702_v41, %v5158_v5 }
 0x649   : > { %5608 = vmatmul.mubr.f32.gmra.mxu0 %v12916_v24  ;;  %5769 = vmatmul.mubr.f32.gmra.mxu1 %v12916_v24 }
 0x64a   : > { %5839 = vmatprep.mubr.f32.mxu0 %v12021_v0  ;;  %6000 = vmatprep.mubr.f32.mxu1 %v12021_v0  ;;  %v13416_v0 = vld [vmem:[#allocation2_spill] sm:$0xff] }
 0x64d   : > { %5840 = vmatmul.mubr.f32.vlgmr.msra.gmra.mxu0 %v12024_v45  ;;  %6001 = vmatmul.mubr.f32.vlgmr.msra.gmra.mxu1 %v12024_v45  ;;  %v5428_v45 = vsub.s32 2, %v13416_v0 }
 0x64e   : > { %5845 = vmatprep.mubr.f32.mxu0 %v12222_v56  ;;  %6005 = vmatprep.mubr.f32.mxu1 %v12222_v56  ;;  %v12962_v56 = vld [vmem:[%s13280_s13] sm:$0x7f] }
 0x651   : > { %5846 = vmatmul.mubr.f32.gmra.mxu0 %v12246_v29  ;;  %6006 = vmatmul.mubr.f32.gmra.mxu1 %v12246_v29  ;;  %v5432_v29 = vsub.s32 3, %v13416_v0 }
 0x652   : > { %5851 = vmatprep.mubr.f32.mxu0 %v12307_v58  ;;  %6010 = vmatprep.mubr.f32.mxu1 %v12307_v58  ;;  %v12971_v58 = vrot.slane %v12962_v56, %v13339_v8 }
 0x655   : > { %5852 = vmatmul.mubr.f32.gmra.mxu0 %v12318_v6  ;;  %6011 = vmatmul.mubr.f32.gmra.mxu1 %v12318_v6  ;;  %v12974_v6 = vrot.slane %v12962_v56, %v5428_v45 }
 0x656   : > { %5857 = vmatprep.mubr.f32.mxu0 %v12365_v9  ;;  %6015 = vmatprep.mubr.f32.mxu1 %v12365_v9  ;;  %v12980_v9 = vrot.slane %v12962_v56, %v13340_v22 }
 0x659   : > { %5858 = vmatmul.mubr.f32.gmra.mxu0 %v12377_v51  ;;  %6016 = vmatmul.mubr.f32.gmra.mxu1 %v12377_v51  ;;  %v12983_v51 = vrot.slane %v12962_v56, %v5432_v29 }
 0x65a   : > { %5863 = vmatprep.mubr.f32.mxu0 %v12429_v59  ;;  %6020 = vmatprep.mubr.f32.mxu1 %v12429_v59 }
 0x65d   : > { %5864 = vmatmul.mubr.f32.gmra.mxu0 %v12449_v19  ;;  %6021 = vmatmul.mubr.f32.gmra.mxu1 %v12449_v19 }
 0x65e   : > { %5869 = vmatprep.mubr.f32.mxu0 %v12512_v18  ;;  %6025 = vmatprep.mubr.f32.mxu1 %v12512_v18 }
 0x661   : > { %5870 = vmatmul.mubr.f32.gmra.mxu0 %v12523_v21  ;;  %6026 = vmatmul.mubr.f32.gmra.mxu1 %v12523_v21 }
 0x662   : > { %5875 = vmatprep.mubr.f32.mxu0 %v12574_v42  ;;  %6030 = vmatprep.mubr.f32.mxu1 %v12574_v42 }
 0x665   : > { %5876 = vmatmul.mubr.f32.gmra.mxu0 %v12584_v60  ;;  %6031 = vmatmul.mubr.f32.gmra.mxu1 %v12584_v60 }
 0x666   : > { %5881 = vmatprep.mubr.f32.mxu0 %v12636_v34  ;;  %6035 = vmatprep.mubr.f32.mxu1 %v12636_v34 }
 0x669   : > { %5882 = vmatmul.mubr.f32.gmra.mxu0 %v12645_v37  ;;  %6036 = vmatmul.mubr.f32.gmra.mxu1 %v12645_v37 }
 0x66a   : > { %5887 = vmatprep.mubr.f32.mxu0 %v12677_v55  ;;  %6040 = vmatprep.mubr.f32.mxu1 %v12677_v55 }
 0x66d   : > { %5888 = vmatmul.mubr.f32.gmra.mxu0 %v12683_v39  ;;  %6041 = vmatmul.mubr.f32.gmra.mxu1 %v12683_v39 }
 0x66e   : > { %5893 = vmatprep.mubr.f32.mxu0 %v12717_v28  ;;  %6045 = vmatprep.mubr.f32.mxu1 %v12717_v28 }
 0x671   : > { %5894 = vmatmul.mubr.f32.gmra.mxu0 %v12732_v33  ;;  %6046 = vmatmul.mubr.f32.gmra.mxu1 %v12732_v33 }
 0x672   : > { %5899 = vmatprep.mubr.f32.mxu0 %v12754_v38  ;;  %6050 = vmatprep.mubr.f32.mxu1 %v12754_v38 }
 0x675   : > { %5900 = vmatmul.mubr.f32.gmra.mxu0 %v12776_v32  ;;  %6051 = vmatmul.mubr.f32.gmra.mxu1 %v12776_v32 }
 0x676   : > { %5905 = vmatprep.mubr.f32.mxu0 %v12801_v1  ;;  %6055 = vmatprep.mubr.f32.mxu1 %v12801_v1 }
 0x679   : > { %5906 = vmatmul.mubr.f32.gmra.mxu0 %v12822_v17  ;;  %6056 = vmatmul.mubr.f32.gmra.mxu1 %v12822_v17 }
 0x67a   : > { %5911 = vmatprep.mubr.f32.mxu0 %v12843_v4  ;;  %6060 = vmatprep.mubr.f32.mxu1 %v12843_v4 }
 0x67d   : > { %5912 = vmatmul.mubr.f32.gmra.mxu0 %v12849_v36  ;;  %6061 = vmatmul.mubr.f32.gmra.mxu1 %v12849_v36 }
 0x67e   : > { %5917 = vmatprep.mubr.f32.mxu0 %v12868_v63  ;;  %6065 = vmatprep.mubr.f32.mxu1 %v12868_v63 }
 0x67f   : > { %v5519_v8 = vpop.f32.mrf.mxu0  ;;  %v5680_v59 = vpop.f32.mrf.mxu1 }
 0x680   : > { %v5520_v19 = vadd.f32 %v5519_v8, %v12971_v58  ;;  %v5681_v18 = vadd.f32 %v5680_v59, %v12974_v6 }
 0x681   : > { %v5521_v21 = vpop.f32.mrf.mxu0  ;;  %v5682_v42 = vpop.f32.mrf.mxu1  ;;  %5918 = vmatmul.mubr.f32.gmra.mxu0 %v12878_v54  ;;  %6066 = vmatmul.mubr.f32.gmra.mxu1 %v12878_v54 }
 0x682   : > { %v6081_v22 = vmul.f32 0.5, %v5520_v19  ;;  %v6083_v60 = vmul.f32 0.5, %v5681_v18  ;;  %v5522_v34 = vadd.f32 %v5521_v21, %v12980_v9  ;;  %v5683_v37 = vadd.f32 %v5682_v42, %v12983_v51  ;;  %5923 = vmatprep.mubr.f32.mxu0 %v12892_v25  ;;  %6070 = vmatprep.mubr.f32.mxu1 %v12892_v25 }
 0x684   : > { %7687 = vtanh.f32 %v6081_v22  ;;  %v6082_v55 = vmul.f32 0.5, %v5522_v34  ;;  %v6084_v39 = vmul.f32 0.5, %v5683_v37 }
 0x685   : > { %7689 = vtanh.f32 %v6083_v60  ;;  %5924 = vmatmul.mubr.f32.gmra.mxu0 %v12899_v40  ;;  %6071 = vmatmul.mubr.f32.gmra.mxu1 %v12899_v40 }
 0x686   : > { %7691 = vtanh.f32 %v6082_v55  ;;  %5929 = vmatprep.mubr.f32.mxu0 %v12909_v46  ;;  %6075 = vmatprep.mubr.f32.mxu1 %v12909_v46 }
 0x687   : > { %7693 = vtanh.f32 %v6084_v39 }
 0x689   : > { %5930 = vmatmul.mubr.f32.gmra.mxu0 %v12916_v24  ;;  %6076 = vmatmul.mubr.f32.gmra.mxu1 %v12916_v24 }
 0x691   : > { %v7688_v41 = vpop.eup %7687 }
 0x692   : > { %v7690_v43 = vpop.eup %7689  ;;  %v6305_v28 = vadd.f32 1.0, %v7688_v41 }
 0x693   : > { %v7692_v33 = vpop.eup %7691  ;;  %v6307_v38 = vadd.f32 1.0, %v7690_v43 }
 0x694   : > { %v7694_v32 = vpop.eup %7693  ;;  %v6417_v12 = vmul.f32 0.5, %v6305_v28  ;;  %v6306_v1 = vadd.f32 1.0, %v7692_v33 }
 0x695   : > { %v6419_v17 = vmul.f32 0.5, %v6307_v38  ;;  %v6308_v4 = vadd.f32 1.0, %v7694_v32 }
 0x696   : > { %6529 = vst [vmem:[%s13014_s30] sm:$0xff] %v6417_v12  ;;  %v6418_v36 = vmul.f32 0.5, %v6306_v1  ;;  %v5525_v63 = vpop.f32.mrf.mxu0  ;;  %v5686_v30 = vpop.f32.mrf.mxu1 }
 0x697   : > { %6531 = vst [vmem:[%s13014_s30 + $0x10] sm:$0xff] %v6419_v17  ;;  %v6420_v3 = vmul.f32 0.5, %v6308_v4  ;;  %v5526_v15 = vadd.f32 %v5525_v63, %v12971_v58  ;;  %v5687_v26 = vadd.f32 %v5686_v30, %v12974_v6 }
 0x698   : > { %6530 = vst [vmem:[%s13014_s30 + $0x8] sm:$0xff] %v6418_v36  ;;  %v5527_v16 = vpop.f32.mrf.mxu0  ;;  %v5688_v7 = vpop.f32.mrf.mxu1 }
 0x699   : > { %6532 = vst [vmem:[%s13014_s30 + $0x18] sm:$0xff] %v6420_v3  ;;  %v6088_v50 = vmul.f32 0.5, %v5526_v15  ;;  %v6090_v54 = vmul.f32 0.5, %v5687_v26  ;;  %v5528_v44 = vadd.f32 %v5527_v16, %v12980_v9  ;;  %v5689_v62 = vadd.f32 %v5688_v7, %v12983_v51 }
 0x69b   : > { %7695 = vtanh.f32 %v6088_v50  ;;  %v6089_v53 = vmul.f32 0.5, %v5528_v44  ;;  %v6091_v31 = vmul.f32 0.5, %v5689_v62 }
 0x69c   : > { %7697 = vtanh.f32 %v6090_v54 }
 0x69d   : > { %7699 = vtanh.f32 %v6089_v53 }
 0x69e   : > { %7701 = vtanh.f32 %v6091_v31  ;;  %v5531_v27 = vpop.f32.mrf.mxu0  ;;  %v5692_v10 = vpop.f32.mrf.mxu1 }
 0x69f   : > { %v5532_v11 = vadd.f32 %v5531_v27, %v12971_v58  ;;  %v5693_v25 = vadd.f32 %v5692_v10, %v12974_v6 }
 0x6a0   : > { %v5533_v61 = vpop.f32.mrf.mxu0  ;;  %v5694_v57 = vpop.f32.mrf.mxu1 }
 0x6a1   : > { %v6095_v23 = vmul.f32 0.5, %v5532_v11  ;;  %v6097_v35 = vmul.f32 0.5, %v5693_v25  ;;  %v5534_v40 = vadd.f32 %v5533_v61, %v12980_v9  ;;  %v5695_v13 = vadd.f32 %v5694_v57, %v12983_v51 }
 0x6a3   : > { %7703 = vtanh.f32 %v6095_v23  ;;  %v6096_v2 = vmul.f32 0.5, %v5534_v40  ;;  %v6098_v49 = vmul.f32 0.5, %v5695_v13 }
 0x6a4   : > { %7705 = vtanh.f32 %v6097_v35 }
 0x6a5   : > { %7707 = vtanh.f32 %v6096_v2  ;;  %v5537_v52 = vpop.f32.mrf.mxu0  ;;  %v5698_v47 = vpop.f32.mrf.mxu1 }
 0x6a6   : > { %7709 = vtanh.f32 %v6098_v49  ;;  %v5538_v48 = vadd.f32 %v5537_v52, %v12971_v58  ;;  %v5699_v14 = vadd.f32 %v5698_v47, %v12974_v6 }
 0x6a7   : > { %v5539_v46 = vpop.f32.mrf.mxu0  ;;  %v5700_v20 = vpop.f32.mrf.mxu1 }
 0x6a8   : > { %v7696_v5 = vpop.eup %7695  ;;  %v6102_v24 = vmul.f32 0.5, %v5538_v48  ;;  %v6104_v45 = vmul.f32 0.5, %v5699_v14  ;;  %v5540_v29 = vadd.f32 %v5539_v46, %v12980_v9  ;;  %v5701_v8 = vadd.f32 %v5700_v20, %v12983_v51 }
 0x6a9   : > { %v7698_v59 = vpop.eup %7697  ;;  %v6312_v19 = vadd.f32 1.0, %v7696_v5 }
 0x6aa   : > { %v7700_v18 = vpop.eup %7699  ;;  %v6314_v21 = vadd.f32 1.0, %v7698_v59  ;;  %7711 = vtanh.f32 %v6102_v24  ;;  %v6103_v42 = vmul.f32 0.5, %v5540_v29  ;;  %v6105_v22 = vmul.f32 0.5, %v5701_v8 }
 0x6ab   : > { %v7702_v60 = vpop.eup %7701  ;;  %v6424_v34 = vmul.f32 0.5, %v6312_v19  ;;  %v6313_v37 = vadd.f32 1.0, %v7700_v18  ;;  %7713 = vtanh.f32 %v6104_v45 }
 0x6ac   : > { %v6426_v55 = vmul.f32 0.5, %v6314_v21  ;;  %v6315_v39 = vadd.f32 1.0, %v7702_v60  ;;  %7715 = vtanh.f32 %v6103_v42 }
 0x6ad   : > { %6536 = vst [vmem:[%s13014_s30 + $0x38] sm:$0xff] %v6424_v34  ;;  %v6425_v41 = vmul.f32 0.5, %v6313_v37  ;;  %7717 = vtanh.f32 %v6105_v22 }
 0x6ae   : > { %6538 = vst [vmem:[%s13014_s30 + $0x48] sm:$0xff] %v6426_v55  ;;  %v6427_v43 = vmul.f32 0.5, %v6315_v39  ;;  %v5704_v38 = vpop.f32.mrf.mxu1 }
 0x6af   : > { %6537 = vst [vmem:[%s13014_s30 + $0x40] sm:$0xff] %v6425_v41  ;;  %v5543_v33 = vpop.f32.mrf.mxu0  ;;  %v5705_v17 = vadd.f32 %v5704_v38, %v12974_v6 }
 0x6b0   : > { %v7704_v28 = vpop.eup %7703  ;;  %6539 = vst [vmem:[%s13014_s30 + $0x50] sm:$0xff] %v6427_v43  ;;  %v5544_v1 = vadd.f32 %v5543_v33, %v12971_v58  ;;  %v5706_v30 = vpop.f32.mrf.mxu1 }
 0x6b1   : > { %v7706_v32 = vpop.eup %7705  ;;  %v6319_v12 = vadd.f32 1.0, %v7704_v28  ;;  %v5545_v63 = vpop.f32.mrf.mxu0  ;;  %v6111_v7 = vmul.f32 0.5, %v5705_v17  ;;  %v5707_v62 = vadd.f32 %v5706_v30, %v12983_v51 }
 0x6b2   : > { %v7708_v4 = vpop.eup %7707  ;;  %v6321_v36 = vadd.f32 1.0, %v7706_v32  ;;  %v6109_v16 = vmul.f32 0.5, %v5544_v1  ;;  %v5546_v44 = vadd.f32 %v5545_v63, %v12980_v9 }
 0x6b3   : > { %v7710_v3 = vpop.eup %7709  ;;  %v6431_v15 = vmul.f32 0.5, %v6319_v12  ;;  %v6320_v26 = vadd.f32 1.0, %v7708_v4  ;;  %v6112_v10 = vmul.f32 0.5, %v5707_v62 }
 0x6b4   : > { %v6433_v50 = vmul.f32 0.5, %v6321_v36  ;;  %v6322_v54 = vadd.f32 1.0, %v7710_v3  ;;  %7719 = vtanh.f32 %v6109_v16  ;;  %v6110_v27 = vmul.f32 0.5, %v5546_v44 }
 0x6b5   : > { %6543 = vst [vmem:[%s13014_s30 + $0x70] sm:$0xff] %v6431_v15  ;;  %v6432_v53 = vmul.f32 0.5, %v6320_v26  ;;  %7721 = vtanh.f32 %v6111_v7 }
 0x6b6   : > { %6545 = vst [vmem:[%s13014_s30 + $0x80] sm:$0xff] %v6433_v50  ;;  %v6434_v31 = vmul.f32 0.5, %v6322_v54  ;;  %7723 = vtanh.f32 %v6110_v27 }
 0x6b7   : > { %v7712_v11 = vpop.eup %7711  ;;  %6544 = vst [vmem:[%s13014_s30 + $0x78] sm:$0xff] %v6432_v53  ;;  %7725 = vtanh.f32 %v6112_v10 }
 0x6b8   : > { %v7714_v25 = vpop.eup %7713  ;;  %6546 = vst [vmem:[%s13014_s30 + $0x88] sm:$0xff] %v6434_v31  ;;  %v6326_v61 = vadd.f32 1.0, %v7712_v11 }
 0x6b9   : > { %v7716_v57 = vpop.eup %7715  ;;  %v6328_v23 = vadd.f32 1.0, %v7714_v25 }
 0x6ba   : > { %v7718_v35 = vpop.eup %7717  ;;  %v6438_v40 = vmul.f32 0.5, %v6326_v61  ;;  %v6327_v13 = vadd.f32 1.0, %v7716_v57 }
 0x6bb   : > { %v6440_v2 = vmul.f32 0.5, %v6328_v23  ;;  %v6329_v49 = vadd.f32 1.0, %v7718_v35  ;;  %v5549_v47 = vpop.f32.mrf.mxu0  ;;  %v5710_v48 = vpop.f32.mrf.mxu1 }
 0x6bc   : > { %6550 = vst [vmem:[%s13014_s30 + $0xa8] sm:$0xff] %v6438_v40  ;;  %v6439_v52 = vmul.f32 0.5, %v6327_v13  ;;  %v5550_v46 = vadd.f32 %v5549_v47, %v12971_v58  ;;  %v5711_v20 = vadd.f32 %v5710_v48, %v12974_v6 }
 0x6bd   : > { %6552 = vst [vmem:[%s13014_s30 + $0xb8] sm:$0xff] %v6440_v2  ;;  %v6441_v14 = vmul.f32 0.5, %v6329_v49  ;;  %v5551_v5 = vpop.f32.mrf.mxu0  ;;  %v5712_v24 = vpop.f32.mrf.mxu1 }
 0x6be   : > { %6551 = vst [vmem:[%s13014_s30 + $0xb0] sm:$0xff] %v6439_v52  ;;  %v6116_v45 = vmul.f32 0.5, %v5550_v46  ;;  %v6118_v29 = vmul.f32 0.5, %v5711_v20  ;;  %v5552_v8 = vadd.f32 %v5551_v5, %v12980_v9  ;;  %v5713_v59 = vadd.f32 %v5712_v24, %v12983_v51 }
 0x6bf   : > { %6553 = vst [vmem:[%s13014_s30 + $0xc0] sm:$0xff] %v6441_v14 }
 0x6c0   : > { %7727 = vtanh.f32 %v6116_v45  ;;  %v6117_v19 = vmul.f32 0.5, %v5552_v8  ;;  %v6119_v18 = vmul.f32 0.5, %v5713_v59 }
 0x6c1   : > { %v7720_v21 = vpop.eup %7719  ;;  %7729 = vtanh.f32 %v6118_v29 }
 0x6c2   : > { %v7722_v42 = vpop.eup %7721  ;;  %v6333_v22 = vadd.f32 1.0, %v7720_v21  ;;  %7731 = vtanh.f32 %v6117_v19  ;;  %v5555_v55 = vpop.f32.mrf.mxu0 }
 0x6c3   : > { %v6335_v60 = vadd.f32 1.0, %v7722_v42  ;;  %7733 = vtanh.f32 %v6119_v18  ;;  %v7724_v34 = vpop.eup %7723  ;;  %v5716_v39 = vpop.f32.mrf.mxu1  ;;  %v5556_v33 = vadd.f32 %v5555_v55, %v12971_v58 }
 0x6c4   : > { %v6445_v37 = vmul.f32 0.5, %v6333_v22  ;;  %v7726_v41 = vpop.eup %7725  ;;  %v6334_v28 = vadd.f32 1.0, %v7724_v34  ;;  %v5717_v38 = vadd.f32 %v5716_v39, %v12974_v6  ;;  %v5557_v12 = vpop.f32.mrf.mxu0 }
 0x6c5   : > { %v6447_v43 = vmul.f32 0.5, %v6335_v60  ;;  %v6336_v32 = vadd.f32 1.0, %v7726_v41  ;;  %v5718_v1 = vpop.f32.mrf.mxu1  ;;  %v6123_v4 = vmul.f32 0.5, %v5556_v33  ;;  %v5558_v63 = vadd.f32 %v5557_v12, %v12980_v9 }
 0x6c6   : > { %6557 = vst [vmem:[%s13014_s30 + $0xe0] sm:$0xff] %v6445_v37  ;;  %v6446_v17 = vmul.f32 0.5, %v6334_v28  ;;  %v6125_v36 = vmul.f32 0.5, %v5717_v38  ;;  %v5719_v3 = vadd.f32 %v5718_v1, %v12983_v51 }
 0x6c7   : > { %6559 = vst [vmem:[%s13014_s30 + $0xf0] sm:$0xff] %v6447_v43  ;;  %v6448_v30 = vmul.f32 0.5, %v6336_v32  ;;  %7735 = vtanh.f32 %v6123_v4  ;;  %v6124_v15 = vmul.f32 0.5, %v5558_v63 }
 0x6c8   : > { %6558 = vst [vmem:[%s13014_s30 + $0xe8] sm:$0xff] %v6446_v17  ;;  %7737 = vtanh.f32 %v6125_v36  ;;  %v6126_v26 = vmul.f32 0.5, %v5719_v3 }
 0x6c9   : > { %6560 = vst [vmem:[%s13014_s30 + $0xf8] sm:$0xff] %v6448_v30  ;;  %7739 = vtanh.f32 %v6124_v15 }
 0x6ca   : > { %7741 = vtanh.f32 %v6126_v26 }
 0x6cd   : > { %v7728_v16 = vpop.eup %7727  ;;  %v5561_v62 = vpop.f32.mrf.mxu0 }
 0x6ce   : > { %v7730_v7 = vpop.eup %7729  ;;  %v6340_v50 = vadd.f32 1.0, %v7728_v16  ;;  %v5722_v53 = vpop.f32.mrf.mxu1  ;;  %v5562_v11 = vadd.f32 %v5561_v62, %v12971_v58 }
 0x6cf   : > { %v7732_v54 = vpop.eup %7731  ;;  %v6342_v44 = vadd.f32 1.0, %v7730_v7  ;;  %v5723_v25 = vadd.f32 %v5722_v53, %v12974_v6  ;;  %v5563_v23 = vpop.f32.mrf.mxu0 }
 0x6d0   : > { %v7734_v31 = vpop.eup %7733  ;;  %v6452_v27 = vmul.f32 0.5, %v6340_v50  ;;  %v6341_v10 = vadd.f32 1.0, %v7732_v54  ;;  %v5724_v35 = vpop.f32.mrf.mxu1  ;;  %v6130_v13 = vmul.f32 0.5, %v5562_v11  ;;  %v5564_v49 = vadd.f32 %v5563_v23, %v12980_v9 }
 0x6d1   : > { %v6454_v61 = vmul.f32 0.5, %v6342_v44  ;;  %v6343_v57 = vadd.f32 1.0, %v7734_v31  ;;  %v6132_v2 = vmul.f32 0.5, %v5723_v25  ;;  %v5725_v47 = vadd.f32 %v5724_v35, %v12983_v51 }
 0x6d2   : > { %6564 = vst [vmem:[%s13014_s30 + $0x118] sm:$0xff] %v6452_v27  ;;  %v6453_v40 = vmul.f32 0.5, %v6341_v10  ;;  %7743 = vtanh.f32 %v6130_v13  ;;  %v6131_v48 = vmul.f32 0.5, %v5564_v49 }
 0x6d3   : > { %6566 = vst [vmem:[%s13014_s30 + $0x128] sm:$0xff] %v6454_v61  ;;  %v6455_v52 = vmul.f32 0.5, %v6343_v57  ;;  %7745 = vtanh.f32 %v6132_v2  ;;  %v6133_v14 = vmul.f32 0.5, %v5725_v47 }
 0x6d4   : > { %6565 = vst [vmem:[%s13014_s30 + $0x120] sm:$0xff] %v6453_v40  ;;  %v7736_v46 = vpop.eup %7735  ;;  %7747 = vtanh.f32 %v6131_v48 }
 0x6d5   : > { %6567 = vst [vmem:[%s13014_s30 + $0x130] sm:$0xff] %v6455_v52  ;;  %v7738_v20 = vpop.eup %7737  ;;  %v6347_v5 = vadd.f32 1.0, %v7736_v46  ;;  %7749 = vtanh.f32 %v6133_v14 }
 0x6d6   : > { %v7740_v24 = vpop.eup %7739  ;;  %v6349_v45 = vadd.f32 1.0, %v7738_v20 }
 0x6d7   : > { %v7742_v29 = vpop.eup %7741  ;;  %v6459_v8 = vmul.f32 0.5, %v6347_v5  ;;  %v6348_v59 = vadd.f32 1.0, %v7740_v24  ;;  %v5567_v19 = vpop.f32.mrf.mxu0 }
 0x6d8   : > { %v5728_v18 = vpop.f32.mrf.mxu1  ;;  %v6461_v21 = vmul.f32 0.5, %v6349_v45  ;;  %v6350_v42 = vadd.f32 1.0, %v7742_v29  ;;  %v5568_v22 = vadd.f32 %v5567_v19, %v12971_v58 }
 0x6d9   : > { %v5729_v60 = vadd.f32 %v5728_v18, %v12974_v6  ;;  %6571 = vst [vmem:[%s13014_s30 + $0x150] sm:$0xff] %v6459_v8  ;;  %v6460_v34 = vmul.f32 0.5, %v6348_v59  ;;  %v5569_v37 = vpop.f32.mrf.mxu0 }
 0x6da   : > { %v5730_v55 = vpop.f32.mrf.mxu1  ;;  %6573 = vst [vmem:[%s13014_s30 + $0x160] sm:$0xff] %v6461_v21  ;;  %v6462_v39 = vmul.f32 0.5, %v6350_v42  ;;  %v6137_v41 = vmul.f32 0.5, %v5568_v22  ;;  %v5570_v28 = vadd.f32 %v5569_v37, %v12980_v9 }
 0x6db   : > { %v6139_v43 = vmul.f32 0.5, %v5729_v60  ;;  %6572 = vst [vmem:[%s13014_s30 + $0x158] sm:$0xff] %v6460_v34  ;;  %v5731_v33 = vadd.f32 %v5730_v55, %v12983_v51 }
 0x6dc   : > { %6574 = vst [vmem:[%s13014_s30 + $0x168] sm:$0xff] %v6462_v39  ;;  %7751 = vtanh.f32 %v6137_v41  ;;  %v6138_v38 = vmul.f32 0.5, %v5570_v28 }
 0x6dd   : > { %7753 = vtanh.f32 %v6139_v43  ;;  %v6140_v32 = vmul.f32 0.5, %v5731_v33 }
 0x6de   : > { %7755 = vtanh.f32 %v6138_v38 }
 0x6df   : > { %v7744_v12 = vpop.eup %7743  ;;  %7757 = vtanh.f32 %v6140_v32 }
 0x6e0   : > { %v7746_v1 = vpop.eup %7745  ;;  %v6354_v17 = vadd.f32 1.0, %v7744_v12 }
 0x6e1   : > { %v7748_v4 = vpop.eup %7747  ;;  %v6356_v36 = vadd.f32 1.0, %v7746_v1 }
 0x6e2   : > { %v7750_v63 = vpop.eup %7749  ;;  %v6466_v30 = vmul.f32 0.5, %v6354_v17  ;;  %v6355_v3 = vadd.f32 1.0, %v7748_v4  ;;  %v5573_v50 = vpop.f32.mrf.mxu0 }
 0x6e3   : > { %v6468_v15 = vmul.f32 0.5, %v6356_v36  ;;  %v6357_v26 = vadd.f32 1.0, %v7750_v63  ;;  %v5734_v54 = vpop.f32.mrf.mxu1  ;;  %v5574_v44 = vadd.f32 %v5573_v50, %v12971_v58 }
 0x6e4   : > { %6578 = vst [vmem:[%s13014_s30 + $0x188] sm:$0xff] %v6466_v30  ;;  %v6467_v16 = vmul.f32 0.5, %v6355_v3  ;;  %v5735_v62 = vadd.f32 %v5734_v54, %v12974_v6  ;;  %v5575_v53 = vpop.f32.mrf.mxu0 }
 0x6e5   : > { %6580 = vst [vmem:[%s13014_s30 + $0x198] sm:$0xff] %v6468_v15  ;;  %v6469_v7 = vmul.f32 0.5, %v6357_v26  ;;  %v5736_v31 = vpop.f32.mrf.mxu1  ;;  %v6144_v27 = vmul.f32 0.5, %v5574_v44  ;;  %v5576_v11 = vadd.f32 %v5575_v53, %v12980_v9 }
 0x6e6   : > { %6579 = vst [vmem:[%s13014_s30 + $0x190] sm:$0xff] %v6467_v16  ;;  %v6146_v10 = vmul.f32 0.5, %v5735_v62  ;;  %v5737_v25 = vadd.f32 %v5736_v31, %v12983_v51 }
 0x6e7   : > { %6581 = vst [vmem:[%s13014_s30 + $0x1a0] sm:$0xff] %v6469_v7  ;;  %7759 = vtanh.f32 %v6144_v27  ;;  %v6145_v35 = vmul.f32 0.5, %v5576_v11 }
 0x6e8   : > { %v6147_v40 = vmul.f32 0.5, %v5737_v25  ;;  %7761 = vtanh.f32 %v6146_v10 }
 0x6e9   : > { %v7752_v61 = vpop.eup %7751  ;;  %7763 = vtanh.f32 %v6145_v35 }
 0x6ea   : > { %v7754_v57 = vpop.eup %7753  ;;  %v6361_v23 = vadd.f32 1.0, %v7752_v61  ;;  %7765 = vtanh.f32 %v6147_v40 }
 0x6eb   : > { %v7756_v13 = vpop.eup %7755  ;;  %v6363_v2 = vadd.f32 1.0, %v7754_v57 }
 0x6ec   : > { %v7758_v49 = vpop.eup %7757  ;;  %v6473_v52 = vmul.f32 0.5, %v6361_v23  ;;  %v6362_v47 = vadd.f32 1.0, %v7756_v13  ;;  %v5579_v5 = vpop.f32.mrf.mxu0 }
 0x6ed   : > { %v6475_v48 = vmul.f32 0.5, %v6363_v2  ;;  %v6364_v14 = vadd.f32 1.0, %v7758_v49  ;;  %v5740_v24 = vpop.f32.mrf.mxu1  ;;  %v5580_v45 = vadd.f32 %v5579_v5, %v12971_v58 }
 0x6ee   : > { %6585 = vst [vmem:[%s13014_s30 + $0x1c0] sm:$0xff] %v6473_v52  ;;  %v6474_v46 = vmul.f32 0.5, %v6362_v47  ;;  %v5741_v29 = vadd.f32 %v5740_v24, %v12974_v6  ;;  %v5581_v8 = vpop.f32.mrf.mxu0 }
 0x6ef   : > { %6587 = vst [vmem:[%s13014_s30 + $0x1d0] sm:$0xff] %v6475_v48  ;;  %v6476_v20 = vmul.f32 0.5, %v6364_v14  ;;  %v5742_v59 = vpop.f32.mrf.mxu1  ;;  %v6151_v19 = vmul.f32 0.5, %v5580_v45  ;;  %v5582_v21 = vadd.f32 %v5581_v8, %v12980_v9 }
 0x6f0   : > { %6586 = vst [vmem:[%s13014_s30 + $0x1c8] sm:$0xff] %v6474_v46  ;;  %v6153_v18 = vmul.f32 0.5, %v5741_v29  ;;  %v5743_v42 = vadd.f32 %v5742_v59, %v12983_v51 }
 0x6f1   : > { %6588 = vst [vmem:[%s13014_s30 + $0x1d8] sm:$0xff] %v6476_v20  ;;  %7767 = vtanh.f32 %v6151_v19  ;;  %v6152_v22 = vmul.f32 0.5, %v5582_v21 }
 0x6f2   : > { %v6154_v60 = vmul.f32 0.5, %v5743_v42  ;;  %7769 = vtanh.f32 %v6153_v18 }
 0x6f3   : > { %7771 = vtanh.f32 %v6152_v22 }
 0x6f4   : > { %v7760_v34 = vpop.eup %7759  ;;  %7773 = vtanh.f32 %v6154_v60  ;;  %v5585_v43 = vpop.f32.mrf.mxu0 }
 0x6f5   : > { %v7762_v37 = vpop.eup %7761  ;;  %v6368_v55 = vadd.f32 1.0, %v7760_v34  ;;  %v5746_v28 = vpop.f32.mrf.mxu1  ;;  %v5586_v12 = vadd.f32 %v5585_v43, %v12971_v58 }
 0x6f6   : > { %v7764_v39 = vpop.eup %7763  ;;  %v6370_v41 = vadd.f32 1.0, %v7762_v37  ;;  %v5747_v1 = vadd.f32 %v5746_v28, %v12974_v6  ;;  %v5587_v36 = vpop.f32.mrf.mxu0 }
 0x6f7   : > { %v7766_v33 = vpop.eup %7765  ;;  %v6480_v38 = vmul.f32 0.5, %v6368_v55  ;;  %v6369_v32 = vadd.f32 1.0, %v7764_v39  ;;  %v5748_v63 = vpop.f32.mrf.mxu1  ;;  %v6158_v3 = vmul.f32 0.5, %v5586_v12  ;;  %v5588_v26 = vadd.f32 %v5587_v36, %v12980_v9 }
 0x6f8   : > { %v6482_v17 = vmul.f32 0.5, %v6370_v41  ;;  %v6371_v4 = vadd.f32 1.0, %v7766_v33  ;;  %v6160_v15 = vmul.f32 0.5, %v5747_v1  ;;  %v5749_v7 = vadd.f32 %v5748_v63, %v12983_v51 }
 0x6f9   : > { %6592 = vst [vmem:[%s13014_s30 + $0x1f8] sm:$0xff] %v6480_v38  ;;  %v6481_v30 = vmul.f32 0.5, %v6369_v32  ;;  %7775 = vtanh.f32 %v6158_v3  ;;  %v6159_v44 = vmul.f32 0.5, %v5588_v26  ;;  %v5436_v38 = vsub.s32 4, %v13416_v0 }
 0x6fa   : > { %6594 = vst [vmem:[%s13014_s30 + $0x208] sm:$0xff] %v6482_v17  ;;  %v6483_v16 = vmul.f32 0.5, %v6371_v4  ;;  %7777 = vtanh.f32 %v6160_v15  ;;  %v6161_v31 = vmul.f32 0.5, %v5749_v7 }
 0x6fb   : > { %v5591_v50 = vpop.f32.mrf.mxu0  ;;  %v5752_v54 = vpop.f32.mrf.mxu1  ;;  %6593 = vst [vmem:[%s13014_s30 + $0x200] sm:$0xff] %v6481_v30  ;;  %7779 = vtanh.f32 %v6159_v44  ;;  %v13119_v44 = vrot.slane %v12962_v56, %v5436_v38 }
 0x6fc   : > { %v5592_v62 = vadd.f32 %v5591_v50, %v12971_v58  ;;  %v5753_v53 = vadd.f32 %v5752_v54, %v12974_v6  ;;  %6595 = vst [vmem:[%s13014_s30 + $0x210] sm:$0xff] %v6483_v16  ;;  %7781 = vtanh.f32 %v6161_v31  ;;  %v5440_v16 = vsub.s32 5, %v13416_v0 }
 0x6fd   : > { %v5593_v27 = vpop.f32.mrf.mxu0  ;;  %v5754_v10 = vpop.f32.mrf.mxu1 }
 0x6fe   : > { %v6165_v11 = vmul.f32 0.5, %v5592_v62  ;;  %v6167_v25 = vmul.f32 0.5, %v5753_v53  ;;  %v5594_v61 = vadd.f32 %v5593_v27, %v12980_v9  ;;  %v7768_v57 = vpop.eup %7767  ;;  %v5755_v23 = vadd.f32 %v5754_v10, %v12983_v51 }
 0x6ff   : > { %v7770_v35 = vpop.eup %7769  ;;  %v6375_v40 = vadd.f32 1.0, %v7768_v57  ;;  %v5597_v47 = vpop.f32.mrf.mxu0 }
 0x700   : > { %7783 = vtanh.f32 %v6165_v11  ;;  %v6166_v13 = vmul.f32 0.5, %v5594_v61  ;;  %v7772_v2 = vpop.eup %7771  ;;  %v6377_v49 = vadd.f32 1.0, %v7770_v35  ;;  %v6168_v52 = vmul.f32 0.5, %v5755_v23  ;;  %v5758_v48 = vpop.f32.mrf.mxu1 }
 0x701   : > { %7785 = vtanh.f32 %v6167_v25  ;;  %v7774_v14 = vpop.eup %7773  ;;  %v6487_v46 = vmul.f32 0.5, %v6375_v40  ;;  %v6376_v20 = vadd.f32 1.0, %v7772_v2  ;;  %v5598_v5 = vadd.f32 %v5597_v47, %v12971_v58  ;;  %v5599_v8 = vpop.f32.mrf.mxu0 }
 0x702   : > { %7787 = vtanh.f32 %v6166_v13  ;;  %v6489_v24 = vmul.f32 0.5, %v6377_v49  ;;  %v6378_v45 = vadd.f32 1.0, %v7774_v14  ;;  %v5759_v29 = vadd.f32 %v5758_v48, %v12974_v6  ;;  %v5760_v59 = vpop.f32.mrf.mxu1 }
 0x703   : > { %7789 = vtanh.f32 %v6168_v52  ;;  %6599 = vst [vmem:[%s13014_s30 + $0x230] sm:$0xff] %v6487_v46  ;;  %v6488_v19 = vmul.f32 0.5, %v6376_v20  ;;  %v6172_v18 = vmul.f32 0.5, %v5598_v5  ;;  %v5600_v21 = vadd.f32 %v5599_v8, %v12980_v9  ;;  %v5603_v34 = vpop.f32.mrf.mxu0 }
 0x704   : > { %v5761_v42 = vadd.f32 %v5760_v59, %v12983_v51  ;;  %6601 = vst [vmem:[%s13014_s30 + $0x240] sm:$0xff] %v6489_v24  ;;  %v6490_v22 = vmul.f32 0.5, %v6378_v45  ;;  %v6174_v60 = vmul.f32 0.5, %v5759_v29  ;;  %v5764_v37 = vpop.f32.mrf.mxu1  ;;  %v5604_v41 = vadd.f32 %v5603_v34, %v12971_v58 }
 0x705   : > { %6600 = vst [vmem:[%s13014_s30 + $0x238] sm:$0xff] %v6488_v19  ;;  %7791 = vtanh.f32 %v6172_v18  ;;  %v6173_v55 = vmul.f32 0.5, %v5600_v21  ;;  %v5765_v43 = vadd.f32 %v5764_v37, %v12974_v6  ;;  %v5605_v28 = vpop.f32.mrf.mxu0  ;;  %v5444_v11 = vsub.s32 6, %v13416_v0 }
 0x706   : > { %v6175_v39 = vmul.f32 0.5, %v5761_v42  ;;  %6602 = vst [vmem:[%s13014_s30 + $0x248] sm:$0xff] %v6490_v22  ;;  %7793 = vtanh.f32 %v6174_v60  ;;  %v5766_v33 = vpop.f32.mrf.mxu1  ;;  %v6179_v32 = vmul.f32 0.5, %v5604_v41  ;;  %v5606_v12 = vadd.f32 %v5605_v28, %v12980_v9  ;;  %v7776_v17 = vpop.eup %7775 }
 0x707   : > { %7795 = vtanh.f32 %v6173_v55  ;;  %v5767_v1 = vadd.f32 %v5766_v33, %v12983_v51  ;;  %v6181_v4 = vmul.f32 0.5, %v5765_v43  ;;  %v7778_v36 = vpop.eup %7777  ;;  %v6382_v63 = vadd.f32 1.0, %v7776_v17 }
 0x708   : > { %7797 = vtanh.f32 %v6175_v39  ;;  %v6180_v30 = vmul.f32 0.5, %v5606_v12  ;;  %v7780_v15 = vpop.eup %7779  ;;  %v6384_v26 = vadd.f32 1.0, %v7778_v36  ;;  %v13127_v47 = vrot.slane %v12962_v56, %v5440_v16 }
 0x709   : > { %7799 = vtanh.f32 %v6179_v32  ;;  %v6182_v3 = vmul.f32 0.5, %v5767_v1  ;;  %v7782_v7 = vpop.eup %7781  ;;  %v6494_v50 = vmul.f32 0.5, %v6382_v63  ;;  %v6383_v54 = vadd.f32 1.0, %v7780_v15  ;;  %v5609_v27 = vpop.f32.mrf.mxu0 }
 0x70a   : > { %7801 = vtanh.f32 %v6181_v4  ;;  %v6496_v53 = vmul.f32 0.5, %v6384_v26  ;;  %v6385_v31 = vadd.f32 1.0, %v7782_v7  ;;  %v5770_v10 = vpop.f32.mrf.mxu1  ;;  %v5610_v23 = vadd.f32 %v5609_v27, %v12971_v58 }
 0x70b   : > { %7803 = vtanh.f32 %v6180_v30  ;;  %6606 = vst [vmem:[%s13014_s30 + $0x268] sm:$0xff] %v6494_v50  ;;  %v6495_v61 = vmul.f32 0.5, %v6383_v54  ;;  %v5771_v35 = vadd.f32 %v5770_v10, %v12974_v6  ;;  %v5611_v49 = vpop.f32.mrf.mxu0  ;;  %v13136_v19 = vrot.slane %v12962_v56, %v5444_v11 }
 0x70c   : > { %7805 = vtanh.f32 %v6182_v3  ;;  %6608 = vst [vmem:[%s13014_s30 + $0x278] sm:$0xff] %v6496_v53  ;;  %v6497_v13 = vmul.f32 0.5, %v6385_v31  ;;  %v5772_v52 = vpop.f32.mrf.mxu1  ;;  %v6186_v46 = vmul.f32 0.5, %v5610_v23  ;;  %v5612_v5 = vadd.f32 %v5611_v49, %v12980_v9 }
 0x70d   : > { %v7784_v62 = vpop.eup %7783  ;;  %6607 = vst [vmem:[%s13014_s30 + $0x270] sm:$0xff] %v6495_v61  ;;  %v6188_v20 = vmul.f32 0.5, %v5771_v35  ;;  %v5773_v24 = vadd.f32 %v5772_v52, %v12983_v51  ;;  %v5841_v45 = vpop.f32.mrf.mxu0 }
 0x70e   : > { %v7786_v25 = vpop.eup %7785  ;;  %v6389_v57 = vadd.f32 1.0, %v7784_v62  ;;  %6609 = vst [vmem:[%s13014_s30 + $0x280] sm:$0xff] %v6497_v13  ;;  %v7019_v29 = vpop.f32.mrf.mxu1  ;;  %7807 = vtanh.f32 %v6186_v46  ;;  %v5842_v59 = vadd.f32 %v5841_v45, %v13119_v44  ;;  %v6187_v42 = vmul.f32 0.5, %v5612_v5 }
 0x70f   : > { %v7788_v40 = vpop.eup %7787  ;;  %v6391_v2 = vadd.f32 1.0, %v7786_v25  ;;  %7809 = vtanh.f32 %v6188_v20  ;;  %v6189_v9 = vmul.f32 0.5, %v5773_v24  ;;  %v5843_v22 = vpop.f32.mrf.mxu0 }
 0x710   : > { %v7790_v0 = vpop.eup %7789  ;;  %v6501_v48 = vmul.f32 0.5, %v6389_v57  ;;  %v6390_v14 = vadd.f32 1.0, %v7788_v40  ;;  %v7020_v51 = vpop.f32.mrf.mxu1  ;;  %v6085_v37 = vmul.f32 0.5, %v5842_v59  ;;  %v5844_v55 = vadd.f32 %v5843_v22, %v13127_v47 }
 0x711   : > { %v6503_v58 = vmul.f32 0.5, %v6391_v2  ;;  %v6392_v6 = vadd.f32 1.0, %v7790_v0  ;;  %v7021_v39 = vadd.f32 %v7020_v51, %v7019_v29  ;;  %7811 = vtanh.f32 %v6187_v42  ;;  %v5847_v43 = vpop.f32.mrf.mxu0 }
 0x712   : > { %6613 = vst [vmem:[%s13014_s30 + $0x2a0] sm:$0xff] %v6501_v48  ;;  %v6502_v8 = vmul.f32 0.5, %v6390_v14  ;;  %v7792_v18 = vpop.eup %7791  ;;  %v7022_v28 = vpop.f32.mrf.mxu1  ;;  %7813 = vtanh.f32 %v6189_v9  ;;  %v6086_v12 = vmul.f32 0.5, %v5844_v55  ;;  %v5848_v16 = vadd.f32 %v5847_v43, %v13119_v44 }
 0x713   : > { %6615 = vst [vmem:[%s13014_s30 + $0x2b0] sm:$0xff] %v6503_v58  ;;  %v6504_v21 = vmul.f32 0.5, %v6392_v6  ;;  %v7794_v60 = vpop.eup %7793  ;;  %v6396_v34 = vadd.f32 1.0, %v7792_v18  ;;  %7815 = vtanh.f32 %v6085_v37  ;;  %v6003_v36 = vadd.f32 %v7021_v39, %v13136_v19  ;;  %v5849_v63 = vpop.f32.mrf.mxu0 }
 0x714   : > { %6614 = vst [vmem:[%s13014_s30 + $0x2a8] sm:$0xff] %v6502_v8  ;;  %v7796_v41 = vpop.eup %7795  ;;  %v6398_v56 = vadd.f32 1.0, %v7794_v60  ;;  %v7023_v30 = vpop.f32.mrf.mxu1  ;;  %7817 = vtanh.f32 %v6086_v12  ;;  %v5850_v53 = vadd.f32 %v5849_v63, %v13127_v47  ;;  %v6092_v61 = vmul.f32 0.5, %v5848_v16 }
 0x715   : > { %6616 = vst [vmem:[%s13014_s30 + $0x2b8] sm:$0xff] %v6504_v21  ;;  %v7798_v33 = vpop.eup %7797  ;;  %v6508_v38 = vmul.f32 0.5, %v6396_v34  ;;  %v6397_v32 = vadd.f32 1.0, %v7796_v41  ;;  %v6087_v62 = vmul.f32 0.5, %v6003_v36  ;;  %v5853_v31 = vpop.f32.mrf.mxu0  ;;  %v7024_v57 = vadd.f32 %v7023_v30, %v7022_v28 }
 0x716   : > { %v7800_v1 = vpop.eup %7799  ;;  %v6510_v17 = vmul.f32 0.5, %v6398_v56  ;;  %v6399_v4 = vadd.f32 1.0, %v7798_v33  ;;  %v7025_v27 = vpop.f32.mrf.mxu1  ;;  %v6093_v40 = vmul.f32 0.5, %v5850_v53  ;;  %v5854_v0 = vadd.f32 %v5853_v31, %v13119_v44 }
 0x717   : > { %v7802_v3 = vpop.eup %7801  ;;  %6620 = vst [vmem:[%s13014_s30 + $0x2d8] sm:$0xff] %v6508_v38  ;;  %v6509_v15 = vmul.f32 0.5, %v6397_v32  ;;  %v6403_v26 = vadd.f32 1.0, %v7800_v1  ;;  %7819 = vtanh.f32 %v6087_v62  ;;  %v5855_v13 = vpop.f32.mrf.mxu0  ;;  %v6008_v52 = vadd.f32 %v7024_v57, %v13136_v19 }
 0x718   : > { %v7804_v7 = vpop.eup %7803  ;;  %6622 = vst [vmem:[%s13014_s30 + $0x2e8] sm:$0xff] %v6510_v17  ;;  %v6511_v50 = vmul.f32 0.5, %v6399_v4  ;;  %v6405_v54 = vadd.f32 1.0, %v7802_v3  ;;  %v7026_v2 = vpop.f32.mrf.mxu1  ;;  %7821 = vtanh.f32 %v6092_v61  ;;  %v5856_v14 = vadd.f32 %v5855_v13, %v13127_v47 }
 0x719   : > { %v7806_v10 = vpop.eup %7805  ;;  %6621 = vst [vmem:[%s13014_s30 + $0x2e0] sm:$0xff] %v6509_v15  ;;  %v6515_v11 = vmul.f32 0.5, %v6403_v26  ;;  %v6404_v25 = vadd.f32 1.0, %v7804_v7  ;;  %7823 = vtanh.f32 %v6093_v40  ;;  %v7027_v46 = vadd.f32 %v7026_v2, %v7025_v27  ;;  %v5859_v20 = vpop.f32.mrf.mxu0 }
 0x71a   : > { %6623 = vst [vmem:[%s13014_s30 + $0x2f0] sm:$0xff] %v6511_v50  ;;  %v6517_v23 = vmul.f32 0.5, %v6405_v54  ;;  %v6406_v35 = vadd.f32 1.0, %v7806_v10  ;;  %v7028_v58 = vpop.f32.mrf.mxu1  ;;  %v6094_v6 = vmul.f32 0.5, %v6008_v52  ;;  %v6099_v5 = vmul.f32 0.5, %v5854_v0 }
 0x71b   : > { %6627 = vst [vmem:[%s13014_s30 + $0x310] sm:$0xff] %v6515_v11  ;;  %v6516_v49 = vmul.f32 0.5, %v6404_v25  ;;  %v5860_v24 = vadd.f32 %v5859_v20, %v13119_v44  ;;  %v7808_v45 = vpop.eup %7807  ;;  %v6100_v29 = vmul.f32 0.5, %v5856_v14  ;;  %v6013_v8 = vadd.f32 %v7027_v46, %v13136_v19  ;;  %v5861_v59 = vpop.f32.mrf.mxu0 }
 0x71c   : > { %6629 = vst [vmem:[%s13014_s30 + $0x320] sm:$0xff] %v6517_v23  ;;  %v6518_v48 = vmul.f32 0.5, %v6406_v35  ;;  %v7029_v18 = vpop.f32.mrf.mxu1  ;;  %v7810_v21 = vpop.eup %7809  ;;  %v6410_v42 = vadd.f32 1.0, %v7808_v45  ;;  %7825 = vtanh.f32 %v6094_v6  ;;  %v5862_v22 = vadd.f32 %v5861_v59, %v13127_v47 }
 0x71d   : > { %6628 = vst [vmem:[%s13014_s30 + $0x318] sm:$0xff] %v6516_v49  ;;  %v6106_v9 = vmul.f32 0.5, %v5860_v24  ;;  %v6412_v51 = vadd.f32 1.0, %v7810_v21  ;;  %7827 = vtanh.f32 %v6099_v5  ;;  %v6101_v60 = vmul.f32 0.5, %v6013_v8  ;;  %v5865_v37 = vpop.f32.mrf.mxu0 }
 0x71e   : > { %6630 = vst [vmem:[%s13014_s30 + $0x328] sm:$0xff] %v6518_v48  ;;  %v7030_v34 = vadd.f32 %v7029_v18, %v7028_v58  ;;  %v7031_v55 = vpop.f32.mrf.mxu1  ;;  %v7812_v39 = vpop.eup %7811  ;;  %v6522_v41 = vmul.f32 0.5, %v6410_v42  ;;  %7829 = vtanh.f32 %v6100_v29  ;;  %v6107_v56 = vmul.f32 0.5, %v5862_v22 }
 0x71f   : > { %v5866_v43 = vadd.f32 %v5865_v37, %v13119_v44  ;;  %v7814_v28 = vpop.eup %7813  ;;  %v6524_v33 = vmul.f32 0.5, %v6412_v51  ;;  %v6411_v38 = vadd.f32 1.0, %v7812_v39  ;;  %7831 = vtanh.f32 %v6101_v60  ;;  %v5867_v12 = vpop.f32.mrf.mxu0 }
 0x720   : > { %v6018_v32 = vadd.f32 %v7030_v34, %v13136_v19  ;;  %v7032_v1 = vpop.f32.mrf.mxu1  ;;  %v7816_v17 = vpop.eup %7815  ;;  %6634 = vst [vmem:[%s13014_s30 + $0x348] sm:$0xff] %v6522_v41  ;;  %v6413_v4 = vadd.f32 1.0, %v7814_v28  ;;  %7833 = vtanh.f32 %v6106_v9  ;;  %v5868_v63 = vadd.f32 %v5867_v12, %v13127_v47 }
 0x721   : > { %v6113_v36 = vmul.f32 0.5, %v5866_v43  ;;  %v7818_v30 = vpop.eup %7817  ;;  %6636 = vst [vmem:[%s13014_s30 + $0x358] sm:$0xff] %v6524_v33  ;;  %v6523_v3 = vmul.f32 0.5, %v6411_v38  ;;  %v6309_v15 = vadd.f32 1.0, %v7816_v17  ;;  %7835 = vtanh.f32 %v6107_v56  ;;  %v5871_v16 = vpop.f32.mrf.mxu0 }
 0x722   : > { %v6108_v26 = vmul.f32 0.5, %v6018_v32  ;;  %v7034_v7 = vpop.f32.mrf.mxu1  ;;  %v6525_v50 = vmul.f32 0.5, %v6413_v4  ;;  %v6310_v54 = vadd.f32 1.0, %v7818_v30  ;;  %v6114_v62 = vmul.f32 0.5, %v5868_v63 }
 0x723   : > { %7837 = vtanh.f32 %v6113_v36  ;;  %6635 = vst [vmem:[%s13014_s30 + $0x350] sm:$0xff] %v6523_v3  ;;  %v6421_v53 = vmul.f32 0.5, %v6309_v15  ;;  %v7033_v31 = vadd.f32 %v7032_v1, %v7031_v55  ;;  %v5872_v27 = vadd.f32 %v5871_v16, %v13119_v44  ;;  %v5873_v10 = vpop.f32.mrf.mxu0 }
 0x724   : > { %7839 = vtanh.f32 %v6108_v26  ;;  %v7035_v11 = vpop.f32.mrf.mxu1  ;;  %v7820_v25 = vpop.eup %7819  ;;  %6637 = vst [vmem:[%s13014_s30 + $0x360] sm:$0xff] %v6525_v50  ;;  %v6422_v61 = vmul.f32 0.5, %v6310_v54  ;;  %v5874_v57 = vadd.f32 %v5873_v10, %v13127_v47 }
 0x725   : > { %7841 = vtanh.f32 %v6114_v62  ;;  %v7036_v23 = vadd.f32 %v7035_v11, %v7034_v7  ;;  %v7822_v35 = vpop.eup %7821  ;;  %6533 = vst [vmem:[%s13014_s30 + $0x20] sm:$0xff] %v6421_v53  ;;  %v6311_v40 = vadd.f32 1.0, %v7820_v25  ;;  %v6023_v13 = vadd.f32 %v7033_v31, %v13136_v19  ;;  %v5877_v49 = vpop.f32.mrf.mxu0 }
 0x726   : > { %v6120_v2 = vmul.f32 0.5, %v5872_v27  ;;  %v7037_v52 = vpop.f32.mrf.mxu1  ;;  %v7824_v0 = vpop.eup %7823  ;;  %6534 = vst [vmem:[%s13014_s30 + $0x28] sm:$0xff] %v6422_v61  ;;  %v6316_v48 = vadd.f32 1.0, %v7822_v35  ;;  %v6121_v14 = vmul.f32 0.5, %v5874_v57  ;;  %v5878_v20 = vadd.f32 %v5877_v49, %v13119_v44 }
 0x727   : > { %v6028_v46 = vadd.f32 %v7036_v23, %v13136_v19  ;;  %v6423_v58 = vmul.f32 0.5, %v6311_v40  ;;  %v6317_v6 = vadd.f32 1.0, %v7824_v0  ;;  %v6115_v5 = vmul.f32 0.5, %v6023_v13  ;;  %v5879_v24 = vpop.f32.mrf.mxu0 }
 0x728   : > { %7843 = vtanh.f32 %v6120_v2  ;;  %v7038_v45 = vpop.f32.mrf.mxu1  ;;  %v6428_v29 = vmul.f32 0.5, %v6316_v48  ;;  %v6127_v59 = vmul.f32 0.5, %v5878_v20  ;;  %v5880_v42 = vadd.f32 %v5879_v24, %v13127_v47 }
 0x729   : > { %7845 = vtanh.f32 %v6121_v14  ;;  %v6122_v8 = vmul.f32 0.5, %v6028_v46  ;;  %v7826_v18 = vpop.eup %7825  ;;  %6535 = vst.msk [vmem:[%s13014_s30 + $0x30] sm:$0xff] %vm859_vm0, %v6423_v58  ;;  %v6429_v21 = vmul.f32 0.5, %v6317_v6  ;;  %v7039_v9 = vadd.f32 %v7038_v45, %v7037_v52  ;;  %v5883_v22 = vpop.f32.mrf.mxu0 }
 0x72a   : > { %7847 = vtanh.f32 %v6115_v5  ;;  %v7040_v51 = vpop.f32.mrf.mxu1  ;;  %v7828_v60 = vpop.eup %7827  ;;  %6540 = vst [vmem:[%s13014_s30 + $0x58] sm:$0xff] %v6428_v29  ;;  %v6318_v34 = vadd.f32 1.0, %v7826_v18  ;;  %v5884_v37 = vadd.f32 %v5883_v22, %v13119_v44  ;;  %v6128_v41 = vmul.f32 0.5, %v5880_v42 }
 0x72b   : > { %7849 = vtanh.f32 %v6122_v8  ;;  %v7830_v55 = vpop.eup %7829  ;;  %6541 = vst [vmem:[%s13014_s30 + $0x60] sm:$0xff] %v6429_v21  ;;  %v6323_v39 = vadd.f32 1.0, %v7828_v60  ;;  %v6033_v56 = vadd.f32 %v7039_v9, %v13136_v19  ;;  %v5885_v43 = vpop.f32.mrf.mxu0 }
 0x72c   : > { %7851 = vtanh.f32 %v6127_v59  ;;  %v7041_v28 = vpop.f32.mrf.mxu1  ;;  %v7832_v33 = vpop.eup %7831  ;;  %v6430_v38 = vmul.f32 0.5, %v6318_v34  ;;  %v6324_v32 = vadd.f32 1.0, %v7830_v55  ;;  %v6134_v12 = vmul.f32 0.5, %v5884_v37 }
 0x72d   : > { %v5886_v1 = vadd.f32 %v5885_v43, %v13127_v47  ;;  %v7834_v17 = vpop.eup %7833  ;;  %v6435_v4 = vmul.f32 0.5, %v6323_v39  ;;  %v6325_v36 = vadd.f32 1.0, %v7832_v33  ;;  %7853 = vtanh.f32 %v6128_v41  ;;  %v5889_v30 = vpop.f32.mrf.mxu0 }
 0x72e   : > { %v6129_v63 = vmul.f32 0.5, %v6033_v56  ;;  %v7043_v3 = vpop.f32.mrf.mxu1  ;;  %v7836_v15 = vpop.eup %7835  ;;  %6542 = vst.msk [vmem:[%s13014_s30 + $0x68] sm:$0xff] %vm859_vm0, %v6430_v38  ;;  %v6436_v26 = vmul.f32 0.5, %v6324_v32  ;;  %v6330_v16 = vadd.f32 1.0, %v7834_v17  ;;  %7855 = vtanh.f32 %v6134_v12 }
 0x72f   : > { %v6135_v7 = vmul.f32 0.5, %v5886_v1  ;;  %6547 = vst [vmem:[%s13014_s30 + $0x90] sm:$0xff] %v6435_v4  ;;  %v6437_v54 = vmul.f32 0.5, %v6325_v36  ;;  %v6331_v62 = vadd.f32 1.0, %v7836_v15  ;;  %v7042_v53 = vadd.f32 %v7041_v28, %v7040_v51  ;;  %v5891_v31 = vpop.f32.mrf.mxu0 }
 0x730   : > { %v7838_v50 = vpop.eup %7837  ;;  %7857 = vtanh.f32 %v6129_v63  ;;  %v7044_v27 = vpop.f32.mrf.mxu1  ;;  %6548 = vst [vmem:[%s13014_s30 + $0x98] sm:$0xff] %v6436_v26  ;;  %v6442_v11 = vmul.f32 0.5, %v6330_v16  ;;  %v5890_v61 = vadd.f32 %v5889_v30, %v13119_v44  ;;  %v5892_v13 = vadd.f32 %v5891_v31, %v13127_v47 }
 0x731   : > { %v7840_v10 = vpop.eup %7839  ;;  %v6337_v25 = vadd.f32 1.0, %v7838_v50  ;;  %7859 = vtanh.f32 %v6135_v7  ;;  %6549 = vst.msk [vmem:[%s13014_s30 + $0xa0] sm:$0xff] %vm859_vm0, %v6437_v54  ;;  %v6443_v23 = vmul.f32 0.5, %v6331_v62  ;;  %v6038_v40 = vadd.f32 %v7042_v53, %v13136_v19  ;;  %v5895_v2 = vpop.f32.mrf.mxu0 }
 0x732   : > { %v7842_v57 = vpop.eup %7841  ;;  %v6332_v35 = vadd.f32 1.0, %v7840_v10  ;;  %v7046_v49 = vpop.f32.mrf.mxu1  ;;  %6554 = vst [vmem:[%s13014_s30 + $0xc8] sm:$0xff] %v6442_v11  ;;  %v6141_v48 = vmul.f32 0.5, %v5890_v61  ;;  %v7045_v14 = vadd.f32 %v7044_v27, %v7043_v3  ;;  %v6142_v58 = vmul.f32 0.5, %v5892_v13 }
 0x733   : > { %v6449_v52 = vmul.f32 0.5, %v6337_v25  ;;  %v6338_v0 = vadd.f32 1.0, %v7842_v57  ;;  %6555 = vst [vmem:[%s13014_s30 + $0xd0] sm:$0xff] %v6443_v23  ;;  %v6136_v20 = vmul.f32 0.5, %v6038_v40  ;;  %v5896_v6 = vadd.f32 %v5895_v2, %v13119_v44  ;;  %v5897_v5 = vpop.f32.mrf.mxu0 }
 0x734   : > { %v6444_v46 = vmul.f32 0.5, %v6332_v35  ;;  %v7047_v24 = vpop.f32.mrf.mxu1  ;;  %7861 = vtanh.f32 %v6141_v48  ;;  %v6043_v8 = vadd.f32 %v7045_v14, %v13136_v19  ;;  %v5898_v59 = vadd.f32 %v5897_v5, %v13127_v47 }
 0x735   : > { %v7844_v45 = vpop.eup %7843  ;;  %6561 = vst [vmem:[%s13014_s30 + $0x100] sm:$0xff] %v6449_v52  ;;  %v6450_v29 = vmul.f32 0.5, %v6338_v0  ;;  %7863 = vtanh.f32 %v6136_v20  ;;  %v6148_v42 = vmul.f32 0.5, %v5896_v6  ;;  %v7048_v9 = vadd.f32 %v7047_v24, %v7046_v49  ;;  %v5901_v22 = vpop.f32.mrf.mxu0 }
 0x736   : > { %v7846_v18 = vpop.eup %7845  ;;  %6556 = vst.msk [vmem:[%s13014_s30 + $0xd8] sm:$0xff] %vm859_vm0, %v6444_v46  ;;  %v6344_v21 = vadd.f32 1.0, %v7844_v45  ;;  %v7049_v51 = vpop.f32.mrf.mxu1  ;;  %7865 = vtanh.f32 %v6142_v58  ;;  %v6143_v37 = vmul.f32 0.5, %v6043_v8  ;;  %v6149_v55 = vmul.f32 0.5, %v5898_v59 }
 0x737   : > { %v7848_v60 = vpop.eup %7847  ;;  %6562 = vst [vmem:[%s13014_s30 + $0x108] sm:$0xff] %v6450_v29  ;;  %v6345_v34 = vadd.f32 1.0, %v7846_v18  ;;  %7867 = vtanh.f32 %v6148_v42  ;;  %v6048_v43 = vadd.f32 %v7048_v9, %v13136_v19  ;;  %v5903_v28 = vpop.f32.mrf.mxu0  ;;  %v5902_v1 = vadd.f32 %v5901_v22, %v13119_v44 }
 0x738   : > { %v7850_v39 = vpop.eup %7849  ;;  %v6339_v41 = vadd.f32 1.0, %v7848_v60  ;;  %v6456_v56 = vmul.f32 0.5, %v6344_v21  ;;  %v7050_v33 = vpop.f32.mrf.mxu1  ;;  %7869 = vtanh.f32 %v6143_v37  ;;  %v5904_v16 = vadd.f32 %v5903_v28, %v13127_v47 }
 0x739   : > { %v7852_v38 = vpop.eup %7851  ;;  %v6457_v32 = vmul.f32 0.5, %v6345_v34  ;;  %v6346_v12 = vadd.f32 1.0, %v7850_v39  ;;  %7871 = vtanh.f32 %v6149_v55  ;;  %v6150_v36 = vmul.f32 0.5, %v6048_v43  ;;  %v5907_v63 = vpop.f32.mrf.mxu0 }
 0x73a   : > { %v6451_v17 = vmul.f32 0.5, %v6339_v41  ;;  %6568 = vst [vmem:[%s13014_s30 + $0x138] sm:$0xff] %v6456_v56  ;;  %v6351_v4 = vadd.f32 1.0, %v7852_v38  ;;  %v7052_v30 = vpop.f32.mrf.mxu1  ;;  %v7854_v3 = vpop.eup %7853  ;;  %v6155_v26 = vmul.f32 0.5, %v5902_v1  ;;  %v7051_v7 = vadd.f32 %v7050_v33, %v7049_v51 }
 0x73b   : > { %6569 = vst [vmem:[%s13014_s30 + $0x140] sm:$0xff] %v6457_v32  ;;  %v6458_v15 = vmul.f32 0.5, %v6346_v12  ;;  %v7856_v50 = vpop.eup %7855  ;;  %v6352_v62 = vadd.f32 1.0, %v7854_v3  ;;  %7873 = vtanh.f32 %v6150_v36  ;;  %v5908_v53 = vadd.f32 %v5907_v63, %v13119_v44  ;;  %v5909_v31 = vpop.f32.mrf.mxu0 }
 0x73c   : > { %6563 = vst.msk [vmem:[%s13014_s30 + $0x110] sm:$0xff] %vm859_vm0, %v6451_v17  ;;  %v6463_v54 = vmul.f32 0.5, %v6351_v4  ;;  %v7053_v27 = vpop.f32.mrf.mxu1  ;;  %v6358_v11 = vadd.f32 1.0, %v7856_v50  ;;  %7875 = vtanh.f32 %v6155_v26  ;;  %v6156_v25 = vmul.f32 0.5, %v5904_v16 }
 0x73d   : > { %v7858_v10 = vpop.eup %7857  ;;  %6570 = vst.msk [vmem:[%s13014_s30 + $0x148] sm:$0xff] %vm859_vm0, %v6458_v15  ;;  %v6053_v61 = vadd.f32 %v7051_v7, %v13136_v19  ;;  %v6464_v23 = vmul.f32 0.5, %v6352_v62  ;;  %v6162_v40 = vmul.f32 0.5, %v5908_v53  ;;  %v5910_v13 = vadd.f32 %v5909_v31, %v13127_v47  ;;  %v5913_v2 = vpop.f32.mrf.mxu0 }
 0x73e   : > { %v7860_v57 = vpop.eup %7859  ;;  %6575 = vst [vmem:[%s13014_s30 + $0x170] sm:$0xff] %v6463_v54  ;;  %v6353_v35 = vadd.f32 1.0, %v7858_v10  ;;  %v7055_v49 = vpop.f32.mrf.mxu1  ;;  %v6470_v52 = vmul.f32 0.5, %v6358_v11  ;;  %7877 = vtanh.f32 %v6156_v25  ;;  %v7054_v20 = vadd.f32 %v7053_v27, %v7052_v30 }
 0x73f   : > { %v6359_v0 = vadd.f32 1.0, %v7860_v57  ;;  %v6157_v48 = vmul.f32 0.5, %v6053_v61  ;;  %6576 = vst [vmem:[%s13014_s30 + $0x178] sm:$0xff] %v6464_v23  ;;  %7879 = vtanh.f32 %v6162_v40  ;;  %v6163_v46 = vmul.f32 0.5, %v5910_v13  ;;  %v5915_v58 = vpop.f32.mrf.mxu0 }
 0x740   : > { %v6465_v14 = vmul.f32 0.5, %v6353_v35  ;;  %v7056_v6 = vpop.f32.mrf.mxu1  ;;  %6582 = vst [vmem:[%s13014_s30 + $0x1a8] sm:$0xff] %v6470_v52  ;;  %v5914_v24 = vadd.f32 %v5913_v2, %v13119_v44  ;;  %v5916_v45 = vadd.f32 %v5915_v58, %v13127_v47  ;;  %v6058_v8 = vadd.f32 %v7054_v20, %v13136_v19 }
 0x741   : > { %v6471_v5 = vmul.f32 0.5, %v6359_v0  ;;  %7881 = vtanh.f32 %v6157_v48  ;;  %v7862_v29 = vpop.eup %7861  ;;  %v7057_v59 = vadd.f32 %v7056_v6, %v7055_v49  ;;  %v5919_v18 = vpop.f32.mrf.mxu0 }
 0x742   : > { %6577 = vst.msk [vmem:[%s13014_s30 + $0x180] sm:$0xff] %vm859_vm0, %v6465_v14  ;;  %7883 = vtanh.f32 %v6163_v46  ;;  %v7058_v21 = vpop.f32.mrf.mxu1  ;;  %v7864_v42 = vpop.eup %7863  ;;  %v6365_v9 = vadd.f32 1.0, %v7862_v29  ;;  %v6169_v22 = vmul.f32 0.5, %v5914_v24  ;;  %v6170_v51 = vmul.f32 0.5, %v5916_v45 }
 0x743   : > { %6583 = vst [vmem:[%s13014_s30 + $0x1b0] sm:$0xff] %v6471_v5  ;;  %v5920_v60 = vadd.f32 %v5919_v18, %v13119_v44  ;;  %v7866_v34 = vpop.eup %7865  ;;  %v6360_v37 = vadd.f32 1.0, %v7864_v42  ;;  %v6164_v55 = vmul.f32 0.5, %v6058_v8  ;;  %v6063_v39 = vadd.f32 %v7057_v59, %v13136_v19  ;;  %v5921_v41 = vpop.f32.mrf.mxu0 }
 0x744   : > { %v7059_v56 = vpop.f32.mrf.mxu1  ;;  %v7868_v43 = vpop.eup %7867  ;;  %v6477_v28 = vmul.f32 0.5, %v6365_v9  ;;  %v6366_v33 = vadd.f32 1.0, %v7866_v34  ;;  %7885 = vtanh.f32 %v6169_v22  ;;  %v5922_v15 = vadd.f32 %v5921_v41, %v13127_v47 }
 0x745   : > { %v6176_v38 = vmul.f32 0.5, %v5920_v60  ;;  %v7870_v32 = vpop.eup %7869  ;;  %v6472_v12 = vmul.f32 0.5, %v6360_v37  ;;  %v6372_v1 = vadd.f32 1.0, %v7868_v43  ;;  %7887 = vtanh.f32 %v6164_v55  ;;  %v5925_v4 = vpop.f32.mrf.mxu0 }
 0x746   : > { %v6171_v17 = vmul.f32 0.5, %v6063_v39  ;;  %v7061_v36 = vpop.f32.mrf.mxu1  ;;  %v7872_v63 = vpop.eup %7871  ;;  %6589 = vst [vmem:[%s13014_s30 + $0x1e0] sm:$0xff] %v6477_v28  ;;  %v6478_v30 = vmul.f32 0.5, %v6366_v33  ;;  %v6367_v3 = vadd.f32 1.0, %v7870_v32  ;;  %7889 = vtanh.f32 %v6170_v51 }
 0x747   : > { %6584 = vst.msk [vmem:[%s13014_s30 + $0x1b8] sm:$0xff] %vm859_vm0, %v6472_v12  ;;  %v6484_v26 = vmul.f32 0.5, %v6372_v1  ;;  %v6373_v16 = vadd.f32 1.0, %v7872_v63  ;;  %v7060_v7 = vadd.f32 %v7059_v56, %v7058_v21  ;;  %v5927_v50 = vpop.f32.mrf.mxu0  ;;  %v6177_v31 = vmul.f32 0.5, %v5922_v15 }
 0x748   : > { %7891 = vtanh.f32 %v6171_v17  ;;  %v7062_v54 = vpop.f32.mrf.mxu1  ;;  %v7874_v62 = vpop.eup %7873  ;;  %6590 = vst [vmem:[%s13014_s30 + $0x1e8] sm:$0xff] %v6478_v30  ;;  %v6479_v53 = vmul.f32 0.5, %v6367_v3  ;;  %v5926_v27 = vadd.f32 %v5925_v4, %v13119_v44  ;;  %v5928_v57 = vadd.f32 %v5927_v50, %v13127_v47 }
 0x749   : > { %7893 = vtanh.f32 %v6176_v38  ;;  %v7876_v10 = vpop.eup %7875  ;;  %6596 = vst [vmem:[%s13014_s30 + $0x218] sm:$0xff] %v6484_v26  ;;  %v6485_v11 = vmul.f32 0.5, %v6373_v16  ;;  %v6374_v25 = vadd.f32 1.0, %v7874_v62  ;;  %v6068_v61 = vadd.f32 %v7060_v7, %v13136_v19  ;;  %v5931_v23 = vpop.f32.mrf.mxu0 }
 0x74a   : > { %v7064_v35 = vpop.f32.mrf.mxu1  ;;  %6591 = vst.msk [vmem:[%s13014_s30 + $0x1f0] sm:$0xff] %vm859_vm0, %v6479_v53  ;;  %v6379_v40 = vadd.f32 1.0, %v7876_v10  ;;  %7895 = vtanh.f32 %v6177_v31  ;;  %v6183_v13 = vmul.f32 0.5, %v5926_v27  ;;  %v7063_v2 = vadd.f32 %v7062_v54, %v7061_v36 }
 0x74b   : > { %v7878_v49 = vpop.eup %7877  ;;  %6597 = vst [vmem:[%s13014_s30 + $0x220] sm:$0xff] %v6485_v11  ;;  %v6486_v52 = vmul.f32 0.5, %v6374_v25  ;;  %v6178_v0 = vmul.f32 0.5, %v6068_v61  ;;  %v6184_v48 = vmul.f32 0.5, %v5928_v57  ;;  %v5932_v14 = vadd.f32 %v5931_v23, %v13119_v44  ;;  %v5933_v46 = vpop.f32.mrf.mxu0 }
 0x74c   : > { %v7880_v20 = vpop.eup %7879  ;;  %v6491_v58 = vmul.f32 0.5, %v6379_v40  ;;  %v6380_v6 = vadd.f32 1.0, %v7878_v49  ;;  %7897 = vtanh.f32 %v6183_v13  ;;  %v6073_v5 = vadd.f32 %v7063_v2, %v13136_v19  ;;  %v7065_v59 = vpop.f32.mrf.mxu1 }
 0x74d   : > { %6598 = vst.msk [vmem:[%s13014_s30 + $0x228] sm:$0xff] %vm859_vm0, %v6486_v52  ;;  %v6386_v45 = vadd.f32 1.0, %v7880_v20  ;;  %7899 = vtanh.f32 %v6178_v0  ;;  %v6190_v29 = vmul.f32 0.5, %v5932_v14  ;;  %v5934_v8 = vadd.f32 %v5933_v46, %v13127_v47 }
 0x74e   : > { %v7882_v24 = vpop.eup %7881  ;;  %6603 = vst [vmem:[%s13014_s30 + $0x250] sm:$0xff] %v6491_v58  ;;  %v6492_v44 = vmul.f32 0.5, %v6380_v6  ;;  %7901 = vtanh.f32 %v6184_v48  ;;  %v6185_v42 = vmul.f32 0.5, %v6073_v5  ;;  %v7066_v34 = vadd.f32 %v7065_v59, %v7064_v35 }
 0x74f   : > { %v7884_v18 = vpop.eup %7883  ;;  %v6381_v21 = vadd.f32 1.0, %v7882_v24  ;;  %v6498_v9 = vmul.f32 0.5, %v6386_v45  ;;  %7903 = vtanh.f32 %v6190_v29  ;;  %v6191_v51 = vmul.f32 0.5, %v5934_v8 }
 0x750   : > { %v6387_v22 = vadd.f32 1.0, %v7884_v18  ;;  %6604 = vst [vmem:[%s13014_s30 + $0x258] sm:$0xff] %v6492_v44  ;;  %7905 = vtanh.f32 %v6185_v42  ;;  %v6078_v41 = vadd.f32 %v7066_v34, %v13136_v19 }
 0x751   : > { %v6493_v60 = vmul.f32 0.5, %v6381_v21  ;;  %v7886_v37 = vpop.eup %7885  ;;  %6610 = vst [vmem:[%s13014_s30 + $0x288] sm:$0xff] %v6498_v9  ;;  %7907 = vtanh.f32 %v6191_v51 }
 0x752   : > { %v6499_v47 = vmul.f32 0.5, %v6387_v22  ;;  %v7888_v55 = vpop.eup %7887  ;;  %v6393_v39 = vadd.f32 1.0, %v7886_v37  ;;  %v6192_v32 = vmul.f32 0.5, %v6078_v41 }
 0x753   : > { %6605 = vst.msk [vmem:[%s13014_s30 + $0x260] sm:$0xff] %vm859_vm0, %v6493_v60  ;;  %v7890_v56 = vpop.eup %7889  ;;  %v6388_v43 = vadd.f32 1.0, %v7888_v55 }
 0x754   : > { %6611 = vst [vmem:[%s13014_s30 + $0x290] sm:$0xff] %v6499_v47  ;;  %v6505_v33 = vmul.f32 0.5, %v6393_v39  ;;  %v6394_v38 = vadd.f32 1.0, %v7890_v56  ;;  %7909 = vtanh.f32 %v6192_v32 }
 0x755   : > { %v7892_v28 = vpop.eup %7891  ;;  %v6500_v1 = vmul.f32 0.5, %v6388_v43 }
 0x756   : > { %v7894_v12 = vpop.eup %7893  ;;  %v6395_v17 = vadd.f32 1.0, %v7892_v28  ;;  %6617 = vst [vmem:[%s13014_s30 + $0x2c0] sm:$0xff] %v6505_v33  ;;  %v6506_v4 = vmul.f32 0.5, %v6394_v38 }
 0x757   : > { %v6400_v36 = vadd.f32 1.0, %v7894_v12  ;;  %v7896_v19 = vpop.eup %7895  ;;  %6612 = vst.msk [vmem:[%s13014_s30 + $0x298] sm:$0xff] %vm859_vm0, %v6500_v1 }
 0x758   : > { %v6507_v63 = vmul.f32 0.5, %v6395_v17  ;;  %6618 = vst [vmem:[%s13014_s30 + $0x2c8] sm:$0xff] %v6506_v4  ;;  %v6401_v3 = vadd.f32 1.0, %v7896_v19 }
 0x759   : > { %v6512_v30 = vmul.f32 0.5, %v6400_v36  ;;  %v7898_v15 = vpop.eup %7897 }
 0x75a   : > { %6619 = vst.msk [vmem:[%s13014_s30 + $0x2d0] sm:$0xff] %vm859_vm0, %v6507_v63  ;;  %v7900_v26 = vpop.eup %7899  ;;  %v6513_v16 = vmul.f32 0.5, %v6401_v3  ;;  %v6407_v7 = vadd.f32 1.0, %v7898_v15 }
 0x75b   : > { %6624 = vst [vmem:[%s13014_s30 + $0x2f8] sm:$0xff] %v6512_v30  ;;  %v7902_v50 = vpop.eup %7901  ;;  %v6402_v54 = vadd.f32 1.0, %v7900_v26 }
 0x75c   : > { %v7904_v62 = vpop.eup %7903  ;;  %6625 = vst [vmem:[%s13014_s30 + $0x300] sm:$0xff] %v6513_v16  ;;  %v6519_v53 = vmul.f32 0.5, %v6407_v7  ;;  %v6408_v31 = vadd.f32 1.0, %v7902_v50 }
 0x75d   : > { %v7906_v27 = vpop.eup %7905  ;;  %v6514_v10 = vmul.f32 0.5, %v6402_v54  ;;  %v6414_v11 = vadd.f32 1.0, %v7904_v62 }
 0x75e   : > { %v7908_v25 = vpop.eup %7907  ;;  %6631 = vst [vmem:[%s13014_s30 + $0x330] sm:$0xff] %v6519_v53  ;;  %v6520_v61 = vmul.f32 0.5, %v6408_v31  ;;  %v6409_v57 = vadd.f32 1.0, %v7906_v27 }
 0x75f   : > { %6626 = vst.msk [vmem:[%s13014_s30 + $0x308] sm:$0xff] %vm859_vm0, %v6514_v10  ;;  %v6526_v23 = vmul.f32 0.5, %v6414_v11  ;;  %v6415_v35 = vadd.f32 1.0, %v7908_v25 }
 0x760   : > { %6632 = vst [vmem:[%s13014_s30 + $0x338] sm:$0xff] %v6520_v61  ;;  %v6521_v40 = vmul.f32 0.5, %v6409_v57 }
 0x761   : > { %6638 = vst [vmem:[%s13014_s30 + $0x368] sm:$0xff] %v6526_v23  ;;  %v6527_v13 = vmul.f32 0.5, %v6415_v35  ;;  %v7910_v2 = vpop.eup %7909 }
 0x762   : > { %6633 = vst.msk [vmem:[%s13014_s30 + $0x340] sm:$0xff] %vm859_vm0, %v6521_v40  ;;  %v6416_v49 = vadd.f32 1.0, %v7910_v2 }
 0x763   : > { %6639 = vst [vmem:[%s13014_s30 + $0x370] sm:$0xff] %v6527_v13 }
 0x764   : > { %v6528_v52 = vmul.f32 0.5, %v6416_v49 }
 0x766   : > { %6640 = vst.msk [vmem:[%s13014_s30 + $0x378] sm:$0xff] %vm859_vm0, %v6528_v52 }
 0x767 PF: > { %s26_s18 = sadd.s32 1, %s7917_s18  }
 0x768   : > { %p23_p4 = scmp.ge.s32.totalorder %s26_s18, 4  }
 0x76a   :  { %25 = sbr.rel (!%p23_p4) target bundleno = 1 (0x1), region = 121 }

</bundles_post_ra>
